<compile_context>
chip_gen: v6e
topology: v6e:2x2x1
jax: 0.10.0
libtpu: 0.0.40
codegen_flags: <defaults>
</compile_context>

<pallas_src>
import functools

import jax
import jax.numpy as jnp
from jax.experimental import pallas as pl
from jax.experimental.pallas import tpu as pltpu


LANE = 128
_VMEM_LIMIT = 32 * 1024 * 1024  # safe on v5e/v6e (128MiB) and v7x (64MiB)


def _round_up(v, m):
    return ((v + m - 1) // m) * m


def _pick_tm(m, cap=512):
    """Largest multiple-of-8 divisor of m (<= cap); fall back to a full-M block
    (full-dim blocks are exempt from the (8,128) rule) so no runtime pad/slice
    of M is ever needed."""
    best = 0
    t = 8
    while t <= min(m, cap):
        if m % t == 0:
            best = t
        t += 8
    return best if best else m


# ----------------------------------------------------------------------------
# Kernel A: gridded, pipelined matmul + bias + optional ReLU (bf16 MXU, f32 acc)
# ----------------------------------------------------------------------------
def _mm_kernel(x_ref, w_ref, b_ref, o_ref, acc_ref, *, relu):
    @pl.when(pl.program_id(2) == 0)
    def _():
        acc_ref[...] = jnp.zeros_like(acc_ref)

    acc_ref[...] += jnp.dot(x_ref[...], w_ref[...],
                            preferred_element_type=jnp.float32)

    @pl.when(pl.program_id(2) == pl.num_programs(2) - 1)
    def _():
        y = acc_ref[...] + b_ref[...]
        if relu:
            y = jnp.maximum(y, 0.0)
        o_ref[...] = y.astype(o_ref.dtype)


def matmul_bias_act(x, w, b, relu=False):
    """(M, K) @ (K, N) + b with bf16 MXU inputs / f32 accumulation.

    N is padded to a multiple of 128 (lane-dense output stores); model weights
    are stored pre-padded so this pad only triggers for activation RHS."""
    M, K = x.shape
    N = w.shape[1]
    npad = (-N) % LANE
    if npad:
        w = jnp.pad(w, ((0, 0), (0, npad)))
        b = jnp.pad(b, ((0, npad),))
    Np = N + npad

    tm = _pick_tm(M)
    tn = 256 if Np % 256 == 0 else 128
    tk = 512 if (K > 1024 and K % 512 == 0) else K  # all K in this model small

    xb = x.astype(jnp.bfloat16)
    wb = w.astype(jnp.bfloat16)
    b2 = b.reshape(1, Np).astype(jnp.float32)

    grid = (M // tm, Np // tn, K // tk)
    out = pl.pallas_call(
        functools.partial(_mm_kernel, relu=relu),
        grid=grid,
        in_specs=[
            pl.BlockSpec((tm, tk), lambda i, j, k: (i, k)),
            pl.BlockSpec((tk, tn), lambda i, j, k: (k, j)),
            pl.BlockSpec((1, tn), lambda i, j, k: (0, j)),
        ],
        out_specs=pl.BlockSpec((tm, tn), lambda i, j, k: (i, j)),
        out_shape=jax.ShapeDtypeStruct((M, Np), jnp.float32),
        scratch_shapes=[pltpu.VMEM((tm, tn), jnp.float32)],
        compiler_params=pltpu.CompilerParams(
            dimension_semantics=("parallel", "parallel", "arbitrary"),
            vmem_limit_bytes=_VMEM_LIMIT),
        cost_estimate=pl.CostEstimate(
            flops=2 * M * Np * K,
            transcendentals=0,
            bytes_accessed=(M * K + K * Np) * 2 + M * Np * 4),
    )(xb, wb, b2)
    if npad:
        out = out[:, :N]
    return out


# ----------------------------------------------------------------------------
# Kernel B: fused stride-1 3x3 conv (and conv chains) over a flat-haloed layout.
# Activation rows are (y*Wp + x) of a zero-haloed (Hp, Wp, C) map, with `pad`
# extra zero rows before/after so every one of the 9 taps is a *static* offset
# slice of the VMEM-resident ref feeding an accumulating MXU dot (no im2col,
# no rotates).  Output halo rows (y/x on the border) are re-zeroed by `mask`
# so chained convs stay correct.
# ----------------------------------------------------------------------------
def _tap_conv_ref(x_ref, w_ref, b_ref, mask, *, pad, wp, nt):
    cout = w_ref.shape[-1]
    acc = jnp.zeros((nt, cout), jnp.float32)
    t = 0
    for dy in (-1, 0, 1):
        for dx in (-1, 0, 1):
            start = pad + dy * wp + dx                    # static per-tap offset
            xs = x_ref[pl.ds(start, nt), :]
            acc = acc + jnp.dot(xs.astype(jnp.bfloat16), w_ref[t],
                                preferred_element_type=jnp.float32)
            t += 1
    return jnp.maximum(acc + b_ref[...], 0.0) * mask


def _conv3x3_kernel(x_ref, m_ref, w_ref, b_ref, o_ref, *, pad, wp, nt):
    o_ref[...] = _tap_conv_ref(x_ref, w_ref, b_ref, m_ref[...],
                               pad=pad, wp=wp, nt=nt)


def _mask_head_kernel(x_ref, m_ref, wf1_ref, bf1_ref, wf2_ref, bf2_ref,
                      wdc_ref, bdc_ref, wpr_ref, bpr_ref, o_ref, hbuf,
                      *, pad, wp, nt):
    mask = m_ref[...]
    h = _tap_conv_ref(x_ref, wf1_ref, bf1_ref, mask, pad=pad, wp=wp, nt=nt)
    # Stage the intermediate in a VMEM scratch with the same flat-halo layout
    # so the second conv reuses the static-slice tap reads. `pad` is a multiple
    # of 8 -> the interior store is sublane-aligned.
    hbuf[...] = jnp.zeros_like(hbuf)
    hbuf[pl.ds(pad, nt), :] = h
    h2 = _tap_conv_ref(hbuf, wf2_ref, bf2_ref, mask, pad=pad, wp=wp, nt=nt)
    # deconv2x2(stride 2) == per-position linear map to 4*C channels (+ ReLU)
    d = jnp.dot(h2.astype(jnp.bfloat16), wdc_ref[...],
                preferred_element_type=jnp.float32) + bdc_ref[...]
    d = jnp.maximum(d, 0.0)
    # 1x1 predictor applied block-diagonally to each 2x2 sub-position
    o_ref[...] = jnp.dot(d.astype(jnp.bfloat16), wpr_ref[...],
                         preferred_element_type=jnp.float32) + bpr_ref[...]


def _interior_mask(hp, wp):
    yy = jax.lax.broadcasted_iota(jnp.int32, (hp, wp), 0)
    xx = jax.lax.broadcasted_iota(jnp.int32, (hp, wp), 1)
    inside = (yy >= 1) & (yy <= hp - 2) & (xx >= 1) & (xx <= wp - 2)
    return inside.astype(jnp.float32).reshape(hp * wp, 1)


def _flat_haloed(x, pad):
    """(N, H, W, C) -> (N * ((H+2)*(W+2) + 2*pad), C): 2-D zero halo around
    every image, flattened row-major, plus `pad` extra zero rows per image."""
    n, h, w, c = x.shape
    xh = jnp.pad(x, ((0, 0), (1, 1), (1, 1), (0, 0)))
    xh = xh.reshape(n, (h + 2) * (w + 2), c)
    xh = jnp.pad(xh, ((0, 0), (pad, pad), (0, 0)))
    return xh.reshape(n * xh.shape[1], c)


def conv3x3_fused(x, w9, b2):
    """Fused stride-1 3x3 conv + ReLU. x: (1, H, W, Cin) -> (1, H, W, Cout)."""
    n, h, w, cin = x.shape
    assert n == 1  # single-image forward (non-aligned nt is full-block only for n==1)
    hp, wp = h + 2, w + 2
    nt = hp * wp
    pad = _round_up(wp + 1, 8)
    ntp = nt + 2 * pad
    xh = _flat_haloed(x.astype(jnp.float32), pad)
    mask = _interior_mask(hp, wp)
    cout = w9.shape[-1]
    out = pl.pallas_call(
        functools.partial(_conv3x3_kernel, pad=pad, wp=wp, nt=nt),
        grid=(n,),
        in_specs=[
            pl.BlockSpec((ntp, cin), lambda i: (i, 0)),
            pl.BlockSpec((nt, 1), lambda i: (0, 0)),
            pl.BlockSpec(w9.shape, lambda i: (0, 0, 0)),
            pl.BlockSpec(b2.shape, lambda i: (0, 0)),
        ],
        out_specs=pl.BlockSpec((nt, cout), lambda i: (i, 0)),
        out_shape=jax.ShapeDtypeStruct((n * nt, cout), jnp.float32),
        compiler_params=pltpu.CompilerParams(
            dimension_semantics=("parallel",),
            vmem_limit_bytes=_VMEM_LIMIT),
    )(xh, mask, w9, b2)
    return out.reshape(n, hp, wp, cout)[:, 1:h + 1, 1:w + 1, :]


# ----------------------------------------------------------------------------
# ROIAlign: gather-free separable bilinear interpolation (two dense matmuls).
# ----------------------------------------------------------------------------
def _bilinear_weights(lo, hi, s, length):
    binw = (hi - lo) / s
    centers = lo[:, None] + (jnp.arange(s, dtype=jnp.float32) + 0.5) * binw[:, None] - 0.5
    centers = jnp.clip(centers, 0.0, length - 1.0)
    pos = jnp.arange(length, dtype=jnp.float32)
    return jnp.maximum(0.0, 1.0 - jnp.abs(centers[:, :, None] - pos[None, None, :]))


# ----------------------------------------------------------------------------
# FeaturePredictor (synthetic small backbone + ROI heads)
# ----------------------------------------------------------------------------
class FeaturePredictorPallas:
    def __init__(self, key, channels=32, num_classes=4):
        C = channels
        ncls = num_classes
        self.C = C
        self.num_classes = ncls
        self.Cp = _round_up(C, LANE)            # lane-dense channel width
        self.Dp = _round_up(4 * C, LANE)        # deconv output width
        self.Pp = _round_up(4 * ncls, LANE)     # predictor output width

        # detectron2 default pixel normalization constants (BGR means/stds)
        self.pixel_mean = jnp.array([103.530, 116.280, 123.675], jnp.float32)
        self.pixel_std = jnp.array([57.375, 57.120, 58.395], jnp.float32)

        def wini(k, shape, scale=0.05):
            return scale * jax.random.normal(k, shape, jnp.float32)

        ks = jax.random.split(key, 6)
        # TODO(synk): original loads a detectron2 checkpoint; weights are synthetic here.
        w_stem = wini(ks[0], (3, 3, 3, C))
        w_bb2 = wini(ks[1], (3, 3, C, C))
        w_f1 = wini(ks[2], (3, 3, C, C))
        w_f2 = wini(ks[3], (3, 3, C, C))
        w_dc = wini(ks[4], (C, 2, 2, C))
        w_pred = wini(ks[5], (C, ncls))
        b_stem = b_bb2 = b_f1 = b_f2 = b_dc = jnp.zeros((C,), jnp.float32)
        b_pred = jnp.zeros((ncls,), jnp.float32)

        Cp, Dp, Pp = self.Cp, self.Dp, self.Pp

        def pad_cols(a, n):
            return jnp.pad(a, ((0, 0),) * (a.ndim - 1) + ((0, n - a.shape[-1]),))

        # stem: fold 1/pixel_std into the weights (mean is subtracted in-line)
        w_stem_f = w_stem * (1.0 / self.pixel_std).reshape(1, 1, 3, 1)
        self.w_stem = pad_cols(w_stem_f.reshape(9 * 3, C), Cp).astype(jnp.bfloat16)
        self.b_stem = jnp.pad(b_stem, (0, Cp - C))

        # stride-1 3x3 convs: (9, Cin, Cout_padded) tap-major weights
        self.w_bb2 = pad_cols(w_bb2.reshape(9, C, C), Cp).astype(jnp.bfloat16)
        self.b_bb2 = jnp.pad(b_bb2, (0, Cp - C)).reshape(1, Cp)
        self.w_f1 = pad_cols(w_f1.reshape(9, C, C), Cp).astype(jnp.bfloat16)
        self.b_f1 = jnp.pad(b_f1, (0, Cp - C)).reshape(1, Cp)
        # f2 consumes the VMEM-resident 128-wide (zero-padded) f1 output
        self.w_f2 = jnp.pad(w_f2.reshape(9, C, C),
                            ((0, 0), (0, Cp - C), (0, Cp - C))).astype(jnp.bfloat16)
        self.b_f2 = jnp.pad(b_f2, (0, Cp - C)).reshape(1, Cp)

        # deconv2x2(s2) as per-position (Cp -> 4*C padded) linear map
        wdc2 = w_dc.reshape(C, 4 * C)
        self.w_dc = jnp.pad(wdc2, ((0, Cp - C), (0, Dp - 4 * C))).astype(jnp.bfloat16)
        self.b_dc = jnp.pad(jnp.tile(b_dc, 4), (0, Dp - 4 * C)).reshape(1, Dp)

        # predictor (1x1) applied block-diagonally to the 4 sub-positions
        wbd = jnp.zeros((Dp, Pp), jnp.float32)
        for g in range(4):
            wbd = wbd.at[g * C:(g + 1) * C, g * ncls:(g + 1) * ncls].set(w_pred)
        self.w_pr = wbd.astype(jnp.bfloat16)
        self.b_pr = jnp.pad(jnp.tile(b_pred, 4), (0, Pp - 4 * ncls)).reshape(1, Pp)

        self.spatial_scale = 0.5   # p2 produced at stride 2
        self.box_pool_size = 7
        self.mask_pool_size = 14

    # ----- backbone ---------------------------------------------------------
    def backbone(self, original_image):
        # TODO(synk): detectron2 preprocess_image also resizes / pads to size
        # divisibility; only the mean/std normalization is kept here.
        x = (original_image.astype(jnp.float32) - self.pixel_mean)[None]
        n, h, w, cin = x.shape
        # stride-2 stem via im2col + gridded matmul (Cin=3, im2col is tiny)
        xp = jnp.pad(x, ((0, 0), (1, 1), (1, 1), (0, 0)))
        ho, wo = (h - 1) // 2 + 1, (w - 1) // 2 + 1
        cols = []
        for dy in range(3):
            for dx in range(3):
                cols.append(xp[:, dy:dy + 2 * ho:2, dx:dx + 2 * wo:2, :])
        patches = jnp.concatenate(cols, axis=-1).reshape(n * ho * wo, 9 * cin)
        stem = matmul_bias_act(patches, self.w_stem, self.b_stem, relu=True)
        stem = stem.reshape(n, ho, wo, self.Cp)[..., :self.C]
        # second backbone conv: fused-tap kernel, activation stays in VMEM
        p2 = conv3x3_fused(stem, self.w_bb2, self.b_bb2)[..., :self.C]
        return p2[0]                                          # (H/2, W/2, C)

    # ----- ROIAlign (gather-free, separable bilinear) -----------------------
    def roi_align(self, feat, boxes, s):
        h, w, c = feat.shape
        r = boxes.shape[0]
        b = boxes * self.spatial_scale
        wy = _bilinear_weights(b[:, 1], b[:, 3], s, h)        # (R, S, H)
        wx = _bilinear_weights(b[:, 0], b[:, 2], s, w)        # (R, S, W)
        # stage 1 (row interpolation) on the MXU via the gridded Pallas matmul
        t = matmul_bias_act(wy.reshape(r * s, h), feat.reshape(h, w * c),
                            jnp.zeros((w * c,), jnp.float32), relu=False)
        t = t.reshape(r, s, w, c)
        # stage 2 (column interpolation) as a batched contraction.
        # TODO(synk): a fully in-Pallas per-box version needs an in-kernel
        # (S,W,C) relayout or a manual DMA gather; left to XLA here.
        return jnp.einsum('rjx,rixc->rijc', wx, t)            # (R, S, S, C)

    # ----- mask head (single fused pallas_call, grid over boxes) ------------
    def mask_head(self, pooled):
        r, s, _, c = pooled.shape
        sp = s + 2
        nt = sp * sp
        pad = _round_up(sp + 1, 8)
        ntp = nt + 2 * pad
        xh = _flat_haloed(pooled.astype(jnp.float32), pad)
        mask = _interior_mask(sp, sp)
        out = pl.pallas_call(
            functools.partial(_mask_head_kernel, pad=pad, wp=sp, nt=nt),
            grid=(r,),
            in_specs=[
                pl.BlockSpec((ntp, c), lambda i: (i, 0)),
                pl.BlockSpec((nt, 1), lambda i: (0, 0)),
                pl.BlockSpec(self.w_f1.shape, lambda i: (0, 0, 0)),
                pl.BlockSpec(self.b_f1.shape, lambda i: (0, 0)),
                pl.BlockSpec(self.w_f2.shape, lambda i: (0, 0, 0)),
                pl.BlockSpec(self.b_f2.shape, lambda i: (0, 0)),
                pl.BlockSpec(self.w_dc.shape, lambda i: (0, 0)),
                pl.BlockSpec(self.b_dc.shape, lambda i: (0, 0)),
                pl.BlockSpec(self.w_pr.shape, lambda i: (0, 0)),
                pl.BlockSpec(self.b_pr.shape, lambda i: (0, 0)),
            ],
            out_specs=pl.BlockSpec((nt, self.Pp), lambda i: (i, 0)),
            out_shape=jax.ShapeDtypeStruct((r * nt, self.Pp), jnp.float32),
            scratch_shapes=[pltpu.VMEM((ntp, self.Cp), jnp.float32)],
            compiler_params=pltpu.CompilerParams(
                dimension_semantics=("parallel",),
                vmem_limit_bytes=_VMEM_LIMIT),
        )(xh, mask, self.w_f1, self.b_f1, self.w_f2, self.b_f2,
          self.w_dc, self.b_dc, self.w_pr, self.b_pr)
        ncls = self.num_classes
        out = out.reshape(r, sp, sp, self.Pp)[:, 1:s + 1, 1:s + 1, :4 * ncls]
        # fold the deconv 2x2 interleave into the single final NCHW transpose
        out = out.reshape(r, s, s, 2, 2, ncls)
        out = out.transpose(0, 5, 1, 3, 2, 4).reshape(r, ncls, 2 * s, 2 * s)
        return out                                            # (R, K, 2S, 2S)

    # ----- forward -----------------------------------------------------------
    def forward(self, original_image, boxes):
        p2 = self.backbone(original_image)                    # (H/2, W/2, C)
        box_feats = self.roi_align(p2, boxes, self.box_pool_size)
        mask_feats = self.roi_align(p2, boxes, self.mask_pool_size)
        pred_masks = self.mask_head(mask_feats)               # (R, K, 28, 28)
        box_features = box_feats.transpose(0, 3, 1, 2)        # (R, C, 7, 7)
        return box_features, pred_masks


# ----------------------------------------------------------------------------
if __name__ == "__main__":
    key = jax.random.PRNGKey(0)
    k_img, k_model = jax.random.split(key)

    H = W = 32
    original_image = jax.random.uniform(k_img, (H, W, 3), jnp.float32,
                                        minval=0.0, maxval=255.0)
    boxes = jnp.array([[2.0, 3.0, 20.0, 25.0],
                       [5.0, 5.0, 30.0, 30.0],
                       [0.0, 0.0, 15.0, 12.0]], jnp.float32)

    model = FeaturePredictorPallas(k_model, channels=32, num_classes=4)
    fwd = jax.jit(model.forward)
    box_features, pred_masks = fwd(original_image, boxes)
    jax.block_until_ready((box_features, pred_masks))

    assert box_features.shape == (3, 32, 7, 7), box_features.shape
    assert pred_masks.shape == (3, 4, 28, 28), pred_masks.shape
    assert jnp.all(jnp.isfinite(box_features)) and jnp.all(jnp.isfinite(pred_masks))
    print("KERNEL_OK")
</pallas_src>

<mosaic_0001>
module attributes {stable_mosaic.version = 11 : i64} {
  func.func @_mm_kernel(%arg0: i32, %arg1: i32, %arg2: i32, %arg3: memref<256x27xbf16, #tpu.memory_space<vmem>>, %arg4: memref<27x128xbf16, #tpu.memory_space<vmem>>, %arg5: memref<1x128xf32, #tpu.memory_space<vmem>>, %arg6: memref<256x128xf32, #tpu.memory_space<vmem>>, %arg7: memref<256x128xf32, #tpu.memory_space<vmem>>) attributes {dimension_semantics = [#tpu.dimension_semantics<parallel>, #tpu.dimension_semantics<parallel>, #tpu.dimension_semantics<arbitrary>], iteration_bounds = array<i64: 1, 1, 1>, scalar_prefetch = 0 : i64, scratch_operands = 1 : i64, tpu.core_type = #tpu.core_type<tc>, window_params = [{transform_indices = @transform_0, window_bounds = array<i64: 256, 27>}, {transform_indices = @transform_1, window_bounds = array<i64: 27, 128>}, {transform_indices = @transform_2, window_bounds = array<i64: 1, 128>}, {transform_indices = @transform_3, window_bounds = array<i64: 256, 128>}]} {
    %c0_i32 = arith.constant 0 : i32
    %0 = arith.cmpi eq, %arg2, %c0_i32 : i32
    %1 = arith.extui %0 : i1 to i32
    %c0_i32_0 = arith.constant 0 : i32
    %2 = arith.cmpi ne, %1, %c0_i32_0 : i32
    scf.if %2 {
      %cst_10 = arith.constant 0.000000e+00 : f32
      %12 = vector.broadcast %cst_10 : f32 to vector<256x128xf32>
      %c0_11 = arith.constant 0 : index
      %c0_12 = arith.constant 0 : index
      %13 = vector.load %arg7[%c0_11, %c0_12] : memref<256x128xf32, #tpu.memory_space<vmem>>, vector<256x128xf32>
      tpu.vector_store %arg7[%c0_11, %c0_12], %12 {strides = array<i32>} : memref<256x128xf32, #tpu.memory_space<vmem>>, vector<256x128xf32>,
    } else {
    }
    %c0 = arith.constant 0 : index
    %c0_1 = arith.constant 0 : index
    %3 = vector.load %arg7[%c0, %c0_1] : memref<256x128xf32, #tpu.memory_space<vmem>>, vector<256x128xf32>
    %c0_2 = arith.constant 0 : index
    %c0_3 = arith.constant 0 : index
    %4 = vector.load %arg3[%c0_2, %c0_3] : memref<256x27xbf16, #tpu.memory_space<vmem>>, vector<256x27xbf16>
    %c0_4 = arith.constant 0 : index
    %c0_5 = arith.constant 0 : index
    %5 = vector.load %arg4[%c0_4, %c0_5] : memref<27x128xbf16, #tpu.memory_space<vmem>>, vector<27x128xbf16>
    %cst = arith.constant dense<0.000000e+00> : vector<256x128xf32>
    %6 = tpu.matmul %4, %5, %cst {dimension_numbers = #tpu.dot_dimension_numbers<[1], [0], [0], [1], [0, 0, 1, 1], [], []>} : vector<256x27xbf16>, vector<27x128xbf16>, vector<256x128xf32> -> vector<256x128xf32>
    %7 = arith.addf %3, %6 : vector<256x128xf32>
    %c0_6 = arith.constant 0 : index
    %c0_7 = arith.constant 0 : index
    %8 = vector.load %arg7[%c0_6, %c0_7] : memref<256x128xf32, #tpu.memory_space<vmem>>, vector<256x128xf32>
    tpu.vector_store %arg7[%c0_6, %c0_7], %7 {strides = array<i32>} : memref<256x128xf32, #tpu.memory_space<vmem>>, vector<256x128xf32>,
    %c0_i32_8 = arith.constant 0 : i32
    %9 = arith.cmpi eq, %arg2, %c0_i32_8 : i32
    %10 = arith.extui %9 : i1 to i32
    %c0_i32_9 = arith.constant 0 : i32
    %11 = arith.cmpi ne, %10, %c0_i32_9 : i32
    scf.if %11 {
      %c0_10 = arith.constant 0 : index
      %c0_11 = arith.constant 0 : index
      %12 = vector.load %arg7[%c0_10, %c0_11] : memref<256x128xf32, #tpu.memory_space<vmem>>, vector<256x128xf32>
      %c0_12 = arith.constant 0 : index
      %c0_13 = arith.constant 0 : index
      %13 = vector.load %arg5[%c0_12, %c0_13] : memref<1x128xf32, #tpu.memory_space<vmem>>, vector<1x128xf32>
      %14 = vector.broadcast %13 : vector<1x128xf32> to vector<256x128xf32>
      %15 = arith.addf %12, %14 : vector<256x128xf32>
      %cst_14 = arith.constant 0.000000e+00 : f32
      %16 = vector.broadcast %cst_14 : f32 to vector<256x128xf32>
      %17 = arith.maximumf %15, %16 : vector<256x128xf32>
      %c0_15 = arith.constant 0 : index
      %c0_16 = arith.constant 0 : index
      %18 = vector.load %arg6[%c0_15, %c0_16] : memref<256x128xf32, #tpu.memory_space<vmem>>, vector<256x128xf32>
      tpu.vector_store %arg6[%c0_15, %c0_16], %17 {strides = array<i32>} : memref<256x128xf32, #tpu.memory_space<vmem>>, vector<256x128xf32>,
    } else {
    }
    return
  }
  func.func @transform_0(%arg0: i32, %arg1: i32, %arg2: i32) -> (i32, i32) {
    %c0_i32 = arith.constant 0 : i32
    return %arg0, %arg2 : i32, i32
  }
  func.func @transform_1(%arg0: i32, %arg1: i32, %arg2: i32) -> (i32, i32) {
    %c0_i32 = arith.constant 0 : i32
    return %arg2, %arg1 : i32, i32
  }
  func.func @transform_2(%arg0: i32, %arg1: i32, %arg2: i32) -> (i32, i32) {
    %c0_i32 = arith.constant 0 : i32
    %c0_i32_0 = arith.constant 0 : i32
    return %c0_i32, %arg1 : i32, i32
  }
  func.func @transform_3(%arg0: i32, %arg1: i32, %arg2: i32) -> (i32, i32) {
    %c0_i32 = arith.constant 0 : i32
    return %arg0, %arg1 : i32, i32
  }
}

module attributes {stable_mosaic.version = 11 : i64} {
  func.func @_conv3x3_kernel(%arg0: i32, %arg1: memref<372x32xf32, #tpu.memory_space<vmem>>, %arg2: memref<324x1xf32, #tpu.memory_space<vmem>>, %arg3: memref<9x32x128xbf16, #tpu.memory_space<vmem>>, %arg4: memref<1x128xf32, #tpu.memory_space<vmem>>, %arg5: memref<324x128xf32, #tpu.memory_space<vmem>>) attributes {dimension_semantics = [#tpu.dimension_semantics<parallel>], iteration_bounds = array<i64: 1>, scalar_prefetch = 0 : i64, scratch_operands = 0 : i64, tpu.core_type = #tpu.core_type<tc>, window_params = [{transform_indices = @transform_0, window_bounds = array<i64: 372, 32>}, {pipeline_mode = #tpu.pipeline_mode<synchronous>, transform_indices = @transform_1, window_bounds = array<i64: 324, 1>}, {pipeline_mode = #tpu.pipeline_mode<synchronous>, transform_indices = @transform_2, window_bounds = array<i64: 9, 32, 128>}, {pipeline_mode = #tpu.pipeline_mode<synchronous>, transform_indices = @transform_3, window_bounds = array<i64: 1, 128>}, {transform_indices = @transform_4, window_bounds = array<i64: 324, 128>}]} {
    %c0 = arith.constant 0 : index
    %c0_0 = arith.constant 0 : index
    %0 = vector.load %arg2[%c0, %c0_0] : memref<324x1xf32, #tpu.memory_space<vmem>>, vector<324x1xf32>
    %cst = arith.constant 0.000000e+00 : f32
    %1 = vector.broadcast %cst : f32 to vector<324x128xf32>
    %c5 = arith.constant 5 : index
    %c0_1 = arith.constant 0 : index
    %2 = vector.load %arg1[%c5, %c0_1] : memref<372x32xf32, #tpu.memory_space<vmem>>, vector<324x32xf32>
    %3 = arith.truncf %2 : vector<324x32xf32> to vector<324x32xbf16>
    %c0_2 = arith.constant 0 : index
    %c0_3 = arith.constant 0 : index
    %c0_4 = arith.constant 0 : index
    %4 = vector.load %arg3[%c0_2, %c0_3, %c0_4] : memref<9x32x128xbf16, #tpu.memory_space<vmem>>, vector<1x32x128xbf16>
    %5 = vector.shape_cast %4 : vector<1x32x128xbf16> to vector<32x128xbf16>
    %cst_5 = arith.constant dense<0.000000e+00> : vector<324x128xf32>
    %6 = tpu.matmul %3, %5, %cst_5 {dimension_numbers = #tpu.dot_dimension_numbers<[1], [0], [0], [1], [0, 0, 1, 1], [], []>} : vector<324x32xbf16>, vector<32x128xbf16>, vector<324x128xf32> -> vector<324x128xf32>
    %7 = arith.addf %1, %6 : vector<324x128xf32>
    %c6 = arith.constant 6 : index
    %c0_6 = arith.constant 0 : index
    %8 = vector.load %arg1[%c6, %c0_6] : memref<372x32xf32, #tpu.memory_space<vmem>>, vector<324x32xf32>
    %9 = arith.truncf %8 : vector<324x32xf32> to vector<324x32xbf16>
    %c1 = arith.constant 1 : index
    %c0_7 = arith.constant 0 : index
    %c0_8 = arith.constant 0 : index
    %10 = vector.load %arg3[%c1, %c0_7, %c0_8] : memref<9x32x128xbf16, #tpu.memory_space<vmem>>, vector<1x32x128xbf16>
    %11 = vector.shape_cast %10 : vector<1x32x128xbf16> to vector<32x128xbf16>
    %cst_9 = arith.constant dense<0.000000e+00> : vector<324x128xf32>
    %12 = tpu.matmul %9, %11, %cst_9 {dimension_numbers = #tpu.dot_dimension_numbers<[1], [0], [0], [1], [0, 0, 1, 1], [], []>} : vector<324x32xbf16>, vector<32x128xbf16>, vector<324x128xf32> -> vector<324x128xf32>
    %13 = arith.addf %7, %12 : vector<324x128xf32>
    %c7 = arith.constant 7 : index
    %c0_10 = arith.constant 0 : index
    %14 = vector.load %arg1[%c7, %c0_10] : memref<372x32xf32, #tpu.memory_space<vmem>>, vector<324x32xf32>
    %15 = arith.truncf %14 : vector<324x32xf32> to vector<324x32xbf16>
    %c2 = arith.constant 2 : index
    %c0_11 = arith.constant 0 : index
    %c0_12 = arith.constant 0 : index
    %16 = vector.load %arg3[%c2, %c0_11, %c0_12] : memref<9x32x128xbf16, #tpu.memory_space<vmem>>, vector<1x32x128xbf16>
    %17 = vector.shape_cast %16 : vector<1x32x128xbf16> to vector<32x128xbf16>
    %cst_13 = arith.constant dense<0.000000e+00> : vector<324x128xf32>
    %18 = tpu.matmul %15, %17, %cst_13 {dimension_numbers = #tpu.dot_dimension_numbers<[1], [0], [0], [1], [0, 0, 1, 1], [], []>} : vector<324x32xbf16>, vector<32x128xbf16>, vector<324x128xf32> -> vector<324x128xf32>
    %19 = arith.addf %13, %18 : vector<324x128xf32>
    %c23 = arith.constant 23 : index
    %c0_14 = arith.constant 0 : index
    %20 = vector.load %arg1[%c23, %c0_14] : memref<372x32xf32, #tpu.memory_space<vmem>>, vector<324x32xf32>
    %21 = arith.truncf %20 : vector<324x32xf32> to vector<324x32xbf16>
    %c3 = arith.constant 3 : index
    %c0_15 = arith.constant 0 : index
    %c0_16 = arith.constant 0 : index
    %22 = vector.load %arg3[%c3, %c0_15, %c0_16] : memref<9x32x128xbf16, #tpu.memory_space<vmem>>, vector<1x32x128xbf16>
    %23 = vector.shape_cast %22 : vector<1x32x128xbf16> to vector<32x128xbf16>
    %cst_17 = arith.constant dense<0.000000e+00> : vector<324x128xf32>
    %24 = tpu.matmul %21, %23, %cst_17 {dimension_numbers = #tpu.dot_dimension_numbers<[1], [0], [0], [1], [0, 0, 1, 1], [], []>} : vector<324x32xbf16>, vector<32x128xbf16>, vector<324x128xf32> -> vector<324x128xf32>
    %25 = arith.addf %19, %24 : vector<324x128xf32>
    %c24 = arith.constant 24 : index
    %c0_18 = arith.constant 0 : index
    %26 = vector.load %arg1[%c24, %c0_18] : memref<372x32xf32, #tpu.memory_space<vmem>>, vector<324x32xf32>
    %27 = arith.truncf %26 : vector<324x32xf32> to vector<324x32xbf16>
    %c4 = arith.constant 4 : index
    %c0_19 = arith.constant 0 : index
    %c0_20 = arith.constant 0 : index
    %28 = vector.load %arg3[%c4, %c0_19, %c0_20] : memref<9x32x128xbf16, #tpu.memory_space<vmem>>, vector<1x32x128xbf16>
    %29 = vector.shape_cast %28 : vector<1x32x128xbf16> to vector<32x128xbf16>
    %cst_21 = arith.constant dense<0.000000e+00> : vector<324x128xf32>
    %30 = tpu.matmul %27, %29, %cst_21 {dimension_numbers = #tpu.dot_dimension_numbers<[1], [0], [0], [1], [0, 0, 1, 1], [], []>} : vector<324x32xbf16>, vector<32x128xbf16>, vector<324x128xf32> -> vector<324x128xf32>
    %31 = arith.addf %25, %30 : vector<324x128xf32>
    %c25 = arith.constant 25 : index
    %c0_22 = arith.constant 0 : index
    %32 = vector.load %arg1[%c25, %c0_22] : memref<372x32xf32, #tpu.memory_space<vmem>>, vector<324x32xf32>
    %33 = arith.truncf %32 : vector<324x32xf32> to vector<324x32xbf16>
    %c5_23 = arith.constant 5 : index
    %c0_24 = arith.constant 0 : index
    %c0_25 = arith.constant 0 : index
    %34 = vector.load %arg3[%c5_23, %c0_24, %c0_25] : memref<9x32x128xbf16, #tpu.memory_space<vmem>>, vector<1x32x128xbf16>
    %35 = vector.shape_cast %34 : vector<1x32x128xbf16> to vector<32x128xbf16>
    %cst_26 = arith.constant dense<0.000000e+00> : vector<324x128xf32>
    %36 = tpu.matmul %33, %35, %cst_26 {dimension_numbers = #tpu.dot_dimension_numbers<[1], [0], [0], [1], [0, 0, 1, 1], [], []>} : vector<324x32xbf16>, vector<32x128xbf16>, vector<324x128xf32> -> vector<324x128xf32>
    %37 = arith.addf %31, %36 : vector<324x128xf32>
    %c41 = arith.constant 41 : index
    %c0_27 = arith.constant 0 : index
    %38 = vector.load %arg1[%c41, %c0_27] : memref<372x32xf32, #tpu.memory_space<vmem>>, vector<324x32xf32>
    %39 = arith.truncf %38 : vector<324x32xf32> to vector<324x32xbf16>
    %c6_28 = arith.constant 6 : index
    %c0_29 = arith.constant 0 : index
    %c0_30 = arith.constant 0 : index
    %40 = vector.load %arg3[%c6_28, %c0_29, %c0_30] : memref<9x32x128xbf16, #tpu.memory_space<vmem>>, vector<1x32x128xbf16>
    %41 = vector.shape_cast %40 : vector<1x32x128xbf16> to vector<32x128xbf16>
    %cst_31 = arith.constant dense<0.000000e+00> : vector<324x128xf32>
    %42 = tpu.matmul %39, %41, %cst_31 {dimension_numbers = #tpu.dot_dimension_numbers<[1], [0], [0], [1], [0, 0, 1, 1], [], []>} : vector<324x32xbf16>, vector<32x128xbf16>, vector<324x128xf32> -> vector<324x128xf32>
    %43 = arith.addf %37, %42 : vector<324x128xf32>
    %c42 = arith.constant 42 : index
    %c0_32 = arith.constant 0 : index
    %44 = vector.load %arg1[%c42, %c0_32] : memref<372x32xf32, #tpu.memory_space<vmem>>, vector<324x32xf32>
    %45 = arith.truncf %44 : vector<324x32xf32> to vector<324x32xbf16>
    %c7_33 = arith.constant 7 : index
    %c0_34 = arith.constant 0 : index
    %c0_35 = arith.constant 0 : index
    %46 = vector.load %arg3[%c7_33, %c0_34, %c0_35] : memref<9x32x128xbf16, #tpu.memory_space<vmem>>, vector<1x32x128xbf16>
    %47 = vector.shape_cast %46 : vector<1x32x128xbf16> to vector<32x128xbf16>
    %cst_36 = arith.constant dense<0.000000e+00> : vector<324x128xf32>
    %48 = tpu.matmul %45, %47, %cst_36 {dimension_numbers = #tpu.dot_dimension_numbers<[1], [0], [0], [1], [0, 0, 1, 1], [], []>} : vector<324x32xbf16>, vector<32x128xbf16>, vector<324x128xf32> -> vector<324x128xf32>
    %49 = arith.addf %43, %48 : vector<324x128xf32>
    %c43 = arith.constant 43 : index
    %c0_37 = arith.constant 0 : index
    %50 = vector.load %arg1[%c43, %c0_37] : memref<372x32xf32, #tpu.memory_space<vmem>>, vector<324x32xf32>
    %51 = arith.truncf %50 : vector<324x32xf32> to vector<324x32xbf16>
    %c8 = arith.constant 8 : index
    %c0_38 = arith.constant 0 : index
    %c0_39 = arith.constant 0 : index
    %52 = vector.load %arg3[%c8, %c0_38, %c0_39] : memref<9x32x128xbf16, #tpu.memory_space<vmem>>, vector<1x32x128xbf16>
    %53 = vector.shape_cast %52 : vector<1x32x128xbf16> to vector<32x128xbf16>
    %cst_40 = arith.constant dense<0.000000e+00> : vector<324x128xf32>
    %54 = tpu.matmul %51, %53, %cst_40 {dimension_numbers = #tpu.dot_dimension_numbers<[1], [0], [0], [1], [0, 0, 1, 1], [], []>} : vector<324x32xbf16>, vector<32x128xbf16>, vector<324x128xf32> -> vector<324x128xf32>
    %55 = arith.addf %49, %54 : vector<324x128xf32>
    %c0_41 = arith.constant 0 : index
    %c0_42 = arith.constant 0 : index
    %56 = vector.load %arg4[%c0_41, %c0_42] : memref<1x128xf32, #tpu.memory_space<vmem>>, vector<1x128xf32>
    %57 = vector.broadcast %56 : vector<1x128xf32> to vector<324x128xf32>
    %58 = arith.addf %55, %57 : vector<324x128xf32>
    %cst_43 = arith.constant 0.000000e+00 : f32
    %59 = vector.broadcast %cst_43 : f32 to vector<324x128xf32>
    %60 = arith.maximumf %58, %59 : vector<324x128xf32>
    %61 = vector.broadcast %0 : vector<324x1xf32> to vector<324x128xf32>
    %62 = arith.mulf %60, %61 : vector<324x128xf32>
    %c0_44 = arith.constant 0 : index
    %c0_45 = arith.constant 0 : index
    %63 = vector.load %arg5[%c0_44, %c0_45] : memref<324x128xf32, #tpu.memory_space<vmem>>, vector<324x128xf32>
    tpu.vector_store %arg5[%c0_44, %c0_45], %62 {strides = array<i32>} : memref<324x128xf32, #tpu.memory_space<vmem>>, vector<324x128xf32>,
    return
  }
  func.func @transform_0(%arg0: i32) -> (i32, i32) {
    %c0_i32 = arith.constant 0 : i32
    %c0_i32_0 = arith.constant 0 : i32
    return %arg0, %c0_i32 : i32, i32
  }
  func.func @transform_1(%arg0: i32) -> (i32, i32) {
    %c0_i32 = arith.constant 0 : i32
    %c0_i32_0 = arith.constant 0 : i32
    %c0_i32_1 = arith.constant 0 : i32
    return %c0_i32, %c0_i32_0 : i32, i32
  }
  func.func @transform_2(%arg0: i32) -> (i32, i32, i32) {
    %c0_i32 = arith.constant 0 : i32
    %c0_i32_0 = arith.constant 0 : i32
    %c0_i32_1 = arith.constant 0 : i32
    %c0_i32_2 = arith.constant 0 : i32
    return %c0_i32, %c0_i32_0, %c0_i32_1 : i32, i32, i32
  }
  func.func @transform_3(%arg0: i32) -> (i32, i32) {
    %c0_i32 = arith.constant 0 : i32
    %c0_i32_0 = arith.constant 0 : i32
    %c0_i32_1 = arith.constant 0 : i32
    return %c0_i32, %c0_i32_0 : i32, i32
  }
  func.func @transform_4(%arg0: i32) -> (i32, i32) {
    %c0_i32 = arith.constant 0 : i32
    %c0_i32_0 = arith.constant 0 : i32
    return %arg0, %c0_i32 : i32, i32
  }
}

module attributes {stable_mosaic.version = 11 : i64} {
  func.func @_mm_kernel(%arg0: i32, %arg1: i32, %arg2: i32, %arg3: memref<42x16xbf16, #tpu.memory_space<vmem>>, %arg4: memref<16x256xbf16, #tpu.memory_space<vmem>>, %arg5: memref<1x256xf32, #tpu.memory_space<vmem>>, %arg6: memref<42x256xf32, #tpu.memory_space<vmem>>, %arg7: memref<42x256xf32, #tpu.memory_space<vmem>>) attributes {dimension_semantics = [#tpu.dimension_semantics<parallel>, #tpu.dimension_semantics<parallel>, #tpu.dimension_semantics<arbitrary>], iteration_bounds = array<i64: 1, 2, 1>, scalar_prefetch = 0 : i64, scratch_operands = 1 : i64, tpu.core_type = #tpu.core_type<tc>, window_params = [{transform_indices = @transform_0, window_bounds = array<i64: 42, 16>}, {transform_indices = @transform_1, window_bounds = array<i64: 16, 256>}, {transform_indices = @transform_2, window_bounds = array<i64: 1, 256>}, {transform_indices = @transform_3, window_bounds = array<i64: 42, 256>}]} {
    %c0_i32 = arith.constant 0 : i32
    %0 = arith.cmpi eq, %arg2, %c0_i32 : i32
    %1 = arith.extui %0 : i1 to i32
    %c0_i32_0 = arith.constant 0 : i32
    %2 = arith.cmpi ne, %1, %c0_i32_0 : i32
    scf.if %2 {
      %cst_10 = arith.constant 0.000000e+00 : f32
      %12 = vector.broadcast %cst_10 : f32 to vector<42x256xf32>
      %c0_11 = arith.constant 0 : index
      %c0_12 = arith.constant 0 : index
      %13 = vector.load %arg7[%c0_11, %c0_12] : memref<42x256xf32, #tpu.memory_space<vmem>>, vector<42x256xf32>
      tpu.vector_store %arg7[%c0_11, %c0_12], %12 {strides = array<i32>} : memref<42x256xf32, #tpu.memory_space<vmem>>, vector<42x256xf32>,
    } else {
    }
    %c0 = arith.constant 0 : index
    %c0_1 = arith.constant 0 : index
    %3 = vector.load %arg7[%c0, %c0_1] : memref<42x256xf32, #tpu.memory_space<vmem>>, vector<42x256xf32>
    %c0_2 = arith.constant 0 : index
    %c0_3 = arith.constant 0 : index
    %4 = vector.load %arg3[%c0_2, %c0_3] : memref<42x16xbf16, #tpu.memory_space<vmem>>, vector<42x16xbf16>
    %c0_4 = arith.constant 0 : index
    %c0_5 = arith.constant 0 : index
    %5 = vector.load %arg4[%c0_4, %c0_5] : memref<16x256xbf16, #tpu.memory_space<vmem>>, vector<16x256xbf16>
    %cst = arith.constant dense<0.000000e+00> : vector<42x256xf32>
    %6 = tpu.matmul %4, %5, %cst {dimension_numbers = #tpu.dot_dimension_numbers<[1], [0], [0], [1], [0, 0, 1, 1], [], []>} : vector<42x16xbf16>, vector<16x256xbf16>, vector<42x256xf32> -> vector<42x256xf32>
    %7 = arith.addf %3, %6 : vector<42x256xf32>
    %c0_6 = arith.constant 0 : index
    %c0_7 = arith.constant 0 : index
    %8 = vector.load %arg7[%c0_6, %c0_7] : memref<42x256xf32, #tpu.memory_space<vmem>>, vector<42x256xf32>
    tpu.vector_store %arg7[%c0_6, %c0_7], %7 {strides = array<i32>} : memref<42x256xf32, #tpu.memory_space<vmem>>, vector<42x256xf32>,
    %c0_i32_8 = arith.constant 0 : i32
    %9 = arith.cmpi eq, %arg2, %c0_i32_8 : i32
    %10 = arith.extui %9 : i1 to i32
    %c0_i32_9 = arith.constant 0 : i32
    %11 = arith.cmpi ne, %10, %c0_i32_9 : i32
    scf.if %11 {
      %c0_10 = arith.constant 0 : index
      %c0_11 = arith.constant 0 : index
      %12 = vector.load %arg7[%c0_10, %c0_11] : memref<42x256xf32, #tpu.memory_space<vmem>>, vector<42x256xf32>
      %c0_12 = arith.constant 0 : index
      %c0_13 = arith.constant 0 : index
      %13 = vector.load %arg5[%c0_12, %c0_13] : memref<1x256xf32, #tpu.memory_space<vmem>>, vector<1x256xf32>
      %14 = vector.broadcast %13 : vector<1x256xf32> to vector<42x256xf32>
      %15 = arith.addf %12, %14 : vector<42x256xf32>
      %c0_14 = arith.constant 0 : index
      %c0_15 = arith.constant 0 : index
      %16 = vector.load %arg6[%c0_14, %c0_15] : memref<42x256xf32, #tpu.memory_space<vmem>>, vector<42x256xf32>
      tpu.vector_store %arg6[%c0_14, %c0_15], %15 {strides = array<i32>} : memref<42x256xf32, #tpu.memory_space<vmem>>, vector<42x256xf32>,
    } else {
    }
    return
  }
  func.func @transform_0(%arg0: i32, %arg1: i32, %arg2: i32) -> (i32, i32) {
    %c0_i32 = arith.constant 0 : i32
    return %arg0, %arg2 : i32, i32
  }
  func.func @transform_1(%arg0: i32, %arg1: i32, %arg2: i32) -> (i32, i32) {
    %c0_i32 = arith.constant 0 : i32
    return %arg2, %arg1 : i32, i32
  }
  func.func @transform_2(%arg0: i32, %arg1: i32, %arg2: i32) -> (i32, i32) {
    %c0_i32 = arith.constant 0 : i32
    %c0_i32_0 = arith.constant 0 : i32
    return %c0_i32, %arg1 : i32, i32
  }
  func.func @transform_3(%arg0: i32, %arg1: i32, %arg2: i32) -> (i32, i32) {
    %c0_i32 = arith.constant 0 : i32
    return %arg0, %arg1 : i32, i32
  }
}

module attributes {stable_mosaic.version = 11 : i64} {
  func.func @_mask_head_kernel(%arg0: i32, %arg1: memref<304x32xf32, #tpu.memory_space<vmem>>, %arg2: memref<256x1xf32, #tpu.memory_space<vmem>>, %arg3: memref<9x32x128xbf16, #tpu.memory_space<vmem>>, %arg4: memref<1x128xf32, #tpu.memory_space<vmem>>, %arg5: memref<9x128x128xbf16, #tpu.memory_space<vmem>>, %arg6: memref<1x128xf32, #tpu.memory_space<vmem>>, %arg7: memref<128x128xbf16, #tpu.memory_space<vmem>>, %arg8: memref<1x128xf32, #tpu.memory_space<vmem>>, %arg9: memref<128x128xbf16, #tpu.memory_space<vmem>>, %arg10: memref<1x128xf32, #tpu.memory_space<vmem>>, %arg11: memref<256x128xf32, #tpu.memory_space<vmem>>, %arg12: memref<304x128xf32, #tpu.memory_space<vmem>>) attributes {dimension_semantics = [#tpu.dimension_semantics<parallel>], iteration_bounds = array<i64: 3>, scalar_prefetch = 0 : i64, scratch_operands = 1 : i64, tpu.core_type = #tpu.core_type<tc>, window_params = [{transform_indices = @transform_0, window_bounds = array<i64: 304, 32>}, {pipeline_mode = #tpu.pipeline_mode<synchronous>, transform_indices = @transform_1, window_bounds = array<i64: 256, 1>}, {pipeline_mode = #tpu.pipeline_mode<synchronous>, transform_indices = @transform_2, window_bounds = array<i64: 9, 32, 128>}, {pipeline_mode = #tpu.pipeline_mode<synchronous>, transform_indices = @transform_3, window_bounds = array<i64: 1, 128>}, {pipeline_mode = #tpu.pipeline_mode<synchronous>, transform_indices = @transform_4, window_bounds = array<i64: 9, 128, 128>}, {pipeline_mode = #tpu.pipeline_mode<synchronous>, transform_indices = @transform_5, window_bounds = array<i64: 1, 128>}, {pipeline_mode = #tpu.pipeline_mode<synchronous>, transform_indices = @transform_6, window_bounds = array<i64: 128, 128>}, {pipeline_mode = #tpu.pipeline_mode<synchronous>, transform_indices = @transform_7, window_bounds = array<i64: 1, 128>}, {pipeline_mode = #tpu.pipeline_mode<synchronous>, transform_indices = @transform_8, window_bounds = array<i64: 128, 128>}, {pipeline_mode = #tpu.pipeline_mode<synchronous>, transform_indices = @transform_9, window_bounds = array<i64: 1, 128>}, {transform_indices = @transform_10, window_bounds = array<i64: 256, 128>}]} {
    %c0 = arith.constant 0 : index
    %c0_0 = arith.constant 0 : index
    %0 = vector.load %arg2[%c0, %c0_0] : memref<256x1xf32, #tpu.memory_space<vmem>>, vector<256x1xf32>
    %cst = arith.constant 0.000000e+00 : f32
    %1 = vector.broadcast %cst : f32 to vector<256x128xf32>
    %c7 = arith.constant 7 : index
    %c0_1 = arith.constant 0 : index
    %2 = vector.load %arg1[%c7, %c0_1] : memref<304x32xf32, #tpu.memory_space<vmem>>, vector<256x32xf32>
    %3 = arith.truncf %2 : vector<256x32xf32> to vector<256x32xbf16>
    %c0_2 = arith.constant 0 : index
    %c0_3 = arith.constant 0 : index
    %c0_4 = arith.constant 0 : index
    %4 = vector.load %arg3[%c0_2, %c0_3, %c0_4] : memref<9x32x128xbf16, #tpu.memory_space<vmem>>, vector<1x32x128xbf16>
    %5 = vector.shape_cast %4 : vector<1x32x128xbf16> to vector<32x128xbf16>
    %cst_5 = arith.constant dense<0.000000e+00> : vector<256x128xf32>
    %6 = tpu.matmul %3, %5, %cst_5 {dimension_numbers = #tpu.dot_dimension_numbers<[1], [0], [0], [1], [0, 0, 1, 1], [], []>} : vector<256x32xbf16>, vector<32x128xbf16>, vector<256x128xf32> -> vector<256x128xf32>
    %7 = arith.addf %1, %6 : vector<256x128xf32>
    %c8 = arith.constant 8 : index
    %c0_6 = arith.constant 0 : index
    %8 = vector.load %arg1[%c8, %c0_6] : memref<304x32xf32, #tpu.memory_space<vmem>>, vector<256x32xf32>
    %9 = arith.truncf %8 : vector<256x32xf32> to vector<256x32xbf16>
    %c1 = arith.constant 1 : index
    %c0_7 = arith.constant 0 : index
    %c0_8 = arith.constant 0 : index
    %10 = vector.load %arg3[%c1, %c0_7, %c0_8] : memref<9x32x128xbf16, #tpu.memory_space<vmem>>, vector<1x32x128xbf16>
    %11 = vector.shape_cast %10 : vector<1x32x128xbf16> to vector<32x128xbf16>
    %cst_9 = arith.constant dense<0.000000e+00> : vector<256x128xf32>
    %12 = tpu.matmul %9, %11, %cst_9 {dimension_numbers = #tpu.dot_dimension_numbers<[1], [0], [0], [1], [0, 0, 1, 1], [], []>} : vector<256x32xbf16>, vector<32x128xbf16>, vector<256x128xf32> -> vector<256x128xf32>
    %13 = arith.addf %7, %12 : vector<256x128xf32>
    %c9 = arith.constant 9 : index
    %c0_10 = arith.constant 0 : index
    %14 = vector.load %arg1[%c9, %c0_10] : memref<304x32xf32, #tpu.memory_space<vmem>>, vector<256x32xf32>
    %15 = arith.truncf %14 : vector<256x32xf32> to vector<256x32xbf16>
    %c2 = arith.constant 2 : index
    %c0_11 = arith.constant 0 : index
    %c0_12 = arith.constant 0 : index
    %16 = vector.load %arg3[%c2, %c0_11, %c0_12] : memref<9x32x128xbf16, #tpu.memory_space<vmem>>, vector<1x32x128xbf16>
    %17 = vector.shape_cast %16 : vector<1x32x128xbf16> to vector<32x128xbf16>
    %cst_13 = arith.constant dense<0.000000e+00> : vector<256x128xf32>
    %18 = tpu.matmul %15, %17, %cst_13 {dimension_numbers = #tpu.dot_dimension_numbers<[1], [0], [0], [1], [0, 0, 1, 1], [], []>} : vector<256x32xbf16>, vector<32x128xbf16>, vector<256x128xf32> -> vector<256x128xf32>
    %19 = arith.addf %13, %18 : vector<256x128xf32>
    %c23 = arith.constant 23 : index
    %c0_14 = arith.constant 0 : index
    %20 = vector.load %arg1[%c23, %c0_14] : memref<304x32xf32, #tpu.memory_space<vmem>>, vector<256x32xf32>
    %21 = arith.truncf %20 : vector<256x32xf32> to vector<256x32xbf16>
    %c3 = arith.constant 3 : index
    %c0_15 = arith.constant 0 : index
    %c0_16 = arith.constant 0 : index
    %22 = vector.load %arg3[%c3, %c0_15, %c0_16] : memref<9x32x128xbf16, #tpu.memory_space<vmem>>, vector<1x32x128xbf16>
    %23 = vector.shape_cast %22 : vector<1x32x128xbf16> to vector<32x128xbf16>
    %cst_17 = arith.constant dense<0.000000e+00> : vector<256x128xf32>
    %24 = tpu.matmul %21, %23, %cst_17 {dimension_numbers = #tpu.dot_dimension_numbers<[1], [0], [0], [1], [0, 0, 1, 1], [], []>} : vector<256x32xbf16>, vector<32x128xbf16>, vector<256x128xf32> -> vector<256x128xf32>
    %25 = arith.addf %19, %24 : vector<256x128xf32>
    %c24 = arith.constant 24 : index
    %c0_18 = arith.constant 0 : index
    %26 = vector.load %arg1[%c24, %c0_18] : memref<304x32xf32, #tpu.memory_space<vmem>>, vector<256x32xf32>
    %27 = arith.truncf %26 : vector<256x32xf32> to vector<256x32xbf16>
    %c4 = arith.constant 4 : index
    %c0_19 = arith.constant 0 : index
    %c0_20 = arith.constant 0 : index
    %28 = vector.load %arg3[%c4, %c0_19, %c0_20] : memref<9x32x128xbf16, #tpu.memory_space<vmem>>, vector<1x32x128xbf16>
    %29 = vector.shape_cast %28 : vector<1x32x128xbf16> to vector<32x128xbf16>
    %cst_21 = arith.constant dense<0.000000e+00> : vector<256x128xf32>
    %30 = tpu.matmul %27, %29, %cst_21 {dimension_numbers = #tpu.dot_dimension_numbers<[1], [0], [0], [1], [0, 0, 1, 1], [], []>} : vector<256x32xbf16>, vector<32x128xbf16>, vector<256x128xf32> -> vector<256x128xf32>
    %31 = arith.addf %25, %30 : vector<256x128xf32>
    %c25 = arith.constant 25 : index
    %c0_22 = arith.constant 0 : index
    %32 = vector.load %arg1[%c25, %c0_22] : memref<304x32xf32, #tpu.memory_space<vmem>>, vector<256x32xf32>
    %33 = arith.truncf %32 : vector<256x32xf32> to vector<256x32xbf16>
    %c5 = arith.constant 5 : index
    %c0_23 = arith.constant 0 : index
    %c0_24 = arith.constant 0 : index
    %34 = vector.load %arg3[%c5, %c0_23, %c0_24] : memref<9x32x128xbf16, #tpu.memory_space<vmem>>, vector<1x32x128xbf16>
    %35 = vector.shape_cast %34 : vector<1x32x128xbf16> to vector<32x128xbf16>
    %cst_25 = arith.constant dense<0.000000e+00> : vector<256x128xf32>
    %36 = tpu.matmul %33, %35, %cst_25 {dimension_numbers = #tpu.dot_dimension_numbers<[1], [0], [0], [1], [0, 0, 1, 1], [], []>} : vector<256x32xbf16>, vector<32x128xbf16>, vector<256x128xf32> -> vector<256x128xf32>
    %37 = arith.addf %31, %36 : vector<256x128xf32>
    %c39 = arith.constant 39 : index
    %c0_26 = arith.constant 0 : index
    %38 = vector.load %arg1[%c39, %c0_26] : memref<304x32xf32, #tpu.memory_space<vmem>>, vector<256x32xf32>
    %39 = arith.truncf %38 : vector<256x32xf32> to vector<256x32xbf16>
    %c6 = arith.constant 6 : index
    %c0_27 = arith.constant 0 : index
    %c0_28 = arith.constant 0 : index
    %40 = vector.load %arg3[%c6, %c0_27, %c0_28] : memref<9x32x128xbf16, #tpu.memory_space<vmem>>, vector<1x32x128xbf16>
    %41 = vector.shape_cast %40 : vector<1x32x128xbf16> to vector<32x128xbf16>
    %cst_29 = arith.constant dense<0.000000e+00> : vector<256x128xf32>
    %42 = tpu.matmul %39, %41, %cst_29 {dimension_numbers = #tpu.dot_dimension_numbers<[1], [0], [0], [1], [0, 0, 1, 1], [], []>} : vector<256x32xbf16>, vector<32x128xbf16>, vector<256x128xf32> -> vector<256x128xf32>
    %43 = arith.addf %37, %42 : vector<256x128xf32>
    %c40 = arith.constant 40 : index
    %c0_30 = arith.constant 0 : index
    %44 = vector.load %arg1[%c40, %c0_30] : memref<304x32xf32, #tpu.memory_space<vmem>>, vector<256x32xf32>
    %45 = arith.truncf %44 : vector<256x32xf32> to vector<256x32xbf16>
    %c7_31 = arith.constant 7 : index
    %c0_32 = arith.constant 0 : index
    %c0_33 = arith.constant 0 : index
    %46 = vector.load %arg3[%c7_31, %c0_32, %c0_33] : memref<9x32x128xbf16, #tpu.memory_space<vmem>>, vector<1x32x128xbf16>
    %47 = vector.shape_cast %46 : vector<1x32x128xbf16> to vector<32x128xbf16>
    %cst_34 = arith.constant dense<0.000000e+00> : vector<256x128xf32>
    %48 = tpu.matmul %45, %47, %cst_34 {dimension_numbers = #tpu.dot_dimension_numbers<[1], [0], [0], [1], [0, 0, 1, 1], [], []>} : vector<256x32xbf16>, vector<32x128xbf16>, vector<256x128xf32> -> vector<256x128xf32>
    %49 = arith.addf %43, %48 : vector<256x128xf32>
    %c41 = arith.constant 41 : index
    %c0_35 = arith.constant 0 : index
    %50 = vector.load %arg1[%c41, %c0_35] : memref<304x32xf32, #tpu.memory_space<vmem>>, vector<256x32xf32>
    %51 = arith.truncf %50 : vector<256x32xf32> to vector<256x32xbf16>
    %c8_36 = arith.constant 8 : index
    %c0_37 = arith.constant 0 : index
    %c0_38 = arith.constant 0 : index
    %52 = vector.load %arg3[%c8_36, %c0_37, %c0_38] : memref<9x32x128xbf16, #tpu.memory_space<vmem>>, vector<1x32x128xbf16>
    %53 = vector.shape_cast %52 : vector<1x32x128xbf16> to vector<32x128xbf16>
    %cst_39 = arith.constant dense<0.000000e+00> : vector<256x128xf32>
    %54 = tpu.matmul %51, %53, %cst_39 {dimension_numbers = #tpu.dot_dimension_numbers<[1], [0], [0], [1], [0, 0, 1, 1], [], []>} : vector<256x32xbf16>, vector<32x128xbf16>, vector<256x128xf32> -> vector<256x128xf32>
    %55 = arith.addf %49, %54 : vector<256x128xf32>
    %c0_40 = arith.constant 0 : index
    %c0_41 = arith.constant 0 : index
    %56 = vector.load %arg4[%c0_40, %c0_41] : memref<1x128xf32, #tpu.memory_space<vmem>>, vector<1x128xf32>
    %57 = vector.broadcast %56 : vector<1x128xf32> to vector<256x128xf32>
    %58 = arith.addf %55, %57 : vector<256x128xf32>
    %cst_42 = arith.constant 0.000000e+00 : f32
    %59 = vector.broadcast %cst_42 : f32 to vector<256x128xf32>
    %60 = arith.maximumf %58, %59 : vector<256x128xf32>
    %61 = vector.broadcast %0 : vector<256x1xf32> to vector<256x128xf32>
    %62 = arith.mulf %60, %61 : vector<256x128xf32>
    %cst_43 = arith.constant 0.000000e+00 : f32
    %63 = vector.broadcast %cst_43 : f32 to vector<304x128xf32>
    %c0_44 = arith.constant 0 : index
    %c0_45 = arith.constant 0 : index
    %64 = vector.load %arg12[%c0_44, %c0_45] : memref<304x128xf32, #tpu.memory_space<vmem>>, vector<304x128xf32>
    tpu.vector_store %arg12[%c0_44, %c0_45], %63 {strides = array<i32>} : memref<304x128xf32, #tpu.memory_space<vmem>>, vector<304x128xf32>,
    %c24_46 = arith.constant 24 : index
    %c0_47 = arith.constant 0 : index
    %65 = vector.load %arg12[%c24_46, %c0_47] : memref<304x128xf32, #tpu.memory_space<vmem>>, vector<256x128xf32>
    tpu.vector_store %arg12[%c24_46, %c0_47], %62 {strides = array<i32>} : memref<304x128xf32, #tpu.memory_space<vmem>>, vector<256x128xf32>,
    %cst_48 = arith.constant 0.000000e+00 : f32
    %66 = vector.broadcast %cst_48 : f32 to vector<256x128xf32>
    %c7_49 = arith.constant 7 : index
    %c0_50 = arith.constant 0 : index
    %67 = vector.load %arg12[%c7_49, %c0_50] : memref<304x128xf32, #tpu.memory_space<vmem>>, vector<256x128xf32>
    %68 = arith.truncf %67 : vector<256x128xf32> to vector<256x128xbf16>
    %c0_51 = arith.constant 0 : index
    %c0_52 = arith.constant 0 : index
    %c0_53 = arith.constant 0 : index
    %69 = vector.load %arg5[%c0_51, %c0_52, %c0_53] : memref<9x128x128xbf16, #tpu.memory_space<vmem>>, vector<1x128x128xbf16>
    %70 = vector.shape_cast %69 : vector<1x128x128xbf16> to vector<128x128xbf16>
    %cst_54 = arith.constant dense<0.000000e+00> : vector<256x128xf32>
    %71 = tpu.matmul %68, %70, %cst_54 {dimension_numbers = #tpu.dot_dimension_numbers<[1], [0], [0], [1], [0, 0, 1, 1], [], []>} : vector<256x128xbf16>, vector<128x128xbf16>, vector<256x128xf32> -> vector<256x128xf32>
    %72 = arith.addf %66, %71 : vector<256x128xf32>
    %c8_55 = arith.constant 8 : index
    %c0_56 = arith.constant 0 : index
    %73 = vector.load %arg12[%c8_55, %c0_56] : memref<304x128xf32, #tpu.memory_space<vmem>>, vector<256x128xf32>
    %74 = arith.truncf %73 : vector<256x128xf32> to vector<256x128xbf16>
    %c1_57 = arith.constant 1 : index
    %c0_58 = arith.constant 0 : index
    %c0_59 = arith.constant 0 : index
    %75 = vector.load %arg5[%c1_57, %c0_58, %c0_59] : memref<9x128x128xbf16, #tpu.memory_space<vmem>>, vector<1x128x128xbf16>
    %76 = vector.shape_cast %75 : vector<1x128x128xbf16> to vector<128x128xbf16>
    %cst_60 = arith.constant dense<0.000000e+00> : vector<256x128xf32>
    %77 = tpu.matmul %74, %76, %cst_60 {dimension_numbers = #tpu.dot_dimension_numbers<[1], [0], [0], [1], [0, 0, 1, 1], [], []>} : vector<256x128xbf16>, vector<128x128xbf16>, vector<256x128xf32> -> vector<256x128xf32>
    %78 = arith.addf %72, %77 : vector<256x128xf32>
    %c9_61 = arith.constant 9 : index
    %c0_62 = arith.constant 0 : index
    %79 = vector.load %arg12[%c9_61, %c0_62] : memref<304x128xf32, #tpu.memory_space<vmem>>, vector<256x128xf32>
    %80 = arith.truncf %79 : vector<256x128xf32> to vector<256x128xbf16>
    %c2_63 = arith.constant 2 : index
    %c0_64 = arith.constant 0 : index
    %c0_65 = arith.constant 0 : index
    %81 = vector.load %arg5[%c2_63, %c0_64, %c0_65] : memref<9x128x128xbf16, #tpu.memory_space<vmem>>, vector<1x128x128xbf16>
    %82 = vector.shape_cast %81 : vector<1x128x128xbf16> to vector<128x128xbf16>
    %cst_66 = arith.constant dense<0.000000e+00> : vector<256x128xf32>
    %83 = tpu.matmul %80, %82, %cst_66 {dimension_numbers = #tpu.dot_dimension_numbers<[1], [0], [0], [1], [0, 0, 1, 1], [], []>} : vector<256x128xbf16>, vector<128x128xbf16>, vector<256x128xf32> -> vector<256x128xf32>
    %84 = arith.addf %78, %83 : vector<256x128xf32>
    %c23_67 = arith.constant 23 : index
    %c0_68 = arith.constant 0 : index
    %85 = vector.load %arg12[%c23_67, %c0_68] : memref<304x128xf32, #tpu.memory_space<vmem>>, vector<256x128xf32>
    %86 = arith.truncf %85 : vector<256x128xf32> to vector<256x128xbf16>
    %c3_69 = arith.constant 3 : index
    %c0_70 = arith.constant 0 : index
    %c0_71 = arith.constant 0 : index
    %87 = vector.load %arg5[%c3_69, %c0_70, %c0_71] : memref<9x128x128xbf16, #tpu.memory_space<vmem>>, vector<1x128x128xbf16>
    %88 = vector.shape_cast %87 : vector<1x128x128xbf16> to vector<128x128xbf16>
    %cst_72 = arith.constant dense<0.000000e+00> : vector<256x128xf32>
    %89 = tpu.matmul %86, %88, %cst_72 {dimension_numbers = #tpu.dot_dimension_numbers<[1], [0], [0], [1], [0, 0, 1, 1], [], []>} : vector<256x128xbf16>, vector<128x128xbf16>, vector<256x128xf32> -> vector<256x128xf32>
    %90 = arith.addf %84, %89 : vector<256x128xf32>
    %c24_73 = arith.constant 24 : index
    %c0_74 = arith.constant 0 : index
    %91 = vector.load %arg12[%c24_73, %c0_74] : memref<304x128xf32, #tpu.memory_space<vmem>>, vector<256x128xf32>
    %92 = arith.truncf %91 : vector<256x128xf32> to vector<256x128xbf16>
    %c4_75 = arith.constant 4 : index
    %c0_76 = arith.constant 0 : index
    %c0_77 = arith.constant 0 : index
    %93 = vector.load %arg5[%c4_75, %c0_76, %c0_77] : memref<9x128x128xbf16, #tpu.memory_space<vmem>>, vector<1x128x128xbf16>
    %94 = vector.shape_cast %93 : vector<1x128x128xbf16> to vector<128x128xbf16>
    %cst_78 = arith.constant dense<0.000000e+00> : vector<256x128xf32>
    %95 = tpu.matmul %92, %94, %cst_78 {dimension_numbers = #tpu.dot_dimension_numbers<[1], [0], [0], [1], [0, 0, 1, 1], [], []>} : vector<256x128xbf16>, vector<128x128xbf16>, vector<256x128xf32> -> vector<256x128xf32>
    %96 = arith.addf %90, %95 : vector<256x128xf32>
    %c25_79 = arith.constant 25 : index
    %c0_80 = arith.constant 0 : index
    %97 = vector.load %arg12[%c25_79, %c0_80] : memref<304x128xf32, #tpu.memory_space<vmem>>, vector<256x128xf32>
    %98 = arith.truncf %97 : vector<256x128xf32> to vector<256x128xbf16>
    %c5_81 = arith.constant 5 : index
    %c0_82 = arith.constant 0 : index
    %c0_83 = arith.constant 0 : index
    %99 = vector.load %arg5[%c5_81, %c0_82, %c0_83] : memref<9x128x128xbf16, #tpu.memory_space<vmem>>, vector<1x128x128xbf16>
    %100 = vector.shape_cast %99 : vector<1x128x128xbf16> to vector<128x128xbf16>
    %cst_84 = arith.constant dense<0.000000e+00> : vector<256x128xf32>
    %101 = tpu.matmul %98, %100, %cst_84 {dimension_numbers = #tpu.dot_dimension_numbers<[1], [0], [0], [1], [0, 0, 1, 1], [], []>} : vector<256x128xbf16>, vector<128x128xbf16>, vector<256x128xf32> -> vector<256x128xf32>
    %102 = arith.addf %96, %101 : vector<256x128xf32>
    %c39_85 = arith.constant 39 : index
    %c0_86 = arith.constant 0 : index
    %103 = vector.load %arg12[%c39_85, %c0_86] : memref<304x128xf32, #tpu.memory_space<vmem>>, vector<256x128xf32>
    %104 = arith.truncf %103 : vector<256x128xf32> to vector<256x128xbf16>
    %c6_87 = arith.constant 6 : index
    %c0_88 = arith.constant 0 : index
    %c0_89 = arith.constant 0 : index
    %105 = vector.load %arg5[%c6_87, %c0_88, %c0_89] : memref<9x128x128xbf16, #tpu.memory_space<vmem>>, vector<1x128x128xbf16>
    %106 = vector.shape_cast %105 : vector<1x128x128xbf16> to vector<128x128xbf16>
    %cst_90 = arith.constant dense<0.000000e+00> : vector<256x128xf32>
    %107 = tpu.matmul %104, %106, %cst_90 {dimension_numbers = #tpu.dot_dimension_numbers<[1], [0], [0], [1], [0, 0, 1, 1], [], []>} : vector<256x128xbf16>, vector<128x128xbf16>, vector<256x128xf32> -> vector<256x128xf32>
    %108 = arith.addf %102, %107 : vector<256x128xf32>
    %c40_91 = arith.constant 40 : index
    %c0_92 = arith.constant 0 : index
    %109 = vector.load %arg12[%c40_91, %c0_92] : memref<304x128xf32, #tpu.memory_space<vmem>>, vector<256x128xf32>
    %110 = arith.truncf %109 : vector<256x128xf32> to vector<256x128xbf16>
    %c7_93 = arith.constant 7 : index
    %c0_94 = arith.constant 0 : index
    %c0_95 = arith.constant 0 : index
    %111 = vector.load %arg5[%c7_93, %c0_94, %c0_95] : memref<9x128x128xbf16, #tpu.memory_space<vmem>>, vector<1x128x128xbf16>
    %112 = vector.shape_cast %111 : vector<1x128x128xbf16> to vector<128x128xbf16>
    %cst_96 = arith.constant dense<0.000000e+00> : vector<256x128xf32>
    %113 = tpu.matmul %110, %112, %cst_96 {dimension_numbers = #tpu.dot_dimension_numbers<[1], [0], [0], [1], [0, 0, 1, 1], [], []>} : vector<256x128xbf16>, vector<128x128xbf16>, vector<256x128xf32> -> vector<256x128xf32>
    %114 = arith.addf %108, %113 : vector<256x128xf32>
    %c41_97 = arith.constant 41 : index
    %c0_98 = arith.constant 0 : index
    %115 = vector.load %arg12[%c41_97, %c0_98] : memref<304x128xf32, #tpu.memory_space<vmem>>, vector<256x128xf32>
    %116 = arith.truncf %115 : vector<256x128xf32> to vector<256x128xbf16>
    %c8_99 = arith.constant 8 : index
    %c0_100 = arith.constant 0 : index
    %c0_101 = arith.constant 0 : index
    %117 = vector.load %arg5[%c8_99, %c0_100, %c0_101] : memref<9x128x128xbf16, #tpu.memory_space<vmem>>, vector<1x128x128xbf16>
    %118 = vector.shape_cast %117 : vector<1x128x128xbf16> to vector<128x128xbf16>
    %cst_102 = arith.constant dense<0.000000e+00> : vector<256x128xf32>
    %119 = tpu.matmul %116, %118, %cst_102 {dimension_numbers = #tpu.dot_dimension_numbers<[1], [0], [0], [1], [0, 0, 1, 1], [], []>} : vector<256x128xbf16>, vector<128x128xbf16>, vector<256x128xf32> -> vector<256x128xf32>
    %120 = arith.addf %114, %119 : vector<256x128xf32>
    %c0_103 = arith.constant 0 : index
    %c0_104 = arith.constant 0 : index
    %121 = vector.load %arg6[%c0_103, %c0_104] : memref<1x128xf32, #tpu.memory_space<vmem>>, vector<1x128xf32>
    %122 = vector.broadcast %121 : vector<1x128xf32> to vector<256x128xf32>
    %123 = arith.addf %120, %122 : vector<256x128xf32>
    %cst_105 = arith.constant 0.000000e+00 : f32
    %124 = vector.broadcast %cst_105 : f32 to vector<256x128xf32>
    %125 = arith.maximumf %123, %124 : vector<256x128xf32>
    %126 = vector.broadcast %0 : vector<256x1xf32> to vector<256x128xf32>
    %127 = arith.mulf %125, %126 : vector<256x128xf32>
    %128 = arith.truncf %127 : vector<256x128xf32> to vector<256x128xbf16>
    %c0_106 = arith.constant 0 : index
    %c0_107 = arith.constant 0 : index
    %129 = vector.load %arg7[%c0_106, %c0_107] : memref<128x128xbf16, #tpu.memory_space<vmem>>, vector<128x128xbf16>
    %cst_108 = arith.constant dense<0.000000e+00> : vector<256x128xf32>
    %130 = tpu.matmul %128, %129, %cst_108 {dimension_numbers = #tpu.dot_dimension_numbers<[1], [0], [0], [1], [0, 0, 1, 1], [], []>} : vector<256x128xbf16>, vector<128x128xbf16>, vector<256x128xf32> -> vector<256x128xf32>
    %c0_109 = arith.constant 0 : index
    %c0_110 = arith.constant 0 : index
    %131 = vector.load %arg8[%c0_109, %c0_110] : memref<1x128xf32, #tpu.memory_space<vmem>>, vector<1x128xf32>
    %132 = vector.broadcast %131 : vector<1x128xf32> to vector<256x128xf32>
    %133 = arith.addf %130, %132 : vector<256x128xf32>
    %cst_111 = arith.constant 0.000000e+00 : f32
    %134 = vector.broadcast %cst_111 : f32 to vector<256x128xf32>
    %135 = arith.maximumf %133, %134 : vector<256x128xf32>
    %136 = arith.truncf %135 : vector<256x128xf32> to vector<256x128xbf16>
    %c0_112 = arith.constant 0 : index
    %c0_113 = arith.constant 0 : index
    %137 = vector.load %arg9[%c0_112, %c0_113] : memref<128x128xbf16, #tpu.memory_space<vmem>>, vector<128x128xbf16>
    %cst_114 = arith.constant dense<0.000000e+00> : vector<256x128xf32>
    %138 = tpu.matmul %136, %137, %cst_114 {dimension_numbers = #tpu.dot_dimension_numbers<[1], [0], [0], [1], [0, 0, 1, 1], [], []>} : vector<256x128xbf16>, vector<128x128xbf16>, vector<256x128xf32> -> vector<256x128xf32>
    %c0_115 = arith.constant 0 : index
    %c0_116 = arith.constant 0 : index
    %139 = vector.load %arg10[%c0_115, %c0_116] : memref<1x128xf32, #tpu.memory_space<vmem>>, vector<1x128xf32>
    %140 = vector.broadcast %139 : vector<1x128xf32> to vector<256x128xf32>
    %141 = arith.addf %138, %140 : vector<256x128xf32>
    %c0_117 = arith.constant 0 : index
    %c0_118 = arith.constant 0 : index
    %142 = vector.load %arg11[%c0_117, %c0_118] : memref<256x128xf32, #tpu.memory_space<vmem>>, vector<256x128xf32>
    tpu.vector_store %arg11[%c0_117, %c0_118], %141 {strides = array<i32>} : memref<256x128xf32, #tpu.memory_space<vmem>>, vector<256x128xf32>,
    return
  }
  func.func @transform_0(%arg0: i32) -> (i32, i32) {
    %c0_i32 = arith.constant 0 : i32
    %c0_i32_0 = arith.constant 0 : i32
    return %arg0, %c0_i32 : i32, i32
  }
  func.func @transform_1(%arg0: i32) -> (i32, i32) {
    %c0_i32 = arith.constant 0 : i32
    %c0_i32_0 = arith.constant 0 : i32
    %c0_i32_1 = arith.constant 0 : i32
    return %c0_i32, %c0_i32_0 : i32, i32
  }
  func.func @transform_2(%arg0: i32) -> (i32, i32, i32) {
    %c0_i32 = arith.constant 0 : i32
    %c0_i32_0 = arith.constant 0 : i32
    %c0_i32_1 = arith.constant 0 : i32
    %c0_i32_2 = arith.constant 0 : i32
    return %c0_i32, %c0_i32_0, %c0_i32_1 : i32, i32, i32
  }
  func.func @transform_3(%arg0: i32) -> (i32, i32) {
    %c0_i32 = arith.constant 0 : i32
    %c0_i32_0 = arith.constant 0 : i32
    %c0_i32_1 = arith.constant 0 : i32
    return %c0_i32, %c0_i32_0 : i32, i32
  }
  func.func @transform_4(%arg0: i32) -> (i32, i32, i32) {
    %c0_i32 = arith.constant 0 : i32
    %c0_i32_0 = arith.constant 0 : i32
    %c0_i32_1 = arith.constant 0 : i32
    %c0_i32_2 = arith.constant 0 : i32
    return %c0_i32, %c0_i32_0, %c0_i32_1 : i32, i32, i32
  }
  func.func @transform_5(%arg0: i32) -> (i32, i32) {
    %c0_i32 = arith.constant 0 : i32
    %c0_i32_0 = arith.constant 0 : i32
    %c0_i32_1 = arith.constant 0 : i32
    return %c0_i32, %c0_i32_0 : i32, i32
  }
  func.func @transform_6(%arg0: i32) -> (i32, i32) {
    %c0_i32 = arith.constant 0 : i32
    %c0_i32_0 = arith.constant 0 : i32
    %c0_i32_1 = arith.constant 0 : i32
    return %c0_i32, %c0_i32_0 : i32, i32
  }
  func.func @transform_7(%arg0: i32) -> (i32, i32) {
    %c0_i32 = arith.constant 0 : i32
    %c0_i32_0 = arith.constant 0 : i32
    %c0_i32_1 = arith.constant 0 : i32
    return %c0_i32, %c0_i32_0 : i32, i32
  }
  func.func @transform_8(%arg0: i32) -> (i32, i32) {
    %c0_i32 = arith.constant 0 : i32
    %c0_i32_0 = arith.constant 0 : i32
    %c0_i32_1 = arith.constant 0 : i32
    return %c0_i32, %c0_i32_0 : i32, i32
  }
  func.func @transform_9(%arg0: i32) -> (i32, i32) {
    %c0_i32 = arith.constant 0 : i32
    %c0_i32_0 = arith.constant 0 : i32
    %c0_i32_1 = arith.constant 0 : i32
    return %c0_i32, %c0_i32_0 : i32, i32
  }
  func.func @transform_10(%arg0: i32) -> (i32, i32) {
    %c0_i32 = arith.constant 0 : i32
    %c0_i32_0 = arith.constant 0 : i32
    return %arg0, %c0_i32 : i32, i32
  }
}

module attributes {stable_mosaic.version = 11 : i64} {
  func.func @_mm_kernel(%arg0: i32, %arg1: i32, %arg2: i32, %arg3: memref<21x16xbf16, #tpu.memory_space<vmem>>, %arg4: memref<16x256xbf16, #tpu.memory_space<vmem>>, %arg5: memref<1x256xf32, #tpu.memory_space<vmem>>, %arg6: memref<21x256xf32, #tpu.memory_space<vmem>>, %arg7: memref<21x256xf32, #tpu.memory_space<vmem>>) attributes {dimension_semantics = [#tpu.dimension_semantics<parallel>, #tpu.dimension_semantics<parallel>, #tpu.dimension_semantics<arbitrary>], iteration_bounds = array<i64: 1, 2, 1>, scalar_prefetch = 0 : i64, scratch_operands = 1 : i64, tpu.core_type = #tpu.core_type<tc>, window_params = [{transform_indices = @transform_0, window_bounds = array<i64: 21, 16>}, {transform_indices = @transform_1, window_bounds = array<i64: 16, 256>}, {transform_indices = @transform_2, window_bounds = array<i64: 1, 256>}, {transform_indices = @transform_3, window_bounds = array<i64: 21, 256>}]} {
    %c0_i32 = arith.constant 0 : i32
    %0 = arith.cmpi eq, %arg2, %c0_i32 : i32
    %1 = arith.extui %0 : i1 to i32
    %c0_i32_0 = arith.constant 0 : i32
    %2 = arith.cmpi ne, %1, %c0_i32_0 : i32
    scf.if %2 {
      %cst_10 = arith.constant 0.000000e+00 : f32
      %12 = vector.broadcast %cst_10 : f32 to vector<21x256xf32>
      %c0_11 = arith.constant 0 : index
      %c0_12 = arith.constant 0 : index
      %13 = vector.load %arg7[%c0_11, %c0_12] : memref<21x256xf32, #tpu.memory_space<vmem>>, vector<21x256xf32>
      tpu.vector_store %arg7[%c0_11, %c0_12], %12 {strides = array<i32>} : memref<21x256xf32, #tpu.memory_space<vmem>>, vector<21x256xf32>,
    } else {
    }
    %c0 = arith.constant 0 : index
    %c0_1 = arith.constant 0 : index
    %3 = vector.load %arg7[%c0, %c0_1] : memref<21x256xf32, #tpu.memory_space<vmem>>, vector<21x256xf32>
    %c0_2 = arith.constant 0 : index
    %c0_3 = arith.constant 0 : index
    %4 = vector.load %arg3[%c0_2, %c0_3] : memref<21x16xbf16, #tpu.memory_space<vmem>>, vector<21x16xbf16>
    %c0_4 = arith.constant 0 : index
    %c0_5 = arith.constant 0 : index
    %5 = vector.load %arg4[%c0_4, %c0_5] : memref<16x256xbf16, #tpu.memory_space<vmem>>, vector<16x256xbf16>
    %cst = arith.constant dense<0.000000e+00> : vector<21x256xf32>
    %6 = tpu.matmul %4, %5, %cst {dimension_numbers = #tpu.dot_dimension_numbers<[1], [0], [0], [1], [0, 0, 1, 1], [], []>} : vector<21x16xbf16>, vector<16x256xbf16>, vector<21x256xf32> -> vector<21x256xf32>
    %7 = arith.addf %3, %6 : vector<21x256xf32>
    %c0_6 = arith.constant 0 : index
    %c0_7 = arith.constant 0 : index
    %8 = vector.load %arg7[%c0_6, %c0_7] : memref<21x256xf32, #tpu.memory_space<vmem>>, vector<21x256xf32>
    tpu.vector_store %arg7[%c0_6, %c0_7], %7 {strides = array<i32>} : memref<21x256xf32, #tpu.memory_space<vmem>>, vector<21x256xf32>,
    %c0_i32_8 = arith.constant 0 : i32
    %9 = arith.cmpi eq, %arg2, %c0_i32_8 : i32
    %10 = arith.extui %9 : i1 to i32
    %c0_i32_9 = arith.constant 0 : i32
    %11 = arith.cmpi ne, %10, %c0_i32_9 : i32
    scf.if %11 {
      %c0_10 = arith.constant 0 : index
      %c0_11 = arith.constant 0 : index
      %12 = vector.load %arg7[%c0_10, %c0_11] : memref<21x256xf32, #tpu.memory_space<vmem>>, vector<21x256xf32>
      %c0_12 = arith.constant 0 : index
      %c0_13 = arith.constant 0 : index
      %13 = vector.load %arg5[%c0_12, %c0_13] : memref<1x256xf32, #tpu.memory_space<vmem>>, vector<1x256xf32>
      %14 = vector.broadcast %13 : vector<1x256xf32> to vector<21x256xf32>
      %15 = arith.addf %12, %14 : vector<21x256xf32>
      %c0_14 = arith.constant 0 : index
      %c0_15 = arith.constant 0 : index
      %16 = vector.load %arg6[%c0_14, %c0_15] : memref<21x256xf32, #tpu.memory_space<vmem>>, vector<21x256xf32>
      tpu.vector_store %arg6[%c0_14, %c0_15], %15 {strides = array<i32>} : memref<21x256xf32, #tpu.memory_space<vmem>>, vector<21x256xf32>,
    } else {
    }
    return
  }
  func.func @transform_0(%arg0: i32, %arg1: i32, %arg2: i32) -> (i32, i32) {
    %c0_i32 = arith.constant 0 : i32
    return %arg0, %arg2 : i32, i32
  }
  func.func @transform_1(%arg0: i32, %arg1: i32, %arg2: i32) -> (i32, i32) {
    %c0_i32 = arith.constant 0 : i32
    return %arg2, %arg1 : i32, i32
  }
  func.func @transform_2(%arg0: i32, %arg1: i32, %arg2: i32) -> (i32, i32) {
    %c0_i32 = arith.constant 0 : i32
    %c0_i32_0 = arith.constant 0 : i32
    return %c0_i32, %arg1 : i32, i32
  }
  func.func @transform_3(%arg0: i32, %arg1: i32, %arg2: i32) -> (i32, i32) {
    %c0_i32 = arith.constant 0 : i32
    return %arg0, %arg1 : i32, i32
  }
}

</mosaic_0001>

<bundles_post_ra>
// kernel: forward.5
= control target key start
LH: loop header
LB: loop body
LE: loop exit
PB: predicated region body
PF: predicated region fallthrough
CT: control target
= control target key end

     0   :  { %8 = vsyncpa [#allocation4], 0  ;;  %s785_s12 = smov [#allocation3]   ;;  %s1009_s0 = inlined_call_operand.vmem [shape: bf16[256,27], index: 0, kind: input, shape index: {}]   ;;  %s1010_s1 = inlined_call_operand.hbm [shape: bf16[27,128], index: 1, kind: input, shape index: {}]   ;;  %s1011_s2 = inlined_call_operand.vmem [shape: f32[1,128], index: 2, kind: input, shape index: {}]   ;;  %s1012_s3 = inlined_call_operand.vmem [shape: f32[256,128], index: 3, kind: output, shape index: {}]  }
   0x1   :  { %s16_s13 = sshll.u32 %s785_s12, 4  ;;  %s17_s13 = int_to_ptr.vmem [resolvable:$true] %s16_s13 }
   0x2   :  { %s771_s14 = scalar_lea.vmem %s17_s13, 256  ;;  %p776_p1 = scmp.lt.s32.totalorder %s17_s13, %s17_s13 }
   0x3   :  { %p772_p0 = scmp.ne.s32.totalorder %s17_s13, %s771_s14  ;;  %p777_p2 = scmp.lt.s32.totalorder %s771_s14, %s771_s14 }
   0x5   :  { %p778_p3 = por %p777_p2, %p776_p1 }
   0x7   :  { %p779_p4 = pnand %p778_p3, %p772_p0 }
   0x9   :  { %782 = shalt.err (!%p779_p4)
}
   0xa   :  { %s786_s15 = smov 64   ;;  %s787_s16 = smov 4  }
   0xb   :  { %22 = dma.hbm_to_vmem [thread:$0]  %s1010_s1, 256, %s17_s13, [#allocation4], %s786_s15, %s786_s15, %s787_s16  }
   0xc   :  { %783 = dma.done.wait [#allocation4], 256  }
   0xd   :  { %784 = vsyncadd [#allocation4], 4294967040  ;;  %vm273_vm0 = vcmask 1044480   ;;  %vm274_vm1 = vcmask 1045504   ;;  %v788_v0 = vmov 65535   ;;  %v746_v4 = vld [vmem:[#allocation3] sm:$0xff]  }
   0xe   :  { %v275_v1 = vsel %vm273_vm0, 4294967295, %v788_v0  ;;  %v745_v3 = vld [vmem:[#allocation3 + $0x8] sm:$0x3f]   ;;  %v747_v6 = vld [vmem:[%s1009_s0] sm:$0xff]   ;;  %vm224_vm2 = vcmask 220160   ;;  %v751_v10 = vld [vmem:[%s1009_s0 + $0x10] sm:$0xff]  }
   0xf   :  { %v276_v2 = vsel %vm274_vm1, %v275_v1, 0  ;;  %v748_v7 = vld [vmem:[%s1009_s0 + $0x40] sm:$0xff]   ;;  %v749_v8 = vld [vmem:[%s1009_s0 + $0x8] sm:$0xff]   ;;  %705 = vmatprep.mubr.msk.bf16.mxu0 %vm224_vm2, %v747_v6  ;;  %v752_v11 = vld [vmem:[%s1009_s0 + $0x50] sm:$0xff]  }
  0x10   :  { %v278_v5 = vand.u32 %v745_v3, %v276_v2  ;;  %721 = vmatprep.mubr.msk.bf16.mxu1 %vm224_vm2, %v748_v7  ;;  %v750_v9 = vld [vmem:[%s1009_s0 + $0x48] sm:$0xff]   ;;  %v753_v12 = vld [vmem:[%s1009_s0 + $0x18] sm:$0xff]   ;;  %v755_v14 = vld [vmem:[%s1009_s0 + $0x20] sm:$0xff]  }
  0x11   :  { %v754_v13 = vld [vmem:[%s1009_s0 + $0x58] sm:$0xff]   ;;  %v756_v15 = vld [vmem:[%s1009_s0 + $0x60] sm:$0xff]   ;;  %v757_v16 = vld [vmem:[%s1009_s0 + $0x28] sm:$0xff]  }
  0x12   :  { %701 = vmatprep.subr.bf16.mxu0 %v278_v5  ;;  %737 = vmatprep.subr.bf16.mxu1 %v278_v5  ;;  %v758_v17 = vld [vmem:[%s1009_s0 + $0x68] sm:$0xff]   ;;  %v759_v18 = vld [vmem:[%s1009_s0 + $0x30] sm:$0xff]   ;;  %v761_v20 = vld [vmem:[%s1009_s0 + $0x38] sm:$0xff]  }
  0x13   :  { %702 = vmatpush3.bf16.msra.mxu0 %v278_v5  ;;  %739 = vmatpush3.bf16.msra.mxu1 %v278_v5  ;;  %v760_v19 = vld [vmem:[%s1009_s0 + $0x70] sm:$0xff]   ;;  %v762_v21 = vld [vmem:[%s1009_s0 + $0x78] sm:$0xff]   ;;  %v879_v22 = vld [vmem:[%s1011_s2] ss:$0 sm:$0xff] }
  0x14   :  { %703 = vmatprep.subr.bf16.mxu0 %v746_v4  ;;  %738 = vmatprep.subr.bf16.mxu1 %v746_v4 }
  0x17   :  { %704 = vmatpush3.bf16.msra.mxu0 %v746_v4  ;;  %740 = vmatpush3.bf16.msra.mxu1 %v746_v4 }
  0x1a   :  { %706 = vmatmul.mubr.msk.bf16.vlgmr.msra.gmra.mxu0 %vm224_vm2, %v749_v8  ;;  %722 = vmatmul.mubr.msk.bf16.vlgmr.msra.gmra.mxu1 %vm224_vm2, %v750_v9 }
  0x1b   :  { %709 = vmatprep.mubr.msk.bf16.mxu0 %vm224_vm2, %v751_v10  ;;  %725 = vmatprep.mubr.msk.bf16.mxu1 %vm224_vm2, %v752_v11 }
  0x22   :  { %710 = vmatmul.mubr.msk.bf16.gmra.mxu0 %vm224_vm2, %v753_v12  ;;  %726 = vmatmul.mubr.msk.bf16.gmra.mxu1 %vm224_vm2, %v754_v13 }
  0x23   :  { %713 = vmatprep.mubr.msk.bf16.mxu0 %vm224_vm2, %v755_v14  ;;  %729 = vmatprep.mubr.msk.bf16.mxu1 %vm224_vm2, %v756_v15 }
  0x2a   :  { %714 = vmatmul.mubr.msk.bf16.gmra.mxu0 %vm224_vm2, %v757_v16  ;;  %730 = vmatmul.mubr.msk.bf16.gmra.mxu1 %vm224_vm2, %v758_v17 }
  0x2b   :  { %717 = vmatprep.mubr.msk.bf16.mxu0 %vm224_vm2, %v759_v18  ;;  %733 = vmatprep.mubr.msk.bf16.mxu1 %vm224_vm2, %v760_v19 }
  0x32   :  { %718 = vmatmul.mubr.msk.bf16.gmra.mxu0 %vm224_vm2, %v761_v20  ;;  %734 = vmatmul.mubr.msk.bf16.gmra.mxu1 %vm224_vm2, %v762_v21 }
  0xda   :  { %v707_v23 = vpop.f32.mrf.mxu0  ;;  %v723_v24 = vpop.f32.mrf.mxu1 }
  0xdb   :  { %v549_v25 = vadd.f32 %v707_v23, %v879_v22  ;;  %v565_v26 = vadd.f32 %v723_v24, %v879_v22 }
  0xdc   :  { %v314_v27 = vpop.f32.mrf.mxu0  ;;  %v378_v28 = vpop.f32.mrf.mxu1 }
  0xdd   :  { %v581_v29 = vmax.f32 %v549_v25, 0.0  ;;  %v597_v30 = vmax.f32 %v565_v26, 0.0  ;;  %v547_v31 = vadd.f32 %v879_v22, %v314_v27  ;;  %v563_v32 = vadd.f32 %v879_v22, %v378_v28 }
  0xde   :  { %v708_v33 = vpop.f32.mrf.mxu0  ;;  %v724_v34 = vpop.f32.mrf.mxu1 }
  0xdf   :  { %613 = vst [vmem:[%s1012_s3 + $0x10] sm:$0xff] %v581_v29  ;;  %629 = vst [vmem:[%s1012_s3 + $0x90] sm:$0xff] %v597_v30  ;;  %v579_v35 = vmax.f32 %v547_v31, 0.0  ;;  %v595_v36 = vmax.f32 %v563_v32, 0.0  ;;  %v550_v37 = vadd.f32 %v708_v33, %v879_v22  ;;  %v566_v38 = vadd.f32 %v724_v34, %v879_v22 }
  0xe0   :  { %v317_v39 = vpop.f32.mrf.mxu0  ;;  %v381_v40 = vpop.f32.mrf.mxu1 }
  0xe1   :  { %611 = vst [vmem:[%s1012_s3] sm:$0xff] %v579_v35  ;;  %627 = vst [vmem:[%s1012_s3 + $0x80] sm:$0xff] %v595_v36  ;;  %v582_v41 = vmax.f32 %v550_v37, 0.0  ;;  %v598_v42 = vmax.f32 %v566_v38, 0.0  ;;  %v548_v43 = vadd.f32 %v879_v22, %v317_v39  ;;  %v564_v44 = vadd.f32 %v879_v22, %v381_v40 }
  0xe2   :  { %v711_v45 = vpop.f32.mrf.mxu0  ;;  %v727_v46 = vpop.f32.mrf.mxu1 }
  0xe3   :  { %614 = vst [vmem:[%s1012_s3 + $0x18] sm:$0xff] %v582_v41  ;;  %630 = vst [vmem:[%s1012_s3 + $0x98] sm:$0xff] %v598_v42  ;;  %v580_v47 = vmax.f32 %v548_v43, 0.0  ;;  %v596_v48 = vmax.f32 %v564_v44, 0.0  ;;  %v553_v49 = vadd.f32 %v711_v45, %v879_v22  ;;  %v569_v50 = vadd.f32 %v727_v46, %v879_v22 }
  0xe4   :  { %v330_v51 = vpop.f32.mrf.mxu0  ;;  %v394_v52 = vpop.f32.mrf.mxu1 }
  0xe5   :  { %612 = vst [vmem:[%s1012_s3 + $0x8] sm:$0xff] %v580_v47  ;;  %628 = vst [vmem:[%s1012_s3 + $0x88] sm:$0xff] %v596_v48  ;;  %v585_v53 = vmax.f32 %v553_v49, 0.0  ;;  %v601_v54 = vmax.f32 %v569_v50, 0.0  ;;  %v551_v55 = vadd.f32 %v879_v22, %v330_v51  ;;  %v567_v56 = vadd.f32 %v879_v22, %v394_v52 }
  0xe6   :  { %v712_v57 = vpop.f32.mrf.mxu0  ;;  %v728_v58 = vpop.f32.mrf.mxu1 }
  0xe7   :  { %617 = vst [vmem:[%s1012_s3 + $0x30] sm:$0xff] %v585_v53  ;;  %633 = vst [vmem:[%s1012_s3 + $0xb0] sm:$0xff] %v601_v54  ;;  %v583_v59 = vmax.f32 %v551_v55, 0.0  ;;  %v599_v60 = vmax.f32 %v567_v56, 0.0  ;;  %v554_v61 = vadd.f32 %v712_v57, %v879_v22  ;;  %v570_v62 = vadd.f32 %v728_v58, %v879_v22 }
  0xe8   :  { %v333_v63 = vpop.f32.mrf.mxu0  ;;  %v397_v0 = vpop.f32.mrf.mxu1 }
  0xe9   :  { %615 = vst [vmem:[%s1012_s3 + $0x20] sm:$0xff] %v583_v59  ;;  %631 = vst [vmem:[%s1012_s3 + $0xa0] sm:$0xff] %v599_v60  ;;  %v586_v1 = vmax.f32 %v554_v61, 0.0  ;;  %v602_v2 = vmax.f32 %v570_v62, 0.0  ;;  %v552_v3 = vadd.f32 %v879_v22, %v333_v63  ;;  %v568_v4 = vadd.f32 %v879_v22, %v397_v0 }
  0xea   :  { %v715_v5 = vpop.f32.mrf.mxu0  ;;  %v731_v6 = vpop.f32.mrf.mxu1 }
  0xeb   :  { %618 = vst [vmem:[%s1012_s3 + $0x38] sm:$0xff] %v586_v1  ;;  %634 = vst [vmem:[%s1012_s3 + $0xb8] sm:$0xff] %v602_v2  ;;  %v584_v7 = vmax.f32 %v552_v3, 0.0  ;;  %v600_v8 = vmax.f32 %v568_v4, 0.0  ;;  %v557_v9 = vadd.f32 %v715_v5, %v879_v22  ;;  %v573_v10 = vadd.f32 %v731_v6, %v879_v22 }
  0xec   :  { %v346_v11 = vpop.f32.mrf.mxu0  ;;  %v410_v12 = vpop.f32.mrf.mxu1 }
  0xed   :  { %616 = vst [vmem:[%s1012_s3 + $0x28] sm:$0xff] %v584_v7  ;;  %632 = vst [vmem:[%s1012_s3 + $0xa8] sm:$0xff] %v600_v8  ;;  %v589_v13 = vmax.f32 %v557_v9, 0.0  ;;  %v605_v14 = vmax.f32 %v573_v10, 0.0  ;;  %v555_v15 = vadd.f32 %v879_v22, %v346_v11  ;;  %v571_v16 = vadd.f32 %v879_v22, %v410_v12 }
  0xee   :  { %v716_v17 = vpop.f32.mrf.mxu0  ;;  %v732_v18 = vpop.f32.mrf.mxu1 }
  0xef   :  { %621 = vst [vmem:[%s1012_s3 + $0x50] sm:$0xff] %v589_v13  ;;  %637 = vst [vmem:[%s1012_s3 + $0xd0] sm:$0xff] %v605_v14  ;;  %v587_v19 = vmax.f32 %v555_v15, 0.0  ;;  %v603_v20 = vmax.f32 %v571_v16, 0.0  ;;  %v558_v21 = vadd.f32 %v716_v17, %v879_v22  ;;  %v574_v23 = vadd.f32 %v732_v18, %v879_v22 }
  0xf0   :  { %v349_v24 = vpop.f32.mrf.mxu0  ;;  %v413_v25 = vpop.f32.mrf.mxu1 }
  0xf1   :  { %619 = vst [vmem:[%s1012_s3 + $0x40] sm:$0xff] %v587_v19  ;;  %635 = vst [vmem:[%s1012_s3 + $0xc0] sm:$0xff] %v603_v20  ;;  %v590_v26 = vmax.f32 %v558_v21, 0.0  ;;  %v606_v27 = vmax.f32 %v574_v23, 0.0  ;;  %v556_v28 = vadd.f32 %v879_v22, %v349_v24  ;;  %v572_v29 = vadd.f32 %v879_v22, %v413_v25 }
  0xf2   :  { %v719_v30 = vpop.f32.mrf.mxu0  ;;  %v735_v31 = vpop.f32.mrf.mxu1 }
  0xf3   :  { %622 = vst [vmem:[%s1012_s3 + $0x58] sm:$0xff] %v590_v26  ;;  %638 = vst [vmem:[%s1012_s3 + $0xd8] sm:$0xff] %v606_v27  ;;  %v588_v32 = vmax.f32 %v556_v28, 0.0  ;;  %v604_v33 = vmax.f32 %v572_v29, 0.0  ;;  %v561_v34 = vadd.f32 %v719_v30, %v879_v22  ;;  %v577_v35 = vadd.f32 %v735_v31, %v879_v22 }
  0xf4   :  { %v362_v36 = vpop.f32.mrf.mxu0  ;;  %v426_v37 = vpop.f32.mrf.mxu1 }
  0xf5   :  { %620 = vst [vmem:[%s1012_s3 + $0x48] sm:$0xff] %v588_v32  ;;  %636 = vst [vmem:[%s1012_s3 + $0xc8] sm:$0xff] %v604_v33  ;;  %v593_v38 = vmax.f32 %v561_v34, 0.0  ;;  %v609_v39 = vmax.f32 %v577_v35, 0.0  ;;  %v559_v40 = vadd.f32 %v879_v22, %v362_v36  ;;  %v575_v41 = vadd.f32 %v879_v22, %v426_v37 }
  0xf6   :  { %v720_v42 = vpop.f32.mrf.mxu0  ;;  %v736_v43 = vpop.f32.mrf.mxu1 }
  0xf7   :  { %625 = vst [vmem:[%s1012_s3 + $0x70] sm:$0xff] %v593_v38  ;;  %641 = vst [vmem:[%s1012_s3 + $0xf0] sm:$0xff] %v609_v39  ;;  %v591_v44 = vmax.f32 %v559_v40, 0.0  ;;  %v607_v45 = vmax.f32 %v575_v41, 0.0  ;;  %v562_v46 = vadd.f32 %v720_v42, %v879_v22  ;;  %v578_v47 = vadd.f32 %v736_v43, %v879_v22 }
  0xf8   :  { %v365_v48 = vpop.f32.mrf.mxu0  ;;  %v429_v49 = vpop.f32.mrf.mxu1 }
  0xf9   :  { %623 = vst [vmem:[%s1012_s3 + $0x60] sm:$0xff] %v591_v44  ;;  %639 = vst [vmem:[%s1012_s3 + $0xe0] sm:$0xff] %v607_v45  ;;  %v594_v50 = vmax.f32 %v562_v46, 0.0  ;;  %v610_v51 = vmax.f32 %v578_v47, 0.0  ;;  %v560_v52 = vadd.f32 %v879_v22, %v365_v48  ;;  %v576_v53 = vadd.f32 %v879_v22, %v429_v49 }
  0xfb   :  { %626 = vst [vmem:[%s1012_s3 + $0x78] sm:$0xff] %v594_v50  ;;  %642 = vst [vmem:[%s1012_s3 + $0xf8] sm:$0xff] %v610_v51  ;;  %v592_v54 = vmax.f32 %v560_v52, 0.0  ;;  %v608_v55 = vmax.f32 %v576_v53, 0.0 }
  0xfd   :  { %624 = vst [vmem:[%s1012_s3 + $0x68] sm:$0xff] %v592_v54  ;;  %640 = vst [vmem:[%s1012_s3 + $0xe8] sm:$0xff] %v608_v55 }
  0xfe   :  { %647 = vsyncpa [#allocation4], 1 }

// kernel: forward.8
= control target key start
LH: loop header
LB: loop body
LE: loop exit
PB: predicated region body
PF: predicated region fallthrough
CT: control target
= control target key end

     0   :  { %s788_s12 = smov 0   ;;  %s790_s13 = smov 0   ;;  %s903_s0 = inlined_call_operand.vmem [shape: bf16[42,16], index: 0, kind: input, shape index: {}]   ;;  %s904_s1 = inlined_call_operand.vmem [shape: bf16[16,512], index: 1, kind: input, shape index: {}]   ;;  %s905_s2 = inlined_call_operand.vmem [shape: f32[1,512], index: 2, kind: input, shape index: {}]   ;;  %s906_s3 = inlined_call_operand.vmem [shape: f32[42,512], index: 3, kind: output, shape index: {}]  }
   0x1   :  { %s792_s14 = smov 0   ;;  %s794_s15 = smov 0  }
   0x2   :  { %s796_s16 = smov 0  }
   0x3 LB: > { %s28_s17 = sadd.s32 1, %s760_s15  ;;  %s650_s18 = sadd.s32 4294967295, %s764_s16   ;;  %s764_s16 = sphi %s796_s16, %s13_s16   ;;  %s760_s15 = sphi %s794_s15, %s911_s15   ;;  %s756_s14 = sphi %s792_s14, %s910_s14   ;;  %s752_s13 = sphi %s790_s13, %s909_s13   ;;  %s748_s12 = sphi %s788_s12, %s908_s12  }
   0x4   : > { %p30_p0 = scmp.ge.s32.totalorder %s28_s17, 2  ;;  %p76_p1 = scmp.ne.s32.totalorder %s752_s13, %s748_s12 }
   0x5   : > { %p77_p2 = scmp.eq.s32.totalorder %s764_s16, 0  ;;  %p134_p4 = scmp.eq.s32.totalorder %s650_s18, 1 }
   0x6   : > { %s913_s17 = smov (%p30_p0, %s28_s17), 0  ;;  %s69_s20 = sadd.s32 1, %s752_s13 }
   0x7   : > { %p78_p3 = por %p77_p2, %p76_p1  ;;  %s65_s19 = ssub.s32 %s760_s15, %s913_s17 }
   0x8   : > { %p67_p5 = scmp.eq.s32.totalorder %s65_s19, 0  ;;  %p823_p6 = por %p134_p4, %p76_p1 }
   0x9   : > { %p654_p7 = scmp.ge.s32.totalorder %s764_s16, 2 }
   0xa   : > { %s828_s22 = scalar_select %p67_p5, %s752_s13, %s69_s20  }
   0xb   : > { %168 = sbr.rel (%p654_p7) target bundleno = 21 (0x15), region = 20 }
  0x10   : > { %171 = sbr.rel (!%p78_p3) target bundleno = 21 (0x15), region = 24  ;;  %s173_s23 = sand.u32 (%p78_p3), 1, %s752_s13  }
  0x11   : > { %s673_s24 = sshll.u32 (%p78_p3), %s760_s15, 3  ;;  %s655_s25 = sshll.u32 (%p78_p3), %s173_s23, 4 }
  0x12   : > { %s181_s28 = scalar_lea.vmem (%p78_p3), %s904_s1, %s673_s24  ;;  %s175_s29 = scalar_lea.vmem (%p78_p3), [#allocation3], %s655_s25 }
  0x13   : > { %v212_v0 = vld [vmem:[%s181_s28] sm:$0xff] (%p78_p3)  ;;  %v214_v1 = vld [vmem:[%s181_s28 + $0x10] sm:$0xff] (%p78_p3) }
  0x14   : > { %213 = vst [vmem:[%s175_s29] sm:$0xff] (%p78_p3), %v212_v0  ;;  %215 = vst [vmem:[%s175_s29 + $0x8] sm:$0xff] (%p78_p3), %v214_v1 }
  0x15 PF: > { %p658_p8 = scmp.ge.s32.totalorder %s764_s16, 1  ;;  %p228_p9 = scmp.lt.s32.totalorder %s764_s16, 3 }
  0x17   : > { %p229_p10 = pnand %p658_p8, %p228_p9 }
  0x18   : > { %s235_s30 = sand.u32 (!%p229_p10), 1, %s748_s12   ;;  %s660_s18 = sshll.u32 (!%p229_p10), %s756_s14, 1 }
  0x19   : > { %232 = sbr.rel (%p229_p10) target bundleno = 264 (0x108), region = 66  ;;  %s659_s4 = sshll.u32 (!%p229_p10), %s235_s30, 4 }
  0x1a   : > { %s237_s5 = scalar_lea.vmem (!%p229_p10), [#allocation3], %s659_s4  ;;  %p281_p11 = scmp.lt.s32.totalorder (!%p229_p10), %s660_s18, 3 }
  0x1b   : > { %s677_s24 = smul.u32 (!%p229_p10), 96, %s235_s30 }
  0x1d   : > { %s856_s25 = scalar_lea.vmem (!%p229_p10), [#allocation4], %s677_s24 }
  0x1e   : > { %v766_v2 = vmov 0   ;;  %v720_v3 = vld [vmem:[%s237_s5 + $0x4] ss:$8 sps:$4 sm:$0xff]   ;;  %v722_v4 = vld [vmem:[%s237_s5] ss:$8 sps:$4 sm:$0xff]   ;;  %vm349_vm0 = vcmask 130048   ;;  %v463_v9 = vlaneseq }
  0x1f   : > { %401 = vmatprep.mubr.bf16.mxu1 %v766_v2  ;;  %391 = vmatprep.mubr.bf16.mxu0 %v766_v2  ;;  %v723_v5 = vld [vmem:[%s903_s0 + $0x8] sm:$0xff]   ;;  %v724_v6 = vld [vmem:[%s903_s0] sm:$0xff]   ;;  %v767_v7 = vmov 0.0   ;;  %v725_v8 = vld [vmem:[%s903_s0 + $0x10] sm:$0x1f]   ;;  %s915_s18 = smov (!%p281_p11, %s660_s18), 3 }
  0x20   : > { %675 = vmatprep.subr.bf16.mxu1 %v720_v3  ;;  %373 = vmatprep.subr.bf16.mxu0 %v720_v3  ;;  %302 = vst [vmem:[#allocation2 + $0x10] sm:$0x3] %v767_v7  ;;  %303 = vst [vmem:[#allocation2 + $0x40] sm:$0x3] %v767_v7  ;;  %v464_v10 = vshrl.u32 %v463_v9, 7  ;;  %s283_s23 = scalar_lea.vmem %s905_s2, %s915_s18  ;;  %s674_s12 = sshll.u32 (%p823_p6), %s756_s14, 4 }
  0x21   : > { %676 = vmatpush1.bf16.msra.mxu1 %v722_v4  ;;  %374 = vmatpush1.bf16.msra.mxu0 %v722_v4  ;;  %v461_v12 = vld [vmem:[%s283_s23] sm:$0x3]  ;;  %s509_s28 = scalar_lea.vmem (%p823_p6), %s906_s3, %s674_s12 }
  0x22   : > { %v465_v11 = vsub.s32 0, %v464_v10  ;;  %v469_v13 = vsub.s32 1, %v464_v10 }
  0x24   : > { %667 = vmatmul.mubr.msk.bf16.vlgmr.msra.gmra.mxu1 %vm349_vm0, %v723_v5  ;;  %666 = vmatmul.mubr.msk.bf16.vlgmr.msra.gmra.mxu0 %vm349_vm0, %v724_v6  ;;  %v466_v14 = vrot.slane %v461_v12, %v465_v11  ;;  %v470_v17 = vrot.slane %v461_v12, %v469_v13 }
  0x25   : > { %411 = vmatprep.mubr.bf16.mxu1 %v766_v2 }
  0x27   : > { %v314_v34 = vld [vmem:[#allocation2 + $0x10] sm:$0x3]  ;;  %v315_v37 = vld [vmem:[#allocation2 + $0x40] sm:$0x3] }
  0x2c   : > { %668 = vmatmul.mubr.msk.bf16.gmra.mxu1 %vm349_vm0, %v725_v8 }
  0xe4   : > { %v403_v15 = vpop.f32.mrf.mxu1  ;;  %v393_v16 = vpop.f32.mrf.mxu0 }
  0xe5   : > { %v477_v20 = vadd.f32 %v466_v14, %v403_v15  ;;  %v473_v21 = vadd.f32 %v466_v14, %v393_v16 }
  0xe6   : > { %v405_v18 = vpop.f32.mrf.mxu1  ;;  %v395_v19 = vpop.f32.mrf.mxu0 }
  0xe7   : > { %489 = vst [vmem:[%s856_s25 + $0x20] sm:$0xff] %v477_v20  ;;  %485 = vst [vmem:[%s856_s25] sm:$0xff] %v473_v21  ;;  %v478_v24 = vadd.f32 %v470_v17, %v405_v18  ;;  %v474_v25 = vadd.f32 %v470_v17, %v395_v19 }
  0xe8   : > { %v407_v22 = vpop.f32.mrf.mxu1  ;;  %v397_v23 = vpop.f32.mrf.mxu0 }
  0xe9   : > { %490 = vst [vmem:[%s856_s25 + $0x28] sm:$0xff] %v478_v24  ;;  %486 = vst [vmem:[%s856_s25 + $0x8] sm:$0xff] %v474_v25  ;;  %v479_v28 = vadd.f32 %v466_v14, %v407_v22  ;;  %v475_v29 = vadd.f32 %v466_v14, %v397_v23 }
  0xea   : > { %v409_v26 = vpop.f32.mrf.mxu1  ;;  %v399_v27 = vpop.f32.mrf.mxu0 }
  0xeb   : > { %491 = vst [vmem:[%s856_s25 + $0x30] sm:$0xff] %v479_v28  ;;  %487 = vst [vmem:[%s856_s25 + $0x10] sm:$0xff] %v475_v29  ;;  %v480_v31 = vadd.f32 %v470_v17, %v409_v26  ;;  %v476_v32 = vadd.f32 %v470_v17, %v399_v27 }
  0xec   : > { %v413_v30 = vpop.f32.mrf.mxu1 }
  0xed   : > { %492 = vst [vmem:[%s856_s25 + $0x38] sm:$0xff] %v480_v31  ;;  %488 = vst [vmem:[%s856_s25 + $0x18] sm:$0xff] %v476_v32  ;;  %v481_v35 = vadd.f32 %v466_v14, %v413_v30 }
  0xee   : > { %v415_v33 = vpop.f32.mrf.mxu1  ;;  %v522_v46 = vld [vmem:[%s856_s25] sm:$0xff] (%p823_p6) }
  0xef   : > { %493 = vst [vmem:[%s856_s25 + $0x40] sm:$0xff] %v481_v35  ;;  %v482_v38 = vadd.f32 %v470_v17, %v415_v33  ;;  %v530_v50 = vld [vmem:[%s856_s25 + $0x20] sm:$0xff] (%p823_p6)  ;;  %523 = vst [vmem:[%s509_s28] sm:$0xff] (%p823_p6), %v522_v46 }
  0xf0   : > { %v417_v36 = vpop.f32.mrf.mxu1  ;;  %v524_v47 = vld [vmem:[%s856_s25 + $0x8] sm:$0xff] (%p823_p6)  ;;  %531 = vst [vmem:[%s509_s28 + $0x40] sm:$0xff] (%p823_p6), %v530_v50 }
  0xf1   : > { %v432_v39 = vadd.f32 %v417_v36, %v314_v34  ;;  %494 = vst [vmem:[%s856_s25 + $0x48] sm:$0xff] %v482_v38  ;;  %v532_v51 = vld [vmem:[%s856_s25 + $0x28] sm:$0xff] (%p823_p6)  ;;  %525 = vst [vmem:[%s509_s28 + $0x8] sm:$0xff] (%p823_p6), %v524_v47 }
  0xf2   : > { %v419_v40 = vpop.f32.mrf.mxu1  ;;  %v526_v48 = vld [vmem:[%s856_s25 + $0x10] sm:$0xff] (%p823_p6)  ;;  %533 = vst [vmem:[%s509_s28 + $0x48] sm:$0xff] (%p823_p6), %v532_v51 }
  0xf3   : > { %444 = vst [vmem:[#allocation2 + $0x10] sm:$0x3] %v432_v39  ;;  %v433_v41 = vadd.f32 %v419_v40, %v315_v37  ;;  %527 = vst [vmem:[%s509_s28 + $0x20] sm:$0xff] (%p823_p6), %v526_v48  ;;  %v534_v52 = vld [vmem:[%s856_s25 + $0x30] sm:$0xff] (%p823_p6) }
  0xf4   : > { %v528_v49 = vld [vmem:[%s856_s25 + $0x18] sm:$0xff] (%p823_p6)  ;;  %535 = vst [vmem:[%s509_s28 + $0x60] sm:$0xff] (%p823_p6), %v534_v52 }
  0xf5   : > { %445 = vst [vmem:[#allocation2 + $0x40] sm:$0x3] %v433_v41  ;;  %529 = vst [vmem:[%s509_s28 + $0x28] sm:$0xff] (%p823_p6), %v528_v49  ;;  %v536_v53 = vld [vmem:[%s856_s25 + $0x38] sm:$0xff] (%p823_p6) }
  0xf6   : > { %v538_v54 = vld [vmem:[%s856_s25 + $0x40] sm:$0xff] (%p823_p6)  ;;  %537 = vst [vmem:[%s509_s28 + $0x68] sm:$0xff] (%p823_p6), %v536_v53 }
  0xf7   : > { %539 = vst [vmem:[%s509_s28 + $0x80] sm:$0xff] (%p823_p6), %v538_v54 }
  0xf8   : > { %v540_v55 = vld [vmem:[%s856_s25 + $0x48] sm:$0xff] (%p823_p6) }
  0xf9   : > { %541 = vst [vmem:[%s509_s28 + $0x88] sm:$0xff] (%p823_p6), %v540_v55 }
  0xfa   : > { %v459_v42 = vld [vmem:[#allocation2 + $0x10] sm:$0x3] }
  0xfb   : > { %v483_v43 = vadd.f32 %v466_v14, %v459_v42  ;;  %503 = sbr.rel (!%p823_p6) target bundleno = 264 (0x108), region = 82 }
  0xfc   : > { %v460_v44 = vld [vmem:[#allocation2 + $0x40] sm:$0x3] }
  0xfd   : > { %495 = vst [vmem:[%s856_s25 + $0x50] sm:$0x3] %v483_v43  ;;  %v484_v45 = vadd.f32 %v470_v17, %v460_v44 }
  0xff   : > { %496 = vst [vmem:[%s856_s25 + $0x58] sm:$0x3] %v484_v45 }
 0x104   : > { %v542_v56 = vld [vmem:[%s856_s25 + $0x50] sm:$0xff] }
 0x105   : > { %543 = vst [vmem:[%s509_s28 + $0xa0] sm:$0xff] %v542_v56 }
 0x106   : > { %v544_v57 = vld [vmem:[%s856_s25 + $0x58] sm:$0xff] }
 0x107   : > { %545 = vst [vmem:[%s509_s28 + $0xa8] sm:$0xff] %v544_v57 }
 0x108 PF: > { %s13_s16 = sadd.s32 1, %s764_s16   ;;  %s908_s12 = smov %s752_s13 }
 0x109   : > { %p10_p12 = scmp.ge.s32.totalorder %s13_s16, 4   ;;  %s909_s13 = smov %s828_s22 }
 0x10a   : > { %s910_s14 = smov %s760_s15  ;;  %s911_s15 = smov %s913_s17 }
 0x10b   :  { %12 = sbr.rel (!%p10_p12) target bundleno = 3 (0x3), region = 142 }

// kernel: forward.6
= control target key start
LH: loop header
LB: loop body
LE: loop exit
PB: predicated region body
PF: predicated region fallthrough
CT: control target
= control target key end

     0   :  { %9 = vsyncpa [#allocation3], 0  ;;  %s5078_s15 = smov [#allocation2]   ;;  %s7438_s0 = inlined_call_operand.vmem [shape: f32[372,32], index: 0, kind: input, shape index: {}]   ;;  %s7439_s1 = inlined_call_operand.vmem [shape: f32[324,1], index: 1, kind: input, shape index: {}]   ;;  %s7440_s2 = inlined_call_operand.hbm [shape: bf16[9,32,128], index: 2, kind: input, shape index: {}]   ;;  %s7441_s3 = inlined_call_operand.vmem [shape: f32[1,128], index: 3, kind: input, shape index: {}]   ;;  %s7442_s4 = inlined_call_operand.vmem [shape: f32[324,128], index: 4, kind: output, shape index: {}]  }
   0x1   :  { %s19_s16 = sshll.u32 %s5078_s15, 4  ;;  %s20_s16 = int_to_ptr.vmem [resolvable:$true] %s19_s16 }
   0x2   :  { %s5064_s17 = scalar_lea.vmem %s20_s16, 2304  ;;  %p5069_p1 = scmp.lt.s32.totalorder %s20_s16, %s20_s16 }
   0x3   :  { %p5065_p0 = scmp.ne.s32.totalorder %s20_s16, %s5064_s17  ;;  %p5070_p2 = scmp.lt.s32.totalorder %s5064_s17, %s5064_s17 }
   0x5   :  { %p5071_p3 = por %p5070_p2, %p5069_p1 }
   0x7   :  { %p5072_p4 = pnand %p5071_p3, %p5065_p0 }
   0x9   :  { %5075 = shalt.err (!%p5072_p4)
}
   0xa   :  { %s5079_s18 = smov 64   ;;  %s5080_s19 = smov 4  }
   0xb   :  { %25 = dma.hbm_to_vmem [thread:$0]  %s7440_s2, 2304, %s20_s16, [#allocation3], %s5079_s18, %s5079_s18, %s5080_s19  }
   0xc   :  { %5076 = dma.done.wait [#allocation3], 2304  }
   0xd   :  { %5077 = vsyncadd [#allocation3], 4294964992  ;;  %v7443_v0 = vmov 0.0   ;;  %vm5082_vm0 = vmmov 0   ;;  %v5038_v1 = vld [vmem:[#allocation2 + $0x18] sm:$0xff]   ;;  %v5039_v2 = vld [vmem:[#allocation2 + $0x10] sm:$0xff]  }
   0xe   :  { %4234 = vmatprep.subr.bf16.mxu0 %v7443_v0  ;;  %5026 = vmatprep.subr.bf16.mxu1 %v7443_v0  ;;  %v139_v3 = vld [vmem:[%s7438_s0 + $0x6] sm:$0xff]  ;;  %v140_v4 = vld [vmem:[%s7438_s0 + $0xe] sm:$0xff]  ;;  %v161_v5 = vld [vmem:[%s7438_s0 + $0xb6] sm:$0xff]  ;;  %vm218_vm1 = vcmask 261120  }
   0xf   :  { %4238 = vmatprep.mubr.msk.bf16.mxu0 %vm5082_vm0, %v7443_v0  ;;  %4282 = vmatprep.mubr.msk.bf16.mxu1 %vm5082_vm0, %v7443_v0  ;;  %v162_v6 = vld [vmem:[%s7438_s0 + $0xbe] sm:$0xff]  ;;  %v180_v7 = vpack.c.bf16 %v140_v4, %v139_v3  ;;  %v5040_v9 = vld [vmem:[#allocation2 + $0x28] sm:$0xff]   ;;  %v141_v11 = vld [vmem:[%s7438_s0 + $0x16] sm:$0xff] }
  0x10   :  { %4235 = vmatpush3.bf16.msra.mxu0 %v5038_v1  ;;  %5028 = vmatpush3.bf16.msra.mxu1 %v5038_v1  ;;  %v191_v8 = vpack.c.bf16 %v162_v6, %v161_v5  ;;  %v5041_v10 = vld [vmem:[#allocation2 + $0x8] sm:$0xff]   ;;  %v142_v12 = vld [vmem:[%s7438_s0 + $0x1e] sm:$0xff]  ;;  %v165_v21 = vld [vmem:[%s7438_s0 + $0xd6] sm:$0xff] }
  0x11   :  { %4236 = vmatprep.subr.bf16.mxu0 %v7443_v0  ;;  %5027 = vmatprep.subr.bf16.mxu1 %v7443_v0  ;;  %v163_v13 = vld [vmem:[%s7438_s0 + $0xc6] sm:$0xff]  ;;  %v164_v14 = vld [vmem:[%s7438_s0 + $0xce] sm:$0xff]  ;;  %v181_v16 = vpack.c.bf16 %v142_v12, %v141_v11  ;;  %v166_v22 = vld [vmem:[%s7438_s0 + $0xde] sm:$0xff] }
  0x12   :  { %v5042_v15 = vld [vmem:[#allocation2 + $0x20] sm:$0xff]   ;;  %v192_v17 = vpack.c.bf16 %v164_v14, %v163_v13  ;;  %v144_v20 = vld [vmem:[%s7438_s0 + $0x2e] sm:$0xff]  ;;  %v193_v24 = vpack.c.bf16 %v166_v22, %v165_v21  ;;  %v145_v25 = vld [vmem:[%s7438_s0 + $0x36] sm:$0xff] }
  0x13   :  { %v5043_v18 = vld [vmem:[#allocation2] sm:$0xff]   ;;  %v168_v28 = vld [vmem:[%s7438_s0 + $0xee] sm:$0xff]  ;;  %v169_v33 = vld [vmem:[%s7438_s0 + $0xf6] sm:$0xff] }
  0x14   :  { %4237 = vmatpush3.bf16.msra.mxu0 %v5039_v2  ;;  %5029 = vmatpush3.bf16.msra.mxu1 %v5039_v2  ;;  %v143_v19 = vld [vmem:[%s7438_s0 + $0x26] sm:$0xff]  ;;  %v146_v26 = vld [vmem:[%s7438_s0 + $0x3e] sm:$0xff]  ;;  %v148_v32 = vld [vmem:[%s7438_s0 + $0x4e] sm:$0xff] }
  0x15   :  { %4410 = vmatprep.subr.bf16.mxu0 %v7443_v0  ;;  %4322 = vmatprep.subr.bf16.mxu1 %v7443_v0  ;;  %v182_v23 = vpack.c.bf16 %v144_v20, %v143_v19  ;;  %v167_v27 = vld [vmem:[%s7438_s0 + $0xe6] sm:$0xff]  ;;  %v183_v29 = vpack.c.bf16 %v146_v26, %v145_v25  ;;  %v170_v34 = vld [vmem:[%s7438_s0 + $0xfe] sm:$0xff]  ;;  %v149_v37 = vld [vmem:[%s7438_s0 + $0x56] sm:$0xff] }
  0x16   :  { %v194_v30 = vpack.c.bf16 %v168_v28, %v167_v27  ;;  %v147_v31 = vld [vmem:[%s7438_s0 + $0x46] sm:$0xff]  ;;  %v195_v36 = vpack.c.bf16 %v170_v34, %v169_v33  ;;  %v150_v38 = vld [vmem:[%s7438_s0 + $0x5e] sm:$0xff]  ;;  %v172_v40 = vld [vmem:[%s7438_s0 + $0x10e] sm:$0xff] }
  0x17   :  { %4239 = vmatmul.mubr.msk.bf16.vlgmr.msra.gmra.mxu0 %vm218_vm1, %v180_v7  ;;  %4283 = vmatmul.mubr.msk.bf16.vlgmr.msra.gmra.mxu1 %vm218_vm1, %v191_v8  ;;  %v184_v35 = vpack.c.bf16 %v148_v32, %v147_v31  ;;  %v171_v39 = vld [vmem:[%s7438_s0 + $0x106] sm:$0xff]  ;;  %v185_v41 = vpack.c.bf16 %v150_v38, %v149_v37  ;;  %v152_v44 = vld [vmem:[%s7438_s0 + $0x6e] sm:$0xff]  ;;  %v173_v45 = vld [vmem:[%s7438_s0 + $0x116] sm:$0xff] }
  0x18   :  { %4411 = vmatpush3.bf16.msra.mxu0 %v5040_v9  ;;  %4242 = vmatprep.mubr.msk.bf16.mxu0 %vm5082_vm0, %v7443_v0  ;;  %v196_v42 = vpack.c.bf16 %v172_v40, %v171_v39  ;;  %v151_v43 = vld [vmem:[%s7438_s0 + $0x66] sm:$0xff]  ;;  %v174_v46 = vld [vmem:[%s7438_s0 + $0x11e] sm:$0xff]  ;;  %v153_v49 = vld [vmem:[%s7438_s0 + $0x76] sm:$0xff] }
  0x19   :  { %4286 = vmatprep.mubr.msk.bf16.mxu1 %vm5082_vm0, %v7443_v0  ;;  %4323 = vmatpush3.bf16.msra.mxu1 %v5041_v10  ;;  %v186_v47 = vpack.c.bf16 %v152_v44, %v151_v43  ;;  %v197_v48 = vpack.c.bf16 %v174_v46, %v173_v45  ;;  %v154_v50 = vld [vmem:[%s7438_s0 + $0x7e] sm:$0xff]  ;;  %v175_v51 = vld [vmem:[%s7438_s0 + $0x126] sm:$0xff]  ;;  %v176_v52 = vld [vmem:[%s7438_s0 + $0x12e] sm:$0xff] }
  0x1a   :  { %4412 = vmatprep.subr.bf16.mxu0 %v7443_v0  ;;  %4324 = vmatprep.subr.bf16.mxu1 %v7443_v0  ;;  %v187_v53 = vpack.c.bf16 %v154_v50, %v153_v49  ;;  %v198_v54 = vpack.c.bf16 %v176_v52, %v175_v51  ;;  %v155_v55 = vld [vmem:[%s7438_s0 + $0x86] sm:$0xff]  ;;  %v156_v56 = vld [vmem:[%s7438_s0 + $0x8e] sm:$0xff]  ;;  %v177_v57 = vld [vmem:[%s7438_s0 + $0x136] sm:$0xff] }
  0x1b   :  { %v178_v58 = vld [vmem:[%s7438_s0 + $0x13e] sm:$0xff]  ;;  %v188_v59 = vpack.c.bf16 %v156_v56, %v155_v55  ;;  %v157_v61 = vld [vmem:[%s7438_s0 + $0x96] sm:$0xff]  ;;  %v179_v63 = vld [vmem:[%s7438_s0 + $0x146] sm:$0xf] }
  0x1c   :  { %4413 = vmatpush3.bf16.msra.mxu0 %v5042_v15  ;;  %v199_v60 = vpack.c.bf16 %v178_v58, %v177_v57  ;;  %v158_v62 = vld [vmem:[%s7438_s0 + $0x9e] sm:$0xff]  ;;  %v200_v2 = vpack.c.bf16 %v179_v63, %v179_v63  ;;  %v159_v3 = vld [vmem:[%s7438_s0 + $0xa6] sm:$0xff]  ;;  %v160_v4 = vld [vmem:[%s7438_s0 + $0xae] sm:$0xff] }
  0x1d   :  { %4325 = vmatpush3.bf16.msra.mxu1 %v5043_v18  ;;  %4586 = vmatprep.subr.bf16.mxu0 %v7443_v0  ;;  %v189_v1 = vpack.c.bf16 %v158_v62, %v157_v61  ;;  %v73_v5 = vld [vmem:[%s7438_s0 + $0x5] sm:$0xff]  ;;  %v74_v6 = vld [vmem:[%s7438_s0 + $0xd] sm:$0xff]  ;;  %v190_v7 = vpack.c.bf16 %v160_v4, %v159_v3  ;;  %v5044_v9 = vld [vmem:[#allocation2 + $0x38] sm:$0xff]  }
  0x1e   :  { %4498 = vmatprep.subr.bf16.mxu1 %v7443_v0  ;;  %v114_v8 = vpack.c.bf16 %v74_v6, %v73_v5  ;;  %v75_v10 = vld [vmem:[%s7438_s0 + $0x15] sm:$0xff]  ;;  %v76_v11 = vld [vmem:[%s7438_s0 + $0x1d] sm:$0xff]  ;;  %v757_v12 = vld [vmem:[%s7438_s0 + $0x7] sm:$0xff] }
  0x1f   :  { %4243 = vmatmul.mubr.msk.bf16.gmra.mxu0 %vm218_vm1, %v181_v16  ;;  %4287 = vmatmul.mubr.msk.bf16.gmra.mxu1 %vm218_vm1, %v192_v17  ;;  %v758_v13 = vld [vmem:[%s7438_s0 + $0xf] sm:$0xff]  ;;  %v115_v15 = vpack.c.bf16 %v76_v11, %v75_v10  ;;  %v77_v18 = vld [vmem:[%s7438_s0 + $0x25] sm:$0xff]  ;;  %v759_v20 = vld [vmem:[%s7438_s0 + $0x17] sm:$0xff] }
  0x20   :  { %4246 = vmatprep.mubr.msk.bf16.mxu0 %vm5082_vm0, %v7443_v0  ;;  %4290 = vmatprep.mubr.msk.bf16.mxu1 %vm5082_vm0, %v7443_v0  ;;  %v5046_v14 = vld [vmem:[#allocation2 + $0x30] sm:$0xff]   ;;  %v798_v16 = vpack.c.bf16 %v758_v13, %v757_v12  ;;  %v5045_v17 = vld [vmem:[#allocation2 + $0x48] sm:$0xff]   ;;  %v760_v21 = vld [vmem:[%s7438_s0 + $0x1f] sm:$0xff] }
  0x21   :  { %v78_v19 = vld [vmem:[%s7438_s0 + $0x2d] sm:$0xff]  ;;  %v5047_v22 = vld [vmem:[#allocation2 + $0x40] sm:$0xff]   ;;  %v79_v25 = vld [vmem:[%s7438_s0 + $0x35] sm:$0xff] }
  0x22   :  { %v80_v26 = vld [vmem:[%s7438_s0 + $0x3d] sm:$0xff]  ;;  %v761_v27 = vld [vmem:[%s7438_s0 + $0x27] sm:$0xff]  ;;  %v762_v28 = vld [vmem:[%s7438_s0 + $0x2f] sm:$0xff] }
  0x23   :  { %v81_v31 = vld [vmem:[%s7438_s0 + $0x45] sm:$0xff]  ;;  %v82_v32 = vld [vmem:[%s7438_s0 + $0x4d] sm:$0xff]  ;;  %v763_v33 = vld [vmem:[%s7438_s0 + $0x37] sm:$0xff] }
  0x24   :  { %v764_v34 = vld [vmem:[%s7438_s0 + $0x3f] sm:$0xff]  ;;  %v83_v37 = vld [vmem:[%s7438_s0 + $0x55] sm:$0xff]  ;;  %v765_v39 = vld [vmem:[%s7438_s0 + $0x47] sm:$0xff] }
  0x25   :  { %v84_v38 = vld [vmem:[%s7438_s0 + $0x5d] sm:$0xff]  ;;  %v766_v40 = vld [vmem:[%s7438_s0 + $0x4f] sm:$0xff]  ;;  %v85_v43 = vld [vmem:[%s7438_s0 + $0x65] sm:$0xff] }
  0x26   :  { %v86_v44 = vld [vmem:[%s7438_s0 + $0x6d] sm:$0xff]  ;;  %v767_v45 = vld [vmem:[%s7438_s0 + $0x57] sm:$0xff]  ;;  %v768_v46 = vld [vmem:[%s7438_s0 + $0x5f] sm:$0xff] }
  0x27   :  { %4247 = vmatmul.mubr.msk.bf16.gmra.mxu0 %vm218_vm1, %v182_v23  ;;  %4291 = vmatmul.mubr.msk.bf16.gmra.mxu1 %vm218_vm1, %v193_v24  ;;  %v116_v23 = vpack.c.bf16 %v78_v19, %v77_v18  ;;  %v5354_v24 = vpack.c.bf16 %v760_v21, %v759_v20  ;;  %v87_v49 = vld [vmem:[%s7438_s0 + $0x75] sm:$0xff]  ;;  %v88_v50 = vld [vmem:[%s7438_s0 + $0x7d] sm:$0xff]  ;;  %v769_v51 = vld [vmem:[%s7438_s0 + $0x67] sm:$0xff] }
  0x28   :  { %4250 = vmatprep.mubr.msk.bf16.mxu0 %vm5082_vm0, %v7443_v0  ;;  %4294 = vmatprep.mubr.msk.bf16.mxu1 %vm5082_vm0, %v7443_v0  ;;  %v770_v52 = vld [vmem:[%s7438_s0 + $0x6f] sm:$0xff]  ;;  %v89_v55 = vld [vmem:[%s7438_s0 + $0x85] sm:$0xff]  ;;  %v771_v57 = vld [vmem:[%s7438_s0 + $0x77] sm:$0xff] }
  0x29   :  { %v90_v56 = vld [vmem:[%s7438_s0 + $0x8d] sm:$0xff]  ;;  %v772_v58 = vld [vmem:[%s7438_s0 + $0x7f] sm:$0xff]  ;;  %v91_v61 = vld [vmem:[%s7438_s0 + $0x95] sm:$0xff] }
  0x2a   :  { %v92_v62 = vld [vmem:[%s7438_s0 + $0x9d] sm:$0xff]  ;;  %v773_v63 = vld [vmem:[%s7438_s0 + $0x87] sm:$0xff]  ;;  %v95_v10 = vld [vmem:[%s7438_s0 + $0xb5] sm:$0xff] }
  0x2b   :  { %v93_v4 = vld [vmem:[%s7438_s0 + $0xa5] sm:$0xff]  ;;  %v94_v5 = vld [vmem:[%s7438_s0 + $0xad] sm:$0xff]  ;;  %v775_v6 = vld [vmem:[%s7438_s0 + $0x97] sm:$0xff] }
  0x2c   :  { %v96_v11 = vld [vmem:[%s7438_s0 + $0xbd] sm:$0xff]  ;;  %v777_v12 = vld [vmem:[%s7438_s0 + $0xa7] sm:$0xff]  ;;  %v778_v13 = vld [vmem:[%s7438_s0 + $0xaf] sm:$0xff] }
  0x2d   :  { %v779_v18 = vld [vmem:[%s7438_s0 + $0xb7] sm:$0xff]  ;;  %v780_v19 = vld [vmem:[%s7438_s0 + $0xbf] sm:$0xff] }
  0x2e   :  { %v5565_v21 = vpack.c.bf16 %v780_v19, %v779_v18 }
  0x2f   :  { %4251 = vmatmul.mubr.msk.bf16.gmra.mxu0 %vm218_vm1, %v183_v29  ;;  %4295 = vmatmul.mubr.msk.bf16.gmra.mxu1 %vm218_vm1, %v194_v30  ;;  %v117_v29 = vpack.c.bf16 %v80_v26, %v79_v25  ;;  %v5376_v30 = vpack.c.bf16 %v762_v28, %v761_v27  ;;  %v781_v25 = vld [vmem:[%s7438_s0 + $0xc7] sm:$0xff]  ;;  %v782_v26 = vld [vmem:[%s7438_s0 + $0xcf] sm:$0xff] }
  0x30   :  { %4254 = vmatprep.mubr.msk.bf16.mxu0 %vm5082_vm0, %v7443_v0  ;;  %4298 = vmatprep.mubr.msk.bf16.mxu1 %vm5082_vm0, %v7443_v0  ;;  %v5586_v28 = vpack.c.bf16 %v782_v26, %v781_v25 }
  0x37   :  { %4255 = vmatmul.mubr.msk.bf16.gmra.mxu0 %vm218_vm1, %v184_v35  ;;  %4299 = vmatmul.mubr.msk.bf16.gmra.mxu1 %vm218_vm1, %v195_v36  ;;  %v118_v35 = vpack.c.bf16 %v82_v32, %v81_v31  ;;  %v5397_v36 = vpack.c.bf16 %v764_v34, %v763_v33  ;;  %v102_v31 = vld [vmem:[%s7438_s0 + $0xed] sm:$0xff]  ;;  %v783_v32 = vld [vmem:[%s7438_s0 + $0xd7] sm:$0xff]  ;;  %v784_v33 = vld [vmem:[%s7438_s0 + $0xdf] sm:$0xff] }
  0x38   :  { %4258 = vmatprep.mubr.msk.bf16.mxu0 %vm5082_vm0, %v7443_v0  ;;  %4302 = vmatprep.mubr.msk.bf16.mxu1 %vm5082_vm0, %v7443_v0 }
  0x3f   :  { %4259 = vmatmul.mubr.msk.bf16.gmra.mxu0 %vm218_vm1, %v185_v41  ;;  %4303 = vmatmul.mubr.msk.bf16.gmra.mxu1 %vm218_vm1, %v196_v42  ;;  %v119_v41 = vpack.c.bf16 %v84_v38, %v83_v37  ;;  %v5418_v42 = vpack.c.bf16 %v766_v40, %v765_v39  ;;  %v103_v39 = vld [vmem:[%s7438_s0 + $0xf5] sm:$0xff]  ;;  %v104_v40 = vld [vmem:[%s7438_s0 + $0xfd] sm:$0xff] }
  0x40   :  { %4262 = vmatprep.mubr.msk.bf16.mxu0 %vm5082_vm0, %v7443_v0  ;;  %4306 = vmatprep.mubr.msk.bf16.mxu1 %vm5082_vm0, %v7443_v0 }
  0x47   :  { %4263 = vmatmul.mubr.msk.bf16.gmra.mxu0 %vm218_vm1, %v186_v47  ;;  %4307 = vmatmul.mubr.msk.bf16.gmra.mxu1 %vm218_vm1, %v197_v48  ;;  %v120_v47 = vpack.c.bf16 %v86_v44, %v85_v43  ;;  %v5439_v48 = vpack.c.bf16 %v768_v46, %v767_v45  ;;  %v786_v43 = vld [vmem:[%s7438_s0 + $0xef] sm:$0xff] }
  0x48   :  { %4266 = vmatprep.mubr.msk.bf16.mxu0 %vm5082_vm0, %v7443_v0  ;;  %4310 = vmatprep.mubr.msk.bf16.mxu1 %vm5082_vm0, %v7443_v0 }
  0x4f   :  { %4267 = vmatmul.mubr.msk.bf16.gmra.mxu0 %vm218_vm1, %v187_v53  ;;  %4311 = vmatmul.mubr.msk.bf16.gmra.mxu1 %vm218_vm1, %v198_v54  ;;  %v121_v53 = vpack.c.bf16 %v88_v50, %v87_v49  ;;  %v5460_v54 = vpack.c.bf16 %v770_v52, %v769_v51  ;;  %v129_v49 = vpack.c.bf16 %v104_v40, %v103_v39 }
  0x50   :  { %4270 = vmatprep.mubr.msk.bf16.mxu0 %vm5082_vm0, %v7443_v0  ;;  %4314 = vmatprep.mubr.msk.bf16.mxu1 %vm5082_vm0, %v7443_v0 }
  0x57   :  { %4271 = vmatmul.mubr.msk.bf16.gmra.mxu0 %vm218_vm1, %v188_v59  ;;  %4315 = vmatmul.mubr.msk.bf16.gmra.mxu1 %vm218_vm1, %v199_v60  ;;  %v122_v59 = vpack.c.bf16 %v90_v56, %v89_v55  ;;  %v5481_v60 = vpack.c.bf16 %v772_v58, %v771_v57  ;;  %v105_v56 = vld [vmem:[%s7438_s0 + $0x105] sm:$0xff]  ;;  %v106_v57 = vld [vmem:[%s7438_s0 + $0x10d] sm:$0xff]  ;;  %v787_v58 = vld [vmem:[%s7438_s0 + $0xf7] sm:$0xff] }
  0x58   :  { %4274 = vmatprep.mubr.msk.bf16.mxu0 %vm5082_vm0, %v7443_v0  ;;  %4318 = vmatprep.mubr.msk.bf16.mxu1 %vm5082_vm0, %v7443_v0 }
  0x5f   :  { %4275 = vmatmul.mubr.msk.bf16.gmra.mxu0 %vm218_vm1, %v189_v1  ;;  %4319 = vmatmul.mubr.msk.bf16.gmra.mxu1 %vm218_vm1, %v200_v2  ;;  %v774_v1 = vld [vmem:[%s7438_s0 + $0x8f] sm:$0xff]  ;;  %v123_v2 = vpack.c.bf16 %v92_v62, %v91_v61 }
  0x60   :  { %4278 = vmatprep.mubr.msk.bf16.mxu0 %vm5082_vm0, %v7443_v0  ;;  %4326 = vmatprep.mubr.msk.bf16.mxu1 %vm5082_vm0, %v7443_v0  ;;  %v5502_v3 = vpack.c.bf16 %v774_v1, %v773_v63 }
  0x67   :  { %4279 = vmatmul.mubr.msk.bf16.gmra.mxu0 %vm218_vm1, %v190_v7  ;;  %4327 = vmatmul.mubr.msk.bf16.vlgmr.msra.gmra.mxu1 %vm218_vm1, %v114_v8  ;;  %v776_v7 = vld [vmem:[%s7438_s0 + $0x9f] sm:$0xff]  ;;  %v124_v8 = vpack.c.bf16 %v94_v5, %v93_v4 }
  0x68   :  { %4330 = vmatprep.mubr.msk.bf16.mxu1 %vm5082_vm0, %v7443_v0  ;;  %4414 = vmatprep.mubr.msk.bf16.mxu0 %vm5082_vm0, %v7443_v0 }
  0x69   :  { %4499 = vmatpush3.bf16.msra.mxu1 %v5044_v9  ;;  %v5523_v9 = vpack.c.bf16 %v776_v7, %v775_v6 }
  0x6a   :  { %4500 = vmatprep.subr.bf16.mxu1 %v7443_v0 }
  0x6d   :  { %4501 = vmatpush3.bf16.msra.mxu1 %v5046_v14  ;;  %v125_v14 = vpack.c.bf16 %v96_v11, %v95_v10  ;;  %v107_v10 = vld [vmem:[%s7438_s0 + $0x115] sm:$0xff]  ;;  %v108_v11 = vld [vmem:[%s7438_s0 + $0x11d] sm:$0xff] }
  0x6e   :  { %4674 = vmatprep.subr.bf16.mxu1 %v7443_v0  ;;  %v131_v19 = vpack.c.bf16 %v108_v11, %v107_v10 }
  0x6f   :  { %4331 = vmatmul.mubr.msk.bf16.gmra.mxu1 %vm218_vm1, %v115_v15  ;;  %4415 = vmatmul.mubr.msk.bf16.vlgmr.msra.gmra.mxu0 %vm218_vm1, %v798_v16  ;;  %v5544_v15 = vpack.c.bf16 %v778_v13, %v777_v12  ;;  %v97_v16 = vld [vmem:[%s7438_s0 + $0xc5] sm:$0xff]  ;;  %v790_v13 = vld [vmem:[%s7438_s0 + $0x10f] sm:$0xff] }
  0x70   :  { %4587 = vmatpush3.bf16.msra.mxu0 %v5045_v17  ;;  %4334 = vmatprep.mubr.msk.bf16.mxu1 %vm5082_vm0, %v7443_v0  ;;  %v98_v17 = vld [vmem:[%s7438_s0 + $0xcd] sm:$0xff] }
  0x71   :  { %4418 = vmatprep.mubr.msk.bf16.mxu0 %vm5082_vm0, %v7443_v0  ;;  %4588 = vmatprep.subr.bf16.mxu0 %v7443_v0  ;;  %v126_v20 = vpack.c.bf16 %v98_v17, %v97_v16  ;;  %v789_v12 = vld [vmem:[%s7438_s0 + $0x107] sm:$0xff] }
  0x74   :  { %4589 = vmatpush3.bf16.msra.mxu0 %v5047_v22  ;;  %v99_v22 = vld [vmem:[%s7438_s0 + $0xd5] sm:$0xff] }
  0x75   :  { %4762 = vmatprep.subr.bf16.mxu0 %v7443_v0 }
  0x77   :  { %4335 = vmatmul.mubr.msk.bf16.gmra.mxu1 %vm218_vm1, %v116_v23  ;;  %4419 = vmatmul.mubr.msk.bf16.gmra.mxu0 %vm218_vm1, %v5354_v24  ;;  %v100_v23 = vld [vmem:[%s7438_s0 + $0xdd] sm:$0xff] }
  0x78   :  { %4338 = vmatprep.mubr.msk.bf16.mxu1 %vm5082_vm0, %v7443_v0  ;;  %4422 = vmatprep.mubr.msk.bf16.mxu0 %vm5082_vm0, %v7443_v0  ;;  %v127_v27 = vpack.c.bf16 %v100_v23, %v99_v22 }
  0x7f   :  { %4339 = vmatmul.mubr.msk.bf16.gmra.mxu1 %vm218_vm1, %v117_v29  ;;  %4423 = vmatmul.mubr.msk.bf16.gmra.mxu0 %vm218_vm1, %v5376_v30  ;;  %v101_v29 = vld [vmem:[%s7438_s0 + $0xe5] sm:$0xff] }
  0x80   :  { %4342 = vmatprep.mubr.msk.bf16.mxu1 %vm5082_vm0, %v7443_v0  ;;  %4426 = vmatprep.mubr.msk.bf16.mxu0 %vm5082_vm0, %v7443_v0  ;;  %v128_v34 = vpack.c.bf16 %v102_v31, %v101_v29  ;;  %v110_v29 = vld [vmem:[%s7438_s0 + $0x12d] sm:$0xff]  ;;  %v791_v31 = vld [vmem:[%s7438_s0 + $0x117] sm:$0xff] }
  0x87   :  { %4343 = vmatmul.mubr.msk.bf16.gmra.mxu1 %vm218_vm1, %v118_v35  ;;  %4427 = vmatmul.mubr.msk.bf16.gmra.mxu0 %vm218_vm1, %v5397_v36  ;;  %v5607_v35 = vpack.c.bf16 %v784_v33, %v783_v32  ;;  %v792_v32 = vld [vmem:[%s7438_s0 + $0x11f] sm:$0xff] }
  0x88   :  { %4346 = vmatprep.mubr.msk.bf16.mxu1 %vm5082_vm0, %v7443_v0  ;;  %4430 = vmatprep.mubr.msk.bf16.mxu0 %vm5082_vm0, %v7443_v0 }
  0x8f   :  { %4347 = vmatmul.mubr.msk.bf16.gmra.mxu1 %vm218_vm1, %v119_v41  ;;  %4431 = vmatmul.mubr.msk.bf16.gmra.mxu0 %vm218_vm1, %v5418_v42  ;;  %v785_v41 = vld [vmem:[%s7438_s0 + $0xe7] sm:$0xff] }
  0x90   :  { %4350 = vmatprep.mubr.msk.bf16.mxu1 %vm5082_vm0, %v7443_v0  ;;  %4434 = vmatprep.mubr.msk.bf16.mxu0 %vm5082_vm0, %v7443_v0  ;;  %v5636_v50 = vpack.c.bf16 %v786_v43, %v785_v41  ;;  %v5723_v43 = vpack.c.bf16 %v792_v32, %v791_v31 }
  0x97   :  { %4351 = vmatmul.mubr.msk.bf16.gmra.mxu1 %vm218_vm1, %v120_v47  ;;  %4435 = vmatmul.mubr.msk.bf16.gmra.mxu0 %vm218_vm1, %v5439_v48 }
  0x98   :  { %4354 = vmatprep.mubr.msk.bf16.mxu1 %vm5082_vm0, %v7443_v0  ;;  %4438 = vmatprep.mubr.msk.bf16.mxu0 %vm5082_vm0, %v7443_v0 }
  0x9f   :  { %4355 = vmatmul.mubr.msk.bf16.gmra.mxu1 %vm218_vm1, %v121_v53  ;;  %4439 = vmatmul.mubr.msk.bf16.gmra.mxu0 %vm218_vm1, %v5460_v54 }
  0xa0   :  { %4358 = vmatprep.mubr.msk.bf16.mxu1 %vm5082_vm0, %v7443_v0  ;;  %4442 = vmatprep.mubr.msk.bf16.mxu0 %vm5082_vm0, %v7443_v0 }
  0xa7   :  { %4359 = vmatmul.mubr.msk.bf16.gmra.mxu1 %vm218_vm1, %v122_v59  ;;  %4443 = vmatmul.mubr.msk.bf16.gmra.mxu0 %vm218_vm1, %v5481_v60  ;;  %v788_v59 = vld [vmem:[%s7438_s0 + $0xff] sm:$0xff] }
  0xa8   :  { %4362 = vmatprep.mubr.msk.bf16.mxu1 %vm5082_vm0, %v7443_v0  ;;  %4446 = vmatprep.mubr.msk.bf16.mxu0 %vm5082_vm0, %v7443_v0  ;;  %v5665_v4 = vpack.c.bf16 %v788_v59, %v787_v58  ;;  %v794_v58 = vld [vmem:[%s7438_s0 + $0x12f] sm:$0xff] }
  0xaf   :  { %4363 = vmatmul.mubr.msk.bf16.gmra.mxu1 %vm218_vm1, %v123_v2  ;;  %4447 = vmatmul.mubr.msk.bf16.gmra.mxu0 %vm218_vm1, %v5502_v3  ;;  %v130_v2 = vpack.c.bf16 %v106_v57, %v105_v56  ;;  %v112_v56 = vld [vmem:[%s7438_s0 + $0x13d] sm:$0xff]  ;;  %v793_v57 = vld [vmem:[%s7438_s0 + $0x127] sm:$0xff] }
  0xb0   :  { %4366 = vmatprep.mubr.msk.bf16.mxu1 %vm5082_vm0, %v7443_v0  ;;  %4450 = vmatprep.mubr.msk.bf16.mxu0 %vm5082_vm0, %v7443_v0 }
  0xb7   :  { %4367 = vmatmul.mubr.msk.bf16.gmra.mxu1 %vm218_vm1, %v124_v8  ;;  %4451 = vmatmul.mubr.msk.bf16.gmra.mxu0 %vm218_vm1, %v5523_v9 }
  0xb8   :  { %4370 = vmatprep.mubr.msk.bf16.mxu1 %vm5082_vm0, %v7443_v0  ;;  %4454 = vmatprep.mubr.msk.bf16.mxu0 %vm5082_vm0, %v7443_v0 }
  0xbf   :  { %4371 = vmatmul.mubr.msk.bf16.gmra.mxu1 %vm218_vm1, %v125_v14  ;;  %4455 = vmatmul.mubr.msk.bf16.gmra.mxu0 %vm218_vm1, %v5544_v15 }
  0xc0   :  { %4374 = vmatprep.mubr.msk.bf16.mxu1 %vm5082_vm0, %v7443_v0  ;;  %4458 = vmatprep.mubr.msk.bf16.mxu0 %vm5082_vm0, %v7443_v0 }
  0xc7   :  { %4375 = vmatmul.mubr.msk.bf16.gmra.mxu1 %vm218_vm1, %v126_v20  ;;  %4459 = vmatmul.mubr.msk.bf16.gmra.mxu0 %vm218_vm1, %v5565_v21  ;;  %v5694_v20 = vpack.c.bf16 %v790_v13, %v789_v12 }
  0xc8   :  { %4378 = vmatprep.mubr.msk.bf16.mxu1 %vm5082_vm0, %v7443_v0  ;;  %4462 = vmatprep.mubr.msk.bf16.mxu0 %vm5082_vm0, %v7443_v0 }
  0xcf   :  { %4379 = vmatmul.mubr.msk.bf16.gmra.mxu1 %vm218_vm1, %v127_v27  ;;  %4463 = vmatmul.mubr.msk.bf16.gmra.mxu0 %vm218_vm1, %v5586_v28  ;;  %v109_v27 = vld [vmem:[%s7438_s0 + $0x125] sm:$0xff] }
  0xd0   :  { %4382 = vmatprep.mubr.msk.bf16.mxu1 %vm5082_vm0, %v7443_v0  ;;  %4466 = vmatprep.mubr.msk.bf16.mxu0 %vm5082_vm0, %v7443_v0  ;;  %v132_v41 = vpack.c.bf16 %v110_v29, %v109_v27 }
  0xd7   :  { %v5609_v37 = vpop.f32.mrf.mxu0  ;;  %v5611_v38 = vpop.f32.mrf.mxu1  ;;  %4383 = vmatmul.mubr.msk.bf16.gmra.mxu1 %vm218_vm1, %v128_v34  ;;  %4467 = vmatmul.mubr.msk.bf16.gmra.mxu0 %vm218_vm1, %v5607_v35 }
  0xd8   :  { %4386 = vmatprep.mubr.msk.bf16.mxu1 %vm5082_vm0, %v7443_v0  ;;  %4470 = vmatprep.mubr.msk.bf16.mxu0 %vm5082_vm0, %v7443_v0 }
  0xd9   :  { %v4240_v44 = vpop.f32.mrf.mxu0  ;;  %v4284_v45 = vpop.f32.mrf.mxu1 }
  0xdb   :  { %v5632_v46 = vpop.f32.mrf.mxu0  ;;  %v5634_v47 = vpop.f32.mrf.mxu1 }
  0xdd   :  { %v4241_v51 = vpop.f32.mrf.mxu0  ;;  %v4285_v52 = vpop.f32.mrf.mxu1 }
  0xde   :  { %v111_v52 = vld [vmem:[%s7438_s0 + $0x135] sm:$0xff] }
  0xdf   :  { %v5638_v53 = vpop.f32.mrf.mxu0  ;;  %v5640_v55 = vpop.f32.mrf.mxu1  ;;  %4387 = vmatmul.mubr.msk.bf16.gmra.mxu1 %vm218_vm1, %v129_v49  ;;  %4471 = vmatmul.mubr.msk.bf16.gmra.mxu0 %vm218_vm1, %v5636_v50 }
  0xe0   :  { %4390 = vmatprep.mubr.msk.bf16.mxu1 %vm5082_vm0, %v7443_v0  ;;  %4474 = vmatprep.mubr.msk.bf16.mxu0 %vm5082_vm0, %v7443_v0 }
  0xe1   :  { %v4244_v61 = vpop.f32.mrf.mxu0  ;;  %v4288_v62 = vpop.f32.mrf.mxu1 }
  0xe3   :  { %v5661_v63 = vpop.f32.mrf.mxu0  ;;  %v5663_v1 = vpop.f32.mrf.mxu1 }
  0xe5   :  { %v4245_v5 = vpop.f32.mrf.mxu0  ;;  %v4289_v6 = vpop.f32.mrf.mxu1 }
  0xe6   :  { %v133_v5 = vpack.c.bf16 %v112_v56, %v111_v52  ;;  %v5752_v6 = vpack.c.bf16 %v794_v58, %v793_v57 }
  0xe7   :  { %v5667_v7 = vpop.f32.mrf.mxu0  ;;  %v5669_v8 = vpop.f32.mrf.mxu1  ;;  %4391 = vmatmul.mubr.msk.bf16.gmra.mxu1 %vm218_vm1, %v130_v2  ;;  %4475 = vmatmul.mubr.msk.bf16.gmra.mxu0 %vm218_vm1, %v5665_v4 }
  0xe8   :  { %4394 = vmatprep.mubr.msk.bf16.mxu1 %vm5082_vm0, %v7443_v0  ;;  %4478 = vmatprep.mubr.msk.bf16.mxu0 %vm5082_vm0, %v7443_v0 }
  0xe9   :  { %v4248_v14 = vpop.f32.mrf.mxu0  ;;  %v4292_v16 = vpop.f32.mrf.mxu1 }
  0xea   :  { %v113_v14 = vld [vmem:[%s7438_s0 + $0x145] sm:$0xf]  ;;  %v795_v16 = vld [vmem:[%s7438_s0 + $0x137] sm:$0xff] }
  0xeb   :  { %v5690_v17 = vpop.f32.mrf.mxu0  ;;  %v5692_v18 = vpop.f32.mrf.mxu1  ;;  %v134_v31 = vpack.c.bf16 %v113_v14, %v113_v14 }
  0xed   :  { %v4249_v22 = vpop.f32.mrf.mxu0  ;;  %v4293_v23 = vpop.f32.mrf.mxu1 }
  0xef   :  { %v5696_v25 = vpop.f32.mrf.mxu0  ;;  %v5698_v26 = vpop.f32.mrf.mxu1  ;;  %4395 = vmatmul.mubr.msk.bf16.gmra.mxu1 %vm218_vm1, %v131_v19  ;;  %4479 = vmatmul.mubr.msk.bf16.gmra.mxu0 %vm218_vm1, %v5694_v20  ;;  %v796_v19 = vld [vmem:[%s7438_s0 + $0x13f] sm:$0xff] }
  0xf0   :  { %4398 = vmatprep.mubr.msk.bf16.mxu1 %vm5082_vm0, %v7443_v0  ;;  %4482 = vmatprep.mubr.msk.bf16.mxu0 %vm5082_vm0, %v7443_v0  ;;  %v5778_v32 = vpack.c.bf16 %v796_v19, %v795_v16  ;;  %v1523_v16 = vld [vmem:[%s7438_s0 + $0x18] sm:$0xff]  ;;  %v1524_v19 = vld [vmem:[%s7438_s0 + $0x20] sm:$0xff] }
  0xf1   :  { %v4252_v33 = vpop.f32.mrf.mxu0  ;;  %v4296_v34 = vpop.f32.mrf.mxu1 }
  0xf3   :  { %v5719_v39 = vpop.f32.mrf.mxu0  ;;  %v5721_v40 = vpop.f32.mrf.mxu1 }
  0xf5   :  { %v4253_v44 = vpop.f32.mrf.mxu0  ;;  %v4297_v45 = vpop.f32.mrf.mxu1 }
  0xf6   :  { %v797_v45 = vld [vmem:[%s7438_s0 + $0x147] sm:$0xf] }
  0xf7   :  { %v5725_v49 = vpop.f32.mrf.mxu0  ;;  %v5727_v51 = vpop.f32.mrf.mxu1  ;;  %4399 = vmatmul.mubr.msk.bf16.gmra.mxu1 %vm218_vm1, %v132_v41  ;;  %4483 = vmatmul.mubr.msk.bf16.gmra.mxu0 %vm218_vm1, %v5723_v43 }
  0xf8   :  { %4402 = vmatprep.mubr.msk.bf16.mxu1 %vm5082_vm0, %v7443_v0  ;;  %4486 = vmatprep.mubr.msk.bf16.mxu0 %vm5082_vm0, %v7443_v0 }
  0xf9   :  { %v4256_v59 = vpop.f32.mrf.mxu0  ;;  %v4300_v61 = vpop.f32.mrf.mxu1 }
  0xfa   :  { %v818_v59 = vpack.c.bf16 %v797_v45, %v797_v45  ;;  %v5049_v45 = vld [vmem:[#allocation2 + $0x68] sm:$0xff]  }
  0xfb   :  { %v5748_v62 = vpop.f32.mrf.mxu0  ;;  %v5750_v2 = vpop.f32.mrf.mxu1 }
  0xfd   :  { %v4257_v10 = vpop.f32.mrf.mxu0  ;;  %v4301_v11 = vpop.f32.mrf.mxu1 }
  0xfe   :  { %v5048_v10 = vld [vmem:[#allocation2 + $0x58] sm:$0xff]  }
  0xff   :  { %v5754_v12 = vpop.f32.mrf.mxu0  ;;  %v5756_v13 = vpop.f32.mrf.mxu1  ;;  %4403 = vmatmul.mubr.msk.bf16.gmra.mxu1 %vm218_vm1, %v133_v5  ;;  %4487 = vmatmul.mubr.msk.bf16.gmra.mxu0 %vm218_vm1, %v5752_v6 }
 0x100   :  { %4406 = vmatprep.mubr.msk.bf16.mxu1 %vm5082_vm0, %v7443_v0  ;;  %4490 = vmatprep.mubr.msk.bf16.mxu0 %vm5082_vm0, %v7443_v0 }
 0x101   :  { %v4260_v22 = vpop.f32.mrf.mxu0  ;;  %v4304_v23 = vpop.f32.mrf.mxu1 }
 0x103   :  { %v5774_v27 = vpop.f32.mrf.mxu0  ;;  %v5776_v29 = vpop.f32.mrf.mxu1 }
 0x105   :  { %v4261_v33 = vpop.f32.mrf.mxu0  ;;  %v4305_v34 = vpop.f32.mrf.mxu1 }
 0x106   :  { %v1564_v34 = vpack.c.bf16 %v1524_v19, %v1523_v16  ;;  %v5051_v16 = vld [vmem:[#allocation2 + $0x60] sm:$0xff]  }
 0x107   :  { %v5780_v41 = vpop.f32.mrf.mxu0  ;;  %v5782_v44 = vpop.f32.mrf.mxu1  ;;  %4407 = vmatmul.mubr.msk.bf16.gmra.mxu1 %vm218_vm1, %v134_v31  ;;  %4491 = vmatmul.mubr.msk.bf16.gmra.mxu0 %vm218_vm1, %v5778_v32  ;;  %v5050_v31 = vld [vmem:[#allocation2 + $0x50] sm:$0xff]  }
 0x108   :  { %7445 = vst [vmem:[#allocation5_spill] sm:$0xff] %v5782_v44  ;;  %4494 = vmatprep.mubr.msk.bf16.mxu0 %vm5082_vm0, %v7443_v0  ;;  %4502 = vmatprep.mubr.msk.bf16.mxu1 %vm5082_vm0, %v7443_v0 }
 0x109   :  { %v4264_v52 = vpop.f32.mrf.mxu0  ;;  %v4308_v56 = vpop.f32.mrf.mxu1 }
 0x10b   :  { %v5794_v57 = vpop.f32.mrf.mxu0  ;;  %v5796_v58 = vpop.f32.mrf.mxu1 }
 0x10c   :  { %7446 = vst [vmem:[#allocation6_spill] sm:$0xff] %v5796_v58  ;;  %v7453_v58 = vmov 0.0  }
 0x10d   :  { %v4265_v61 = vpop.f32.mrf.mxu0  ;;  %v4309_v5 = vpop.f32.mrf.mxu1 }
 0x10e   :  { %v1525_v5 = vld [vmem:[%s7438_s0 + $0x28] sm:$0xff] }
 0x10f   :  { %v5798_v11 = vpop.f32.mrf.mxu0  ;;  %v5800_v14 = vpop.f32.mrf.mxu1  ;;  %4495 = vmatmul.mubr.msk.bf16.gmra.mxu0 %vm218_vm1, %v818_v59  ;;  %4503 = vmatmul.mubr.msk.bf16.vlgmr.msra.gmra.mxu1 %vm218_vm1, %v5354_v24 }
 0x110   :  { %7447 = vst [vmem:[#allocation7_spill] sm:$0xff] %v5800_v14  ;;  %4506 = vmatprep.mubr.msk.bf16.mxu1 %vm5082_vm0, %v7443_v0  ;;  %4590 = vmatprep.mubr.msk.bf16.mxu0 %vm5082_vm0, %v7443_v0 }
 0x111   :  { %v4268_v22 = vpop.f32.mrf.mxu0  ;;  %v4312_v23 = vpop.f32.mrf.mxu1  ;;  %4675 = vmatpush3.bf16.msra.mxu1 %v5048_v10  ;;  %v1526_v10 = vld [vmem:[%s7438_s0 + $0x30] sm:$0xff] }
 0x112   :  { %4676 = vmatprep.subr.bf16.mxu1 %v7443_v0 }
 0x113   :  { %v5816_v24 = vpop.f32.mrf.mxu0  ;;  %v5818_v33 = vpop.f32.mrf.mxu1 }
 0x114   :  { %7448 = vst [vmem:[#allocation8_spill] sm:$0xff] %v5818_v33 }
 0x115   :  { %v4269_v52 = vpop.f32.mrf.mxu0  ;;  %v4313_v56 = vpop.f32.mrf.mxu1  ;;  %4677 = vmatpush3.bf16.msra.mxu1 %v5050_v31  ;;  %v1565_v31 = vpack.c.bf16 %v1526_v10, %v1525_v5  ;;  %v1527_v5 = vld [vmem:[%s7438_s0 + $0x38] sm:$0xff]  ;;  %v1528_v10 = vld [vmem:[%s7438_s0 + $0x40] sm:$0xff] }
 0x116   :  { %4850 = vmatprep.subr.bf16.mxu1 %v7443_v0 }
 0x117   :  { %v5821_v59 = vpop.f32.mrf.mxu0  ;;  %v5823_v61 = vpop.f32.mrf.mxu1  ;;  %4507 = vmatmul.mubr.msk.bf16.gmra.mxu1 %vm218_vm1, %v5376_v30  ;;  %4591 = vmatmul.mubr.msk.bf16.vlgmr.msra.gmra.mxu0 %vm218_vm1, %v1564_v34 }
 0x118   :  { %7449 = vst [vmem:[#allocation9_spill] sm:$0xff] %v5823_v61  ;;  %4763 = vmatpush3.bf16.msra.mxu0 %v5049_v45  ;;  %4510 = vmatprep.mubr.msk.bf16.mxu1 %vm5082_vm0, %v7443_v0 }
 0x119   :  { %v4272_v19 = vpop.f32.mrf.mxu0  ;;  %v4316_v22 = vpop.f32.mrf.mxu1  ;;  %4594 = vmatprep.mubr.msk.bf16.mxu0 %vm5082_vm0, %v7443_v0  ;;  %4764 = vmatprep.subr.bf16.mxu0 %v7443_v0 }
 0x11b   :  { %v5839_v30 = vpop.f32.mrf.mxu0  ;;  %v5841_v23 = vpop.f32.mrf.mxu1 }
 0x11c   :  { %7450 = vst [vmem:[#allocation10_spill] sm:$0xff] %v5841_v23  ;;  %4765 = vmatpush3.bf16.msra.mxu0 %v5051_v16 }
 0x11d   :  { %v4273_v34 = vpop.f32.mrf.mxu0  ;;  %v4317_v45 = vpop.f32.mrf.mxu1  ;;  %4938 = vmatprep.subr.bf16.mxu0 %v7443_v0 }
 0x11f   :  { %v5844_v52 = vpop.f32.mrf.mxu0  ;;  %v5846_v56 = vpop.f32.mrf.mxu1  ;;  %4511 = vmatmul.mubr.msk.bf16.gmra.mxu1 %vm218_vm1, %v5397_v36  ;;  %4595 = vmatmul.mubr.msk.bf16.gmra.mxu0 %vm218_vm1, %v1565_v31  ;;  %v1566_v31 = vpack.c.bf16 %v1528_v10, %v1527_v5  ;;  %v1529_v5 = vld [vmem:[%s7438_s0 + $0x48] sm:$0xff]  ;;  %v1530_v10 = vld [vmem:[%s7438_s0 + $0x50] sm:$0xff] }
 0x120   :  { %7451 = vst [vmem:[#allocation11_spill] sm:$0xff] %v5846_v56  ;;  %4514 = vmatprep.mubr.msk.bf16.mxu1 %vm5082_vm0, %v7443_v0  ;;  %4598 = vmatprep.mubr.msk.bf16.mxu0 %vm5082_vm0, %v7443_v0 }
 0x121   :  { %v4276_v16 = vpop.f32.mrf.mxu0  ;;  %v4320_v19 = vpop.f32.mrf.mxu1 }
 0x123   :  { %v5861_v22 = vpop.f32.mrf.mxu0  ;;  %v479_v36 = vpop.f32.mrf.mxu1 }
 0x125   :  { %v4277_v34 = vpop.f32.mrf.mxu0  ;;  %v4321_v45 = vpop.f32.mrf.mxu1 }
 0x127   :  { %v5863_v56 = vpop.f32.mrf.mxu0  ;;  %v591_v23 = vpop.f32.mrf.mxu1  ;;  %4515 = vmatmul.mubr.msk.bf16.gmra.mxu1 %vm218_vm1, %v5418_v42  ;;  %4599 = vmatmul.mubr.msk.bf16.gmra.mxu0 %vm218_vm1, %v1566_v31  ;;  %v1567_v31 = vpack.c.bf16 %v1530_v10, %v1529_v5  ;;  %v1531_v5 = vld [vmem:[%s7438_s0 + $0x58] sm:$0xff] }
 0x128   :  { %4518 = vmatprep.mubr.msk.bf16.mxu1 %vm5082_vm0, %v7443_v0  ;;  %4602 = vmatprep.mubr.msk.bf16.mxu0 %vm5082_vm0, %v7443_v0  ;;  %v592_v61 = vadd.f32 %v591_v23, %v5609_v37  ;;  %v1532_v37 = vld [vmem:[%s7438_s0 + $0x60] sm:$0xff] }
 0x129   :  { %v4280_v16 = vpop.f32.mrf.mxu0  ;;  %v4328_v19 = vpop.f32.mrf.mxu1 }
 0x12a   :  { %v1568_v16 = vpack.c.bf16 %v1532_v37, %v1531_v5 }
 0x12b   :  { %v5878_v36 = vpop.f32.mrf.mxu0  ;;  %v594_v42 = vpop.f32.mrf.mxu1 }
 0x12c   :  { %v595_v10 = vadd.f32 %v594_v42, %v5632_v46  ;;  %v1533_v46 = vld [vmem:[%s7438_s0 + $0x68] sm:$0xff] }
 0x12d   :  { %v4281_v34 = vpop.f32.mrf.mxu0  ;;  %v4329_v45 = vpop.f32.mrf.mxu1 }
 0x12f   :  { %v599_v33 = vpop.f32.mrf.mxu1  ;;  %v933_v0 = vpop.f32.mrf.mxu0  ;;  %4519 = vmatmul.mubr.msk.bf16.gmra.mxu1 %vm218_vm1, %v5439_v48  ;;  %4603 = vmatmul.mubr.msk.bf16.gmra.mxu0 %vm218_vm1, %v1567_v31 }
 0x130   :  { %v5884_v14 = vadd.f32 %v933_v0, %v592_v61  ;;  %4522 = vmatprep.mubr.msk.bf16.mxu1 %vm5082_vm0, %v7453_v58  ;;  %4606 = vmatprep.mubr.msk.bf16.mxu0 %vm5082_vm0, %v7453_v58  ;;  %v600_v45 = vadd.f32 %v599_v33, %v5638_v53  ;;  %v1534_v53 = vld [vmem:[%s7438_s0 + $0x70] sm:$0xff] }
 0x131   :  { %v4332_v23 = vpop.f32.mrf.mxu1  ;;  %v4416_v48 = vpop.f32.mrf.mxu0  ;;  %v1569_v37 = vpack.c.bf16 %v1534_v53, %v1533_v46 }
 0x132   :  { %7452 = vst [vmem:[#allocation12_spill] sm:$0xff] %v5884_v14 }
 0x133   :  { %v602_v0 = vpop.f32.mrf.mxu1  ;;  %v936_v61 = vpop.f32.mrf.mxu0 }
 0x134   :  { %v5897_v19 = vadd.f32 %v936_v61, %v595_v10  ;;  %v603_v42 = vadd.f32 %v602_v0, %v5661_v63  ;;  %v1535_v63 = vld [vmem:[%s7438_s0 + $0x78] sm:$0xff] }
 0x135   :  { %v4333_v31 = vpop.f32.mrf.mxu1  ;;  %v4417_v34 = vpop.f32.mrf.mxu0 }
 0x137   :  { %v607_v14 = vpop.f32.mrf.mxu1  ;;  %v941_v44 = vpop.f32.mrf.mxu0  ;;  %4523 = vmatmul.mubr.msk.bf16.gmra.mxu1 %vm218_vm1, %v5460_v54  ;;  %4607 = vmatmul.mubr.msk.bf16.gmra.mxu0 %vm218_vm1, %v1568_v16 }
 0x138   :  { %v5903_v23 = vadd.f32 %v941_v44, %v600_v45  ;;  %4526 = vmatprep.mubr.msk.bf16.mxu1 %vm5082_vm0, %v7453_v58  ;;  %4610 = vmatprep.mubr.msk.bf16.mxu0 %vm5082_vm0, %v7453_v58  ;;  %v608_v16 = vadd.f32 %v607_v14, %v5667_v7  ;;  %v1536_v7 = vld [vmem:[%s7438_s0 + $0x80] sm:$0xff] }
 0x139   :  { %v4336_v33 = vpop.f32.mrf.mxu1  ;;  %v4420_v54 = vpop.f32.mrf.mxu0 }
 0x13a   :  { %v1570_v33 = vpack.c.bf16 %v1536_v7, %v1535_v63 }
 0x13b   :  { %v610_v44 = vpop.f32.mrf.mxu1  ;;  %v944_v5 = vpop.f32.mrf.mxu0 }
 0x13c   :  { %v5916_v48 = vadd.f32 %v944_v5, %v603_v42  ;;  %v611_v0 = vadd.f32 %v610_v44, %v5690_v17  ;;  %v1537_v17 = vld [vmem:[%s7438_s0 + $0x88] sm:$0xff] }
 0x13d   :  { %v4337_v10 = vpop.f32.mrf.mxu1  ;;  %v4421_v61 = vpop.f32.mrf.mxu0 }
 0x13f   :  { %v615_v31 = vpop.f32.mrf.mxu1  ;;  %v949_v34 = vpop.f32.mrf.mxu0  ;;  %4527 = vmatmul.mubr.msk.bf16.gmra.mxu1 %vm218_vm1, %v5481_v60  ;;  %4611 = vmatmul.mubr.msk.bf16.gmra.mxu0 %vm218_vm1, %v1569_v37 }
 0x140   :  { %v5922_v45 = vadd.f32 %v949_v34, %v608_v16  ;;  %4530 = vmatprep.mubr.msk.bf16.mxu1 %vm5082_vm0, %v7453_v58  ;;  %4614 = vmatprep.mubr.msk.bf16.mxu0 %vm5082_vm0, %v7453_v58  ;;  %v616_v37 = vadd.f32 %v615_v31, %v5696_v25  ;;  %v1538_v25 = vld [vmem:[%s7438_s0 + $0x90] sm:$0xff] }
 0x141   :  { %v4340_v14 = vpop.f32.mrf.mxu1  ;;  %v4424_v60 = vpop.f32.mrf.mxu0  ;;  %v1571_v7 = vpack.c.bf16 %v1538_v25, %v1537_v17 }
 0x143   :  { %v618_v46 = vpop.f32.mrf.mxu1  ;;  %v952_v53 = vpop.f32.mrf.mxu0 }
 0x144   :  { %v5935_v54 = vadd.f32 %v952_v53, %v611_v0  ;;  %v619_v31 = vadd.f32 %v618_v46, %v5719_v39  ;;  %v1539_v39 = vld [vmem:[%s7438_s0 + $0x98] sm:$0xff] }
 0x145   :  { %v4341_v42 = vpop.f32.mrf.mxu1  ;;  %v4425_v5 = vpop.f32.mrf.mxu0 }
 0x147   :  { %v623_v10 = vpop.f32.mrf.mxu1  ;;  %v957_v61 = vpop.f32.mrf.mxu0  ;;  %4531 = vmatmul.mubr.msk.bf16.gmra.mxu1 %vm218_vm1, %v5502_v3  ;;  %4615 = vmatmul.mubr.msk.bf16.gmra.mxu0 %vm218_vm1, %v1570_v33 }
 0x148   :  { %v5941_v16 = vadd.f32 %v957_v61, %v616_v37  ;;  %4534 = vmatprep.mubr.msk.bf16.mxu1 %vm5082_vm0, %v7453_v58  ;;  %4618 = vmatprep.mubr.msk.bf16.mxu0 %vm5082_vm0, %v7453_v58  ;;  %v624_v53 = vadd.f32 %v623_v10, %v5725_v49  ;;  %v1540_v49 = vld [vmem:[%s7438_s0 + $0xa0] sm:$0xff] }
 0x149   :  { %v4344_v44 = vpop.f32.mrf.mxu1  ;;  %v4428_v3 = vpop.f32.mrf.mxu0  ;;  %v1572_v17 = vpack.c.bf16 %v1540_v49, %v1539_v39 }
 0x14b   :  { %v626_v34 = vpop.f32.mrf.mxu1  ;;  %v960_v63 = vpop.f32.mrf.mxu0 }
 0x14c   :  { %v5954_v14 = vadd.f32 %v960_v63, %v619_v31  ;;  %v627_v37 = vadd.f32 %v626_v34, %v5748_v62  ;;  %v1541_v62 = vld [vmem:[%s7438_s0 + $0xa8] sm:$0xff] }
 0x14d   :  { %v4345_v60 = vpop.f32.mrf.mxu1  ;;  %v4429_v0 = vpop.f32.mrf.mxu0 }
 0x14f   :  { %v631_v33 = vpop.f32.mrf.mxu1  ;;  %v965_v42 = vpop.f32.mrf.mxu0  ;;  %4535 = vmatmul.mubr.msk.bf16.gmra.mxu1 %vm218_vm1, %v5523_v9  ;;  %4619 = vmatmul.mubr.msk.bf16.gmra.mxu0 %vm218_vm1, %v1571_v7 }
 0x150   :  { %v5960_v5 = vadd.f32 %v965_v42, %v624_v53  ;;  %4538 = vmatprep.mubr.msk.bf16.mxu1 %vm5082_vm0, %v7453_v58  ;;  %4622 = vmatprep.mubr.msk.bf16.mxu0 %vm5082_vm0, %v7453_v58  ;;  %v632_v31 = vadd.f32 %v631_v33, %v5754_v12  ;;  %v1542_v12 = vld [vmem:[%s7438_s0 + $0xb0] sm:$0xff] }
 0x151   :  { %v4348_v46 = vpop.f32.mrf.mxu1  ;;  %v4432_v9 = vpop.f32.mrf.mxu0  ;;  %v1573_v42 = vpack.c.bf16 %v1542_v12, %v1541_v62 }
 0x153   :  { %v634_v10 = vpop.f32.mrf.mxu1  ;;  %v968_v61 = vpop.f32.mrf.mxu0 }
 0x154   :  { %v5973_v25 = vadd.f32 %v968_v61, %v627_v37  ;;  %v635_v0 = vadd.f32 %v634_v10, %v5774_v27  ;;  %v1543_v27 = vld [vmem:[%s7438_s0 + $0xb8] sm:$0xff] }
 0x155   :  { %v4349_v44 = vpop.f32.mrf.mxu1  ;;  %v4433_v3 = vpop.f32.mrf.mxu0 }
 0x157   :  { %v639_v63 = vpop.f32.mrf.mxu1  ;;  %v973_v7 = vpop.f32.mrf.mxu0  ;;  %4539 = vmatmul.mubr.msk.bf16.gmra.mxu1 %vm218_vm1, %v5544_v15  ;;  %4623 = vmatmul.mubr.msk.bf16.gmra.mxu0 %vm218_vm1, %v1572_v17 }
 0x158   :  { %v5979_v60 = vadd.f32 %v973_v7, %v632_v31  ;;  %4542 = vmatprep.mubr.msk.bf16.mxu1 %vm5082_vm0, %v7453_v58  ;;  %4626 = vmatprep.mubr.msk.bf16.mxu0 %vm5082_vm0, %v7453_v58  ;;  %v640_v9 = vadd.f32 %v639_v63, %v5780_v41  ;;  %v1544_v41 = vld [vmem:[%s7438_s0 + $0xc0] sm:$0xff] }
 0x159   :  { %v4352_v34 = vpop.f32.mrf.mxu1  ;;  %v4436_v15 = vpop.f32.mrf.mxu0  ;;  %v1574_v63 = vpack.c.bf16 %v1544_v41, %v1543_v27 }
 0x15b   :  { %v642_v53 = vpop.f32.mrf.mxu1  ;;  %v976_v33 = vpop.f32.mrf.mxu0 }
 0x15c   :  { %v5992_v39 = vadd.f32 %v976_v33, %v635_v0  ;;  %v643_v44 = vadd.f32 %v642_v53, %v5794_v57  ;;  %v1545_v57 = vld [vmem:[%s7438_s0 + $0xc8] sm:$0xff] }
 0x15d   :  { %v4353_v49 = vpop.f32.mrf.mxu1  ;;  %v4437_v46 = vpop.f32.mrf.mxu0 }
 0x15f   :  { %v647_v37 = vpop.f32.mrf.mxu1  ;;  %v981_v61 = vpop.f32.mrf.mxu0  ;;  %4543 = vmatmul.mubr.msk.bf16.gmra.mxu1 %vm218_vm1, %v5565_v21  ;;  %4627 = vmatmul.mubr.msk.bf16.gmra.mxu0 %vm218_vm1, %v1573_v42 }
 0x160   :  { %v5998_v17 = vadd.f32 %v981_v61, %v640_v9  ;;  %4546 = vmatprep.mubr.msk.bf16.mxu1 %vm5082_vm0, %v7453_v58  ;;  %4630 = vmatprep.mubr.msk.bf16.mxu0 %vm5082_vm0, %v7453_v58  ;;  %v648_v34 = vadd.f32 %v647_v37, %v5798_v11  ;;  %v1546_v11 = vld [vmem:[%s7438_s0 + $0xd0] sm:$0xff] }
 0x161   :  { %v4356_v10 = vpop.f32.mrf.mxu1  ;;  %v4440_v21 = vpop.f32.mrf.mxu0  ;;  %v1575_v9 = vpack.c.bf16 %v1546_v11, %v1545_v57 }
 0x163   :  { %v650_v3 = vpop.f32.mrf.mxu1  ;;  %v984_v31 = vpop.f32.mrf.mxu0 }
 0x164   :  { %v6011_v7 = vadd.f32 %v984_v31, %v643_v44  ;;  %v651_v42 = vadd.f32 %v650_v3, %v5816_v24  ;;  %v1547_v24 = vld [vmem:[%s7438_s0 + $0xd8] sm:$0xff] }
 0x165   :  { %v4357_v62 = vpop.f32.mrf.mxu1  ;;  %v4441_v12 = vpop.f32.mrf.mxu0 }
 0x167   :  { %v655_v15 = vpop.f32.mrf.mxu1  ;;  %v989_v0 = vpop.f32.mrf.mxu0  ;;  %4547 = vmatmul.mubr.msk.bf16.gmra.mxu1 %vm218_vm1, %v5586_v28  ;;  %4631 = vmatmul.mubr.msk.bf16.gmra.mxu0 %vm218_vm1, %v1574_v63 }
 0x168   :  { %v6017_v33 = vadd.f32 %v989_v0, %v648_v34  ;;  %4550 = vmatprep.mubr.msk.bf16.mxu1 %vm5082_vm0, %v7453_v58  ;;  %4634 = vmatprep.mubr.msk.bf16.mxu0 %vm5082_vm0, %v7453_v58  ;;  %v656_v41 = vadd.f32 %v655_v15, %v5821_v59  ;;  %v1548_v59 = vld [vmem:[%s7438_s0 + $0xe0] sm:$0xff] }
 0x169   :  { %v4360_v53 = vpop.f32.mrf.mxu1  ;;  %v4444_v28 = vpop.f32.mrf.mxu0  ;;  %v1576_v12 = vpack.c.bf16 %v1548_v59, %v1547_v24 }
 0x16b   :  { %v658_v49 = vpop.f32.mrf.mxu1  ;;  %v992_v46 = vpop.f32.mrf.mxu0 }
 0x16c   :  { %v6030_v37 = vadd.f32 %v992_v46, %v651_v42  ;;  %v659_v31 = vadd.f32 %v658_v49, %v5839_v30  ;;  %v1549_v30 = vld [vmem:[%s7438_s0 + $0xe8] sm:$0xff] }
 0x16d   :  { %v4361_v61 = vpop.f32.mrf.mxu1  ;;  %v4445_v27 = vpop.f32.mrf.mxu0 }
 0x16f   :  { %v663_v10 = vpop.f32.mrf.mxu1  ;;  %v997_v21 = vpop.f32.mrf.mxu0  ;;  %4551 = vmatmul.mubr.msk.bf16.gmra.mxu1 %vm218_vm1, %v5607_v35  ;;  %4635 = vmatmul.mubr.msk.bf16.gmra.mxu0 %vm218_vm1, %v1575_v9 }
 0x170   :  { %v6036_v44 = vadd.f32 %v997_v21, %v656_v41  ;;  %4554 = vmatprep.mubr.msk.bf16.mxu1 %vm5082_vm0, %v7453_v58  ;;  %4638 = vmatprep.mubr.msk.bf16.mxu0 %vm5082_vm0, %v7453_v58  ;;  %v664_v57 = vadd.f32 %v663_v10, %v5844_v52  ;;  %v1550_v52 = vld [vmem:[%s7438_s0 + $0xf0] sm:$0xff] }
 0x171   :  { %v4364_v3 = vpop.f32.mrf.mxu1  ;;  %v4448_v35 = vpop.f32.mrf.mxu0  ;;  %v1577_v61 = vpack.c.bf16 %v1550_v52, %v1549_v30 }
 0x173   :  { %v666_v63 = vpop.f32.mrf.mxu1  ;;  %v1000_v62 = vpop.f32.mrf.mxu0 }
 0x174   :  { %v6049_v34 = vadd.f32 %v1000_v62, %v659_v31  ;;  %v667_v49 = vadd.f32 %v666_v63, %v5861_v22  ;;  %v1551_v22 = vld [vmem:[%s7438_s0 + $0xf8] sm:$0xff] }
 0x175   :  { %v4365_v15 = vpop.f32.mrf.mxu1  ;;  %v4449_v0 = vpop.f32.mrf.mxu0 }
 0x177   :  { %v671_v11 = vpop.f32.mrf.mxu1  ;;  %v1005_v53 = vpop.f32.mrf.mxu0  ;;  %4555 = vmatmul.mubr.msk.bf16.gmra.mxu1 %vm218_vm1, %v5636_v50  ;;  %4639 = vmatmul.mubr.msk.bf16.gmra.mxu0 %vm218_vm1, %v1576_v12 }
 0x178   :  { %v6055_v28 = vadd.f32 %v1005_v53, %v664_v57  ;;  %4558 = vmatprep.mubr.msk.bf16.mxu1 %vm5082_vm0, %v7453_v58  ;;  %4642 = vmatprep.mubr.msk.bf16.mxu0 %vm5082_vm0, %v7453_v58  ;;  %v672_v21 = vadd.f32 %v671_v11, %v5863_v56  ;;  %v1552_v56 = vld [vmem:[%s7438_s0 + $0x100] sm:$0xff] }
 0x179   :  { %v4368_v42 = vpop.f32.mrf.mxu1  ;;  %v4452_v50 = vpop.f32.mrf.mxu0  ;;  %v1578_v12 = vpack.c.bf16 %v1552_v56, %v1551_v22 }
 0x17b   :  { %v674_v46 = vpop.f32.mrf.mxu1  ;;  %v1008_v9 = vpop.f32.mrf.mxu0 }
 0x17c   :  { %v6068_v27 = vadd.f32 %v1008_v9, %v667_v49  ;;  %v675_v31 = vadd.f32 %v674_v46, %v5878_v36  ;;  %v1553_v36 = vld [vmem:[%s7438_s0 + $0x108] sm:$0xff] }
 0x17d   :  { %v4369_v41 = vpop.f32.mrf.mxu1  ;;  %v4453_v10 = vpop.f32.mrf.mxu0 }
 0x17f   :  { %v679_v24 = vpop.f32.mrf.mxu1  ;;  %v1013_v59 = vpop.f32.mrf.mxu0  ;;  %4559 = vmatmul.mubr.msk.bf16.gmra.mxu1 %vm218_vm1, %v5665_v4  ;;  %4643 = vmatmul.mubr.msk.bf16.gmra.mxu0 %vm218_vm1, %v1577_v61 }
 0x180   :  { %v6074_v3 = vadd.f32 %v1013_v59, %v672_v21  ;;  %4562 = vmatprep.mubr.msk.bf16.mxu1 %vm5082_vm0, %v7453_v58  ;;  %4646 = vmatprep.mubr.msk.bf16.mxu0 %vm5082_vm0, %v7453_v58  ;;  %v680_v11 = vadd.f32 %v679_v24, %v5611_v38  ;;  %v1554_v38 = vld [vmem:[%s7438_s0 + $0x110] sm:$0xff] }
 0x181   :  { %v4372_v35 = vpop.f32.mrf.mxu1  ;;  %v4456_v4 = vpop.f32.mrf.mxu0  ;;  %v1579_v9 = vpack.c.bf16 %v1554_v38, %v1553_v36 }
 0x183   :  { %v682_v63 = vpop.f32.mrf.mxu1  ;;  %v1016_v62 = vpop.f32.mrf.mxu0 }
 0x184   :  { %v6087_v15 = vadd.f32 %v1016_v62, %v675_v31  ;;  %v683_v50 = vadd.f32 %v682_v63, %v5634_v47  ;;  %v1555_v47 = vld [vmem:[%s7438_s0 + $0x118] sm:$0xff] }
 0x185   :  { %v4373_v0 = vpop.f32.mrf.mxu1  ;;  %v4457_v57 = vpop.f32.mrf.mxu0 }
 0x187   :  { %v687_v53 = vpop.f32.mrf.mxu1  ;;  %v1021_v30 = vpop.f32.mrf.mxu0  ;;  %4563 = vmatmul.mubr.msk.bf16.gmra.mxu1 %vm218_vm1, %v5694_v20  ;;  %4647 = vmatmul.mubr.msk.bf16.gmra.mxu0 %vm218_vm1, %v1578_v12 }
 0x188   :  { %v6093_v52 = vadd.f32 %v1021_v30, %v680_v11  ;;  %4566 = vmatprep.mubr.msk.bf16.mxu1 %vm5082_vm0, %v7453_v58  ;;  %4650 = vmatprep.mubr.msk.bf16.mxu0 %vm5082_vm0, %v7453_v58  ;;  %v688_v21 = vadd.f32 %v687_v53, %v5640_v55  ;;  %v1556_v55 = vld [vmem:[%s7438_s0 + $0x120] sm:$0xff] }
 0x189   :  { %v4376_v42 = vpop.f32.mrf.mxu1  ;;  %v4460_v20 = vpop.f32.mrf.mxu0  ;;  %v1580_v63 = vpack.c.bf16 %v1556_v55, %v1555_v47 }
 0x18b   :  { %v690_v49 = vpop.f32.mrf.mxu1  ;;  %v1024_v46 = vpop.f32.mrf.mxu0 }
 0x18c   :  { %v6106_v61 = vadd.f32 %v1024_v46, %v683_v50  ;;  %v691_v35 = vadd.f32 %v690_v49, %v5663_v1  ;;  %v1557_v1 = vld [vmem:[%s7438_s0 + $0x128] sm:$0xff] }
 0x18d   :  { %v4377_v41 = vpop.f32.mrf.mxu1  ;;  %v4461_v10 = vpop.f32.mrf.mxu0 }
 0x18f   :  { %v695_v24 = vpop.f32.mrf.mxu1  ;;  %v1029_v59 = vpop.f32.mrf.mxu0  ;;  %4567 = vmatmul.mubr.msk.bf16.gmra.mxu1 %vm218_vm1, %v5723_v43  ;;  %4651 = vmatmul.mubr.msk.bf16.gmra.mxu0 %vm218_vm1, %v1579_v9 }
 0x190   :  { %v6112_v22 = vadd.f32 %v1029_v59, %v688_v21  ;;  %4570 = vmatprep.mubr.msk.bf16.mxu1 %vm5082_vm0, %v7453_v58  ;;  %4654 = vmatprep.mubr.msk.bf16.mxu0 %vm5082_vm0, %v7453_v58  ;;  %v696_v57 = vadd.f32 %v695_v24, %v5669_v8  ;;  %v1558_v8 = vld [vmem:[%s7438_s0 + $0x130] sm:$0xff]  ;;  %v1560_v59 = vld [vmem:[%s7438_s0 + $0x140] sm:$0xff] }
 0x191   :  { %v4380_v56 = vpop.f32.mrf.mxu1  ;;  %v4464_v43 = vpop.f32.mrf.mxu0  ;;  %v1581_v50 = vpack.c.bf16 %v1558_v8, %v1557_v1  ;;  %v1562_v8 = vld [vmem:[%s7438_s0 + $0x150] sm:$0xff] }
 0x193   :  { %v698_v4 = vpop.f32.mrf.mxu1  ;;  %v1032_v31 = vpop.f32.mrf.mxu0 }
 0x194   :  { %v6125_v62 = vadd.f32 %v1032_v31, %v691_v35  ;;  %v699_v38 = vadd.f32 %v698_v4, %v5692_v18  ;;  %v1178_v18 = vld [vmem:[%s7438_s0 + $0x147] sm:$0xff] }
 0x195   :  { %v4381_v12 = vpop.f32.mrf.mxu1  ;;  %v4465_v0 = vpop.f32.mrf.mxu0 }
 0x197   :  { %v703_v11 = vpop.f32.mrf.mxu1  ;;  %v1037_v53 = vpop.f32.mrf.mxu0  ;;  %4571 = vmatmul.mubr.msk.bf16.gmra.mxu1 %vm218_vm1, %v5752_v6  ;;  %4655 = vmatmul.mubr.msk.bf16.gmra.mxu0 %vm218_vm1, %v1580_v63 }
 0x198   :  { %v6131_v30 = vadd.f32 %v1037_v53, %v696_v57  ;;  %4574 = vmatprep.mubr.msk.bf16.mxu1 %vm5082_vm0, %v7453_v58  ;;  %4658 = vmatprep.mubr.msk.bf16.mxu0 %vm5082_vm0, %v7453_v58  ;;  %v704_v41 = vadd.f32 %v703_v11, %v5698_v26  ;;  %v1179_v26 = vld [vmem:[%s7438_s0 + $0x14f] sm:$0xff] }
 0x199   :  { %v4384_v36 = vpop.f32.mrf.mxu1  ;;  %v4468_v6 = vpop.f32.mrf.mxu0  ;;  %v1200_v4 = vpack.c.bf16 %v1179_v26, %v1178_v18 }
 0x19b   :  { %v706_v42 = vpop.f32.mrf.mxu1  ;;  %v1040_v20 = vpop.f32.mrf.mxu0 }
 0x19c   :  { %v6144_v49 = vadd.f32 %v1040_v20, %v699_v38  ;;  %v707_v56 = vadd.f32 %v706_v42, %v5721_v40  ;;  %v1180_v40 = vld [vmem:[%s7438_s0 + $0x157] sm:$0xf] }
 0x19d   :  { %v4385_v46 = vpop.f32.mrf.mxu1  ;;  %v4469_v9 = vpop.f32.mrf.mxu0 }
 0x19f   :  { %v711_v10 = vpop.f32.mrf.mxu1  ;;  %v1045_v21 = vpop.f32.mrf.mxu0  ;;  %4575 = vmatmul.mubr.msk.bf16.gmra.mxu1 %vm218_vm1, %v5778_v32  ;;  %4659 = vmatmul.mubr.msk.bf16.gmra.mxu0 %vm218_vm1, %v1581_v50  ;;  %v1559_v32 = vld [vmem:[%s7438_s0 + $0x138] sm:$0xff]  ;;  %v1201_v50 = vpack.c.bf16 %v1180_v40, %v1180_v40 }
 0x1a0   :  { %v6153_v24 = vadd.f32 %v1045_v21, %v704_v41  ;;  %4578 = vmatprep.mubr.msk.bf16.mxu1 %vm5082_vm0, %v7453_v58  ;;  %4662 = vmatprep.mubr.msk.bf16.mxu0 %vm5082_vm0, %v7453_v58  ;;  %v1582_v31 = vpack.c.bf16 %v1560_v59, %v1559_v32  ;;  %v712_v57 = vadd.f32 %v711_v10, %v5727_v51  ;;  %v1561_v51 = vld [vmem:[%s7438_s0 + $0x148] sm:$0xff] }
 0x1a1   :  { %v4388_v47 = vpop.f32.mrf.mxu1  ;;  %v4472_v55 = vpop.f32.mrf.mxu0  ;;  %v1583_v46 = vpack.c.bf16 %v1562_v8, %v1561_v51  ;;  %v1907_v59 = vld [vmem:[%s7438_s0 + $0x21] sm:$0xff] }
 0x1a3   :  { %v714_v43 = vpop.f32.mrf.mxu1  ;;  %v1048_v35 = vpop.f32.mrf.mxu0 }
 0x1a4   :  { %v6169_v63 = vadd.f32 %v1048_v35, %v707_v56  ;;  %v715_v38 = vadd.f32 %v714_v43, %v5750_v2  ;;  %v1563_v2 = vld [vmem:[%s7438_s0 + $0x158] sm:$0xf] }
 0x1a5   :  { %v4389_v12 = vpop.f32.mrf.mxu1  ;;  %v4473_v0 = vpop.f32.mrf.mxu0 }
 0x1a7   :  { %v719_v11 = vpop.f32.mrf.mxu1  ;;  %v1053_v53 = vpop.f32.mrf.mxu0  ;;  %4579 = vmatmul.mubr.msk.bf16.gmra.mxu1 %vm218_vm1, %v1200_v4  ;;  %4663 = vmatmul.mubr.msk.bf16.gmra.mxu0 %vm218_vm1, %v1582_v31  ;;  %v1584_v4 = vpack.c.bf16 %v1563_v2, %v1563_v2 }
 0x1a8   :  { %v6174_v1 = vadd.f32 %v1053_v53, %v712_v57  ;;  %4582 = vmatprep.mubr.msk.bf16.mxu1 %vm5082_vm0, %v7453_v58  ;;  %4666 = vmatprep.mubr.msk.bf16.mxu0 %vm5082_vm0, %v7453_v58  ;;  %v720_v21 = vadd.f32 %v719_v11, %v5756_v13  ;;  %v1906_v13 = vld [vmem:[%s7438_s0 + $0x19] sm:$0xff]  ;;  %v7454_v53 = vld [vmem:[#allocation5_spill] sm:$0xff] }
 0x1a9   :  { %v4392_v36 = vpop.f32.mrf.mxu1  ;;  %v4476_v6 = vpop.f32.mrf.mxu0  ;;  %v1947_v31 = vpack.c.bf16 %v1907_v59, %v1906_v13  ;;  %v5052_v11 = vld [vmem:[#allocation2 + $0x78] sm:$0xff]   ;;  %v7456_v59 = vld [vmem:[#allocation7_spill] sm:$0xff] }
 0x1aa   :  { %v1909_v6 = vld [vmem:[%s7438_s0 + $0x31] sm:$0xff] }
 0x1ab   :  { %v722_v42 = vpop.f32.mrf.mxu1  ;;  %v1056_v20 = vpop.f32.mrf.mxu0 }
 0x1ac   :  { %v6190_v9 = vadd.f32 %v1056_v20, %v715_v38  ;;  %v723_v56 = vadd.f32 %v722_v42, %v5776_v29  ;;  %v1908_v29 = vld [vmem:[%s7438_s0 + $0x29] sm:$0xff] }
 0x1ad   :  { %v4393_v41 = vpop.f32.mrf.mxu1  ;;  %v4477_v10 = vpop.f32.mrf.mxu0  ;;  %v5054_v20 = vld [vmem:[#allocation2 + $0x70] sm:$0xff]  }
 0x1af   :  { %v727_v18 = vpop.f32.mrf.mxu1  ;;  %v1061_v26 = vpop.f32.mrf.mxu0  ;;  %4583 = vmatmul.mubr.msk.bf16.gmra.mxu1 %vm218_vm1, %v1201_v50  ;;  %4667 = vmatmul.mubr.msk.bf16.gmra.mxu0 %vm218_vm1, %v1583_v46  ;;  %v7455_v50 = vld [vmem:[#allocation6_spill] sm:$0xff] }
 0x1b0   :  { %v6195_v32 = vadd.f32 %v1061_v26, %v720_v21  ;;  %4670 = vmatprep.mubr.msk.bf16.mxu0 %vm5082_vm0, %v7453_v58  ;;  %4678 = vmatprep.mubr.msk.bf16.mxu1 %vm5082_vm0, %v7453_v58  ;;  %v728_v40 = vadd.f32 %v727_v18, %v7454_v53  ;;  %v1948_v21 = vpack.c.bf16 %v1909_v6, %v1908_v29  ;;  %v5053_v26 = vld [vmem:[#allocation2 + $0x88] sm:$0xff]  }
 0x1b1   :  { %v4396_v47 = vpop.f32.mrf.mxu1  ;;  %v4480_v55 = vpop.f32.mrf.mxu0 }
 0x1b3   :  { %v730_v43 = vpop.f32.mrf.mxu1  ;;  %v1064_v35 = vpop.f32.mrf.mxu0 }
 0x1b4   :  { %v6211_v12 = vadd.f32 %v1064_v35, %v723_v56  ;;  %v731_v46 = vadd.f32 %v730_v43, %v7455_v50  ;;  %v1910_v35 = vld [vmem:[%s7438_s0 + $0x39] sm:$0xff] }
 0x1b5   :  { %v4397_v0 = vpop.f32.mrf.mxu1  ;;  %v4481_v57 = vpop.f32.mrf.mxu0 }
 0x1b7   :  { %v735_v51 = vpop.f32.mrf.mxu1  ;;  %v1069_v8 = vpop.f32.mrf.mxu0  ;;  %4671 = vmatmul.mubr.msk.bf16.gmra.mxu0 %vm218_vm1, %v1584_v4  ;;  %4679 = vmatmul.mubr.msk.bf16.vlgmr.msra.gmra.mxu1 %vm218_vm1, %v1947_v31  ;;  %v1911_v4 = vld [vmem:[%s7438_s0 + $0x41] sm:$0xff] }
 0x1b8   :  { %v6216_v36 = vadd.f32 %v1069_v8, %v728_v40  ;;  %4682 = vmatprep.mubr.msk.bf16.mxu1 %vm5082_vm0, %v7453_v58  ;;  %4766 = vmatprep.mubr.msk.bf16.mxu0 %vm5082_vm0, %v7453_v58  ;;  %v736_v47 = vadd.f32 %v735_v51, %v7456_v59  ;;  %v5055_v31 = vld [vmem:[#allocation2 + $0x80] sm:$0xff]   ;;  %v1949_v8 = vpack.c.bf16 %v1911_v4, %v1910_v35 }
 0x1b9   :  { %v4400_v38 = vpop.f32.mrf.mxu1  ;;  %v4484_v42 = vpop.f32.mrf.mxu0  ;;  %4851 = vmatpush3.bf16.msra.mxu1 %v5052_v11  ;;  %v7457_v11 = vld [vmem:[#allocation8_spill] sm:$0xff] }
 0x1ba   :  { %4852 = vmatprep.subr.bf16.mxu1 %v7453_v58  ;;  %v7458_v42 = vld [vmem:[#allocation9_spill] sm:$0xff] }
 0x1bb   :  { %v738_v41 = vpop.f32.mrf.mxu1  ;;  %v1072_v10 = vpop.f32.mrf.mxu0 }
 0x1bc   :  { %v6230_v18 = vadd.f32 %v1072_v10, %v731_v46  ;;  %v739_v53 = vadd.f32 %v738_v41, %v7457_v11  ;;  %v1912_v41 = vld [vmem:[%s7438_s0 + $0x49] sm:$0xff] }
 0x1bd   :  { %v4401_v2 = vpop.f32.mrf.mxu1  ;;  %v4485_v13 = vpop.f32.mrf.mxu0  ;;  %4853 = vmatpush3.bf16.msra.mxu1 %v5054_v20 }
 0x1be   :  { %v7459_v13 = vld [vmem:[#allocation10_spill] sm:$0xff] }
 0x1bf   :  { %v743_v55 = vpop.f32.mrf.mxu1  ;;  %v1077_v56 = vpop.f32.mrf.mxu0  ;;  %4683 = vmatmul.mubr.msk.bf16.gmra.mxu1 %vm218_vm1, %v1948_v21  ;;  %4767 = vmatmul.mubr.msk.bf16.vlgmr.msra.gmra.mxu0 %vm218_vm1, %v1948_v21  ;;  %v1913_v21 = vld [vmem:[%s7438_s0 + $0x51] sm:$0xff] }
 0x1c0   :  { %v6235_v43 = vadd.f32 %v1077_v56, %v736_v47  ;;  %4939 = vmatpush3.bf16.msra.mxu0 %v5053_v26  ;;  %4686 = vmatprep.mubr.msk.bf16.mxu1 %vm5082_vm0, %v7453_v58  ;;  %v744_v20 = vadd.f32 %v743_v55, %v7458_v42  ;;  %v1950_v56 = vpack.c.bf16 %v1913_v21, %v1912_v41 }
 0x1c1   :  { %v4404_v0 = vpop.f32.mrf.mxu1  ;;  %v4488_v57 = vpop.f32.mrf.mxu0  ;;  %4770 = vmatprep.mubr.msk.bf16.mxu0 %vm5082_vm0, %v7453_v58  ;;  %4940 = vmatprep.subr.bf16.mxu0 %v7453_v58 }
 0x1c2   :  { %v7460_v0 = vld [vmem:[#allocation11_spill] sm:$0xff] }
 0x1c3   :  { %v746_v40 = vpop.f32.mrf.mxu1  ;;  %v1080_v51 = vpop.f32.mrf.mxu0 }
 0x1c4   :  { %v6249_v29 = vadd.f32 %v1080_v51, %v739_v53  ;;  %4941 = vmatpush3.bf16.msra.mxu0 %v5055_v31  ;;  %v747_v59 = vadd.f32 %v746_v40, %v7459_v13  ;;  %v1914_v40 = vld [vmem:[%s7438_s0 + $0x59] sm:$0xff] }
 0x1c5   :  { %v4405_v6 = vpop.f32.mrf.mxu1  ;;  %v4489_v38 = vpop.f32.mrf.mxu0 }
 0x1c6   :  { %v1915_v38 = vld [vmem:[%s7438_s0 + $0x61] sm:$0xff] }
 0x1c7   :  { %v751_v50 = vpop.f32.mrf.mxu1  ;;  %v1085_v46 = vpop.f32.mrf.mxu0  ;;  %4687 = vmatmul.mubr.msk.bf16.gmra.mxu1 %vm218_vm1, %v1949_v8  ;;  %4771 = vmatmul.mubr.msk.bf16.gmra.mxu0 %vm218_vm1, %v1949_v8  ;;  %v7461_v8 = vld [vmem:[#allocation12_spill] sm:$0xff]  ;;  %v1951_v41 = vpack.c.bf16 %v1915_v38, %v1914_v40 }
 0x1c8   :  { %v6254_v10 = vadd.f32 %v1085_v46, %v744_v20  ;;  %4690 = vmatprep.mubr.msk.bf16.mxu1 %vm5082_vm0, %v7453_v58  ;;  %4774 = vmatprep.mubr.msk.bf16.mxu0 %vm5082_vm0, %v7453_v58  ;;  %v752_v57 = vadd.f32 %v751_v50, %v7460_v0 }
 0x1c9   :  { %v4408_v26 = vpop.f32.mrf.mxu1  ;;  %v4492_v2 = vpop.f32.mrf.mxu0 }
 0x1cb   :  { %v754_v47 = vpop.f32.mrf.mxu1  ;;  %v1088_v55 = vpop.f32.mrf.mxu0 }
 0x1cc   :  { %v6267_v35 = vadd.f32 %v1088_v55, %v747_v59 }
 0x1cd   :  { %v4409_v4 = vpop.f32.mrf.mxu1  ;;  %v4493_v31 = vpop.f32.mrf.mxu0 }
 0x1cf   :  { %v1093_v11 = vpop.f32.mrf.mxu0  ;;  %v1316_v53 = vpop.f32.mrf.mxu1  ;;  %4691 = vmatmul.mubr.msk.bf16.gmra.mxu1 %vm218_vm1, %v1950_v56  ;;  %4775 = vmatmul.mubr.msk.bf16.gmra.mxu0 %vm218_vm1, %v1950_v56  ;;  %v1917_v56 = vld [vmem:[%s7438_s0 + $0x71] sm:$0xff] }
 0x1d0   :  { %v6272_v51 = vadd.f32 %v1093_v11, %v752_v57  ;;  %v1482_v6 = vadd.f32 %v1316_v53, %v7461_v8  ;;  %4694 = vmatprep.mubr.msk.bf16.mxu1 %vm5082_vm0, %v7453_v58  ;;  %4778 = vmatprep.mubr.msk.bf16.mxu0 %vm5082_vm0, %v7453_v58 }
 0x1d1   :  { %v4496_v42 = vpop.f32.mrf.mxu0  ;;  %v4504_v20 = vpop.f32.mrf.mxu1 }
 0x1d3   :  { %v1096_v50 = vpop.f32.mrf.mxu0  ;;  %v1319_v46 = vpop.f32.mrf.mxu1 }
 0x1d4   :  { %v1483_v21 = vadd.f32 %v1319_v46, %v5897_v19  ;;  %v1916_v19 = vld [vmem:[%s7438_s0 + $0x69] sm:$0xff]  ;;  %v1919_v50 = vld [vmem:[%s7438_s0 + $0x81] sm:$0xff] }
 0x1d5   :  { %v4497_v26 = vpop.f32.mrf.mxu0  ;;  %v4505_v2 = vpop.f32.mrf.mxu1  ;;  %v1952_v57 = vpack.c.bf16 %v1917_v56, %v1916_v19 }
 0x1d7   :  { %v1324_v13 = vpop.f32.mrf.mxu1  ;;  %v1699_v59 = vpop.f32.mrf.mxu0  ;;  %4695 = vmatmul.mubr.msk.bf16.gmra.mxu1 %vm218_vm1, %v1951_v41  ;;  %4779 = vmatmul.mubr.msk.bf16.gmra.mxu0 %vm218_vm1, %v1951_v41 }
 0x1d8   :  { %v1484_v47 = vadd.f32 %v1324_v13, %v5903_v23  ;;  %v6289_v55 = vadd.f32 %v1699_v59, %v1482_v6  ;;  %4698 = vmatprep.mubr.msk.bf16.mxu1 %vm5082_vm0, %v7453_v58  ;;  %4782 = vmatprep.mubr.msk.bf16.mxu0 %vm5082_vm0, %v7453_v58 }
 0x1d9   :  { %v4508_v4 = vpop.f32.mrf.mxu1  ;;  %v4592_v31 = vpop.f32.mrf.mxu0 }
 0x1db   :  { %v1327_v0 = vpop.f32.mrf.mxu1  ;;  %v1702_v23 = vpop.f32.mrf.mxu0 }
 0x1dc   :  { %v1485_v11 = vadd.f32 %v1327_v0, %v5916_v48  ;;  %v6302_v53 = vadd.f32 %v1702_v23, %v1483_v21  ;;  %v1918_v48 = vld [vmem:[%s7438_s0 + $0x79] sm:$0xff]  ;;  %v1921_v0 = vld [vmem:[%s7438_s0 + $0x91] sm:$0xff] }
 0x1dd   :  { %v4509_v8 = vpop.f32.mrf.mxu1  ;;  %v4593_v6 = vpop.f32.mrf.mxu0  ;;  %v1953_v26 = vpack.c.bf16 %v1919_v50, %v1918_v48 }
 0x1df   :  { %v1332_v40 = vpop.f32.mrf.mxu1  ;;  %v1707_v38 = vpop.f32.mrf.mxu0  ;;  %4699 = vmatmul.mubr.msk.bf16.gmra.mxu1 %vm218_vm1, %v1952_v57  ;;  %4783 = vmatmul.mubr.msk.bf16.gmra.mxu0 %vm218_vm1, %v1952_v57 }
 0x1e0   :  { %v1486_v42 = vadd.f32 %v1332_v40, %v5922_v45  ;;  %v6307_v20 = vadd.f32 %v1707_v38, %v1484_v47  ;;  %4702 = vmatprep.mubr.msk.bf16.mxu1 %vm5082_vm0, %v7453_v58  ;;  %4786 = vmatprep.mubr.msk.bf16.mxu0 %vm5082_vm0, %v7453_v58 }
 0x1e1   :  { %v4512_v46 = vpop.f32.mrf.mxu1  ;;  %v4596_v41 = vpop.f32.mrf.mxu0 }
 0x1e3   :  { %v1335_v21 = vpop.f32.mrf.mxu1  ;;  %v1710_v45 = vpop.f32.mrf.mxu0 }
 0x1e4   :  { %v1487_v2 = vadd.f32 %v1335_v21, %v5935_v54  ;;  %v6320_v13 = vadd.f32 %v1710_v45, %v1485_v11  ;;  %v1920_v54 = vld [vmem:[%s7438_s0 + $0x89] sm:$0xff]  ;;  %v1923_v21 = vld [vmem:[%s7438_s0 + $0xa1] sm:$0xff] }
 0x1e5   :  { %v4513_v59 = vpop.f32.mrf.mxu1  ;;  %v4597_v47 = vpop.f32.mrf.mxu0  ;;  %v1954_v8 = vpack.c.bf16 %v1921_v0, %v1920_v54 }
 0x1e7   :  { %v1340_v19 = vpop.f32.mrf.mxu1  ;;  %v1715_v56 = vpop.f32.mrf.mxu0  ;;  %4703 = vmatmul.mubr.msk.bf16.gmra.mxu1 %vm218_vm1, %v1953_v26  ;;  %4787 = vmatmul.mubr.msk.bf16.gmra.mxu0 %vm218_vm1, %v1953_v26 }
 0x1e8   :  { %v1488_v4 = vadd.f32 %v1340_v19, %v5941_v16  ;;  %v6325_v31 = vadd.f32 %v1715_v56, %v1486_v42  ;;  %4706 = vmatprep.mubr.msk.bf16.mxu1 %vm5082_vm0, %v7453_v58  ;;  %4790 = vmatprep.mubr.msk.bf16.mxu0 %vm5082_vm0, %v7453_v58 }
 0x1e9   :  { %v4516_v23 = vpop.f32.mrf.mxu1  ;;  %v4600_v57 = vpop.f32.mrf.mxu0 }
 0x1eb   :  { %v1343_v11 = vpop.f32.mrf.mxu1  ;;  %v1718_v16 = vpop.f32.mrf.mxu0 }
 0x1ec   :  { %v1489_v6 = vadd.f32 %v1343_v11, %v5954_v14  ;;  %v6338_v40 = vadd.f32 %v1718_v16, %v1487_v2  ;;  %v1922_v14 = vld [vmem:[%s7438_s0 + $0x99] sm:$0xff]  ;;  %v1925_v11 = vld [vmem:[%s7438_s0 + $0xb1] sm:$0xff] }
 0x1ed   :  { %v4517_v38 = vpop.f32.mrf.mxu1  ;;  %v4601_v42 = vpop.f32.mrf.mxu0  ;;  %v1955_v59 = vpack.c.bf16 %v1923_v21, %v1922_v14 }
 0x1ef   :  { %v1348_v48 = vpop.f32.mrf.mxu1  ;;  %v1723_v50 = vpop.f32.mrf.mxu0  ;;  %4707 = vmatmul.mubr.msk.bf16.gmra.mxu1 %vm218_vm1, %v1954_v8  ;;  %4791 = vmatmul.mubr.msk.bf16.gmra.mxu0 %vm218_vm1, %v1954_v8 }
 0x1f0   :  { %v1490_v46 = vadd.f32 %v1348_v48, %v5960_v5  ;;  %v6343_v41 = vadd.f32 %v1723_v50, %v1488_v4  ;;  %4710 = vmatprep.mubr.msk.bf16.mxu1 %vm5082_vm0, %v7453_v58  ;;  %4794 = vmatprep.mubr.msk.bf16.mxu0 %vm5082_vm0, %v7453_v58 }
 0x1f1   :  { %v4520_v45 = vpop.f32.mrf.mxu1  ;;  %v4604_v26 = vpop.f32.mrf.mxu0 }
 0x1f3   :  { %v1351_v2 = vpop.f32.mrf.mxu1  ;;  %v1726_v5 = vpop.f32.mrf.mxu0 }
 0x1f4   :  { %v1491_v47 = vadd.f32 %v1351_v2, %v5973_v25  ;;  %v6356_v19 = vadd.f32 %v1726_v5, %v1489_v6  ;;  %v1924_v25 = vld [vmem:[%s7438_s0 + $0xa9] sm:$0xff]  ;;  %v1927_v2 = vld [vmem:[%s7438_s0 + $0xc1] sm:$0xff] }
 0x1f5   :  { %v4521_v56 = vpop.f32.mrf.mxu1  ;;  %v4605_v4 = vpop.f32.mrf.mxu0  ;;  %v1956_v38 = vpack.c.bf16 %v1925_v11, %v1924_v25 }
 0x1f7   :  { %v1356_v54 = vpop.f32.mrf.mxu1  ;;  %v1731_v0 = vpop.f32.mrf.mxu0  ;;  %4711 = vmatmul.mubr.msk.bf16.gmra.mxu1 %vm218_vm1, %v1955_v59  ;;  %4795 = vmatmul.mubr.msk.bf16.gmra.mxu0 %vm218_vm1, %v1955_v59 }
 0x1f8   :  { %v1492_v23 = vadd.f32 %v1356_v54, %v5979_v60  ;;  %v6361_v57 = vadd.f32 %v1731_v0, %v1490_v46  ;;  %4714 = vmatprep.mubr.msk.bf16.mxu1 %vm5082_vm0, %v7453_v58  ;;  %4798 = vmatprep.mubr.msk.bf16.mxu0 %vm5082_vm0, %v7453_v58 }
 0x1f9   :  { %v4524_v16 = vpop.f32.mrf.mxu1  ;;  %v4608_v8 = vpop.f32.mrf.mxu0 }
 0x1fb   :  { %v1359_v6 = vpop.f32.mrf.mxu1  ;;  %v1734_v60 = vpop.f32.mrf.mxu0 }
 0x1fc   :  { %v1493_v42 = vadd.f32 %v1359_v6, %v5992_v39  ;;  %v6374_v48 = vadd.f32 %v1734_v60, %v1491_v47  ;;  %v1926_v39 = vld [vmem:[%s7438_s0 + $0xb9] sm:$0xff]  ;;  %v1929_v6 = vld [vmem:[%s7438_s0 + $0xd1] sm:$0xff] }
 0x1fd   :  { %v4525_v50 = vpop.f32.mrf.mxu1  ;;  %v4609_v46 = vpop.f32.mrf.mxu0  ;;  %v1957_v56 = vpack.c.bf16 %v1927_v2, %v1926_v39 }
 0x1ff   :  { %v1364_v14 = vpop.f32.mrf.mxu1  ;;  %v1739_v21 = vpop.f32.mrf.mxu0  ;;  %4715 = vmatmul.mubr.msk.bf16.gmra.mxu1 %vm218_vm1, %v1956_v38  ;;  %4799 = vmatmul.mubr.msk.bf16.gmra.mxu0 %vm218_vm1, %v1956_v38 }
 0x200   :  { %v1494_v45 = vadd.f32 %v1364_v14, %v5998_v17  ;;  %v6379_v26 = vadd.f32 %v1739_v21, %v1492_v23  ;;  %4718 = vmatprep.mubr.msk.bf16.mxu1 %vm5082_vm0, %v7453_v58  ;;  %4802 = vmatprep.mubr.msk.bf16.mxu0 %vm5082_vm0, %v7453_v58 }
 0x201   :  { %v4528_v5 = vpop.f32.mrf.mxu1  ;;  %v4612_v59 = vpop.f32.mrf.mxu0 }
 0x203   :  { %v1367_v47 = vpop.f32.mrf.mxu1  ;;  %v1742_v17 = vpop.f32.mrf.mxu0 }
 0x204   :  { %v1495_v4 = vadd.f32 %v1367_v47, %v6011_v7  ;;  %v6392_v54 = vadd.f32 %v1742_v17, %v1493_v42  ;;  %v1928_v7 = vld [vmem:[%s7438_s0 + $0xc9] sm:$0xff]  ;;  %v1931_v47 = vld [vmem:[%s7438_s0 + $0xe1] sm:$0xff] }
 0x205   :  { %v4529_v0 = vpop.f32.mrf.mxu1  ;;  %v4613_v23 = vpop.f32.mrf.mxu0  ;;  %v1958_v50 = vpack.c.bf16 %v1929_v6, %v1928_v7 }
 0x207   :  { %v1372_v25 = vpop.f32.mrf.mxu1  ;;  %v1747_v11 = vpop.f32.mrf.mxu0  ;;  %4719 = vmatmul.mubr.msk.bf16.gmra.mxu1 %vm218_vm1, %v1957_v56  ;;  %4803 = vmatmul.mubr.msk.bf16.gmra.mxu0 %vm218_vm1, %v1957_v56 }
 0x208   :  { %v1496_v16 = vadd.f32 %v1372_v25, %v6017_v33  ;;  %v6397_v8 = vadd.f32 %v1747_v11, %v1494_v45  ;;  %4722 = vmatprep.mubr.msk.bf16.mxu1 %vm5082_vm0, %v7453_v58  ;;  %4806 = vmatprep.mubr.msk.bf16.mxu0 %vm5082_vm0, %v7453_v58 }
 0x209   :  { %v4532_v60 = vpop.f32.mrf.mxu1  ;;  %v4616_v38 = vpop.f32.mrf.mxu0 }
 0x20b   :  { %v1375_v42 = vpop.f32.mrf.mxu1  ;;  %v1750_v33 = vpop.f32.mrf.mxu0 }
 0x20c   :  { %v1497_v46 = vadd.f32 %v1375_v42, %v6030_v37  ;;  %v6410_v14 = vadd.f32 %v1750_v33, %v1495_v4  ;;  %v1930_v37 = vld [vmem:[%s7438_s0 + $0xd9] sm:$0xff]  ;;  %v1933_v42 = vld [vmem:[%s7438_s0 + $0xf1] sm:$0xff] }
 0x20d   :  { %v4533_v21 = vpop.f32.mrf.mxu1  ;;  %v4617_v45 = vpop.f32.mrf.mxu0  ;;  %v1959_v0 = vpack.c.bf16 %v1931_v47, %v1930_v37 }
 0x20f   :  { %v1380_v39 = vpop.f32.mrf.mxu1  ;;  %v1755_v2 = vpop.f32.mrf.mxu0  ;;  %4723 = vmatmul.mubr.msk.bf16.gmra.mxu1 %vm218_vm1, %v1958_v50  ;;  %4807 = vmatmul.mubr.msk.bf16.gmra.mxu0 %vm218_vm1, %v1958_v50 }
 0x210   :  { %v1498_v5 = vadd.f32 %v1380_v39, %v6036_v44  ;;  %v6415_v59 = vadd.f32 %v1755_v2, %v1496_v16  ;;  %4726 = vmatprep.mubr.msk.bf16.mxu1 %vm5082_vm0, %v7453_v58  ;;  %4810 = vmatprep.mubr.msk.bf16.mxu0 %vm5082_vm0, %v7453_v58 }
 0x211   :  { %v4536_v17 = vpop.f32.mrf.mxu1  ;;  %v4620_v56 = vpop.f32.mrf.mxu0 }
 0x213   :  { %v1383_v4 = vpop.f32.mrf.mxu1  ;;  %v1758_v44 = vpop.f32.mrf.mxu0 }
 0x214   :  { %v1499_v23 = vadd.f32 %v1383_v4, %v6049_v34  ;;  %v6428_v25 = vadd.f32 %v1758_v44, %v1497_v46  ;;  %v1932_v34 = vld [vmem:[%s7438_s0 + $0xe9] sm:$0xff]  ;;  %v1935_v4 = vld [vmem:[%s7438_s0 + $0x101] sm:$0xff] }
 0x215   :  { %v4537_v11 = vpop.f32.mrf.mxu1  ;;  %v4621_v16 = vpop.f32.mrf.mxu0  ;;  %v1960_v21 = vpack.c.bf16 %v1933_v42, %v1932_v34 }
 0x217   :  { %v1388_v7 = vpop.f32.mrf.mxu1  ;;  %v1763_v6 = vpop.f32.mrf.mxu0  ;;  %4727 = vmatmul.mubr.msk.bf16.gmra.mxu1 %vm218_vm1, %v1959_v0  ;;  %4811 = vmatmul.mubr.msk.bf16.gmra.mxu0 %vm218_vm1, %v1959_v0 }
 0x218   :  { %v1500_v60 = vadd.f32 %v1388_v7, %v6055_v28  ;;  %v6433_v38 = vadd.f32 %v1763_v6, %v1498_v5  ;;  %4730 = vmatprep.mubr.msk.bf16.mxu1 %vm5082_vm0, %v7453_v58  ;;  %4814 = vmatprep.mubr.msk.bf16.mxu0 %vm5082_vm0, %v7453_v58 }
 0x219   :  { %v4540_v33 = vpop.f32.mrf.mxu1  ;;  %v4624_v50 = vpop.f32.mrf.mxu0 }
 0x21b   :  { %v1391_v46 = vpop.f32.mrf.mxu1  ;;  %v1766_v28 = vpop.f32.mrf.mxu0 }
 0x21c   :  { %v1501_v45 = vadd.f32 %v1391_v46, %v6068_v27  ;;  %v6446_v39 = vadd.f32 %v1766_v28, %v1499_v23  ;;  %v1934_v27 = vld [vmem:[%s7438_s0 + $0xf9] sm:$0xff]  ;;  %v1937_v46 = vld [vmem:[%s7438_s0 + $0x111] sm:$0xff] }
 0x21d   :  { %v4541_v2 = vpop.f32.mrf.mxu1  ;;  %v4625_v5 = vpop.f32.mrf.mxu0  ;;  %v1961_v11 = vpack.c.bf16 %v1935_v4, %v1934_v27 }
 0x21f   :  { %v1396_v37 = vpop.f32.mrf.mxu1  ;;  %v1771_v47 = vpop.f32.mrf.mxu0  ;;  %4731 = vmatmul.mubr.msk.bf16.gmra.mxu1 %vm218_vm1, %v1960_v21  ;;  %4815 = vmatmul.mubr.msk.bf16.gmra.mxu0 %vm218_vm1, %v1960_v21 }
 0x220   :  { %v1502_v17 = vadd.f32 %v1396_v37, %v6074_v3  ;;  %v6451_v56 = vadd.f32 %v1771_v47, %v1500_v60  ;;  %4734 = vmatprep.mubr.msk.bf16.mxu1 %vm5082_vm0, %v7453_v58  ;;  %4818 = vmatprep.mubr.msk.bf16.mxu0 %vm5082_vm0, %v7453_v58 }
 0x221   :  { %v4544_v44 = vpop.f32.mrf.mxu1  ;;  %v4628_v0 = vpop.f32.mrf.mxu0 }
 0x223   :  { %v1399_v23 = vpop.f32.mrf.mxu1  ;;  %v1774_v3 = vpop.f32.mrf.mxu0 }
 0x224   :  { %v1503_v16 = vadd.f32 %v1399_v23, %v6087_v15  ;;  %v6464_v7 = vadd.f32 %v1774_v3, %v1501_v45  ;;  %v1936_v15 = vld [vmem:[%s7438_s0 + $0x109] sm:$0xff]  ;;  %v1939_v23 = vld [vmem:[%s7438_s0 + $0x121] sm:$0xff] }
 0x225   :  { %v4545_v6 = vpop.f32.mrf.mxu1  ;;  %v4629_v60 = vpop.f32.mrf.mxu0  ;;  %v1962_v2 = vpack.c.bf16 %v1937_v46, %v1936_v15 }
 0x227   :  { %v1404_v34 = vpop.f32.mrf.mxu1  ;;  %v1779_v42 = vpop.f32.mrf.mxu0  ;;  %4735 = vmatmul.mubr.msk.bf16.gmra.mxu1 %vm218_vm1, %v1961_v11  ;;  %4819 = vmatmul.mubr.msk.bf16.gmra.mxu0 %vm218_vm1, %v1961_v11 }
 0x228   :  { %v1504_v33 = vadd.f32 %v1404_v34, %v6093_v52  ;;  %v6469_v50 = vadd.f32 %v1779_v42, %v1502_v17  ;;  %4738 = vmatprep.mubr.msk.bf16.mxu1 %vm5082_vm0, %v7453_v58  ;;  %4822 = vmatprep.mubr.msk.bf16.mxu0 %vm5082_vm0, %v7453_v58 }
 0x229   :  { %v4548_v28 = vpop.f32.mrf.mxu1  ;;  %v4632_v21 = vpop.f32.mrf.mxu0 }
 0x22a   :  { %v33_v28 = vld [vmem:[%s7439_s1 + $0x8] sm:$0xff] }
 0x22b   :  { %v1407_v45 = vpop.f32.mrf.mxu1  ;;  %v1782_v52 = vpop.f32.mrf.mxu0 }
 0x22c   :  { %v1505_v5 = vadd.f32 %v1407_v45, %v6106_v61  ;;  %v6482_v37 = vadd.f32 %v1782_v52, %v1503_v16  ;;  %v1938_v61 = vld [vmem:[%s7438_s0 + $0x119] sm:$0xff]  ;;  %v5083_v16 = vmov 0  }
 0x22d   :  { %v4549_v47 = vpop.f32.mrf.mxu1  ;;  %v4633_v17 = vpop.f32.mrf.mxu0  ;;  %5036 = vset.pattern.permute.xlu0 %v5083_v16  ;;  %5037 = vset.pattern.permute.xlu1 %v5083_v16  ;;  %v1963_v34 = vpack.c.bf16 %v1939_v23, %v1938_v61 }
 0x22f   :  { %v1412_v27 = vpop.f32.mrf.mxu1  ;;  %v1787_v4 = vpop.f32.mrf.mxu0  ;;  %4739 = vmatmul.mubr.msk.bf16.gmra.mxu1 %vm218_vm1, %v1962_v2  ;;  %4823 = vmatmul.mubr.msk.bf16.gmra.mxu0 %vm218_vm1, %v1962_v2 }
 0x230   :  { %v1506_v44 = vadd.f32 %v1412_v27, %v6112_v22  ;;  %v6487_v0 = vadd.f32 %v1787_v4, %v1504_v33  ;;  %4742 = vmatprep.mubr.msk.bf16.mxu1 %vm5082_vm0, %v7453_v58  ;;  %4826 = vmatprep.mubr.msk.bf16.mxu0 %vm5082_vm0, %v7453_v58  ;;  %v32_v22 = vld [vmem:[%s7439_s1] sm:$0xff] }
 0x231   :  { %v4552_v3 = vpop.f32.mrf.mxu1  ;;  %v4636_v11 = vpop.f32.mrf.mxu0  ;;  %3529 = vperm.xlu0 %5036, %v32_v22   ;;  %v36_v27 = vld [vmem:[%s7439_s1 + $0x20] sm:$0xff]  ;;  %v35_v22 = vld [vmem:[%s7439_s1 + $0x18] sm:$0xff] }
 0x233   :  { %v1415_v6 = vpop.f32.mrf.mxu1  ;;  %v1790_v60 = vpop.f32.mrf.mxu0 }
 0x234   :  { %v1507_v42 = vadd.f32 %v1415_v6, %v6125_v62  ;;  %v6503_v33 = vadd.f32 %v1790_v60, %v1505_v5  ;;  %v1940_v62 = vld [vmem:[%s7438_s0 + $0x129] sm:$0xff]  ;;  %v1941_v5 = vld [vmem:[%s7438_s0 + $0x131] sm:$0xff] }
 0x235   :  { %v4553_v15 = vpop.f32.mrf.mxu1  ;;  %v4637_v46 = vpop.f32.mrf.mxu0  ;;  %3534 = vperm.xlu0 %5036, %v33_v28   ;;  %v1964_v61 = vpack.c.bf16 %v1941_v5, %v1940_v62  ;;  %v38_v6 = vld [vmem:[%s7439_s1 + $0x30] sm:$0xff] }
 0x236   :  { %v1942_v15 = vld [vmem:[%s7438_s0 + $0x139] sm:$0xff]  ;;  %v1943_v46 = vld [vmem:[%s7438_s0 + $0x141] sm:$0xff] }
 0x237   :  { %v1420_v21 = vpop.f32.mrf.mxu1  ;;  %v1795_v45 = vpop.f32.mrf.mxu0  ;;  %4743 = vmatmul.mubr.msk.bf16.gmra.mxu1 %vm218_vm1, %v1963_v34  ;;  %4827 = vmatmul.mubr.msk.bf16.gmra.mxu0 %vm218_vm1, %v1963_v34  ;;  %v1965_v5 = vpack.c.bf16 %v1943_v46, %v1942_v15 }
 0x238   :  { %v1508_v52 = vadd.f32 %v1420_v21, %v6131_v30  ;;  %v6511_v2 = vadd.f32 %v1795_v45, %v1506_v44  ;;  %4746 = vmatprep.mubr.msk.bf16.mxu1 %vm5082_vm0, %v7453_v58  ;;  %4830 = vmatprep.mubr.msk.bf16.mxu0 %vm5082_vm0, %v7453_v58  ;;  %v34_v30 = vld [vmem:[%s7439_s1 + $0x10] sm:$0xff]  ;;  %v40_v45 = vld [vmem:[%s7439_s1 + $0x40] sm:$0xff] }
 0x239   :  { %v4556_v47 = vpop.f32.mrf.mxu1  ;;  %v4640_v17 = vpop.f32.mrf.mxu0  ;;  %3539 = vperm.xlu1 %5037, %v34_v30   ;;  %3549 = vperm.xlu0 %5036, %v36_v27  }
 0x23b   :  { %v1423_v4 = vpop.f32.mrf.mxu1  ;;  %v1798_v44 = vpop.f32.mrf.mxu0 }
 0x23c   :  { %v1509_v23 = vadd.f32 %v1423_v4, %v6144_v49  ;;  %v6530_v3 = vadd.f32 %v1798_v44, %v1507_v42  ;;  %v39_v4 = vld [vmem:[%s7439_s1 + $0x38] sm:$0xff]  ;;  %v42_v44 = vld [vmem:[%s7439_s1 + $0x50] sm:$0xff] }
 0x23d   :  { %v4557_v11 = vpop.f32.mrf.mxu1  ;;  %v4641_v16 = vpop.f32.mrf.mxu0  ;;  %3544 = vperm.xlu1 %5037, %v35_v22   ;;  %3559 = vperm.xlu0 %5036, %v38_v6   ;;  %v1945_v22 = vld [vmem:[%s7438_s0 + $0x151] sm:$0xff] }
 0x23e   :  { %v1944_v16 = vld [vmem:[%s7438_s0 + $0x149] sm:$0xff] }
 0x23f   :  { %v1428_v60 = vpop.f32.mrf.mxu1  ;;  %v1803_v34 = vpop.f32.mrf.mxu0  ;;  %4747 = vmatmul.mubr.msk.bf16.gmra.mxu1 %vm218_vm1, %v1964_v61  ;;  %4831 = vmatmul.mubr.msk.bf16.gmra.mxu0 %vm218_vm1, %v1964_v61  ;;  %v1966_v46 = vpack.c.bf16 %v1945_v22, %v1944_v16 }
 0x240   :  { %v1510_v49 = vadd.f32 %v1428_v60, %v6153_v24  ;;  %v6541_v42 = vadd.f32 %v1803_v34, %v1508_v52  ;;  %4750 = vmatprep.mubr.msk.bf16.mxu1 %vm5082_vm0, %v7453_v58  ;;  %4834 = vmatprep.mubr.msk.bf16.mxu0 %vm5082_vm0, %v7453_v58  ;;  %v37_v24 = vld [vmem:[%s7439_s1 + $0x28] sm:$0xff]  ;;  %v44_v34 = vld [vmem:[%s7439_s1 + $0x60] sm:$0xff] }
 0x241   :  { %v4560_v28 = vpop.f32.mrf.mxu1  ;;  %v4644_v21 = vpop.f32.mrf.mxu0  ;;  %3554 = vperm.xlu1 %5037, %v37_v24   ;;  %3569 = vperm.xlu0 %5036, %v40_v45  }
 0x243   :  { %v1431_v52 = vpop.f32.mrf.mxu1  ;;  %v1806_v62 = vpop.f32.mrf.mxu0 }
 0x244   :  { %v1511_v47 = vadd.f32 %v1431_v52, %v6169_v63  ;;  %v6560_v17 = vadd.f32 %v1806_v62, %v1509_v23  ;;  %v43_v52 = vld [vmem:[%s7439_s1 + $0x58] sm:$0xff]  ;;  %v46_v62 = vld [vmem:[%s7439_s1 + $0x70] sm:$0xff] }
 0x245   :  { %v4561_v30 = vpop.f32.mrf.mxu1  ;;  %v4645_v27 = vpop.f32.mrf.mxu0  ;;  %3564 = vperm.xlu1 %5037, %v39_v4   ;;  %3579 = vperm.xlu0 %5036, %v42_v44   ;;  %v2327_v4 = vld [vmem:[%s7438_s0 + $0x159] sm:$0xff] }
 0x246   :  { %v1946_v27 = vld [vmem:[%s7438_s0 + $0x159] sm:$0xf] }
 0x247   :  { %v1436_v61 = vpop.f32.mrf.mxu1  ;;  %v1811_v11 = vpop.f32.mrf.mxu0  ;;  %4751 = vmatmul.mubr.msk.bf16.gmra.mxu1 %vm218_vm1, %v1965_v5  ;;  %4835 = vmatmul.mubr.msk.bf16.gmra.mxu0 %vm218_vm1, %v1965_v5 }
 0x248   :  { %v1512_v63 = vadd.f32 %v1436_v61, %v6174_v1  ;;  %v6571_v23 = vadd.f32 %v1811_v11, %v1510_v49  ;;  %4754 = vmatprep.mubr.msk.bf16.mxu1 %vm5082_vm0, %v7453_v58  ;;  %4838 = vmatprep.mubr.msk.bf16.mxu0 %vm5082_vm0, %v7453_v58  ;;  %v41_v1 = vld [vmem:[%s7439_s1 + $0x48] sm:$0xff] }
 0x249   :  { %v4564_v6 = vpop.f32.mrf.mxu1  ;;  %v4648_v60 = vpop.f32.mrf.mxu0  ;;  %3574 = vperm.xlu1 %5037, %v41_v1   ;;  %3589 = vperm.xlu0 %5036, %v44_v34   ;;  %v45_v11 = vld [vmem:[%s7439_s1 + $0x68] sm:$0xff] }
 0x24a   :  { %v1967_v6 = vpack.c.bf16 %v1946_v27, %v1946_v27  ;;  %v49_v27 = vld [vmem:[%s7439_s1 + $0x88] sm:$0xff] }
 0x24b   :  { %v1439_v49 = vpop.f32.mrf.mxu1  ;;  %v1814_v15 = vpop.f32.mrf.mxu0 }
 0x24c   :  { %v1513_v28 = vadd.f32 %v1439_v49, %v6190_v9  ;;  %v6590_v21 = vadd.f32 %v1814_v15, %v1511_v47 }
 0x24d   :  { %v4565_v24 = vpop.f32.mrf.mxu1  ;;  %v4649_v45 = vpop.f32.mrf.mxu0  ;;  %3584 = vperm.xlu1 %5037, %v43_v52   ;;  %3599 = vperm.xlu0 %5036, %v46_v62   ;;  %v2329_v62 = vld [vmem:[%s7438_s0 + $0x169] sm:$0xf] }
 0x24e   :  { %v50_v24 = vld [vmem:[%s7439_s1 + $0x90] sm:$0xff] }
 0x24f   :  { %v1444_v5 = vpop.f32.mrf.mxu1  ;;  %v1819_v30 = vpop.f32.mrf.mxu0  ;;  %4755 = vmatmul.mubr.msk.bf16.gmra.mxu1 %vm218_vm1, %v1966_v46  ;;  %4839 = vmatmul.mubr.msk.bf16.gmra.mxu0 %vm218_vm1, %v1966_v46  ;;  %v47_v46 = vld [vmem:[%s7439_s1 + $0x78] sm:$0xff] }
 0x250   :  { %v1514_v9 = vadd.f32 %v1444_v5, %v6195_v32  ;;  %v6601_v47 = vadd.f32 %v1819_v30, %v1512_v63  ;;  %4758 = vmatprep.mubr.msk.bf16.mxu1 %vm5082_vm0, %v7453_v58  ;;  %4842 = vmatprep.mubr.msk.bf16.mxu0 %vm5082_vm0, %v7453_v58  ;;  %v2328_v32 = vld [vmem:[%s7438_s0 + $0x161] sm:$0xff]  ;;  %v2672_v5 = vld [vmem:[%s7438_s0 + $0x2a] sm:$0xff] }
 0x251   :  { %v4568_v44 = vpop.f32.mrf.mxu1  ;;  %v4652_v61 = vpop.f32.mrf.mxu0  ;;  %v48_v63 = vld [vmem:[%s7439_s1 + $0x80] sm:$0xff]  ;;  %3594 = vperm.xlu1 %5037, %v45_v11   ;;  %v2349_v60 = vpack.c.bf16 %v2328_v32, %v2327_v4 }
 0x252   :  { %3609 = vperm.xlu0 %5036, %v48_v63   ;;  %v52_v4 = vld [vmem:[%s7439_s1 + $0xa0] sm:$0xff]  ;;  %v2350_v61 = vpack.c.bf16 %v2329_v62, %v2329_v62 }
 0x253   :  { %v1447_v16 = vpop.f32.mrf.mxu1  ;;  %v1822_v22 = vpop.f32.mrf.mxu0 }
 0x254   :  { %v1515_v1 = vadd.f32 %v1447_v16, %v6211_v12  ;;  %v6623_v34 = vadd.f32 %v1822_v22, %v1513_v28 }
 0x255   :  { %v4569_v49 = vpop.f32.mrf.mxu1  ;;  %v4653_v15 = vpop.f32.mrf.mxu0  ;;  %3604 = vperm.xlu1 %5037, %v47_v46  }
 0x256   :  { %3619 = vperm.xlu0 %5036, %v50_v24   ;;  %v54_v49 = vld [vmem:[%s7439_s1 + $0xb0] sm:$0xff] }
 0x257   :  { %v1452_v45 = vpop.f32.mrf.mxu1  ;;  %v1827_v52 = vpop.f32.mrf.mxu0  ;;  %4759 = vmatmul.mubr.msk.bf16.gmra.mxu1 %vm218_vm1, %v1967_v6  ;;  %4843 = vmatmul.mubr.msk.bf16.gmra.mxu0 %vm218_vm1, %v2349_v60  ;;  %v51_v60 = vld [vmem:[%s7439_s1 + $0x98] sm:$0xff] }
 0x258   :  { %v1516_v12 = vadd.f32 %v1452_v45, %v6216_v36  ;;  %v6634_v28 = vadd.f32 %v1827_v52, %v1514_v9  ;;  %4846 = vmatprep.mubr.msk.bf16.mxu0 %vm5082_vm0, %v7453_v58  ;;  %4854 = vmatprep.mubr.msk.bf16.mxu1 %vm5082_vm0, %v7453_v58  ;;  %v2673_v36 = vld [vmem:[%s7438_s0 + $0x32] sm:$0xff]  ;;  %v2675_v45 = vld [vmem:[%s7438_s0 + $0x42] sm:$0xff] }
 0x259   :  { %v4572_v30 = vpop.f32.mrf.mxu1  ;;  %v4656_v9 = vpop.f32.mrf.mxu0  ;;  %3614 = vperm.xlu1 %5037, %v49_v27   ;;  %v2713_v11 = vpack.c.bf16 %v2673_v36, %v2672_v5  ;;  %v3055_v52 = vld [vmem:[%s7438_s0 + $0x2b] sm:$0xff]  ;;  %v56_v36 = vld [vmem:[%s7439_s1 + $0xc0] sm:$0xff] }
 0x25a   :  { %3629 = vperm.xlu0 %5036, %v52_v4   ;;  %v53_v5 = vld [vmem:[%s7439_s1 + $0xa8] sm:$0xff] }
 0x25b   :  { %v1455_v32 = vpop.f32.mrf.mxu1  ;;  %v1830_v44 = vpop.f32.mrf.mxu0 }
 0x25c   :  { %v1517_v63 = vadd.f32 %v1455_v32, %v6230_v18  ;;  %v6656_v16 = vadd.f32 %v1830_v44, %v1515_v1  ;;  %v2674_v18 = vld [vmem:[%s7438_s0 + $0x3a] sm:$0xff] }
 0x25d   :  { %v4573_v22 = vpop.f32.mrf.mxu1  ;;  %v4657_v6 = vpop.f32.mrf.mxu0  ;;  %3624 = vperm.xlu1 %5037, %v51_v60   ;;  %v2714_v27 = vpack.c.bf16 %v2675_v45, %v2674_v18  ;;  %v3057_v18 = vld [vmem:[%s7438_s0 + $0x3b] sm:$0xff] }
 0x25e   :  { %3639 = vperm.xlu0 %5036, %v54_v49   ;;  %v55_v22 = vld [vmem:[%s7439_s1 + $0xb8] sm:$0xff]  ;;  %v58_v6 = vld [vmem:[%s7439_s1 + $0xd0] sm:$0xff] }
 0x25f   :  { %v1460_v15 = vpop.f32.mrf.mxu1  ;;  %v1835_v46 = vpop.f32.mrf.mxu0  ;;  %4847 = vmatmul.mubr.msk.bf16.gmra.mxu0 %vm218_vm1, %v2350_v61  ;;  %4855 = vmatmul.mubr.msk.bf16.vlgmr.msra.gmra.mxu1 %vm218_vm1, %v2713_v11 }
 0x260   :  { %v1518_v1 = vadd.f32 %v1460_v15, %v6235_v43  ;;  %v6670_v24 = vadd.f32 %v1835_v46, %v1516_v12  ;;  %4858 = vmatprep.mubr.msk.bf16.mxu1 %vm5082_vm0, %v7453_v58  ;;  %4942 = vmatprep.mubr.msk.bf16.mxu0 %vm5082_vm0, %v7453_v58  ;;  %v3056_v43 = vld [vmem:[%s7438_s0 + $0x33] sm:$0xff] }
 0x261   :  { %v4576_v12 = vpop.f32.mrf.mxu1  ;;  %v4660_v62 = vpop.f32.mrf.mxu0  ;;  %3634 = vperm.xlu1 %5037, %v53_v5   ;;  %v3096_v4 = vpack.c.bf16 %v3056_v43, %v3055_v52  ;;  %v2677_v46 = vld [vmem:[%s7438_s0 + $0x52] sm:$0xff]  ;;  %v57_v52 = vld [vmem:[%s7439_s1 + $0xc8] sm:$0xff]  ;;  %v60_v43 = vld [vmem:[%s7439_s1 + $0xe0] sm:$0xff] }
 0x262   :  { %3649 = vperm.xlu0 %5036, %v56_v36  }
 0x263   :  { %v1463_v30 = vpop.f32.mrf.mxu1  ;;  %v1838_v9 = vpop.f32.mrf.mxu0 }
 0x264   :  { %v1519_v32 = vadd.f32 %v1463_v30, %v6249_v29  ;;  %v6692_v44 = vadd.f32 %v1838_v9, %v1517_v63  ;;  %v2676_v29 = vld [vmem:[%s7438_s0 + $0x4a] sm:$0xff] }
 0x265   :  { %v4577_v61 = vpop.f32.mrf.mxu1  ;;  %v4661_v11 = vpop.f32.mrf.mxu0  ;;  %3644 = vperm.xlu1 %5037, %v55_v22   ;;  %v2715_v5 = vpack.c.bf16 %v2677_v46, %v2676_v29  ;;  %v3059_v29 = vld [vmem:[%s7438_s0 + $0x4b] sm:$0xff] }
 0x266   :  { %3659 = vperm.xlu0 %5036, %v58_v6   ;;  %v59_v61 = vld [vmem:[%s7439_s1 + $0xd8] sm:$0xff]  ;;  %v62_v11 = vld [vmem:[%s7439_s1 + $0xf0] sm:$0xff] }
 0x267   :  { %v1468_v60 = vpop.f32.mrf.mxu1  ;;  %v1843_v49 = vpop.f32.mrf.mxu0  ;;  %4859 = vmatmul.mubr.msk.bf16.gmra.mxu1 %vm218_vm1, %v2714_v27  ;;  %4943 = vmatmul.mubr.msk.bf16.vlgmr.msra.gmra.mxu0 %vm218_vm1, %v3096_v4 }
 0x268   :  { %v1520_v63 = vadd.f32 %v1468_v60, %v6254_v10  ;;  %v6706_v15 = vadd.f32 %v1843_v49, %v1518_v1  ;;  %4862 = vmatprep.mubr.msk.bf16.mxu1 %vm5082_vm0, %v7453_v58  ;;  %4946 = vmatprep.mubr.msk.bf16.mxu0 %vm5082_vm0, %v7453_v58  ;;  %v3058_v10 = vld [vmem:[%s7438_s0 + $0x43] sm:$0xff] }
 0x269   :  { %v4580_v1 = vpop.f32.mrf.mxu1  ;;  %v4664_v45 = vpop.f32.mrf.mxu0  ;;  %3654 = vperm.xlu1 %5037, %v57_v52   ;;  %v3097_v36 = vpack.c.bf16 %v3058_v10, %v3057_v18  ;;  %v2679_v49 = vld [vmem:[%s7438_s0 + $0x62] sm:$0xff] }
 0x26a   :  { %3669 = vperm.xlu0 %5036, %v60_v43   ;;  %v61_v18 = vld [vmem:[%s7439_s1 + $0xe8] sm:$0xff]  ;;  %v64_v10 = vld [vmem:[%s7439_s1 + $0x100] sm:$0xff] }
 0x26b   :  { %v1471_v12 = vpop.f32.mrf.mxu1  ;;  %v1846_v62 = vpop.f32.mrf.mxu0 }
 0x26c   :  { %v1521_v30 = vadd.f32 %v1471_v12, %v6267_v35  ;;  %v6728_v9 = vadd.f32 %v1846_v62, %v1519_v32  ;;  %v2678_v35 = vld [vmem:[%s7438_s0 + $0x5a] sm:$0xff] }
 0x26d   :  { %v4581_v27 = vpop.f32.mrf.mxu1  ;;  %v4665_v4 = vpop.f32.mrf.mxu0  ;;  %3664 = vperm.xlu1 %5037, %v59_v61   ;;  %v2716_v52 = vpack.c.bf16 %v2679_v49, %v2678_v35  ;;  %v3061_v35 = vld [vmem:[%s7438_s0 + $0x5b] sm:$0xff] }
 0x26e   :  { %3679 = vperm.xlu0 %5036, %v62_v11   ;;  %v66_v27 = vld [vmem:[%s7439_s1 + $0x110] sm:$0xff] }
 0x26f   :  { %v1476_v22 = vpop.f32.mrf.mxu1  ;;  %v1851_v6 = vpop.f32.mrf.mxu0  ;;  %4863 = vmatmul.mubr.msk.bf16.gmra.mxu1 %vm218_vm1, %v2715_v5  ;;  %4947 = vmatmul.mubr.msk.bf16.gmra.mxu0 %vm218_vm1, %v3097_v36  ;;  %v63_v36 = vld [vmem:[%s7439_s1 + $0xf8] sm:$0xff] }
 0x270   :  { %v1522_v32 = vadd.f32 %v1476_v22, %v6272_v51  ;;  %v6742_v60 = vadd.f32 %v1851_v6, %v1520_v63  ;;  %4866 = vmatprep.mubr.msk.bf16.mxu1 %vm5082_vm0, %v7453_v58  ;;  %4950 = vmatprep.mubr.msk.bf16.mxu0 %vm5082_vm0, %v7453_v58  ;;  %v3060_v51 = vld [vmem:[%s7438_s0 + $0x53] sm:$0xff] }
 0x271   :  { %v4584_v63 = vpop.f32.mrf.mxu1  ;;  %v4668_v46 = vpop.f32.mrf.mxu0  ;;  %3674 = vperm.xlu1 %5037, %v61_v18   ;;  %v3098_v43 = vpack.c.bf16 %v3060_v51, %v3059_v29  ;;  %v2681_v6 = vld [vmem:[%s7438_s0 + $0x72] sm:$0xff]  ;;  %v65_v29 = vld [vmem:[%s7439_s1 + $0x108] sm:$0xff]  ;;  %v68_v51 = vld [vmem:[%s7439_s1 + $0x120] sm:$0xff] }
 0x272   :  { %3689 = vperm.xlu0 %5036, %v64_v10  }
 0x273   :  { %v1479_v1 = vpop.f32.mrf.mxu1  ;;  %v1854_v45 = vpop.f32.mrf.mxu0 }
 0x274   :  { %v6763_v12 = vadd.f32 %v1854_v45, %v1521_v30  ;;  %v2680_v30 = vld [vmem:[%s7438_s0 + $0x6a] sm:$0xff] }
 0x275   :  { %v4585_v62 = vpop.f32.mrf.mxu1  ;;  %v4669_v5 = vpop.f32.mrf.mxu0  ;;  %3684 = vperm.xlu1 %5037, %v63_v36   ;;  %v2717_v18 = vpack.c.bf16 %v2681_v6, %v2680_v30  ;;  %v3063_v30 = vld [vmem:[%s7438_s0 + $0x6b] sm:$0xff] }
 0x276   :  { %3699 = vperm.xlu0 %5036, %v66_v27   ;;  %v70_v62 = vld [vmem:[%s7439_s1 + $0x130] sm:$0xff] }
 0x277   :  { %v1859_v4 = vpop.f32.mrf.mxu0  ;;  %v2082_v61 = vpop.f32.mrf.mxu1  ;;  %4867 = vmatmul.mubr.msk.bf16.gmra.mxu1 %vm218_vm1, %v2716_v52  ;;  %4951 = vmatmul.mubr.msk.bf16.gmra.mxu0 %vm218_vm1, %v3098_v43  ;;  %v67_v43 = vld [vmem:[%s7439_s1 + $0x118] sm:$0xff] }
 0x278   :  { %v6776_v11 = vadd.f32 %v1859_v4, %v1522_v32  ;;  %v2248_v22 = vadd.f32 %v2082_v61, %v6289_v55  ;;  %4870 = vmatprep.mubr.msk.bf16.mxu1 %vm5082_vm0, %v7453_v58  ;;  %4954 = vmatprep.mubr.msk.bf16.mxu0 %vm5082_vm0, %v7453_v58  ;;  %v3062_v32 = vld [vmem:[%s7438_s0 + $0x63] sm:$0xff] }
 0x279   :  { %v4672_v49 = vpop.f32.mrf.mxu0  ;;  %v4680_v55 = vpop.f32.mrf.mxu1  ;;  %3694 = vperm.xlu1 %5037, %v65_v29   ;;  %v3099_v10 = vpack.c.bf16 %v3062_v32, %v3061_v35  ;;  %v2683_v61 = vld [vmem:[%s7438_s0 + $0x82] sm:$0xff] }
 0x27a   :  { %3709 = vperm.xlu0 %5036, %v68_v51   ;;  %v69_v35 = vld [vmem:[%s7439_s1 + $0x128] sm:$0xff]  ;;  %v72_v32 = vld [vmem:[%s7439_s1 + $0x140] sm:$0xf] }
 0x27b   :  { %v1862_v63 = vpop.f32.mrf.mxu0  ;;  %v2085_v46 = vpop.f32.mrf.mxu1 }
 0x27c   :  { %v2249_v1 = vadd.f32 %v2085_v46, %v6302_v53  ;;  %v2682_v53 = vld [vmem:[%s7438_s0 + $0x7a] sm:$0xff] }
 0x27d   :  { %v4673_v45 = vpop.f32.mrf.mxu0  ;;  %v4681_v52 = vpop.f32.mrf.mxu1  ;;  %3704 = vperm.xlu1 %5037, %v67_v43   ;;  %v2718_v29 = vpack.c.bf16 %v2683_v61, %v2682_v53 }
 0x27e   :  { %3719 = vperm.xlu0 %5036, %v70_v62   ;;  %v71_v45 = vld [vmem:[%s7439_s1 + $0x138] sm:$0xff]  ;;  %v2684_v62 = vld [vmem:[%s7438_s0 + $0x8a] sm:$0xff] }
 0x27f   :  { %v2090_v5 = vpop.f32.mrf.mxu1  ;;  %v2465_v36 = vpop.f32.mrf.mxu0  ;;  %4871 = vmatmul.mubr.msk.bf16.gmra.mxu1 %vm218_vm1, %v2717_v18  ;;  %4955 = vmatmul.mubr.msk.bf16.gmra.mxu0 %vm218_vm1, %v3099_v10 }
 0x280   :  { %v2250_v27 = vadd.f32 %v2090_v5, %v6307_v20  ;;  %v6811_v4 = vadd.f32 %v2465_v36, %v2248_v22  ;;  %4874 = vmatprep.mubr.msk.bf16.mxu1 %vm5082_vm0, %v7453_v58  ;;  %4958 = vmatprep.mubr.msk.bf16.mxu0 %vm5082_vm0, %v7453_v58  ;;  %v3064_v20 = vld [vmem:[%s7438_s0 + $0x73] sm:$0xff]  ;;  %v3065_v36 = vld [vmem:[%s7438_s0 + $0x7b] sm:$0xff] }
 0x281   :  { %v4684_v22 = vpop.f32.mrf.mxu1  ;;  %v4768_v6 = vpop.f32.mrf.mxu0  ;;  %3714 = vperm.xlu1 %5037, %v69_v35   ;;  %v3100_v51 = vpack.c.bf16 %v3064_v20, %v3063_v30  ;;  %v2685_v5 = vld [vmem:[%s7438_s0 + $0x92] sm:$0xff] }
 0x282   :  { %3729 = vperm.xlu0 %5036, %v72_v32   ;;  %v2719_v20 = vpack.c.bf16 %v2685_v5, %v2684_v62 }
 0x283   :  { %v2093_v49 = vpop.f32.mrf.mxu1  ;;  %v2468_v55 = vpop.f32.mrf.mxu0 }
 0x284   :  { %v2251_v63 = vadd.f32 %v2093_v49, %v6320_v13  ;;  %v6833_v46 = vadd.f32 %v2468_v55, %v2249_v1 }
 0x285   :  { %v4685_v18 = vpop.f32.mrf.mxu1  ;;  %v4769_v10 = vpop.f32.mrf.mxu0  ;;  %3724 = vperm.xlu1 %5037, %v71_v45  }
 0x287   :  { %v2098_v52 = vpop.f32.mrf.mxu1  ;;  %v2473_v43 = vpop.f32.mrf.mxu0  ;;  %4875 = vmatmul.mubr.msk.bf16.gmra.mxu1 %vm218_vm1, %v2718_v29  ;;  %4959 = vmatmul.mubr.msk.bf16.gmra.mxu0 %vm218_vm1, %v3100_v51  ;;  %v2686_v51 = vld [vmem:[%s7438_s0 + $0x9a] sm:$0xff] }
 0x288   :  { %v2252_v13 = vadd.f32 %v2098_v52, %v6325_v31  ;;  %v6844_v1 = vadd.f32 %v2473_v43, %v2250_v27  ;;  %4878 = vmatprep.mubr.msk.bf16.mxu1 %vm5082_vm0, %v7453_v58  ;;  %4962 = vmatprep.mubr.msk.bf16.mxu0 %vm5082_vm0, %v7453_v58  ;;  %v3066_v31 = vld [vmem:[%s7438_s0 + $0x83] sm:$0xff] }
 0x289   :  { %v4688_v53 = vpop.f32.mrf.mxu1  ;;  %v4772_v27 = vpop.f32.mrf.mxu0  ;;  %v3101_v22 = vpack.c.bf16 %v3066_v31, %v3065_v36 }
 0x28b   :  { %v2101_v61 = vpop.f32.mrf.mxu1  ;;  %v2476_v30 = vpop.f32.mrf.mxu0 }
 0x28c   :  { %v2253_v6 = vadd.f32 %v2101_v61, %v6338_v40  ;;  %v6860_v35 = vadd.f32 %v2476_v30, %v2251_v63  ;;  %v2687_v40 = vld [vmem:[%s7438_s0 + $0xa2] sm:$0xff]  ;;  %v3067_v63 = vld [vmem:[%s7438_s0 + $0x8b] sm:$0xff] }
 0x28d   :  { %v4689_v32 = vpop.f32.mrf.mxu1  ;;  %v4773_v49 = vpop.f32.mrf.mxu0 }
 0x28f   :  { %v2106_v55 = vpop.f32.mrf.mxu1  ;;  %v2481_v29 = vpop.f32.mrf.mxu0  ;;  %4879 = vmatmul.mubr.msk.bf16.gmra.mxu1 %vm218_vm1, %v2719_v20  ;;  %4963 = vmatmul.mubr.msk.bf16.gmra.mxu0 %vm218_vm1, %v3101_v22  ;;  %v2688_v20 = vld [vmem:[%s7438_s0 + $0xaa] sm:$0xff] }
 0x290   :  { %v2254_v18 = vadd.f32 %v2106_v55, %v6343_v41  ;;  %v6868_v10 = vadd.f32 %v2481_v29, %v2252_v13  ;;  %4882 = vmatprep.mubr.msk.bf16.mxu1 %vm5082_vm0, %v7453_v58  ;;  %4966 = vmatprep.mubr.msk.bf16.mxu0 %vm5082_vm0, %v7453_v58  ;;  %v3068_v41 = vld [vmem:[%s7438_s0 + $0x93] sm:$0xff]  ;;  %v2720_v13 = vpack.c.bf16 %v2687_v40, %v2686_v51 }
 0x291   :  { %v4692_v45 = vpop.f32.mrf.mxu1  ;;  %v4776_v52 = vpop.f32.mrf.mxu0  ;;  %v3102_v5 = vpack.c.bf16 %v3068_v41, %v3067_v63 }
 0x293   :  { %v2109_v43 = vpop.f32.mrf.mxu1  ;;  %v2484_v62 = vpop.f32.mrf.mxu0 }
 0x294   :  { %v2255_v36 = vadd.f32 %v2109_v43, %v6356_v19  ;;  %v6884_v31 = vadd.f32 %v2484_v62, %v2253_v6  ;;  %v2689_v19 = vld [vmem:[%s7438_s0 + $0xb2] sm:$0xff]  ;;  %v3069_v6 = vld [vmem:[%s7438_s0 + $0x9b] sm:$0xff] }
 0x295   :  { %v4693_v53 = vpop.f32.mrf.mxu1  ;;  %v4777_v27 = vpop.f32.mrf.mxu0 }
 0x297   :  { %v2114_v61 = vpop.f32.mrf.mxu1  ;;  %v2489_v30 = vpop.f32.mrf.mxu0  ;;  %4883 = vmatmul.mubr.msk.bf16.gmra.mxu1 %vm218_vm1, %v2720_v13  ;;  %4967 = vmatmul.mubr.msk.bf16.gmra.mxu0 %vm218_vm1, %v3102_v5  ;;  %v2690_v13 = vld [vmem:[%s7438_s0 + $0xba] sm:$0xff] }
 0x298   :  { %v2256_v22 = vadd.f32 %v2114_v61, %v6361_v57  ;;  %v6892_v32 = vadd.f32 %v2489_v30, %v2254_v18  ;;  %4886 = vmatprep.mubr.msk.bf16.mxu1 %vm5082_vm0, %v7453_v58  ;;  %4970 = vmatprep.mubr.msk.bf16.mxu0 %vm5082_vm0, %v7453_v58  ;;  %v3070_v57 = vld [vmem:[%s7438_s0 + $0xa3] sm:$0xff]  ;;  %v2721_v18 = vpack.c.bf16 %v2689_v19, %v2688_v20 }
 0x299   :  { %v4696_v49 = vpop.f32.mrf.mxu1  ;;  %v4780_v55 = vpop.f32.mrf.mxu0  ;;  %v3103_v40 = vpack.c.bf16 %v3070_v57, %v3069_v6 }
 0x29b   :  { %v2117_v29 = vpop.f32.mrf.mxu1  ;;  %v2492_v51 = vpop.f32.mrf.mxu0 }
 0x29c   :  { %v2257_v63 = vadd.f32 %v2117_v29, %v6374_v48  ;;  %v6908_v41 = vadd.f32 %v2492_v51, %v2255_v36  ;;  %v2691_v48 = vld [vmem:[%s7438_s0 + $0xc2] sm:$0xff]  ;;  %v3071_v36 = vld [vmem:[%s7438_s0 + $0xab] sm:$0xff] }
 0x29d   :  { %v4697_v45 = vpop.f32.mrf.mxu1  ;;  %v4781_v52 = vpop.f32.mrf.mxu0 }
 0x29f   :  { %v2122_v43 = vpop.f32.mrf.mxu1  ;;  %v2497_v62 = vpop.f32.mrf.mxu0  ;;  %4887 = vmatmul.mubr.msk.bf16.gmra.mxu1 %vm218_vm1, %v2721_v18  ;;  %4971 = vmatmul.mubr.msk.bf16.gmra.mxu0 %vm218_vm1, %v3103_v40  ;;  %v2692_v18 = vld [vmem:[%s7438_s0 + $0xca] sm:$0xff] }
 0x2a0   :  { %v2258_v5 = vadd.f32 %v2122_v43, %v6379_v26  ;;  %v6916_v53 = vadd.f32 %v2497_v62, %v2256_v22  ;;  %4890 = vmatprep.mubr.msk.bf16.mxu1 %vm5082_vm0, %v7453_v58  ;;  %4974 = vmatprep.mubr.msk.bf16.mxu0 %vm5082_vm0, %v7453_v58  ;;  %v3072_v26 = vld [vmem:[%s7438_s0 + $0xb3] sm:$0xff]  ;;  %v2722_v22 = vpack.c.bf16 %v2691_v48, %v2690_v13 }
 0x2a1   :  { %v4700_v27 = vpop.f32.mrf.mxu1  ;;  %v4784_v61 = vpop.f32.mrf.mxu0  ;;  %v3104_v19 = vpack.c.bf16 %v3072_v26, %v3071_v36 }
 0x2a3   :  { %v2125_v30 = vpop.f32.mrf.mxu1  ;;  %v2500_v20 = vpop.f32.mrf.mxu0 }
 0x2a4   :  { %v2259_v6 = vadd.f32 %v2125_v30, %v6392_v54  ;;  %v6932_v57 = vadd.f32 %v2500_v20, %v2257_v63  ;;  %v2693_v54 = vld [vmem:[%s7438_s0 + $0xd2] sm:$0xff]  ;;  %v3073_v63 = vld [vmem:[%s7438_s0 + $0xbb] sm:$0xff] }
 0x2a5   :  { %v4701_v49 = vpop.f32.mrf.mxu1  ;;  %v4785_v55 = vpop.f32.mrf.mxu0 }
 0x2a7   :  { %v2130_v29 = vpop.f32.mrf.mxu1  ;;  %v2505_v51 = vpop.f32.mrf.mxu0  ;;  %4891 = vmatmul.mubr.msk.bf16.gmra.mxu1 %vm218_vm1, %v2722_v22  ;;  %4975 = vmatmul.mubr.msk.bf16.gmra.mxu0 %vm218_vm1, %v3104_v19  ;;  %v2694_v22 = vld [vmem:[%s7438_s0 + $0xda] sm:$0xff] }
 0x2a8   :  { %v2260_v40 = vadd.f32 %v2130_v29, %v6397_v8  ;;  %v6940_v45 = vadd.f32 %v2505_v51, %v2258_v5  ;;  %4894 = vmatprep.mubr.msk.bf16.mxu1 %vm5082_vm0, %v7453_v58  ;;  %4978 = vmatprep.mubr.msk.bf16.mxu0 %vm5082_vm0, %v7453_v58  ;;  %v3074_v8 = vld [vmem:[%s7438_s0 + $0xc3] sm:$0xff]  ;;  %v2723_v5 = vpack.c.bf16 %v2693_v54, %v2692_v18 }
 0x2a9   :  { %v4704_v52 = vpop.f32.mrf.mxu1  ;;  %v4788_v43 = vpop.f32.mrf.mxu0  ;;  %v3105_v48 = vpack.c.bf16 %v3074_v8, %v3073_v63 }
 0x2ab   :  { %v2133_v62 = vpop.f32.mrf.mxu1  ;;  %v2508_v13 = vpop.f32.mrf.mxu0 }
 0x2ac   :  { %v2261_v36 = vadd.f32 %v2133_v62, %v6410_v14  ;;  %v6956_v26 = vadd.f32 %v2508_v13, %v2259_v6  ;;  %v2695_v14 = vld [vmem:[%s7438_s0 + $0xe2] sm:$0xff]  ;;  %v3075_v6 = vld [vmem:[%s7438_s0 + $0xcb] sm:$0xff] }
 0x2ad   :  { %v4705_v27 = vpop.f32.mrf.mxu1  ;;  %v4789_v61 = vpop.f32.mrf.mxu0 }
 0x2af   :  { %v2138_v30 = vpop.f32.mrf.mxu1  ;;  %v2513_v20 = vpop.f32.mrf.mxu0  ;;  %4895 = vmatmul.mubr.msk.bf16.gmra.mxu1 %vm218_vm1, %v2723_v5  ;;  %4979 = vmatmul.mubr.msk.bf16.gmra.mxu0 %vm218_vm1, %v3105_v48  ;;  %v2696_v5 = vld [vmem:[%s7438_s0 + $0xea] sm:$0xff] }
 0x2b0   :  { %v2262_v19 = vadd.f32 %v2138_v30, %v6415_v59  ;;  %v6964_v49 = vadd.f32 %v2513_v20, %v2260_v40  ;;  %4898 = vmatprep.mubr.msk.bf16.mxu1 %vm5082_vm0, %v7453_v58  ;;  %4982 = vmatprep.mubr.msk.bf16.mxu0 %vm5082_vm0, %v7453_v58  ;;  %v3076_v59 = vld [vmem:[%s7438_s0 + $0xd3] sm:$0xff]  ;;  %v2724_v40 = vpack.c.bf16 %v2695_v14, %v2694_v22 }
 0x2b1   :  { %v4708_v55 = vpop.f32.mrf.mxu1  ;;  %v4792_v29 = vpop.f32.mrf.mxu0  ;;  %v3106_v54 = vpack.c.bf16 %v3076_v59, %v3075_v6 }
 0x2b3   :  { %v2141_v51 = vpop.f32.mrf.mxu1  ;;  %v2516_v18 = vpop.f32.mrf.mxu0 }
 0x2b4   :  { %v2263_v63 = vadd.f32 %v2141_v51, %v6428_v25  ;;  %v6980_v8 = vadd.f32 %v2516_v18, %v2261_v36  ;;  %v2697_v25 = vld [vmem:[%s7438_s0 + $0xf2] sm:$0xff]  ;;  %v3077_v36 = vld [vmem:[%s7438_s0 + $0xdb] sm:$0xff] }
 0x2b5   :  { %v4709_v52 = vpop.f32.mrf.mxu1  ;;  %v4793_v43 = vpop.f32.mrf.mxu0 }
 0x2b7   :  { %v2146_v62 = vpop.f32.mrf.mxu1  ;;  %v2521_v13 = vpop.f32.mrf.mxu0  ;;  %4899 = vmatmul.mubr.msk.bf16.gmra.mxu1 %vm218_vm1, %v2724_v40  ;;  %4983 = vmatmul.mubr.msk.bf16.gmra.mxu0 %vm218_vm1, %v3106_v54  ;;  %v2698_v40 = vld [vmem:[%s7438_s0 + $0xfa] sm:$0xff] }
 0x2b8   :  { %v2264_v48 = vadd.f32 %v2146_v62, %v6433_v38  ;;  %v6988_v27 = vadd.f32 %v2521_v13, %v2262_v19  ;;  %4902 = vmatprep.mubr.msk.bf16.mxu1 %vm5082_vm0, %v7453_v58  ;;  %4986 = vmatprep.mubr.msk.bf16.mxu0 %vm5082_vm0, %v7453_v58  ;;  %v3078_v38 = vld [vmem:[%s7438_s0 + $0xe3] sm:$0xff]  ;;  %v2725_v19 = vpack.c.bf16 %v2697_v25, %v2696_v5 }
 0x2b9   :  { %v4712_v61 = vpop.f32.mrf.mxu1  ;;  %v4796_v30 = vpop.f32.mrf.mxu0  ;;  %v3107_v14 = vpack.c.bf16 %v3078_v38, %v3077_v36 }
 0x2bb   :  { %v2149_v20 = vpop.f32.mrf.mxu1  ;;  %v2524_v22 = vpop.f32.mrf.mxu0 }
 0x2bc   :  { %v2265_v6 = vadd.f32 %v2149_v20, %v6446_v39  ;;  %v7004_v59 = vadd.f32 %v2524_v22, %v2263_v63  ;;  %v2699_v39 = vld [vmem:[%s7438_s0 + $0x102] sm:$0xff]  ;;  %v3079_v63 = vld [vmem:[%s7438_s0 + $0xeb] sm:$0xff] }
 0x2bd   :  { %v4713_v55 = vpop.f32.mrf.mxu1  ;;  %v4797_v29 = vpop.f32.mrf.mxu0 }
 0x2bf   :  { %v2154_v51 = vpop.f32.mrf.mxu1  ;;  %v2529_v18 = vpop.f32.mrf.mxu0  ;;  %4903 = vmatmul.mubr.msk.bf16.gmra.mxu1 %vm218_vm1, %v2725_v19  ;;  %4987 = vmatmul.mubr.msk.bf16.gmra.mxu0 %vm218_vm1, %v3107_v14  ;;  %v2700_v19 = vld [vmem:[%s7438_s0 + $0x10a] sm:$0xff] }
 0x2c0   :  { %v2266_v54 = vadd.f32 %v2154_v51, %v6451_v56  ;;  %v7012_v52 = vadd.f32 %v2529_v18, %v2264_v48  ;;  %4906 = vmatprep.mubr.msk.bf16.mxu1 %vm5082_vm0, %v7453_v58  ;;  %4990 = vmatprep.mubr.msk.bf16.mxu0 %vm5082_vm0, %v7453_v58  ;;  %v3080_v56 = vld [vmem:[%s7438_s0 + $0xf3] sm:$0xff]  ;;  %v2726_v48 = vpack.c.bf16 %v2699_v39, %v2698_v40 }
 0x2c1   :  { %v4716_v43 = vpop.f32.mrf.mxu1  ;;  %v4800_v62 = vpop.f32.mrf.mxu0  ;;  %v3108_v25 = vpack.c.bf16 %v3080_v56, %v3079_v63 }
 0x2c3   :  { %v2157_v13 = vpop.f32.mrf.mxu1  ;;  %v2532_v5 = vpop.f32.mrf.mxu0 }
 0x2c4   :  { %v2267_v36 = vadd.f32 %v2157_v13, %v6464_v7  ;;  %v7028_v38 = vadd.f32 %v2532_v5, %v2265_v6  ;;  %v2701_v7 = vld [vmem:[%s7438_s0 + $0x112] sm:$0xff]  ;;  %v3081_v6 = vld [vmem:[%s7438_s0 + $0xfb] sm:$0xff] }
 0x2c5   :  { %v4717_v61 = vpop.f32.mrf.mxu1  ;;  %v4801_v30 = vpop.f32.mrf.mxu0 }
 0x2c7   :  { %v2162_v20 = vpop.f32.mrf.mxu1  ;;  %v2537_v22 = vpop.f32.mrf.mxu0  ;;  %4907 = vmatmul.mubr.msk.bf16.gmra.mxu1 %vm218_vm1, %v2726_v48  ;;  %4991 = vmatmul.mubr.msk.bf16.gmra.mxu0 %vm218_vm1, %v3108_v25  ;;  %v2702_v48 = vld [vmem:[%s7438_s0 + $0x11a] sm:$0xff] }
 0x2c8   :  { %v2268_v14 = vadd.f32 %v2162_v20, %v6469_v50  ;;  %v7036_v55 = vadd.f32 %v2537_v22, %v2266_v54  ;;  %4910 = vmatprep.mubr.msk.bf16.mxu1 %vm5082_vm0, %v7453_v58  ;;  %4994 = vmatprep.mubr.msk.bf16.mxu0 %vm5082_vm0, %v7453_v58  ;;  %v3082_v50 = vld [vmem:[%s7438_s0 + $0x103] sm:$0xff]  ;;  %v2727_v54 = vpack.c.bf16 %v2701_v7, %v2700_v19 }
 0x2c9   :  { %v4720_v29 = vpop.f32.mrf.mxu1  ;;  %v4804_v51 = vpop.f32.mrf.mxu0  ;;  %v3109_v39 = vpack.c.bf16 %v3082_v50, %v3081_v6 }
 0x2cb   :  { %v2165_v18 = vpop.f32.mrf.mxu1  ;;  %v2540_v40 = vpop.f32.mrf.mxu0 }
 0x2cc   :  { %v2269_v63 = vadd.f32 %v2165_v18, %v6482_v37  ;;  %v7052_v56 = vadd.f32 %v2540_v40, %v2267_v36  ;;  %v2703_v37 = vld [vmem:[%s7438_s0 + $0x122] sm:$0xff]  ;;  %v3083_v36 = vld [vmem:[%s7438_s0 + $0x10b] sm:$0xff] }
 0x2cd   :  { %v4721_v43 = vpop.f32.mrf.mxu1  ;;  %v4805_v62 = vpop.f32.mrf.mxu0 }
 0x2cf   :  { %v2170_v13 = vpop.f32.mrf.mxu1  ;;  %v2545_v5 = vpop.f32.mrf.mxu0  ;;  %4911 = vmatmul.mubr.msk.bf16.gmra.mxu1 %vm218_vm1, %v2727_v54  ;;  %4995 = vmatmul.mubr.msk.bf16.gmra.mxu0 %vm218_vm1, %v3109_v39  ;;  %v2704_v54 = vld [vmem:[%s7438_s0 + $0x12a] sm:$0xff] }
 0x2d0   :  { %v2270_v25 = vadd.f32 %v2170_v13, %v6487_v0  ;;  %v7060_v61 = vadd.f32 %v2545_v5, %v2268_v14  ;;  %4914 = vmatprep.mubr.msk.bf16.mxu1 %vm5082_vm0, %v7453_v58  ;;  %4998 = vmatprep.mubr.msk.bf16.mxu0 %vm5082_vm0, %v7453_v58  ;;  %v3084_v0 = vld [vmem:[%s7438_s0 + $0x113] sm:$0xff]  ;;  %v2728_v14 = vpack.c.bf16 %v2703_v37, %v2702_v48 }
 0x2d1   :  { %v4724_v30 = vpop.f32.mrf.mxu1  ;;  %v4808_v20 = vpop.f32.mrf.mxu0  ;;  %v3110_v7 = vpack.c.bf16 %v3084_v0, %v3083_v36 }
 0x2d3   :  { %v2173_v22 = vpop.f32.mrf.mxu1  ;;  %v2548_v19 = vpop.f32.mrf.mxu0 }
 0x2d4   :  { %v2271_v6 = vadd.f32 %v2173_v22, %v6503_v33  ;;  %v7076_v50 = vadd.f32 %v2548_v19, %v2269_v63  ;;  %v2705_v33 = vld [vmem:[%s7438_s0 + $0x132] sm:$0xff]  ;;  %v3085_v63 = vld [vmem:[%s7438_s0 + $0x11b] sm:$0xff] }
 0x2d5   :  { %v4725_v29 = vpop.f32.mrf.mxu1  ;;  %v4809_v51 = vpop.f32.mrf.mxu0 }
 0x2d7   :  { %v2178_v18 = vpop.f32.mrf.mxu1  ;;  %v2553_v40 = vpop.f32.mrf.mxu0  ;;  %4915 = vmatmul.mubr.msk.bf16.gmra.mxu1 %vm218_vm1, %v2728_v14  ;;  %4999 = vmatmul.mubr.msk.bf16.gmra.mxu0 %vm218_vm1, %v3110_v7  ;;  %v2706_v14 = vld [vmem:[%s7438_s0 + $0x13a] sm:$0xff] }
 0x2d8   :  { %v2272_v39 = vadd.f32 %v2178_v18, %v6511_v2  ;;  %v7084_v43 = vadd.f32 %v2553_v40, %v2270_v25  ;;  %4918 = vmatprep.mubr.msk.bf16.mxu1 %vm5082_vm0, %v7453_v58  ;;  %5002 = vmatprep.mubr.msk.bf16.mxu0 %vm5082_vm0, %v7453_v58  ;;  %v3086_v2 = vld [vmem:[%s7438_s0 + $0x123] sm:$0xff]  ;;  %v2729_v25 = vpack.c.bf16 %v2705_v33, %v2704_v54 }
 0x2d9   :  { %v4728_v62 = vpop.f32.mrf.mxu1  ;;  %v4812_v13 = vpop.f32.mrf.mxu0  ;;  %v3111_v37 = vpack.c.bf16 %v3086_v2, %v3085_v63 }
 0x2db   :  { %v2181_v5 = vpop.f32.mrf.mxu1  ;;  %v2556_v48 = vpop.f32.mrf.mxu0 }
 0x2dc   :  { %v2273_v36 = vadd.f32 %v2181_v5, %v6530_v3  ;;  %v7100_v0 = vadd.f32 %v2556_v48, %v2271_v6  ;;  %v2707_v3 = vld [vmem:[%s7438_s0 + $0x142] sm:$0xff]  ;;  %v3087_v6 = vld [vmem:[%s7438_s0 + $0x12b] sm:$0xff] }
 0x2dd   :  { %v4729_v30 = vpop.f32.mrf.mxu1  ;;  %v4813_v20 = vpop.f32.mrf.mxu0 }
 0x2df   :  { %v2186_v22 = vpop.f32.mrf.mxu1  ;;  %v2561_v19 = vpop.f32.mrf.mxu0  ;;  %4919 = vmatmul.mubr.msk.bf16.gmra.mxu1 %vm218_vm1, %v2729_v25  ;;  %5003 = vmatmul.mubr.msk.bf16.gmra.mxu0 %vm218_vm1, %v3111_v37  ;;  %v2708_v25 = vld [vmem:[%s7438_s0 + $0x14a] sm:$0xff] }
 0x2e0   :  { %v2274_v7 = vadd.f32 %v2186_v22, %v6541_v42  ;;  %v7108_v29 = vadd.f32 %v2561_v19, %v2272_v39  ;;  %4922 = vmatprep.mubr.msk.bf16.mxu1 %vm5082_vm0, %v7453_v58  ;;  %5006 = vmatprep.mubr.msk.bf16.mxu0 %vm5082_vm0, %v7453_v58  ;;  %v3088_v42 = vld [vmem:[%s7438_s0 + $0x133] sm:$0xff]  ;;  %v2730_v39 = vpack.c.bf16 %v2707_v3, %v2706_v14 }
 0x2e1   :  { %v4732_v51 = vpop.f32.mrf.mxu1  ;;  %v4816_v18 = vpop.f32.mrf.mxu0  ;;  %v3112_v33 = vpack.c.bf16 %v3088_v42, %v3087_v6 }
 0x2e3   :  { %v2189_v40 = vpop.f32.mrf.mxu1  ;;  %v2564_v54 = vpop.f32.mrf.mxu0 }
 0x2e4   :  { %v2275_v63 = vadd.f32 %v2189_v40, %v6560_v17  ;;  %v7124_v2 = vadd.f32 %v2564_v54, %v2273_v36  ;;  %v2709_v17 = vld [vmem:[%s7438_s0 + $0x152] sm:$0xff]  ;;  %v3089_v36 = vld [vmem:[%s7438_s0 + $0x13b] sm:$0xff] }
 0x2e5   :  { %v4733_v62 = vpop.f32.mrf.mxu1  ;;  %v4817_v13 = vpop.f32.mrf.mxu0 }
 0x2e7   :  { %v2194_v5 = vpop.f32.mrf.mxu1  ;;  %v2569_v48 = vpop.f32.mrf.mxu0  ;;  %4923 = vmatmul.mubr.msk.bf16.gmra.mxu1 %vm218_vm1, %v2730_v39  ;;  %5007 = vmatmul.mubr.msk.bf16.gmra.mxu0 %vm218_vm1, %v3112_v33  ;;  %v2710_v39 = vld [vmem:[%s7438_s0 + $0x15a] sm:$0xff] }
 0x2e8   :  { %v2276_v37 = vadd.f32 %v2194_v5, %v6571_v23  ;;  %v7132_v30 = vadd.f32 %v2569_v48, %v2274_v7  ;;  %4926 = vmatprep.mubr.msk.bf16.mxu1 %vm5082_vm0, %v7453_v58  ;;  %5010 = vmatprep.mubr.msk.bf16.mxu0 %vm5082_vm0, %v7453_v58  ;;  %v3090_v23 = vld [vmem:[%s7438_s0 + $0x143] sm:$0xff]  ;;  %v2731_v7 = vpack.c.bf16 %v2709_v17, %v2708_v25 }
 0x2e9   :  { %v4736_v20 = vpop.f32.mrf.mxu1  ;;  %v4820_v22 = vpop.f32.mrf.mxu0  ;;  %v3113_v3 = vpack.c.bf16 %v3090_v23, %v3089_v36 }
 0x2eb   :  { %v2197_v19 = vpop.f32.mrf.mxu1  ;;  %v2572_v14 = vpop.f32.mrf.mxu0 }
 0x2ec   :  { %v2277_v6 = vadd.f32 %v2197_v19, %v6590_v21  ;;  %v7148_v42 = vadd.f32 %v2572_v14, %v2275_v63  ;;  %v2711_v21 = vld [vmem:[%s7438_s0 + $0x162] sm:$0xff]  ;;  %v3091_v63 = vld [vmem:[%s7438_s0 + $0x14b] sm:$0xff] }
 0x2ed   :  { %v4737_v51 = vpop.f32.mrf.mxu1  ;;  %v4821_v18 = vpop.f32.mrf.mxu0 }
 0x2ef   :  { %v2202_v40 = vpop.f32.mrf.mxu1  ;;  %v2577_v54 = vpop.f32.mrf.mxu0  ;;  %4927 = vmatmul.mubr.msk.bf16.gmra.mxu1 %vm218_vm1, %v2731_v7  ;;  %5011 = vmatmul.mubr.msk.bf16.gmra.mxu0 %vm218_vm1, %v3113_v3 }
 0x2f0   :  { %v2278_v33 = vadd.f32 %v2202_v40, %v6601_v47  ;;  %v7156_v62 = vadd.f32 %v2577_v54, %v2276_v37  ;;  %4930 = vmatprep.mubr.msk.bf16.mxu1 %vm5082_vm0, %v7453_v58  ;;  %5014 = vmatprep.mubr.msk.bf16.mxu0 %vm5082_vm0, %v7453_v58  ;;  %v3092_v47 = vld [vmem:[%s7438_s0 + $0x153] sm:$0xff]  ;;  %v2732_v37 = vpack.c.bf16 %v2711_v21, %v2710_v39 }
 0x2f1   :  { %v4740_v13 = vpop.f32.mrf.mxu1  ;;  %v4824_v5 = vpop.f32.mrf.mxu0  ;;  %v3114_v17 = vpack.c.bf16 %v3092_v47, %v3091_v63 }
 0x2f3   :  { %v2205_v48 = vpop.f32.mrf.mxu1  ;;  %v2580_v25 = vpop.f32.mrf.mxu0 }
 0x2f4   :  { %v2279_v36 = vadd.f32 %v2205_v48, %v6623_v34  ;;  %v7172_v23 = vadd.f32 %v2580_v25, %v2277_v6  ;;  %v2712_v34 = vld [vmem:[%s7438_s0 + $0x16a] sm:$0xf]  ;;  %v3093_v6 = vld [vmem:[%s7438_s0 + $0x15b] sm:$0xff] }
 0x2f5   :  { %v4741_v20 = vpop.f32.mrf.mxu1  ;;  %v4825_v22 = vpop.f32.mrf.mxu0  ;;  %v2733_v39 = vpack.c.bf16 %v2712_v34, %v2712_v34 }
 0x2f7   :  { %v2210_v19 = vpop.f32.mrf.mxu1  ;;  %v2585_v14 = vpop.f32.mrf.mxu0  ;;  %4931 = vmatmul.mubr.msk.bf16.gmra.mxu1 %vm218_vm1, %v2732_v37  ;;  %5015 = vmatmul.mubr.msk.bf16.gmra.mxu0 %vm218_vm1, %v3114_v17 }
 0x2f8   :  { %v2280_v7 = vadd.f32 %v2210_v19, %v6634_v28  ;;  %v7177_v3 = vadd.f32 %v2585_v14, %v2278_v33  ;;  %4934 = vmatprep.mubr.msk.bf16.mxu1 %vm5082_vm0, %v7453_v58  ;;  %5018 = vmatprep.mubr.msk.bf16.mxu0 %vm5082_vm0, %v7453_v58  ;;  %v3094_v28 = vld [vmem:[%s7438_s0 + $0x163] sm:$0xff] }
 0x2f9   :  { %v4744_v51 = vpop.f32.mrf.mxu1  ;;  %v4828_v18 = vpop.f32.mrf.mxu0  ;;  %v3115_v33 = vpack.c.bf16 %v3094_v28, %v3093_v6 }
 0x2fb   :  { %v2213_v40 = vpop.f32.mrf.mxu1  ;;  %v2588_v54 = vpop.f32.mrf.mxu0 }
 0x2fc   :  { %v2281_v21 = vadd.f32 %v2213_v40, %v6656_v16  ;;  %v7193_v63 = vadd.f32 %v2588_v54, %v2279_v36  ;;  %v3095_v16 = vld [vmem:[%s7438_s0 + $0x16b] sm:$0xf] }
 0x2fd   :  { %v4745_v47 = vpop.f32.mrf.mxu1  ;;  %v4829_v13 = vpop.f32.mrf.mxu0  ;;  %v3116_v19 = vpack.c.bf16 %v3095_v16, %v3095_v16 }
 0x2ff   :  { %v2218_v5 = vpop.f32.mrf.mxu1  ;;  %v2593_v48 = vpop.f32.mrf.mxu0  ;;  %4935 = vmatmul.mubr.msk.bf16.gmra.mxu1 %vm218_vm1, %v2733_v39  ;;  %5019 = vmatmul.mubr.msk.bf16.gmra.mxu0 %vm218_vm1, %v3115_v33 }
 0x300   :  { %v2282_v25 = vadd.f32 %v2218_v5, %v6670_v24  ;;  %v7198_v37 = vadd.f32 %v2593_v48, %v2280_v7  ;;  %5022 = vmatprep.mubr.msk.bf16.mxu0 %vm5082_vm0, %v7453_v58 }
 0x301   :  { %v4748_v17 = vpop.f32.mrf.mxu1  ;;  %v4832_v36 = vpop.f32.mrf.mxu0 }
 0x303   :  { %v2221_v20 = vpop.f32.mrf.mxu1  ;;  %v2596_v22 = vpop.f32.mrf.mxu0 }
 0x304   :  { %v2283_v14 = vadd.f32 %v2221_v20, %v6692_v44  ;;  %v7206_v34 = vadd.f32 %v2596_v22, %v2281_v21 }
 0x305   :  { %v4749_v6 = vpop.f32.mrf.mxu1  ;;  %v4833_v24 = vpop.f32.mrf.mxu0 }
 0x307   :  { %v2226_v7 = vpop.f32.mrf.mxu1  ;;  %v2601_v28 = vpop.f32.mrf.mxu0  ;;  %5023 = vmatmul.mubr.msk.bf16.gmra.mxu0 %vm218_vm1, %v3116_v19 }
 0x308   :  { %v2284_v58 = vadd.f32 %v2226_v7, %v6706_v15  ;;  %v7210_v51 = vadd.f32 %v2601_v28, %v2282_v25 }
 0x309   :  { %v4752_v18 = vpop.f32.mrf.mxu1  ;;  %v4836_v40 = vpop.f32.mrf.mxu0 }
 0x30b   :  { %v2229_v54 = vpop.f32.mrf.mxu1  ;;  %v2604_v39 = vpop.f32.mrf.mxu0 }
 0x30c   :  { %v2285_v33 = vadd.f32 %v2229_v54, %v6728_v9  ;;  %v7213_v47 = vadd.f32 %v2604_v39, %v2283_v14 }
 0x30d   :  { %v4753_v44 = vpop.f32.mrf.mxu1  ;;  %v4837_v21 = vpop.f32.mrf.mxu0 }
 0x30f   :  { %v2234_v13 = vpop.f32.mrf.mxu1  ;;  %v2609_v5 = vpop.f32.mrf.mxu0 }
 0x310   :  { %v2286_v48 = vadd.f32 %v2234_v13, %v6742_v60  ;;  %v7216_v16 = vadd.f32 %v2609_v5, %v2284_v58 }
 0x311   :  { %v4756_v17 = vpop.f32.mrf.mxu1  ;;  %v4840_v15 = vpop.f32.mrf.mxu0 }
 0x313   :  { %v2237_v25 = vpop.f32.mrf.mxu1  ;;  %v2612_v36 = vpop.f32.mrf.mxu0 }
 0x314   :  { %v2287_v20 = vadd.f32 %v2237_v25, %v6763_v12  ;;  %v7219_v22 = vadd.f32 %v2612_v36, %v2285_v33 }
 0x315   :  { %v4757_v19 = vpop.f32.mrf.mxu1  ;;  %v4841_v9 = vpop.f32.mrf.mxu0 }
 0x316   :  { %v3530_v9 = vpop.permute.xlu0 %3529 }
 0x317   :  { %v2242_v14 = vpop.f32.mrf.mxu1  ;;  %v2617_v6 = vpop.f32.mrf.mxu0 }
 0x318   :  { %v2288_v24 = vadd.f32 %v2242_v14, %v6776_v11  ;;  %v7222_v7 = vadd.f32 %v2617_v6, %v2286_v48 }
 0x319   :  { %v4760_v28 = vpop.f32.mrf.mxu1  ;;  %v4844_v60 = vpop.f32.mrf.mxu0 }
 0x31b   :  { %v2245_v58 = vpop.f32.mrf.mxu1  ;;  %v2620_v18 = vpop.f32.mrf.mxu0 }
 0x31c   :  { %v7224_v40 = vadd.f32 %v2620_v18, %v2287_v20  ;;  %v7232_v20 = vld [vmem:[%s7441_s3] ss:$0 sm:$0xff] }
 0x31d   :  { %v4761_v54 = vpop.f32.mrf.mxu1  ;;  %v4845_v39 = vpop.f32.mrf.mxu0 }
 0x31f   :  { %v2625_v44 = vpop.f32.mrf.mxu0  ;;  %v2848_v12 = vpop.f32.mrf.mxu1 }
 0x320   :  { %v7226_v33 = vadd.f32 %v2625_v44, %v2288_v24  ;;  %v3014_v48 = vadd.f32 %v2848_v12, %v6811_v4 }
 0x321   :  { %v4848_v21 = vpop.f32.mrf.mxu0  ;;  %v4856_v13 = vpop.f32.mrf.mxu1 }
 0x322   :  { %v3535_v13 = vpop.permute.xlu0 %3534 }
 0x323   :  { %v2628_v5 = vpop.f32.mrf.mxu0  ;;  %v2851_v17 = vpop.f32.mrf.mxu1 }
 0x324   :  { %v3015_v24 = vadd.f32 %v2851_v17, %v6833_v46 }
 0x325   :  { %v4849_v15 = vpop.f32.mrf.mxu0  ;;  %v4857_v11 = vpop.f32.mrf.mxu1 }
 0x326   :  { %v3540_v11 = vpop.permute.xlu1 %3539 }
 0x327   :  { %v2856_v25 = vpop.f32.mrf.mxu1  ;;  %v3231_v36 = vpop.f32.mrf.mxu0 }
 0x328   :  { %v3397_v19 = vadd.f32 %v3231_v36, %v3014_v48  ;;  %v3016_v44 = vadd.f32 %v2856_v25, %v6844_v1 }
 0x329   :  { %v4860_v14 = vpop.f32.mrf.mxu1  ;;  %v4944_v6 = vpop.f32.mrf.mxu0 }
 0x32a   :  { %v3445_v28 = vadd.f32 %v7232_v20, %v3397_v19 }
 0x32b   :  { %v2859_v60 = vpop.f32.mrf.mxu1  ;;  %v3234_v58 = vpop.f32.mrf.mxu0 }
 0x32c   :  { %v3398_v18 = vadd.f32 %v3234_v58, %v3015_v24  ;;  %v3486_v54 = vmax.f32 %v3445_v28, 0.0  ;;  %v3017_v19 = vadd.f32 %v2859_v60, %v6860_v35 }
 0x32d   :  { %v4861_v4 = vpop.f32.mrf.mxu1  ;;  %v4945_v39 = vpop.f32.mrf.mxu0 }
 0x32e   :  { %v3446_v12 = vadd.f32 %v7232_v20, %v3398_v18  ;;  %v3732_v21 = vmul.f32 %v3530_v9, %v3486_v54  ;;  %v3545_v39 = vpop.permute.xlu1 %3544 }
 0x32f   :  { %v2864_v5 = vpop.f32.mrf.mxu1  ;;  %v3239_v15 = vpop.f32.mrf.mxu0 }
 0x330   :  { %3773 = vst [vmem:[%s7442_s4] sm:$0xff] %v3732_v21  ;;  %v3399_v46 = vadd.f32 %v3239_v15, %v3016_v44  ;;  %v3487_v17 = vmax.f32 %v3446_v12, 0.0  ;;  %v3018_v18 = vadd.f32 %v2864_v5, %v6868_v10 }
 0x331   :  { %v4864_v48 = vpop.f32.mrf.mxu1  ;;  %v4948_v36 = vpop.f32.mrf.mxu0 }
 0x332   :  { %v3447_v14 = vadd.f32 %v7232_v20, %v3399_v46  ;;  %v3733_v1 = vmul.f32 %v3535_v13, %v3487_v17  ;;  %v3550_v48 = vpop.permute.xlu0 %3549 }
 0x333   :  { %v2867_v25 = vpop.f32.mrf.mxu1  ;;  %v3242_v6 = vpop.f32.mrf.mxu0 }
 0x334   :  { %3774 = vst [vmem:[%s7442_s4 + $0x8] sm:$0xff] %v3733_v1  ;;  %v3400_v9 = vadd.f32 %v3242_v6, %v3017_v19  ;;  %v3488_v24 = vmax.f32 %v3447_v14, 0.0  ;;  %v3019_v15 = vadd.f32 %v2867_v25, %v6884_v31 }
 0x335   :  { %v4865_v28 = vpop.f32.mrf.mxu1  ;;  %v4949_v58 = vpop.f32.mrf.mxu0 }
 0x336   :  { %v3448_v54 = vadd.f32 %v7232_v20, %v3400_v9  ;;  %v3734_v4 = vmul.f32 %v3540_v11, %v3488_v24  ;;  %v3555_v28 = vpop.permute.xlu1 %3554 }
 0x337   :  { %v2872_v35 = vpop.f32.mrf.mxu1  ;;  %v3247_v60 = vpop.f32.mrf.mxu0 }
 0x338   :  { %3775 = vst [vmem:[%s7442_s4 + $0x10] sm:$0xff] %v3734_v4  ;;  %v3401_v44 = vadd.f32 %v3247_v60, %v3018_v18  ;;  %v3489_v12 = vmax.f32 %v3448_v54, 0.0  ;;  %v3020_v1 = vadd.f32 %v2872_v35, %v6892_v32 }
 0x339   :  { %v4868_v21 = vpop.f32.mrf.mxu1  ;;  %v4952_v13 = vpop.f32.mrf.mxu0 }
 0x33a   :  { %v3449_v46 = vadd.f32 %v7232_v20, %v3401_v44  ;;  %v3735_v17 = vmul.f32 %v3545_v39, %v3489_v12  ;;  %v3560_v44 = vpop.permute.xlu0 %3559 }
 0x33b   :  { %v2875_v10 = vpop.f32.mrf.mxu1  ;;  %v3250_v5 = vpop.f32.mrf.mxu0 }
 0x33c   :  { %v3490_v11 = vmax.f32 %v3449_v46, 0.0  ;;  %3776 = vst [vmem:[%s7442_s4 + $0x18] sm:$0xff] %v3735_v17  ;;  %v3402_v36 = vadd.f32 %v3250_v5, %v3019_v15  ;;  %v3021_v4 = vadd.f32 %v2875_v10, %v6908_v41 }
 0x33d   :  { %v4869_v19 = vpop.f32.mrf.mxu1  ;;  %v4953_v14 = vpop.f32.mrf.mxu0 }
 0x33e   :  { %v3736_v6 = vmul.f32 %v3550_v48, %v3490_v11  ;;  %v3450_v9 = vadd.f32 %v7232_v20, %v3402_v36  ;;  %v3565_v48 = vpop.permute.xlu1 %3564 }
 0x33f   :  { %v2880_v31 = vpop.f32.mrf.mxu1  ;;  %v3255_v25 = vpop.f32.mrf.mxu0 }
 0x340   :  { %3777 = vst [vmem:[%s7442_s4 + $0x20] sm:$0xff] %v3736_v6  ;;  %v3491_v24 = vmax.f32 %v3450_v9, 0.0  ;;  %v3403_v58 = vadd.f32 %v3255_v25, %v3020_v1  ;;  %v3022_v46 = vadd.f32 %v2880_v31, %v6916_v53  ;;  %v3570_v25 = vpop.permute.xlu0 %3569 }
 0x341   :  { %v4872_v18 = vpop.f32.mrf.mxu1  ;;  %v4956_v54 = vpop.f32.mrf.mxu0 }
 0x342   :  { %v3737_v39 = vmul.f32 %v3555_v28, %v3491_v24  ;;  %v3451_v60 = vadd.f32 %v7232_v20, %v3403_v58 }
 0x343   :  { %v2883_v32 = vpop.f32.mrf.mxu1  ;;  %v3258_v35 = vpop.f32.mrf.mxu0 }
 0x344   :  { %3778 = vst [vmem:[%s7442_s4 + $0x28] sm:$0xff] %v3737_v39  ;;  %v3492_v12 = vmax.f32 %v3451_v60, 0.0  ;;  %v3404_v21 = vadd.f32 %v3258_v35, %v3021_v4  ;;  %v3023_v1 = vadd.f32 %v2883_v32, %v6932_v57  ;;  %v3575_v32 = vpop.permute.xlu1 %3574 }
 0x345   :  { %v4873_v13 = vpop.f32.mrf.mxu1  ;;  %v4957_v15 = vpop.f32.mrf.mxu0 }
 0x346   :  { %v3738_v17 = vmul.f32 %v3560_v44, %v3492_v12  ;;  %v3452_v5 = vadd.f32 %v7232_v20, %v3404_v21 }
 0x347   :  { %v2888_v41 = vpop.f32.mrf.mxu1  ;;  %v3263_v10 = vpop.f32.mrf.mxu0 }
 0x348   :  { %3779 = vst [vmem:[%s7442_s4 + $0x30] sm:$0xff] %v3738_v17  ;;  %v3493_v11 = vmax.f32 %v3452_v5, 0.0  ;;  %v3405_v36 = vadd.f32 %v3263_v10, %v3022_v46  ;;  %v3024_v54 = vadd.f32 %v2888_v41, %v6940_v45  ;;  %v3580_v5 = vpop.permute.xlu0 %3579 }
 0x349   :  { %v4876_v19 = vpop.f32.mrf.mxu1  ;;  %v4960_v14 = vpop.f32.mrf.mxu0 }
 0x34a   :  { %v3739_v6 = vmul.f32 %v3565_v48, %v3493_v11  ;;  %v3453_v9 = vadd.f32 %v7232_v20, %v3405_v36 }
 0x34b   :  { %v2891_v53 = vpop.f32.mrf.mxu1  ;;  %v3266_v31 = vpop.f32.mrf.mxu0 }
 0x34c   :  { %3780 = vst [vmem:[%s7442_s4 + $0x38] sm:$0xff] %v3739_v6  ;;  %v3494_v24 = vmax.f32 %v3453_v9, 0.0  ;;  %v3406_v28 = vadd.f32 %v3266_v31, %v3023_v1  ;;  %v3025_v13 = vadd.f32 %v2891_v53, %v6956_v26  ;;  %v3585_v6 = vpop.permute.xlu1 %3584 }
 0x34d   :  { %v4877_v58 = vpop.f32.mrf.mxu1  ;;  %v4961_v18 = vpop.f32.mrf.mxu0 }
 0x34e   :  { %v3740_v4 = vmul.f32 %v3570_v25, %v3494_v24  ;;  %v3454_v39 = vadd.f32 %v7232_v20, %v3406_v28 }
 0x34f   :  { %v2896_v57 = vpop.f32.mrf.mxu1  ;;  %v3271_v60 = vpop.f32.mrf.mxu0 }
 0x350   :  { %3781 = vst [vmem:[%s7442_s4 + $0x40] sm:$0xff] %v3740_v4  ;;  %v3495_v35 = vmax.f32 %v3454_v39, 0.0  ;;  %v3407_v44 = vadd.f32 %v3271_v60, %v3024_v54  ;;  %v3026_v36 = vadd.f32 %v2896_v57, %v6964_v49  ;;  %v3590_v54 = vpop.permute.xlu0 %3589 }
 0x351   :  { %v4880_v12 = vpop.f32.mrf.mxu1  ;;  %v4964_v21 = vpop.f32.mrf.mxu0 }
 0x352   :  { %v3741_v15 = vmul.f32 %v3575_v32, %v3495_v35  ;;  %v3455_v46 = vadd.f32 %v7232_v20, %v3407_v44  ;;  %v3595_v21 = vpop.permute.xlu1 %3594 }
 0x353   :  { %v2899_v45 = vpop.f32.mrf.mxu1  ;;  %v3274_v17 = vpop.f32.mrf.mxu0 }
 0x354   :  { %3782 = vst [vmem:[%s7442_s4 + $0x48] sm:$0xff] %v3741_v15  ;;  %v3496_v41 = vmax.f32 %v3455_v46, 0.0  ;;  %v3408_v10 = vadd.f32 %v3274_v17, %v3025_v13  ;;  %v3027_v24 = vadd.f32 %v2899_v45, %v6980_v8 }
 0x355   :  { %v4881_v48 = vpop.f32.mrf.mxu1  ;;  %v4965_v11 = vpop.f32.mrf.mxu0 }
 0x356   :  { %v3742_v19 = vmul.f32 %v3580_v5, %v3496_v41  ;;  %v3456_v14 = vadd.f32 %v7232_v20, %v3408_v10  ;;  %v3600_v48 = vpop.permute.xlu0 %3599 }
 0x357   :  { %v2904_v26 = vpop.f32.mrf.mxu1  ;;  %v3279_v1 = vpop.f32.mrf.mxu0 }
 0x358   :  { %3783 = vst [vmem:[%s7442_s4 + $0x50] sm:$0xff] %v3742_v19  ;;  %v3497_v9 = vmax.f32 %v3456_v14, 0.0  ;;  %v3409_v53 = vadd.f32 %v3279_v1, %v3026_v36  ;;  %v3028_v32 = vadd.f32 %v2904_v26, %v6988_v27 }
 0x359   :  { %v4884_v31 = vpop.f32.mrf.mxu1  ;;  %v4968_v25 = vpop.f32.mrf.mxu0 }
 0x35a   :  { %v3743_v28 = vmul.f32 %v3585_v6, %v3497_v9  ;;  %v3457_v58 = vadd.f32 %v7232_v20, %v3409_v53  ;;  %v3605_v53 = vpop.permute.xlu1 %3604 }
 0x35b   :  { %v2907_v49 = vpop.f32.mrf.mxu1  ;;  %v3282_v18 = vpop.f32.mrf.mxu0 }
 0x35c   :  { %3784 = vst [vmem:[%s7442_s4 + $0x58] sm:$0xff] %v3743_v28  ;;  %v3498_v4 = vmax.f32 %v3457_v58, 0.0  ;;  %v3410_v39 = vadd.f32 %v3282_v18, %v3027_v24  ;;  %v3029_v17 = vadd.f32 %v2907_v49, %v7004_v59 }
 0x35d   :  { %v4885_v57 = vpop.f32.mrf.mxu1  ;;  %v4969_v60 = vpop.f32.mrf.mxu0 }
 0x35e   :  { %v3744_v35 = vmul.f32 %v3590_v54, %v3498_v4  ;;  %v3458_v44 = vadd.f32 %v7232_v20, %v3410_v39  ;;  %v3610_v4 = vpop.permute.xlu0 %3609 }
 0x35f   :  { %v2912_v8 = vpop.f32.mrf.mxu1  ;;  %v3287_v12 = vpop.f32.mrf.mxu0 }
 0x360   :  { %3785 = vst [vmem:[%s7442_s4 + $0x60] sm:$0xff] %v3744_v35  ;;  %v3499_v13 = vmax.f32 %v3458_v44, 0.0  ;;  %v3411_v15 = vadd.f32 %v3287_v12, %v3028_v32  ;;  %v3030_v26 = vadd.f32 %v2912_v8, %v7012_v52 }
 0x361   :  { %v4888_v46 = vpop.f32.mrf.mxu1  ;;  %v4972_v45 = vpop.f32.mrf.mxu0 }
 0x362   :  { %v3745_v5 = vmul.f32 %v3595_v21, %v3499_v13  ;;  %v3459_v41 = vadd.f32 %v7232_v20, %v3411_v15  ;;  %v3615_v21 = vpop.permute.xlu1 %3614 }
 0x363   :  { %v2915_v27 = vpop.f32.mrf.mxu1  ;;  %v3290_v10 = vpop.f32.mrf.mxu0 }
 0x364   :  { %3786 = vst [vmem:[%s7442_s4 + $0x68] sm:$0xff] %v3745_v5  ;;  %v3500_v11 = vmax.f32 %v3459_v41, 0.0  ;;  %v3412_v36 = vadd.f32 %v3290_v10, %v3029_v17  ;;  %v3031_v58 = vadd.f32 %v2915_v27, %v7028_v38  ;;  %v3620_v10 = vpop.permute.xlu0 %3619 }
 0x365   :  { %v4889_v19 = vpop.f32.mrf.mxu1  ;;  %v4973_v14 = vpop.f32.mrf.mxu0 }
 0x366   :  { %v3746_v1 = vmul.f32 %v3600_v48, %v3500_v11  ;;  %v3460_v6 = vadd.f32 %v7232_v20, %v3412_v36 }
 0x367   :  { %v2920_v59 = vpop.f32.mrf.mxu1  ;;  %v3295_v9 = vpop.f32.mrf.mxu0 }
 0x368   :  { %3787 = vst [vmem:[%s7442_s4 + $0x70] sm:$0xff] %v3746_v1  ;;  %v3501_v31 = vmax.f32 %v3460_v6, 0.0  ;;  %v3413_v25 = vadd.f32 %v3295_v9, %v3030_v26  ;;  %v3032_v35 = vadd.f32 %v2920_v59, %v7036_v55  ;;  %v3625_v59 = vpop.permute.xlu1 %3624 }
 0x369   :  { %v4892_v24 = vpop.f32.mrf.mxu1  ;;  %v4976_v28 = vpop.f32.mrf.mxu0 }
 0x36a   :  { %v3747_v49 = vmul.f32 %v3605_v53, %v3501_v31  ;;  %v3461_v18 = vadd.f32 %v7232_v20, %v3413_v25 }
 0x36b   :  { %v2923_v52 = vpop.f32.mrf.mxu1  ;;  %v3298_v54 = vpop.f32.mrf.mxu0 }
 0x36c   :  { %3788 = vst [vmem:[%s7442_s4 + $0x78] sm:$0xff] %v3747_v49  ;;  %v3502_v39 = vmax.f32 %v3461_v18, 0.0  ;;  %v3414_v57 = vadd.f32 %v3298_v54, %v3031_v58  ;;  %v3033_v17 = vadd.f32 %v2923_v52, %v7052_v56  ;;  %v3630_v18 = vpop.permute.xlu0 %3629 }
 0x36d   :  { %v4893_v60 = vpop.f32.mrf.mxu1  ;;  %v4977_v32 = vpop.f32.mrf.mxu0 }
 0x36e   :  { %v3748_v44 = vmul.f32 %v3610_v4, %v3502_v39  ;;  %v3462_v8 = vadd.f32 %v7232_v20, %v3414_v57 }
 0x36f   :  { %v2928_v38 = vpop.f32.mrf.mxu1  ;;  %v3303_v12 = vpop.f32.mrf.mxu0 }
 0x370   :  { %3789 = vst [vmem:[%s7442_s4 + $0x80] sm:$0xff] %v3748_v44  ;;  %v3503_v13 = vmax.f32 %v3462_v8, 0.0  ;;  %v3415_v15 = vadd.f32 %v3303_v12, %v3032_v35  ;;  %v3034_v14 = vadd.f32 %v2928_v38, %v7060_v61  ;;  %v3635_v44 = vpop.permute.xlu1 %3634 }
 0x371   :  { %v4896_v46 = vpop.f32.mrf.mxu1  ;;  %v4980_v45 = vpop.f32.mrf.mxu0 }
 0x372   :  { %v3749_v5 = vmul.f32 %v3615_v21, %v3503_v13  ;;  %v3463_v41 = vadd.f32 %v7232_v20, %v3415_v15 }
 0x373   :  { %v2931_v55 = vpop.f32.mrf.mxu1  ;;  %v3306_v27 = vpop.f32.mrf.mxu0 }
 0x374   :  { %3790 = vst [vmem:[%s7442_s4 + $0x88] sm:$0xff] %v3749_v5  ;;  %v3504_v48 = vmax.f32 %v3463_v41, 0.0  ;;  %v3416_v11 = vadd.f32 %v3306_v27, %v3033_v17  ;;  %v3035_v24 = vadd.f32 %v2931_v55, %v7076_v50  ;;  %v3640_v17 = vpop.permute.xlu0 %3639 }
 0x375   :  { %v4897_v36 = vpop.f32.mrf.mxu1  ;;  %v4981_v19 = vpop.f32.mrf.mxu0 }
 0x376   :  { %v3750_v26 = vmul.f32 %v3620_v10, %v3504_v48  ;;  %v3464_v1 = vadd.f32 %v7232_v20, %v3416_v11  ;;  %v3645_v19 = vpop.permute.xlu1 %3644 }
 0x377   :  { %v2936_v56 = vpop.f32.mrf.mxu1  ;;  %v3311_v6 = vpop.f32.mrf.mxu0 }
 0x378   :  { %3791 = vst [vmem:[%s7442_s4 + $0x90] sm:$0xff] %v3750_v26  ;;  %v3505_v9 = vmax.f32 %v3464_v1, 0.0  ;;  %v3417_v53 = vadd.f32 %v3311_v6, %v3034_v14  ;;  %v3036_v57 = vadd.f32 %v2936_v56, %v7084_v43 }
 0x379   :  { %v4900_v31 = vpop.f32.mrf.mxu1  ;;  %v4984_v25 = vpop.f32.mrf.mxu0 }
 0x37a   :  { %v3751_v28 = vmul.f32 %v3625_v59, %v3505_v9  ;;  %v3465_v58 = vadd.f32 %v7232_v20, %v3417_v53  ;;  %v3650_v31 = vpop.permute.xlu0 %3649 }
 0x37b   :  { %v2939_v61 = vpop.f32.mrf.mxu1  ;;  %v3314_v49 = vpop.f32.mrf.mxu0 }
 0x37c   :  { %3792 = vst [vmem:[%s7442_s4 + $0x98] sm:$0xff] %v3751_v28  ;;  %v3506_v52 = vmax.f32 %v3465_v58, 0.0  ;;  %v3418_v54 = vadd.f32 %v3314_v49, %v3035_v24  ;;  %v3037_v13 = vadd.f32 %v2939_v61, %v7100_v0 }
 0x37d   :  { %v4901_v4 = vpop.f32.mrf.mxu1  ;;  %v4985_v39 = vpop.f32.mrf.mxu0 }
 0x37e   :  { %v3752_v60 = vmul.f32 %v3630_v18, %v3506_v52  ;;  %v3466_v32 = vadd.f32 %v7232_v20, %v3418_v54  ;;  %v3655_v54 = vpop.permute.xlu1 %3654 }
 0x37f   :  { %v2944_v50 = vpop.f32.mrf.mxu1  ;;  %v3319_v35 = vpop.f32.mrf.mxu0 }
 0x380   :  { %3793 = vst [vmem:[%s7442_s4 + $0xa0] sm:$0xff] %v3752_v60  ;;  %v3507_v8 = vmax.f32 %v3466_v32, 0.0  ;;  %v3419_v38 = vadd.f32 %v3319_v35, %v3036_v57  ;;  %v3038_v10 = vadd.f32 %v2944_v50, %v7108_v29 }
 0x381   :  { %v4904_v12 = vpop.f32.mrf.mxu1  ;;  %v4988_v21 = vpop.f32.mrf.mxu0 }
 0x382   :  { %v3753_v15 = vmul.f32 %v3635_v44, %v3507_v8  ;;  %v3467_v46 = vadd.f32 %v7232_v20, %v3419_v38  ;;  %v3660_v8 = vpop.permute.xlu0 %3659 }
 0x383   :  { %v2947_v43 = vpop.f32.mrf.mxu1  ;;  %v3322_v45 = vpop.f32.mrf.mxu0 }
 0x384   :  { %3794 = vst [vmem:[%s7442_s4 + $0xa8] sm:$0xff] %v3753_v15  ;;  %v3508_v5 = vmax.f32 %v3467_v46, 0.0  ;;  %v3420_v41 = vadd.f32 %v3322_v45, %v3037_v13  ;;  %v3039_v6 = vadd.f32 %v2947_v43, %v7124_v2 }
 0x385   :  { %v4905_v55 = vpop.f32.mrf.mxu1  ;;  %v4989_v27 = vpop.f32.mrf.mxu0 }
 0x386   :  { %v3754_v48 = vmul.f32 %v3640_v17, %v3508_v5  ;;  %v3468_v11 = vadd.f32 %v7232_v20, %v3420_v41  ;;  %v3665_v17 = vpop.permute.xlu1 %3664 }
 0x387   :  { %v2952_v0 = vpop.f32.mrf.mxu1  ;;  %v3327_v36 = vpop.f32.mrf.mxu0 }
 0x388   :  { %3795 = vst [vmem:[%s7442_s4 + $0xb0] sm:$0xff] %v3754_v48  ;;  %v3509_v14 = vmax.f32 %v3468_v11, 0.0  ;;  %v3421_v26 = vadd.f32 %v3327_v36, %v3038_v10  ;;  %v3040_v61 = vadd.f32 %v2952_v0, %v7132_v30  ;;  %v3670_v36 = vpop.permute.xlu0 %3669 }
 0x389   :  { %v4908_v1 = vpop.f32.mrf.mxu1  ;;  %v4992_v56 = vpop.f32.mrf.mxu0 }
 0x38a   :  { %v3755_v59 = vmul.f32 %v3645_v19, %v3509_v14  ;;  %v3469_v9 = vadd.f32 %v7232_v20, %v3421_v26 }
 0x38b   :  { %v2955_v29 = vpop.f32.mrf.mxu1  ;;  %v3330_v53 = vpop.f32.mrf.mxu0 }
 0x38c   :  { %3796 = vst [vmem:[%s7442_s4 + $0xb8] sm:$0xff] %v3755_v59  ;;  %v3510_v25 = vmax.f32 %v3469_v9, 0.0  ;;  %v3422_v24 = vadd.f32 %v3330_v53, %v3039_v6  ;;  %v3041_v32 = vadd.f32 %v2955_v29, %v7148_v42  ;;  %v3675_v29 = vpop.permute.xlu1 %3674 }
 0x38d   :  { %v4909_v28 = vpop.f32.mrf.mxu1  ;;  %v4993_v58 = vpop.f32.mrf.mxu0 }
 0x38e   :  { %v3756_v49 = vmul.f32 %v3650_v31, %v3510_v25  ;;  %v3470_v18 = vadd.f32 %v7232_v20, %v3422_v24 }
 0x38f   :  { %v2960_v2 = vpop.f32.mrf.mxu1  ;;  %v3335_v52 = vpop.f32.mrf.mxu0 }
 0x390   :  { %3797 = vst [vmem:[%s7442_s4 + $0xc0] sm:$0xff] %v3756_v49  ;;  %v3511_v4 = vmax.f32 %v3470_v18, 0.0  ;;  %v3423_v39 = vadd.f32 %v3335_v52, %v3040_v61  ;;  %v3042_v15 = vadd.f32 %v2960_v2, %v7156_v62  ;;  %v3680_v18 = vpop.permute.xlu0 %3679 }
 0x391   :  { %v4912_v57 = vpop.f32.mrf.mxu1  ;;  %v4996_v60 = vpop.f32.mrf.mxu0 }
 0x392   :  { %v3757_v50 = vmul.f32 %v3655_v54, %v3511_v4  ;;  %v3471_v35 = vadd.f32 %v7232_v20, %v3423_v39 }
 0x393   :  { %v2963_v30 = vpop.f32.mrf.mxu1  ;;  %v3338_v44 = vpop.f32.mrf.mxu0 }
 0x394   :  { %3798 = vst [vmem:[%s7442_s4 + $0xc8] sm:$0xff] %v3757_v50  ;;  %v3512_v38 = vmax.f32 %v3471_v35, 0.0  ;;  %v3424_v12 = vadd.f32 %v3338_v44, %v3041_v32  ;;  %v3043_v10 = vadd.f32 %v2963_v30, %v7172_v23  ;;  %v3685_v50 = vpop.permute.xlu1 %3684 }
 0x395   :  { %v4913_v21 = vpop.f32.mrf.mxu1  ;;  %v4997_v13 = vpop.f32.mrf.mxu0 }
 0x396   :  { %v3758_v46 = vmul.f32 %v3660_v8, %v3512_v38  ;;  %v3472_v43 = vadd.f32 %v7232_v20, %v3424_v12 }
 0x397   :  { %v2968_v42 = vpop.f32.mrf.mxu1  ;;  %v3343_v45 = vpop.f32.mrf.mxu0 }
 0x398   :  { %3799 = vst [vmem:[%s7442_s4 + $0xd0] sm:$0xff] %v3758_v46  ;;  %v3513_v5 = vmax.f32 %v3472_v43, 0.0  ;;  %v3425_v41 = vadd.f32 %v3343_v45, %v3042_v15  ;;  %v3044_v56 = vadd.f32 %v2968_v42, %v7177_v3  ;;  %v3690_v15 = vpop.permute.xlu0 %3689 }
 0x399   :  { %v4916_v55 = vpop.f32.mrf.mxu1  ;;  %v5000_v27 = vpop.f32.mrf.mxu0 }
 0x39a   :  { %v3759_v48 = vmul.f32 %v3665_v17, %v3513_v5  ;;  %v3473_v11 = vadd.f32 %v7232_v20, %v3425_v41  ;;  %v3695_v27 = vpop.permute.xlu1 %3694 }
 0x39b   :  { %v2971_v62 = vpop.f32.mrf.mxu1  ;;  %v3346_v0 = vpop.f32.mrf.mxu0 }
 0x39c   :  { %3800 = vst [vmem:[%s7442_s4 + $0xd8] sm:$0xff] %v3759_v48  ;;  %v3514_v19 = vmax.f32 %v3473_v11, 0.0  ;;  %v3426_v14 = vadd.f32 %v3346_v0, %v3043_v10  ;;  %v3045_v28 = vadd.f32 %v2971_v62, %v7193_v63 }
 0x39d   :  { %v4917_v26 = vpop.f32.mrf.mxu1  ;;  %v5001_v1 = vpop.f32.mrf.mxu0 }
 0x39e   :  { %v3760_v6 = vmul.f32 %v3670_v36, %v3514_v19  ;;  %v3474_v59 = vadd.f32 %v7232_v20, %v3426_v14  ;;  %v3700_v26 = vpop.permute.xlu0 %3699 }
 0x39f   :  { %v2976_v23 = vpop.f32.mrf.mxu1  ;;  %v3351_v9 = vpop.f32.mrf.mxu0 }
 0x3a0   :  { %3801 = vst [vmem:[%s7442_s4 + $0xe0] sm:$0xff] %v3760_v6  ;;  %v3515_v53 = vmax.f32 %v3474_v59, 0.0  ;;  %v3427_v31 = vadd.f32 %v3351_v9, %v3044_v56  ;;  %v3046_v39 = vadd.f32 %v2976_v23, %v7198_v37 }
 0x3a1   :  { %v4920_v25 = vpop.f32.mrf.mxu1  ;;  %v5004_v24 = vpop.f32.mrf.mxu0 }
 0x3a2   :  { %v3761_v58 = vmul.f32 %v3675_v29, %v3515_v53  ;;  %v3475_v61 = vadd.f32 %v7232_v20, %v3427_v31  ;;  %v3705_v31 = vpop.permute.xlu1 %3704 }
 0x3a3   :  { %v2979_v3 = vpop.f32.mrf.mxu1  ;;  %v3354_v49 = vpop.f32.mrf.mxu0 }
 0x3a4   :  { %3802 = vst [vmem:[%s7442_s4 + $0xe8] sm:$0xff] %v3761_v58  ;;  %v3516_v2 = vmax.f32 %v3475_v61, 0.0  ;;  %v3428_v52 = vadd.f32 %v3354_v49, %v3045_v28  ;;  %v3047_v38 = vadd.f32 %v2979_v3, %v7206_v34 }
 0x3a5   :  { %v4921_v54 = vpop.f32.mrf.mxu1  ;;  %v5005_v4 = vpop.f32.mrf.mxu0 }
 0x3a6   :  { %v3762_v57 = vmul.f32 %v3680_v18, %v3516_v2  ;;  %v3476_v60 = vadd.f32 %v7232_v20, %v3428_v52  ;;  %v3710_v2 = vpop.permute.xlu0 %3709 }
 0x3a7   :  { %v2984_v63 = vpop.f32.mrf.mxu1  ;;  %v3359_v32 = vpop.f32.mrf.mxu0 }
 0x3a8   :  { %3803 = vst [vmem:[%s7442_s4 + $0xf0] sm:$0xff] %v3762_v57  ;;  %v3517_v35 = vmax.f32 %v3476_v60, 0.0  ;;  %v3429_v30 = vadd.f32 %v3359_v32, %v3046_v39  ;;  %v3048_v17 = vadd.f32 %v2984_v63, %v7210_v51 }
 0x3a9   :  { %v4924_v44 = vpop.f32.mrf.mxu1  ;;  %v5008_v8 = vpop.f32.mrf.mxu0 }
 0x3aa   :  { %v3763_v12 = vmul.f32 %v3685_v50, %v3517_v35  ;;  %v3477_v21 = vadd.f32 %v7232_v20, %v3429_v30  ;;  %v3715_v50 = vpop.permute.xlu1 %3714 }
 0x3ab   :  { %v2987_v37 = vpop.f32.mrf.mxu1  ;;  %v3362_v13 = vpop.f32.mrf.mxu0 }
 0x3ac   :  { %3804 = vst [vmem:[%s7442_s4 + $0xf8] sm:$0xff] %v3763_v12  ;;  %v3518_v46 = vmax.f32 %v3477_v21, 0.0  ;;  %v3430_v43 = vadd.f32 %v3362_v13, %v3047_v38  ;;  %v3049_v0 = vadd.f32 %v2987_v37, %v7213_v47  ;;  %v3720_v13 = vpop.permute.xlu0 %3719 }
 0x3ad   :  { %v4925_v42 = vpop.f32.mrf.mxu1  ;;  %v5009_v45 = vpop.f32.mrf.mxu0 }
 0x3ae   :  { %v3764_v5 = vmul.f32 %v3690_v15, %v3518_v46  ;;  %v3478_v41 = vadd.f32 %v7232_v20, %v3430_v43 }
 0x3af   :  { %v2992_v34 = vpop.f32.mrf.mxu1  ;;  %v3367_v55 = vpop.f32.mrf.mxu0 }
 0x3b0   :  { %3805 = vst [vmem:[%s7442_s4 + $0x100] sm:$0xff] %v3764_v5  ;;  %v3519_v10 = vmax.f32 %v3478_v41, 0.0  ;;  %v3431_v48 = vadd.f32 %v3367_v55, %v3048_v17  ;;  %v3050_v23 = vadd.f32 %v2992_v34, %v7216_v16  ;;  %v3725_v55 = vpop.permute.xlu1 %3724 }
 0x3b1   :  { %v4928_v11 = vpop.f32.mrf.mxu1  ;;  %v5012_v62 = vpop.f32.mrf.mxu0 }
 0x3b2   :  { %v3765_v36 = vmul.f32 %v3695_v27, %v3519_v10  ;;  %v3479_v19 = vadd.f32 %v7232_v20, %v3431_v48  ;;  %v3730_v62 = vpop.permute.xlu0 %3729 }
 0x3b3   :  { %v2995_v51 = vpop.f32.mrf.mxu1  ;;  %v3370_v14 = vpop.f32.mrf.mxu0 }
 0x3b4   :  { %3806 = vst [vmem:[%s7442_s4 + $0x108] sm:$0xff] %v3765_v36  ;;  %v3520_v1 = vmax.f32 %v3479_v19, 0.0  ;;  %v3432_v56 = vadd.f32 %v3370_v14, %v3049_v0  ;;  %v3051_v61 = vadd.f32 %v2995_v51, %v7219_v22 }
 0x3b5   :  { %v4929_v6 = vpop.f32.mrf.mxu1  ;;  %v5013_v59 = vpop.f32.mrf.mxu0 }
 0x3b6   :  { %v3766_v9 = vmul.f32 %v3700_v26, %v3520_v1  ;;  %v3480_v29 = vadd.f32 %v7232_v20, %v3432_v56 }
 0x3b7   :  { %v3000_v47 = vpop.f32.mrf.mxu1  ;;  %v3375_v53 = vpop.f32.mrf.mxu0 }
 0x3b8   :  { %3807 = vst [vmem:[%s7442_s4 + $0x110] sm:$0xff] %v3766_v9  ;;  %v3521_v25 = vmax.f32 %v3480_v29, 0.0  ;;  %v3433_v24 = vadd.f32 %v3375_v53, %v3050_v23  ;;  %v3052_v57 = vadd.f32 %v3000_v47, %v7222_v7 }
 0x3b9   :  { %v4932_v28 = vpop.f32.mrf.mxu1  ;;  %v5016_v58 = vpop.f32.mrf.mxu0 }
 0x3ba   :  { %v3767_v3 = vmul.f32 %v3705_v31, %v3521_v25  ;;  %v3481_v49 = vadd.f32 %v7232_v20, %v3433_v24 }
 0x3bb   :  { %v3003_v16 = vpop.f32.mrf.mxu1  ;;  %v3378_v18 = vpop.f32.mrf.mxu0 }
 0x3bc   :  { %3808 = vst [vmem:[%s7442_s4 + $0x118] sm:$0xff] %v3767_v3  ;;  %v3522_v52 = vmax.f32 %v3481_v49, 0.0  ;;  %v3434_v54 = vadd.f32 %v3378_v18, %v3051_v61  ;;  %v3053_v38 = vadd.f32 %v3003_v16, %v7224_v40 }
 0x3bd   :  { %v4933_v4 = vpop.f32.mrf.mxu1  ;;  %v5017_v39 = vpop.f32.mrf.mxu0 }
 0x3be   :  { %v3768_v60 = vmul.f32 %v3710_v2, %v3522_v52  ;;  %v3482_v63 = vadd.f32 %v7232_v20, %v3434_v54 }
 0x3bf   :  { %v3008_v22 = vpop.f32.mrf.mxu1  ;;  %v3383_v32 = vpop.f32.mrf.mxu0 }
 0x3c0   :  { %3809 = vst [vmem:[%s7442_s4 + $0x120] sm:$0xff] %v3768_v60  ;;  %v3523_v35 = vmax.f32 %v3482_v63, 0.0  ;;  %v3435_v30 = vadd.f32 %v3383_v32, %v3052_v57  ;;  %v3054_v45 = vadd.f32 %v3008_v22, %v7226_v33 }
 0x3c1   :  { %v5020_v44 = vpop.f32.mrf.mxu0  ;;  %v4936_v8 = vpop.f32.mrf.mxu1 }
 0x3c2   :  { %v3769_v12 = vmul.f32 %v3715_v50, %v3523_v35  ;;  %v3483_v21 = vadd.f32 %v7232_v20, %v3435_v30 }
 0x3c3   :  { %v3386_v7 = vpop.f32.mrf.mxu0  ;;  %v3011_v37 = vpop.f32.mrf.mxu1 }
 0x3c4   :  { %3810 = vst [vmem:[%s7442_s4 + $0x128] sm:$0xff] %v3769_v12  ;;  %v3524_v15 = vmax.f32 %v3483_v21, 0.0  ;;  %v3436_v46 = vadd.f32 %v3386_v7, %v3053_v38 }
 0x3c5   :  { %v5021_v43 = vpop.f32.mrf.mxu0  ;;  %v4937_v42 = vpop.f32.mrf.mxu1 }
 0x3c6   :  { %v3770_v17 = vmul.f32 %v3720_v13, %v3524_v15  ;;  %v3484_v5 = vadd.f32 %v7232_v20, %v3436_v46 }
 0x3c7   :  { %v3391_v40 = vpop.f32.mrf.mxu0 }
 0x3c8   :  { %3811 = vst [vmem:[%s7442_s4 + $0x130] sm:$0xff] %v3770_v17  ;;  %v3525_v41 = vmax.f32 %v3484_v5, 0.0  ;;  %v3437_v34 = vadd.f32 %v3391_v40, %v3054_v45 }
 0x3c9   :  { %v5024_v27 = vpop.f32.mrf.mxu0 }
 0x3ca   :  { %v3771_v10 = vmul.f32 %v3725_v55, %v3525_v41  ;;  %v3485_v48 = vadd.f32 %v7232_v20, %v3437_v34 }
 0x3cb   :  { %v3394_v11 = vpop.f32.mrf.mxu0 }
 0x3cc   :  { %3812 = vst [vmem:[%s7442_s4 + $0x138] sm:$0xff] %v3771_v10  ;;  %v3526_v33 = vmax.f32 %v3485_v48, 0.0 }
 0x3cd   :  { %v5025_v0 = vpop.f32.mrf.mxu0 }
 0x3ce   :  { %v3772_v36 = vmul.f32 %v3730_v62, %v3526_v33 }
 0x3d0   :  { %3813 = vst [vmem:[%s7442_s4 + $0x140] sm:$0xf] %v3772_v36 }
 0x3d1   :  { %3818 = vsyncpa [#allocation3], 1 }

// kernel: forward.7
= control target key start
LH: loop header
LB: loop body
LE: loop exit
PB: predicated region body
PF: predicated region fallthrough
CT: control target
= control target key end

     0   :  { %s706_s12 = smov 0   ;;  %s708_s13 = smov 0   ;;  %s788_s0 = inlined_call_operand.vmem [shape: bf16[21,16], index: 0, kind: input, shape index: {}]   ;;  %s789_s1 = inlined_call_operand.vmem [shape: bf16[16,512], index: 1, kind: input, shape index: {}]   ;;  %s790_s2 = inlined_call_operand.vmem [shape: f32[1,512], index: 2, kind: input, shape index: {}]   ;;  %s791_s3 = inlined_call_operand.vmem [shape: f32[21,512], index: 3, kind: output, shape index: {}]  }
   0x1   :  { %s710_s14 = smov 0   ;;  %s712_s15 = smov 0  }
   0x2   :  { %s714_s16 = smov 0  }
   0x3 LB: > { %s28_s17 = sadd.s32 1, %s678_s15  ;;  %s571_s18 = sadd.s32 4294967295, %s682_s16   ;;  %s682_s16 = sphi %s714_s16, %s13_s16   ;;  %s678_s15 = sphi %s712_s15, %s796_s15   ;;  %s674_s14 = sphi %s710_s14, %s795_s14   ;;  %s670_s13 = sphi %s708_s13, %s794_s13   ;;  %s666_s12 = sphi %s706_s12, %s793_s12  }
   0x4   : > { %p30_p0 = scmp.ge.s32.totalorder %s28_s17, 2  ;;  %p76_p1 = scmp.ne.s32.totalorder %s670_s13, %s666_s12 }
   0x5   : > { %p77_p2 = scmp.eq.s32.totalorder %s682_s16, 0  ;;  %p134_p4 = scmp.eq.s32.totalorder %s571_s18, 1 }
   0x6   : > { %s798_s17 = smov (%p30_p0, %s28_s17), 0  ;;  %s69_s20 = sadd.s32 1, %s670_s13 }
   0x7   : > { %p78_p3 = por %p77_p2, %p76_p1  ;;  %s65_s19 = ssub.s32 %s678_s15, %s798_s17 }
   0x8   : > { %p67_p5 = scmp.eq.s32.totalorder %s65_s19, 0  ;;  %p741_p6 = por %p134_p4, %p76_p1 }
   0x9   : > { %p575_p7 = scmp.ge.s32.totalorder %s682_s16, 2 }
   0xa   : > { %s746_s22 = scalar_select %p67_p5, %s670_s13, %s69_s20  }
   0xb   : > { %168 = sbr.rel (%p575_p7) target bundleno = 21 (0x15), region = 20 }
  0x10   : > { %171 = sbr.rel (!%p78_p3) target bundleno = 21 (0x15), region = 24  ;;  %s173_s23 = sand.u32 (%p78_p3), 1, %s670_s13  }
  0x11   : > { %s592_s24 = sshll.u32 (%p78_p3), %s678_s15, 3  ;;  %s576_s25 = sshll.u32 (%p78_p3), %s173_s23, 4 }
  0x12   : > { %s181_s28 = scalar_lea.vmem (%p78_p3), %s789_s1, %s592_s24  ;;  %s175_s29 = scalar_lea.vmem (%p78_p3), [#allocation3], %s576_s25 }
  0x13   : > { %v212_v0 = vld [vmem:[%s181_s28] sm:$0xff] (%p78_p3)  ;;  %v214_v1 = vld [vmem:[%s181_s28 + $0x10] sm:$0xff] (%p78_p3) }
  0x14   : > { %213 = vst [vmem:[%s175_s29] sm:$0xff] (%p78_p3), %v212_v0  ;;  %215 = vst [vmem:[%s175_s29 + $0x8] sm:$0xff] (%p78_p3), %v214_v1 }
  0x15 PF: > { %p579_p8 = scmp.ge.s32.totalorder %s682_s16, 1  ;;  %p228_p9 = scmp.lt.s32.totalorder %s682_s16, 3 }
  0x17   : > { %p229_p10 = pnand %p579_p8, %p228_p9 }
  0x18   : > { %s235_s30 = sand.u32 (!%p229_p10), 1, %s666_s12   ;;  %s581_s10 = sshll.u32 (!%p229_p10), %s674_s14, 1 }
  0x19   : > { %232 = sbr.rel (%p229_p10) target bundleno = 252 (0xfc), region = 66  ;;  %s580_s4 = sshll.u32 (!%p229_p10), %s235_s30, 4 }
  0x1a   : > { %s237_s5 = scalar_lea.vmem (!%p229_p10), [#allocation3], %s580_s4  ;;  %p281_p11 = scmp.lt.s32.totalorder (!%p229_p10), %s581_s10, 3 }
  0x1b   : > { %s596_s19 = smul.u32 (!%p229_p10), 48, %s235_s30 }
  0x1d   : > { %s268_s20 = scalar_lea.vmem (!%p229_p10), [#allocation4], %s596_s19 }
  0x1e   : > { %v684_v2 = vmov 0   ;;  %v639_v3 = vld [vmem:[%s237_s5 + $0x4] ss:$8 sps:$4 sm:$0xff]   ;;  %v685_v4 = vmov 0.0   ;;  %v641_v5 = vld [vmem:[%s237_s5] ss:$8 sps:$4 sm:$0xff]   ;;  %v408_v8 = vlaneseq }
  0x1f   : > { %366 = vmatprep.mubr.bf16.mxu0 %v684_v2  ;;  %376 = vmatprep.mubr.bf16.mxu1 %v684_v2  ;;  %296 = vst [vmem:[#allocation2 + $0x18] sm:$0x1f] %v685_v4  ;;  %297 = vst [vmem:[#allocation2 + $0x20] sm:$0x1f] %v685_v4  ;;  %v642_v6 = vld [vmem:[%s788_s0] sm:$0xff]   ;;  %vm327_vm0 = vcmask 130048  }
  0x20   : > { %348 = vmatprep.subr.bf16.mxu0 %v639_v3  ;;  %594 = vmatprep.subr.bf16.mxu1 %v639_v3  ;;  %v643_v7 = vld [vmem:[%s788_s0 + $0x8] ss:$0 sps:$4 sm:$0x77]   ;;  %s800_s10 = smov (!%p281_p11, %s581_s10), 3  ;;  %v409_v9 = vshrl.u32 %v408_v8, 7  ;;  %s593_s23 = sshll.u32 (%p741_p6), %s674_s14, 4 }
  0x21   : > { %349 = vmatpush1.bf16.msra.mxu0 %v641_v5  ;;  %595 = vmatpush1.bf16.msra.mxu1 %v641_v5  ;;  %s283_s18 = scalar_lea.vmem %s790_s2, %s800_s10  ;;  %s442_s26 = scalar_lea.vmem (%p741_p6), %s791_s3, %s593_s23 }
  0x22   : > { %v410_v10 = vsub.s32 0, %v409_v9  ;;  %v406_v11 = vld [vmem:[%s283_s18] sm:$0x3]  ;;  %v414_v12 = vsub.s32 1, %v409_v9 }
  0x24   : > { %586 = vmatmul.mubr.msk.bf16.vlgmr.msra.gmra.mxu0 %vm327_vm0, %v642_v6  ;;  %587 = vmatmul.mubr.msk.bf16.vlgmr.msra.gmra.mxu1 %vm327_vm0, %v643_v7  ;;  %v411_v14 = vrot.slane %v406_v11, %v410_v10  ;;  %v415_v19 = vrot.slane %v406_v11, %v414_v12 }
  0x26   : > { %v302_v13 = vld [vmem:[#allocation2 + $0x18] sm:$0x1f]  ;;  %v303_v17 = vld [vmem:[#allocation2 + $0x20] sm:$0x1f] }
  0xe4   : > { %v368_v15 = vpop.f32.mrf.mxu0  ;;  %v378_v16 = vpop.f32.mrf.mxu1 }
  0xe5   : > { %v389_v18 = vadd.f32 %v378_v16, %v302_v13  ;;  %v418_v22 = vadd.f32 %v411_v14, %v368_v15 }
  0xe6   : > { %v370_v20 = vpop.f32.mrf.mxu0  ;;  %v380_v21 = vpop.f32.mrf.mxu1 }
  0xe7   : > { %395 = vst [vmem:[#allocation2 + $0x18] sm:$0x1f] %v389_v18  ;;  %v390_v23 = vadd.f32 %v380_v21, %v303_v17  ;;  %424 = vst [vmem:[%s268_s20] sm:$0xff] %v418_v22  ;;  %v419_v26 = vadd.f32 %v415_v19, %v370_v20 }
  0xe8   : > { %v372_v24 = vpop.f32.mrf.mxu0  ;;  %v382_v25 = vpop.f32.mrf.mxu1 }
  0xe9   : > { %396 = vst [vmem:[#allocation2 + $0x20] sm:$0x1f] %v390_v23  ;;  %425 = vst [vmem:[%s268_s20 + $0x8] sm:$0xff] %v419_v26  ;;  %v420_v29 = vadd.f32 %v411_v14, %v372_v24 }
  0xea   : > { %v374_v27 = vpop.f32.mrf.mxu0  ;;  %v383_v28 = vpop.f32.mrf.mxu1 }
  0xeb   : > { %426 = vst [vmem:[%s268_s20 + $0x10] sm:$0xff] %v420_v29  ;;  %v421_v30 = vadd.f32 %v415_v19, %v374_v27 }
  0xed   : > { %427 = vst [vmem:[%s268_s20 + $0x18] sm:$0xff] %v421_v30 }
  0xee   : > { %v404_v31 = vld [vmem:[#allocation2 + $0x18] sm:$0x1f]  ;;  %v455_v35 = vld [vmem:[%s268_s20] sm:$0xff] (%p741_p6) }
  0xef   : > { %v422_v32 = vadd.f32 %v411_v14, %v404_v31  ;;  %436 = sbr.rel (!%p741_p6) target bundleno = 252 (0xfc), region = 82  ;;  %456 = vst [vmem:[%s442_s26] sm:$0xff] (%p741_p6), %v455_v35 }
  0xf0   : > { %v405_v33 = vld [vmem:[#allocation2 + $0x20] sm:$0x1f]  ;;  %v457_v36 = vld [vmem:[%s268_s20 + $0x8] sm:$0xff] (%p741_p6) }
  0xf1   : > { %428 = vst [vmem:[%s268_s20 + $0x20] sm:$0x1f] %v422_v32  ;;  %v423_v34 = vadd.f32 %v415_v19, %v405_v33  ;;  %458 = vst [vmem:[%s442_s26 + $0x8] sm:$0xff] (%p741_p6), %v457_v36 }
  0xf2   : > { %v459_v37 = vld [vmem:[%s268_s20 + $0x10] sm:$0xff] (%p741_p6) }
  0xf3   : > { %429 = vst [vmem:[%s268_s20 + $0x28] sm:$0x1f] %v423_v34  ;;  %460 = vst [vmem:[%s442_s26 + $0x20] sm:$0xff] (%p741_p6), %v459_v37 }
  0xf4   : > { %v461_v38 = vld [vmem:[%s268_s20 + $0x18] sm:$0xff] }
  0xf5   : > { %462 = vst [vmem:[%s442_s26 + $0x28] sm:$0xff] %v461_v38 }
  0xf8   : > { %v463_v39 = vld [vmem:[%s268_s20 + $0x20] sm:$0xff] }
  0xf9   : > { %464 = vst [vmem:[%s442_s26 + $0x40] sm:$0xff] %v463_v39 }
  0xfa   : > { %v465_v40 = vld [vmem:[%s268_s20 + $0x28] sm:$0xff] }
  0xfb   : > { %466 = vst [vmem:[%s442_s26 + $0x48] sm:$0xff] %v465_v40 }
  0xfc PF: > { %s13_s16 = sadd.s32 1, %s682_s16   ;;  %s793_s12 = smov %s670_s13 }
  0xfd   : > { %p10_p12 = scmp.ge.s32.totalorder %s13_s16, 4   ;;  %s794_s13 = smov %s746_s22 }
  0xfe   : > { %s795_s14 = smov %s678_s15  ;;  %s796_s15 = smov %s798_s17 }
  0xff   :  { %12 = sbr.rel (!%p10_p12) target bundleno = 3 (0x3), region = 142 }

// kernel: forward.9
= control target key start
LH: loop header
LB: loop body
LE: loop exit
PB: predicated region body
PF: predicated region fallthrough
CT: control target
= control target key end

     0   :  { %s8714_s13 = smov 0   ;;  %s11435_s0 = inlined_call_operand.vmem [shape: f32[912,32], index: 0, kind: input, shape index: {}]   ;;  %s11436_s1 = inlined_call_operand.vmem [shape: f32[256,1], index: 1, kind: input, shape index: {}]   ;;  %s11437_s2 = inlined_call_operand.vmem [shape: bf16[9,32,128], index: 2, kind: input, shape index: {}]   ;;  %s11438_s3 = inlined_call_operand.vmem [shape: f32[1,128], index: 3, kind: input, shape index: {}, may-alias: {3,5,7,9}]   ;;  %s11439_s4 = inlined_call_operand.vmem [shape: bf16[9,128,128], index: 4, kind: input, shape index: {}]   ;;  %s11440_s5 = inlined_call_operand.vmem [shape: f32[1,128], index: 5, kind: input, shape index: {}, may-alias: {3,5,7,9}]   ;;  %s11441_s6 = inlined_call_operand.vmem [shape: bf16[128,128], index: 6, kind: input, shape index: {}]   ;;  %s11442_s7 = inlined_call_operand.vmem [shape: f32[1,128], index: 7, kind: input, shape index: {}, may-alias: {3,5,7,9}]   ;;  %s11443_s8 = inlined_call_operand.vmem [shape: bf16[128,128], index: 8, kind: input, shape index: {}]   ;;  %s11444_s9 = inlined_call_operand.vmem [shape: f32[1,128], index: 9, kind: input, shape index: {}, may-alias: {3,5,7,9}]   ;;  %s11445_s10 = inlined_call_operand.vmem [shape: f32[768,128], index: 10, kind: output, shape index: {}]  }
   0x1 LB: > { %s6827_s14 = sadd.s32 4294967295, %s8654_s13   ;;  %p6831_p0 = scmp.ge.s32.totalorder %s8654_s13, 1  ;;  %s8654_s13 = sphi %s8714_s13, %s20_s13  }
   0x2   : > { %p313_p1 = scmp.lt.s32.totalorder %s8654_s13, 4 }
   0x4   : > { %p314_p2 = pnand %p6831_p0, %p313_p1 }
   0x6   : > { %317 = sbr.rel (%p314_p2) target bundleno = 1422 (0x58e), region = 60 }
   0xb   : > { %v8541_v0 = vld [vmem:[%s11437_s2 + $0x18] sm:$0xff]   ;;  %s351_s17 = smul.u32 38, %s6827_s14  ;;  %v8542_v1 = vld [vmem:[%s11437_s2 + $0x8] sm:$0xff]   ;;  %v8543_v2 = vld [vmem:[%s11437_s2 + $0x10] sm:$0xff]   ;;  %vm513_vm0 = vcmask 261120   ;;  %s6833_s19 = sshll.u32 %s6827_s14, 5 }
   0xc   : > { %7677 = vmatprep.subr.bf16.mxu0 %v8541_v0  ;;  %7713 = vmatprep.subr.bf16.mxu1 %v8542_v1  ;;  %v8544_v3 = vld [vmem:[%s11437_s2] sm:$0xff]   ;;  %v8545_v4 = vld [vmem:[%s11437_s2 + $0x28] sm:$0xff]   ;;  %v8547_v5 = vld [vmem:[%s11437_s2 + $0x38] sm:$0xff]   ;;  %p358_p4 = scmp.lt.s32.totalorder %s6833_s19, 95 }
   0xd   : > { %p352_p3 = scmp.lt.s32.totalorder %s351_s17, 113  ;;  %7678 = vmatpush3.bf16.msra.mxu0 %v8541_v0  ;;  %7714 = vmatpush3.bf16.msra.mxu1 %v8542_v1  ;;  %v8546_v13 = vld [vmem:[%s11437_s2 + $0x20] sm:$0xff]   ;;  %v8548_v25 = vld [vmem:[%s11437_s2 + $0x30] sm:$0xff]   ;;  %v8840_v56 = vld [vmem:[%s11437_s2 + $0x48] sm:$0xff]  }
   0xe   : > { %7679 = vmatprep.subr.bf16.mxu0 %v8543_v2  ;;  %7715 = vmatprep.subr.bf16.mxu1 %v8544_v3  ;;  %s11754_s19 = smov (!%p358_p4, %s6833_s19), 95 }
   0xf   : > { %s11752_s17 = smov (!%p352_p3, %s351_s17), 113  ;;  %s6834_s20 = sshll.u32 %s11754_s19, 3 }
  0x10   : > { %s6832_s26 = sshll.u32 %s11752_s17, 3 }
  0x11   : > { %7680 = vmatpush3.bf16.msra.mxu0 %v8543_v2  ;;  %s8745_s11 = scalar_lea.vmem %s11435_s0, %s6832_s26  ;;  %7716 = vmatpush3.bf16.msra.mxu1 %v8544_v3 }
  0x12   : > { %v448_v6 = vld [vmem:[%s8745_s11 + $0x8] sm:$0xff]  ;;  %v449_v7 = vld [vmem:[%s8745_s11 + $0x10] sm:$0xff]  ;;  %7749 = vmatprep.subr.bf16.mxu0 %v8545_v4  ;;  %v450_v11 = vld [vmem:[%s8745_s11 + $0x18] sm:$0xff]  ;;  %7785 = vmatprep.subr.bf16.mxu1 %v8547_v5 }
  0x13   : > { %v396_v8 = vld [vmem:[%s8745_s11 + $0x7] sm:$0xff]  ;;  %v480_v9 = vpack.c.bf16 %v449_v7, %v448_v6  ;;  %v397_v10 = vld [vmem:[%s8745_s11 + $0xf] sm:$0xff]  ;;  %v398_v16 = vld [vmem:[%s8745_s11 + $0x17] sm:$0xff] }
  0x14   : > { %v451_v12 = vld [vmem:[%s8745_s11 + $0x20] sm:$0xff]  ;;  %v428_v14 = vpack.c.bf16 %v397_v10, %v396_v8  ;;  %v452_v18 = vld [vmem:[%s8745_s11 + $0x28] sm:$0xff]  ;;  %v453_v20 = vld [vmem:[%s8745_s11 + $0x30] sm:$0xff] }
  0x15   : > { %v8756_v15 = vpack.c.bf16 %v451_v12, %v450_v11  ;;  %v399_v17 = vld [vmem:[%s8745_s11 + $0x1f] sm:$0xff]  ;;  %7681 = vmatprep.mubr.msk.bf16.mxu0 %vm513_vm0, %v480_v9  ;;  %v400_v21 = vld [vmem:[%s8745_s11 + $0x27] sm:$0xff]  ;;  %v401_v22 = vld [vmem:[%s8745_s11 + $0x2f] sm:$0xff]  ;;  %v8770_v23 = vpack.c.bf16 %v453_v20, %v452_v18 }
  0x16   : > { %v8762_v19 = vpack.c.bf16 %v399_v17, %v398_v16  ;;  %7717 = vmatprep.mubr.msk.bf16.mxu1 %vm513_vm0, %v428_v14  ;;  %v8772_v24 = vpack.c.bf16 %v401_v22, %v400_v21  ;;  %v454_v26 = vld [vmem:[%s8745_s11 + $0x38] sm:$0xff]  ;;  %v455_v27 = vld [vmem:[%s8745_s11 + $0x40] sm:$0xff]  ;;  %v456_v30 = vld [vmem:[%s8745_s11 + $0x48] sm:$0xff] }
  0x17   : > { %7682 = vmatmul.mubr.msk.bf16.vlgmr.msra.gmra.mxu0 %vm513_vm0, %v8756_v15  ;;  %v402_v28 = vld [vmem:[%s8745_s11 + $0x37] sm:$0xff]  ;;  %v403_v29 = vld [vmem:[%s8745_s11 + $0x3f] sm:$0xff]  ;;  %v404_v32 = vld [vmem:[%s8745_s11 + $0x47] sm:$0xff]  ;;  %v8791_v34 = vpack.c.bf16 %v455_v27, %v454_v26 }
  0x18   : > { %7718 = vmatmul.mubr.msk.bf16.vlgmr.msra.gmra.mxu1 %vm513_vm0, %v8762_v19  ;;  %7750 = vmatpush3.bf16.msra.mxu0 %v8545_v4  ;;  %v457_v31 = vld [vmem:[%s8745_s11 + $0x50] sm:$0xff]  ;;  %v8793_v35 = vpack.c.bf16 %v403_v29, %v402_v28  ;;  %v458_v38 = vld [vmem:[%s8745_s11 + $0x58] sm:$0xff]  ;;  %v459_v39 = vld [vmem:[%s8745_s11 + $0x60] sm:$0xff] }
  0x19   : > { %7685 = vmatprep.mubr.msk.bf16.mxu0 %vm513_vm0, %v8770_v23  ;;  %7721 = vmatprep.mubr.msk.bf16.mxu1 %vm513_vm0, %v8772_v24  ;;  %v405_v33 = vld [vmem:[%s8745_s11 + $0x4f] sm:$0xff]  ;;  %v8795_v36 = vpack.c.bf16 %v457_v31, %v456_v30  ;;  %v406_v40 = vld [vmem:[%s8745_s11 + $0x57] sm:$0xff]  ;;  %v407_v41 = vld [vmem:[%s8745_s11 + $0x5f] sm:$0xff]  ;;  %v8815_v46 = vpack.c.bf16 %v459_v39, %v458_v38 }
  0x1a   : > { %7751 = vmatprep.subr.bf16.mxu0 %v8546_v13  ;;  %7786 = vmatpush3.bf16.msra.mxu1 %v8547_v5  ;;  %v8797_v37 = vpack.c.bf16 %v405_v33, %v404_v32  ;;  %v460_v42 = vld [vmem:[%s8745_s11 + $0x68] sm:$0xff]  ;;  %v461_v43 = vld [vmem:[%s8745_s11 + $0x70] sm:$0xff]  ;;  %v8817_v47 = vpack.c.bf16 %v407_v41, %v406_v40  ;;  %v462_v50 = vld [vmem:[%s8745_s11 + $0x78] sm:$0xff] }
  0x1b   : > { %7787 = vmatprep.subr.bf16.mxu1 %v8548_v25  ;;  %v408_v44 = vld [vmem:[%s8745_s11 + $0x67] sm:$0xff]  ;;  %v409_v45 = vld [vmem:[%s8745_s11 + $0x6f] sm:$0xff]  ;;  %v8819_v48 = vpack.c.bf16 %v461_v43, %v460_v42  ;;  %v410_v52 = vld [vmem:[%s8745_s11 + $0x77] sm:$0xff] }
  0x1c   : > { %7752 = vmatpush3.bf16.msra.mxu0 %v8546_v13  ;;  %v8821_v49 = vpack.c.bf16 %v409_v45, %v408_v44  ;;  %v463_v51 = vld [vmem:[%s8745_s11 + $0x80] sm:$0xff]  ;;  %v464_v54 = vld [vmem:[%s8745_s11 + $0x88] sm:$0xff]  ;;  %v465_v55 = vld [vmem:[%s8745_s11 + $0x90] sm:$0xff] }
  0x1d   : > { %v411_v53 = vld [vmem:[%s8745_s11 + $0x7f] sm:$0xff]  ;;  %v412_v57 = vld [vmem:[%s8745_s11 + $0x87] sm:$0xff]  ;;  %v413_v58 = vld [vmem:[%s8745_s11 + $0x8f] sm:$0xff]  ;;  %v8844_v59 = vpack.c.bf16 %v463_v51, %v462_v50  ;;  %7821 = vmatprep.subr.bf16.mxu0 %v8840_v56  ;;  %v8849_v61 = vpack.c.bf16 %v465_v55, %v464_v54 }
  0x1e   : > { %7788 = vmatpush3.bf16.msra.mxu1 %v8548_v25  ;;  %v8847_v60 = vpack.c.bf16 %v411_v53, %v410_v52  ;;  %v8851_v62 = vpack.c.bf16 %v413_v58, %v412_v57  ;;  %v466_v63 = vld [vmem:[%s8745_s11 + $0x98] sm:$0xff]  ;;  %v467_v0 = vld [vmem:[%s8745_s11 + $0xa0] sm:$0xff]  ;;  %v468_v3 = vld [vmem:[%s8745_s11 + $0xa8] sm:$0xff] }
  0x1f   : > { %7686 = vmatmul.mubr.msk.bf16.gmra.mxu0 %vm513_vm0, %v8791_v34  ;;  %v414_v1 = vld [vmem:[%s8745_s11 + $0x97] sm:$0xff]  ;;  %v415_v2 = vld [vmem:[%s8745_s11 + $0x9f] sm:$0xff]  ;;  %v416_v5 = vld [vmem:[%s8745_s11 + $0xa7] sm:$0xff]  ;;  %v8869_v7 = vpack.c.bf16 %v467_v0, %v466_v63 }
  0x20   : > { %7722 = vmatmul.mubr.msk.bf16.gmra.mxu1 %vm513_vm0, %v8793_v35  ;;  %7689 = vmatprep.mubr.msk.bf16.mxu0 %vm513_vm0, %v8795_v36  ;;  %v469_v4 = vld [vmem:[%s8745_s11 + $0xb0] sm:$0xff]  ;;  %v8871_v8 = vpack.c.bf16 %v415_v2, %v414_v1  ;;  %v470_v11 = vld [vmem:[%s8745_s11 + $0xb8] sm:$0xff]  ;;  %v471_v12 = vld [vmem:[%s8745_s11 + $0xc0] sm:$0xff] }
  0x21   : > { %7725 = vmatprep.mubr.msk.bf16.mxu1 %vm513_vm0, %v8797_v37  ;;  %v417_v6 = vld [vmem:[%s8745_s11 + $0xaf] sm:$0xff]  ;;  %v8873_v9 = vpack.c.bf16 %v469_v4, %v468_v3  ;;  %v8882_v13 = vld [vmem:[%s11437_s2 + $0x58] sm:$0xff]   ;;  %v420_v20 = vld [vmem:[%s8745_s11 + $0xc7] sm:$0xff]  ;;  %v8899_v22 = vpack.c.bf16 %v471_v12, %v470_v11 }
  0x22   : > { %v8875_v10 = vpack.c.bf16 %v417_v6, %v416_v5  ;;  %v418_v14 = vld [vmem:[%s8745_s11 + $0xb7] sm:$0xff]  ;;  %v419_v16 = vld [vmem:[%s8745_s11 + $0xbf] sm:$0xff]  ;;  %v472_v17 = vld [vmem:[%s8745_s11 + $0xc8] sm:$0xff]  ;;  %7857 = vmatprep.subr.bf16.mxu1 %v8882_v13 }
  0x23   : > { %v473_v18 = vld [vmem:[%s8745_s11 + $0xd0] sm:$0xff]  ;;  %v8901_v25 = vpack.c.bf16 %v419_v16, %v418_v14  ;;  %v474_v28 = vld [vmem:[%s8745_s11 + $0xd8] sm:$0xff]  ;;  %v475_v29 = vld [vmem:[%s8745_s11 + $0xe0] sm:$0xff] }
  0x24   : > { %v421_v21 = vld [vmem:[%s8745_s11 + $0xcf] sm:$0xff]  ;;  %v8903_v26 = vpack.c.bf16 %v473_v18, %v472_v17  ;;  %v422_v30 = vld [vmem:[%s8745_s11 + $0xd7] sm:$0xff]  ;;  %v423_v31 = vld [vmem:[%s8745_s11 + $0xdf] sm:$0xff]  ;;  %v8923_v40 = vpack.c.bf16 %v475_v29, %v474_v28 }
  0x25   : > { %v8905_v27 = vpack.c.bf16 %v421_v21, %v420_v20  ;;  %v476_v32 = vld [vmem:[%s8745_s11 + $0xe8] sm:$0xff]  ;;  %v477_v33 = vld [vmem:[%s8745_s11 + $0xf0] sm:$0xff]  ;;  %v8925_v41 = vpack.c.bf16 %v423_v31, %v422_v30  ;;  %v478_v44 = vld [vmem:[%s8745_s11 + $0xf8] sm:$0xff] }
  0x26   : > { %v424_v38 = vld [vmem:[%s8745_s11 + $0xe7] sm:$0xff]  ;;  %v425_v39 = vld [vmem:[%s8745_s11 + $0xef] sm:$0xff]  ;;  %v8927_v42 = vpack.c.bf16 %v477_v33, %v476_v32  ;;  %v426_v50 = vld [vmem:[%s8745_s11 + $0xf7] sm:$0xff] }
  0x27   : > { %7690 = vmatmul.mubr.msk.bf16.gmra.mxu0 %vm513_vm0, %v8815_v46  ;;  %v8929_v43 = vpack.c.bf16 %v425_v39, %v424_v38  ;;  %v479_v45 = vld [vmem:[%s8745_s11 + $0x100] sm:$0xff]  ;;  %v944_v52 = vld [vmem:[%s8745_s11 + $0x9] sm:$0xff]  ;;  %v945_v53 = vld [vmem:[%s8745_s11 + $0x11] sm:$0xff] }
  0x28   : > { %7726 = vmatmul.mubr.msk.bf16.gmra.mxu1 %vm513_vm0, %v8817_v47  ;;  %7693 = vmatprep.mubr.msk.bf16.mxu0 %vm513_vm0, %v8819_v48  ;;  %v427_v51 = vld [vmem:[%s8745_s11 + $0xff] sm:$0xff]  ;;  %v8945_v54 = vpack.c.bf16 %v479_v45, %v478_v44  ;;  %v976_v57 = vpack.c.bf16 %v945_v53, %v944_v52  ;;  %v948_v0 = vld [vmem:[%s8745_s11 + $0x29] sm:$0xff]  ;;  %v949_v1 = vld [vmem:[%s8745_s11 + $0x31] sm:$0xff] }
  0x29   : > { %7729 = vmatprep.mubr.msk.bf16.mxu1 %vm513_vm0, %v8821_v49  ;;  %v8947_v55 = vpack.c.bf16 %v427_v51, %v426_v50  ;;  %v946_v58 = vld [vmem:[%s8745_s11 + $0x19] sm:$0xff]  ;;  %v947_v63 = vld [vmem:[%s8745_s11 + $0x21] sm:$0xff]  ;;  %v8965_v4 = vpack.c.bf16 %v949_v1, %v948_v0  ;;  %v8552_v5 = vld [vmem:[%s11437_s2 + $0x50] sm:$0xff]  }
  0x2a   : > { %v8960_v2 = vpack.c.bf16 %v947_v63, %v946_v58  ;;  %v8550_v3 = vld [vmem:[%s11437_s2 + $0x40] sm:$0xff]   ;;  %v952_v12 = vld [vmem:[%s8745_s11 + $0x49] sm:$0xff]  ;;  %v8991_v16 = vld [vmem:[%s11437_s2 + $0x78] sm:$0xff]  }
  0x2b   : > { %v950_v6 = vld [vmem:[%s8745_s11 + $0x39] sm:$0xff]  ;;  %v951_v11 = vld [vmem:[%s8745_s11 + $0x41] sm:$0xff]  ;;  %v956_v21 = vld [vmem:[%s8745_s11 + $0x69] sm:$0xff] }
  0x2c   : > { %v8979_v14 = vld [vmem:[%s11437_s2 + $0x68] sm:$0xff]   ;;  %v954_v18 = vld [vmem:[%s8745_s11 + $0x59] sm:$0xff]  ;;  %v961_v33 = vld [vmem:[%s8745_s11 + $0x91] sm:$0xff] }
  0x2d   : > { %v955_v20 = vld [vmem:[%s8745_s11 + $0x61] sm:$0xff]  ;;  %v958_v30 = vld [vmem:[%s8745_s11 + $0x79] sm:$0xff]  ;;  %v960_v32 = vld [vmem:[%s8745_s11 + $0x89] sm:$0xff] }
  0x2e   : > { %v9012_v28 = vpack.c.bf16 %v955_v20, %v954_v18  ;;  %v959_v31 = vld [vmem:[%s8745_s11 + $0x81] sm:$0xff]  ;;  %v9030_v39 = vpack.c.bf16 %v961_v33, %v960_v32  ;;  %v962_v44 = vld [vmem:[%s8745_s11 + $0x99] sm:$0xff]  ;;  %v964_v50 = vld [vmem:[%s8745_s11 + $0xa9] sm:$0xff] }
  0x2f   : > { %7694 = vmatmul.mubr.msk.bf16.gmra.mxu0 %vm513_vm0, %v8844_v59  ;;  %v9028_v38 = vpack.c.bf16 %v959_v31, %v958_v30  ;;  %v963_v45 = vld [vmem:[%s8745_s11 + $0xa1] sm:$0xff]  ;;  %v965_v51 = vld [vmem:[%s8745_s11 + $0xb1] sm:$0xff]  ;;  %v968_v63 = vld [vmem:[%s8745_s11 + $0xc9] sm:$0xff] }
  0x30   : > { %7730 = vmatmul.mubr.msk.bf16.gmra.mxu1 %vm513_vm0, %v8847_v60  ;;  %7697 = vmatprep.mubr.msk.bf16.mxu0 %vm513_vm0, %v8849_v61  ;;  %v9044_v52 = vpack.c.bf16 %v963_v45, %v962_v44  ;;  %v9046_v53 = vpack.c.bf16 %v965_v51, %v964_v50  ;;  %v967_v58 = vld [vmem:[%s8745_s11 + $0xc1] sm:$0xff]  ;;  %v969_v0 = vld [vmem:[%s8745_s11 + $0xd1] sm:$0xff]  ;;  %v974_v20 = vld [vmem:[%s8745_s11 + $0xf9] sm:$0xff] }
  0x31   : > { %7733 = vmatprep.mubr.msk.bf16.mxu1 %vm513_vm0, %v8851_v62  ;;  %v1281_v30 = vld [vmem:[%s8745_s11 + $0x10f] sm:$0xff]  ;;  %v8554_v33 = vld [vmem:[%s11437_s2 + $0x60] sm:$0xff]   ;;  %v371_v45 = vld [vmem:[%s11436_s1 + $0x38] sm:$0xff] }
  0x32   : > { %v8556_v44 = vld [vmem:[%s11437_s2 + $0x70] sm:$0xff]   ;;  %v372_v50 = vld [vmem:[%s11436_s1 + $0x40] sm:$0xff]  ;;  %v373_v51 = vld [vmem:[%s11436_s1 + $0x48] sm:$0xff] }
  0x37   : > { %7698 = vmatmul.mubr.msk.bf16.gmra.mxu0 %vm513_vm0, %v8869_v7 }
  0x38   : > { %7734 = vmatmul.mubr.msk.bf16.gmra.mxu1 %vm513_vm0, %v8871_v8  ;;  %7701 = vmatprep.mubr.msk.bf16.mxu0 %vm513_vm0, %v8873_v9 }
  0x39   : > { %7737 = vmatprep.mubr.msk.bf16.mxu1 %vm513_vm0, %v8875_v10 }
  0x3f   : > { %7702 = vmatmul.mubr.msk.bf16.gmra.mxu0 %vm513_vm0, %v8899_v22 }
  0x40   : > { %7738 = vmatmul.mubr.msk.bf16.gmra.mxu1 %vm513_vm0, %v8901_v25  ;;  %7705 = vmatprep.mubr.msk.bf16.mxu0 %vm513_vm0, %v8903_v26 }
  0x41   : > { %7741 = vmatprep.mubr.msk.bf16.mxu1 %vm513_vm0, %v8905_v27 }
  0x47   : > { %7706 = vmatmul.mubr.msk.bf16.gmra.mxu0 %vm513_vm0, %v8923_v40 }
  0x48   : > { %7742 = vmatmul.mubr.msk.bf16.gmra.mxu1 %vm513_vm0, %v8925_v41  ;;  %7709 = vmatprep.mubr.msk.bf16.mxu0 %vm513_vm0, %v8927_v42 }
  0x49   : > { %7745 = vmatprep.mubr.msk.bf16.mxu1 %vm513_vm0, %v8929_v43 }
  0x4f   : > { %7710 = vmatmul.mubr.msk.bf16.gmra.mxu0 %vm513_vm0, %v8945_v54 }
  0x50   : > { %7746 = vmatmul.mubr.msk.bf16.gmra.mxu1 %vm513_vm0, %v8947_v55  ;;  %7753 = vmatprep.mubr.msk.bf16.mxu0 %vm513_vm0, %v976_v57  ;;  %v966_v57 = vld [vmem:[%s8745_s11 + $0xb9] sm:$0xff] }
  0x51   : > { %7789 = vmatprep.mubr.msk.bf16.mxu1 %vm513_vm0, %v8762_v19  ;;  %v953_v19 = vld [vmem:[%s8745_s11 + $0x51] sm:$0xff]  ;;  %v9060_v1 = vpack.c.bf16 %v967_v58, %v966_v57  ;;  %v376_v57 = vld [vmem:[%s11436_s1 + $0x60] sm:$0xff]  ;;  %v377_v58 = vld [vmem:[%s11436_s1 + $0x68] sm:$0xff] }
  0x52   : > { %v8996_v17 = vpack.c.bf16 %v953_v19, %v952_v12  ;;  %v973_v12 = vld [vmem:[%s8745_s11 + $0xf1] sm:$0xff] }
  0x57   : > { %7754 = vmatmul.mubr.msk.bf16.vlgmr.msra.gmra.mxu0 %vm513_vm0, %v8960_v2 }
  0x58   : > { %7822 = vmatpush3.bf16.msra.mxu0 %v8840_v56  ;;  %7790 = vmatmul.mubr.msk.bf16.vlgmr.msra.gmra.mxu1 %vm513_vm0, %v8772_v24  ;;  %v8994_v56 = vpack.c.bf16 %v951_v11, %v950_v6  ;;  %v971_v6 = vld [vmem:[%s8745_s11 + $0xe1] sm:$0xff]  ;;  %v972_v11 = vld [vmem:[%s8745_s11 + $0xe9] sm:$0xff] }
  0x59   : > { %7757 = vmatprep.mubr.msk.bf16.mxu0 %vm513_vm0, %v8965_v4  ;;  %7793 = vmatprep.mubr.msk.bf16.mxu1 %vm513_vm0, %v8793_v35  ;;  %v9078_v18 = vpack.c.bf16 %v973_v12, %v972_v11  ;;  %v1893_v11 = vld [vmem:[%s8745_s11 + $0x111] sm:$0xff] }
  0x5a   : > { %7823 = vmatprep.subr.bf16.mxu0 %v8550_v3  ;;  %7858 = vmatpush3.bf16.msra.mxu1 %v8882_v13  ;;  %v957_v13 = vld [vmem:[%s8745_s11 + $0x71] sm:$0xff] }
  0x5b   : > { %7859 = vmatprep.subr.bf16.mxu1 %v8552_v5  ;;  %v9014_v29 = vpack.c.bf16 %v957_v13, %v956_v21  ;;  %v975_v21 = vld [vmem:[%s8745_s11 + $0x101] sm:$0xff] }
  0x5c   : > { %7824 = vmatpush3.bf16.msra.mxu0 %v8550_v3  ;;  %v9062_v3 = vpack.c.bf16 %v969_v0, %v968_v63  ;;  %v1280_v13 = vld [vmem:[%s8745_s11 + $0x107] sm:$0xff]  ;;  %v9092_v31 = vpack.c.bf16 %v975_v21, %v974_v20  ;;  %v378_v63 = vld [vmem:[%s11436_s1 + $0x70] sm:$0xff]  ;;  %v383_v21 = vld [vmem:[%s11436_s1 + $0x98] sm:$0xff] }
  0x5d   : > { %7893 = vmatprep.subr.bf16.mxu0 %v8979_v14  ;;  %v9094_v32 = vpack.c.bf16 %v1281_v30, %v1280_v13  ;;  %v1586_v0 = vld [vmem:[%s8745_s11 + $0x108] sm:$0xff]  ;;  %v382_v20 = vld [vmem:[%s11436_s1 + $0x90] sm:$0xff]  ;;  %v384_v13 = vld [vmem:[%s11436_s1 + $0xa0] sm:$0xff] }
  0x5e   : > { %7860 = vmatpush3.bf16.msra.mxu1 %v8552_v5  ;;  %v970_v5 = vld [vmem:[%s8745_s11 + $0xd9] sm:$0xff]  ;;  %v385_v30 = vld [vmem:[%s11436_s1 + $0xa8] sm:$0xff] }
  0x5f   : > { %7758 = vmatmul.mubr.msk.bf16.gmra.mxu0 %vm513_vm0, %v8994_v56  ;;  %7929 = vmatprep.subr.bf16.mxu1 %v8991_v16  ;;  %v9076_v19 = vpack.c.bf16 %v971_v6, %v970_v5  ;;  %v380_v5 = vld [vmem:[%s11436_s1 + $0x80] sm:$0xff]  ;;  %v1892_v6 = vld [vmem:[%s8745_s11 + $0x109] sm:$0xff] }
  0x60   : > { %7794 = vmatmul.mubr.msk.bf16.gmra.mxu1 %vm513_vm0, %v8797_v37  ;;  %7761 = vmatprep.mubr.msk.bf16.mxu0 %vm513_vm0, %v8996_v17 }
  0x61   : > { %7797 = vmatprep.mubr.msk.bf16.mxu1 %vm513_vm0, %v8817_v47 }
  0x67   : > { %7762 = vmatmul.mubr.msk.bf16.gmra.mxu0 %vm513_vm0, %v9012_v28 }
  0x68   : > { %7798 = vmatmul.mubr.msk.bf16.gmra.mxu1 %vm513_vm0, %v8821_v49  ;;  %7765 = vmatprep.mubr.msk.bf16.mxu0 %vm513_vm0, %v9014_v29 }
  0x69   : > { %7801 = vmatprep.mubr.msk.bf16.mxu1 %vm513_vm0, %v8847_v60 }
  0x6f   : > { %7766 = vmatmul.mubr.msk.bf16.gmra.mxu0 %vm513_vm0, %v9028_v38 }
  0x70   : > { %7802 = vmatmul.mubr.msk.bf16.gmra.mxu1 %vm513_vm0, %v8851_v62  ;;  %7769 = vmatprep.mubr.msk.bf16.mxu0 %vm513_vm0, %v9030_v39 }
  0x71   : > { %7805 = vmatprep.mubr.msk.bf16.mxu1 %vm513_vm0, %v8871_v8 }
  0x77   : > { %7770 = vmatmul.mubr.msk.bf16.gmra.mxu0 %vm513_vm0, %v9044_v52 }
  0x78   : > { %7806 = vmatmul.mubr.msk.bf16.gmra.mxu1 %vm513_vm0, %v8875_v10  ;;  %7773 = vmatprep.mubr.msk.bf16.mxu0 %vm513_vm0, %v9046_v53 }
  0x79   : > { %7809 = vmatprep.mubr.msk.bf16.mxu1 %vm513_vm0, %v8901_v25 }
  0x7f   : > { %7774 = vmatmul.mubr.msk.bf16.gmra.mxu0 %vm513_vm0, %v9060_v1 }
  0x80   : > { %7810 = vmatmul.mubr.msk.bf16.gmra.mxu1 %vm513_vm0, %v8905_v27  ;;  %7777 = vmatprep.mubr.msk.bf16.mxu0 %vm513_vm0, %v9062_v3 }
  0x81   : > { %7813 = vmatprep.mubr.msk.bf16.mxu1 %vm513_vm0, %v8925_v41 }
  0x87   : > { %7778 = vmatmul.mubr.msk.bf16.gmra.mxu0 %vm513_vm0, %v9076_v19 }
  0x88   : > { %7814 = vmatmul.mubr.msk.bf16.gmra.mxu1 %vm513_vm0, %v8929_v43  ;;  %7781 = vmatprep.mubr.msk.bf16.mxu0 %vm513_vm0, %v9078_v18 }
  0x89   : > { %7817 = vmatprep.mubr.msk.bf16.mxu1 %vm513_vm0, %v8947_v55 }
  0x8f   : > { %7782 = vmatmul.mubr.msk.bf16.gmra.mxu0 %vm513_vm0, %v9092_v31 }
  0x90   : > { %7818 = vmatmul.mubr.msk.bf16.gmra.mxu1 %vm513_vm0, %v9094_v32  ;;  %7825 = vmatprep.mubr.msk.bf16.mxu0 %vm513_vm0, %v8756_v15  ;;  %v9122_v15 = vld [vmem:[%s11437_s2 + $0x88] sm:$0xff]  }
  0x91   : > { %7861 = vmatprep.mubr.msk.bf16.mxu1 %vm513_vm0, %v8960_v2  ;;  %v8656_v2 = vmov 0  }
  0x92   : > { %8539 = vset.pattern.permute.xlu0 %v8656_v2  ;;  %8540 = vset.pattern.permute.xlu1 %v8656_v2  ;;  %v388_v2 = vld [vmem:[%s11436_s1 + $0xc0] sm:$0xff] }
  0x97   : > { %7826 = vmatmul.mubr.msk.bf16.vlgmr.msra.gmra.mxu0 %vm513_vm0, %v8770_v23 }
  0x98   : > { %7894 = vmatpush3.bf16.msra.mxu0 %v8979_v14  ;;  %7862 = vmatmul.mubr.msk.bf16.vlgmr.msra.gmra.mxu1 %vm513_vm0, %v8965_v4  ;;  %v364_v14 = vld [vmem:[%s11436_s1] sm:$0xff] }
  0x99   : > { %7829 = vmatprep.mubr.msk.bf16.mxu0 %vm513_vm0, %v8791_v34  ;;  %7865 = vmatprep.mubr.msk.bf16.mxu1 %vm513_vm0, %v8994_v56 }
  0x9a   : > { %7895 = vmatprep.subr.bf16.mxu0 %v8554_v33  ;;  %7930 = vmatpush3.bf16.msra.mxu1 %v8991_v16  ;;  %v366_v16 = vld [vmem:[%s11436_s1 + $0x10] sm:$0xff] }
  0x9b   : > { %7931 = vmatprep.subr.bf16.mxu1 %v8556_v44  ;;  %3159 = vperm.xlu0 %8539, %v364_v14  }
  0x9c   : > { %7896 = vmatpush3.bf16.msra.mxu0 %v8554_v33  ;;  %3169 = vperm.xlu1 %8540, %v366_v16  }
  0x9d   : > { %7965 = vmatprep.subr.bf16.mxu0 %v9122_v15 }
  0x9e   : > { %7932 = vmatpush3.bf16.msra.mxu1 %v8556_v44  ;;  %v387_v44 = vld [vmem:[%s11436_s1 + $0xb8] sm:$0xff] }
  0x9f   : > { %7830 = vmatmul.mubr.msk.bf16.gmra.mxu0 %vm513_vm0, %v8795_v36 }
  0xa0   : > { %7866 = vmatmul.mubr.msk.bf16.gmra.mxu1 %vm513_vm0, %v8996_v17  ;;  %7833 = vmatprep.mubr.msk.bf16.mxu0 %vm513_vm0, %v8815_v46  ;;  %v365_v17 = vld [vmem:[%s11436_s1 + $0x8] sm:$0xff] }
  0xa1   : > { %7869 = vmatprep.mubr.msk.bf16.mxu1 %vm513_vm0, %v9012_v28  ;;  %3164 = vperm.xlu0 %8539, %v365_v17   ;;  %v367_v28 = vld [vmem:[%s11436_s1 + $0x18] sm:$0xff] }
  0xa2   : > { %3174 = vperm.xlu1 %8540, %v367_v28   ;;  %v389_v28 = vld [vmem:[%s11436_s1 + $0xc8] sm:$0xff] }
  0xa7   : > { %7834 = vmatmul.mubr.msk.bf16.gmra.mxu0 %vm513_vm0, %v8819_v48 }
  0xa8   : > { %7870 = vmatmul.mubr.msk.bf16.gmra.mxu1 %vm513_vm0, %v9014_v29  ;;  %7837 = vmatprep.mubr.msk.bf16.mxu0 %vm513_vm0, %v8844_v59  ;;  %v368_v29 = vld [vmem:[%s11436_s1 + $0x20] sm:$0xff] }
  0xa9   : > { %7873 = vmatprep.mubr.msk.bf16.mxu1 %vm513_vm0, %v9028_v38  ;;  %3179 = vperm.xlu0 %8539, %v368_v29   ;;  %v369_v38 = vld [vmem:[%s11436_s1 + $0x28] sm:$0xff] }
  0xaa   : > { %3184 = vperm.xlu1 %8540, %v369_v38  }
  0xae   : > { %3194 = vperm.xlu1 %8540, %v371_v45  }
  0xaf   : > { %7838 = vmatmul.mubr.msk.bf16.gmra.mxu0 %vm513_vm0, %v8849_v61 }
  0xb0   : > { %7874 = vmatmul.mubr.msk.bf16.gmra.mxu1 %vm513_vm0, %v9030_v39  ;;  %7841 = vmatprep.mubr.msk.bf16.mxu0 %vm513_vm0, %v8869_v7  ;;  %v370_v39 = vld [vmem:[%s11436_s1 + $0x30] sm:$0xff] }
  0xb1   : > { %7877 = vmatprep.mubr.msk.bf16.mxu1 %vm513_vm0, %v9044_v52  ;;  %3189 = vperm.xlu0 %8539, %v370_v39   ;;  %v374_v52 = vld [vmem:[%s11436_s1 + $0x50] sm:$0xff] }
  0xb2   : > { %3204 = vperm.xlu1 %8540, %v373_v51   ;;  %v391_v51 = vld [vmem:[%s11436_s1 + $0xd8] sm:$0xff] }
  0xb5   : > { %3199 = vperm.xlu0 %8539, %v372_v50  }
  0xb7   : > { %7842 = vmatmul.mubr.msk.bf16.gmra.mxu0 %vm513_vm0, %v8873_v9 }
  0xb8   : > { %7878 = vmatmul.mubr.msk.bf16.gmra.mxu1 %vm513_vm0, %v9046_v53  ;;  %7845 = vmatprep.mubr.msk.bf16.mxu0 %vm513_vm0, %v8899_v22  ;;  %v375_v53 = vld [vmem:[%s11436_s1 + $0x58] sm:$0xff] }
  0xb9   : > { %7881 = vmatprep.mubr.msk.bf16.mxu1 %vm513_vm0, %v9060_v1  ;;  %3209 = vperm.xlu0 %8539, %v374_v52   ;;  %v1587_v1 = vld [vmem:[%s8745_s11 + $0x110] sm:$0xff]  ;;  %v392_v52 = vld [vmem:[%s11436_s1 + $0xe0] sm:$0xff] }
  0xba   : > { %3214 = vperm.xlu1 %8540, %v375_v53   ;;  %v9229_v12 = vpack.c.bf16 %v1587_v1, %v1586_v0  ;;  %v394_v0 = vld [vmem:[%s11436_s1 + $0xf0] sm:$0xff] }
  0xbd   : > { %3219 = vperm.xlu0 %8539, %v376_v57  }
  0xbe   : > { %3224 = vperm.xlu1 %8540, %v377_v58  }
  0xbf   : > { %7846 = vmatmul.mubr.msk.bf16.gmra.mxu0 %vm513_vm0, %v8903_v26 }
  0xc0   : > { %7882 = vmatmul.mubr.msk.bf16.gmra.mxu1 %vm513_vm0, %v9062_v3  ;;  %7849 = vmatprep.mubr.msk.bf16.mxu0 %vm513_vm0, %v8923_v40  ;;  %v379_v3 = vld [vmem:[%s11436_s1 + $0x78] sm:$0xff] }
  0xc1   : > { %7885 = vmatprep.mubr.msk.bf16.mxu1 %vm513_vm0, %v9076_v19  ;;  %3229 = vperm.xlu0 %8539, %v378_v63   ;;  %v9231_v19 = vpack.c.bf16 %v1893_v11, %v1892_v6  ;;  %v393_v63 = vld [vmem:[%s11436_s1 + $0xe8] sm:$0xff] }
  0xc2   : > { %3234 = vperm.xlu1 %8540, %v379_v3  }
  0xc5   : > { %3239 = vperm.xlu0 %8539, %v380_v5  }
  0xc7   : > { %7850 = vmatmul.mubr.msk.bf16.gmra.mxu0 %vm513_vm0, %v8927_v42 }
  0xc8   : > { %7886 = vmatmul.mubr.msk.bf16.gmra.mxu1 %vm513_vm0, %v9078_v18  ;;  %7853 = vmatprep.mubr.msk.bf16.mxu0 %vm513_vm0, %v8945_v54  ;;  %v381_v18 = vld [vmem:[%s11436_s1 + $0x88] sm:$0xff] }
  0xc9   : > { %7889 = vmatprep.mubr.msk.bf16.mxu1 %vm513_vm0, %v9092_v31  ;;  %3244 = vperm.xlu1 %8540, %v381_v18   ;;  %v8558_v31 = vld [vmem:[%s11437_s2 + $0x80] sm:$0xff]   ;;  %v395_v18 = vld [vmem:[%s11436_s1 + $0xf8] sm:$0xff] }
  0xca   : > { %3249 = vperm.xlu0 %8539, %v382_v20  }
  0xcd   : > { %3254 = vperm.xlu1 %8540, %v383_v21  }
  0xce   : > { %3259 = vperm.xlu0 %8539, %v384_v13  }
  0xcf   : > { %7854 = vmatmul.mubr.msk.bf16.gmra.mxu0 %vm513_vm0, %v9229_v12 }
  0xd0   : > { %7890 = vmatmul.mubr.msk.bf16.gmra.mxu1 %vm513_vm0, %v9231_v19  ;;  %7897 = vmatprep.mubr.msk.bf16.mxu0 %vm513_vm0, %v8772_v24  ;;  %v386_v24 = vld [vmem:[%s11436_s1 + $0xb0] sm:$0xff] }
  0xd1   : > { %7933 = vmatprep.mubr.msk.bf16.mxu1 %vm513_vm0, %v8770_v23  ;;  %3264 = vperm.xlu1 %8540, %v385_v30  }
  0xd2   : > { %3269 = vperm.xlu0 %8539, %v386_v24  }
  0xd5   : > { %3274 = vperm.xlu1 %8540, %v387_v44  }
  0xd6   : > { %3279 = vperm.xlu0 %8539, %v388_v2  }
  0xd7   : > { %v7683_v33 = vpop.f32.mrf.mxu0  ;;  %7898 = vmatmul.mubr.msk.bf16.vlgmr.msra.gmra.mxu0 %vm513_vm0, %v8793_v35 }
  0xd8   : > { %v7719_v23 = vpop.f32.mrf.mxu1  ;;  %7966 = vmatpush3.bf16.msra.mxu0 %v9122_v15  ;;  %7934 = vmatmul.mubr.msk.bf16.vlgmr.msra.gmra.mxu1 %vm513_vm0, %v8791_v34 }
  0xd9   : > { %v9273_v14 = vadd.f32 %v7719_v23, %v7683_v33  ;;  %v596_v16 = vpop.f32.mrf.mxu0  ;;  %7901 = vmatprep.mubr.msk.bf16.mxu0 %vm513_vm0, %v8797_v37  ;;  %7937 = vmatprep.mubr.msk.bf16.mxu1 %vm513_vm0, %v8795_v36  ;;  %v390_v37 = vld [vmem:[%s11436_s1 + $0xd0] sm:$0xff] }
  0xda   : > { %v817_v35 = vpop.f32.mrf.mxu1  ;;  %7967 = vmatprep.subr.bf16.mxu0 %v8558_v31  ;;  %3284 = vperm.xlu1 %8540, %v389_v28  }
  0xdb   : > { %v9279_v34 = vadd.f32 %v817_v35, %v596_v16  ;;  %v7684_v15 = vpop.f32.mrf.mxu0  ;;  %3289 = vperm.xlu0 %8539, %v390_v37  }
  0xdc   : > { %v7720_v17 = vpop.f32.mrf.mxu1  ;;  %7968 = vmatpush3.bf16.msra.mxu0 %v8558_v31 }
  0xdd   : > { %v9287_v29 = vadd.f32 %v7720_v17, %v7684_v15  ;;  %v599_v36 = vpop.f32.mrf.mxu0 }
  0xde   : > { %v820_v38 = vpop.f32.mrf.mxu1  ;;  %3294 = vperm.xlu1 %8540, %v391_v51  }
  0xdf   : > { %v9289_v39 = vadd.f32 %v820_v38, %v599_v36  ;;  %v7687_v45 = vpop.f32.mrf.mxu0  ;;  %7902 = vmatmul.mubr.msk.bf16.gmra.mxu0 %vm513_vm0, %v8817_v47  ;;  %3299 = vperm.xlu0 %8539, %v392_v52  }
  0xe0   : > { %v7723_v50 = vpop.f32.mrf.mxu1  ;;  %7938 = vmatmul.mubr.msk.bf16.gmra.mxu1 %vm513_vm0, %v8815_v46  ;;  %7905 = vmatprep.mubr.msk.bf16.mxu0 %vm513_vm0, %v8821_v49 }
  0xe1   : > { %v9303_v53 = vadd.f32 %v7723_v50, %v7687_v45  ;;  %v612_v57 = vpop.f32.mrf.mxu0  ;;  %7941 = vmatprep.mubr.msk.bf16.mxu1 %vm513_vm0, %v8819_v48 }
  0xe2   : > { %v833_v47 = vpop.f32.mrf.mxu1  ;;  %3304 = vperm.xlu1 %8540, %v393_v63  }
  0xe3   : > { %v9307_v46 = vadd.f32 %v833_v47, %v612_v57  ;;  %v7688_v58 = vpop.f32.mrf.mxu0  ;;  %3309 = vperm.xlu0 %8539, %v394_v0  }
  0xe4   : > { %v7724_v49 = vpop.f32.mrf.mxu1 }
  0xe5   : > { %v9315_v1 = vadd.f32 %v7724_v49, %v7688_v58  ;;  %v615_v3 = vpop.f32.mrf.mxu0 }
  0xe6   : > { %v836_v5 = vpop.f32.mrf.mxu1  ;;  %3314 = vperm.xlu1 %8540, %v395_v18  }
  0xe7   : > { %v9317_v48 = vadd.f32 %v836_v5, %v615_v3  ;;  %v7691_v6 = vpop.f32.mrf.mxu0  ;;  %7906 = vmatmul.mubr.msk.bf16.gmra.mxu0 %vm513_vm0, %v8847_v60 }
  0xe8   : > { %v7727_v11 = vpop.f32.mrf.mxu1  ;;  %7942 = vmatmul.mubr.msk.bf16.gmra.mxu1 %vm513_vm0, %v8844_v59  ;;  %7909 = vmatprep.mubr.msk.bf16.mxu0 %vm513_vm0, %v8851_v62 }
  0xe9   : > { %v9328_v20 = vadd.f32 %v7727_v11, %v7691_v6  ;;  %v628_v21 = vpop.f32.mrf.mxu0  ;;  %7945 = vmatprep.mubr.msk.bf16.mxu1 %vm513_vm0, %v8849_v61  ;;  %v2199_v11 = vld [vmem:[%s8745_s11 + $0x11f] sm:$0xff] }
  0xea   : > { %v849_v13 = vpop.f32.mrf.mxu1 }
  0xeb   : > { %v9332_v60 = vadd.f32 %v849_v13, %v628_v21  ;;  %v7692_v30 = vpop.f32.mrf.mxu0  ;;  %v2504_v13 = vld [vmem:[%s8745_s11 + $0x118] sm:$0xff] }
  0xec   : > { %v7728_v24 = vpop.f32.mrf.mxu1 }
  0xed   : > { %v9334_v59 = vadd.f32 %v7728_v24, %v7692_v30  ;;  %v631_v31 = vpop.f32.mrf.mxu0  ;;  %v2505_v30 = vld [vmem:[%s8745_s11 + $0x120] sm:$0xff] }
  0xee   : > { %v852_v62 = vpop.f32.mrf.mxu1 }
  0xef   : > { %v9336_v33 = vadd.f32 %v852_v62, %v631_v31  ;;  %v7695_v23 = vpop.f32.mrf.mxu0  ;;  %7910 = vmatmul.mubr.msk.bf16.gmra.mxu0 %vm513_vm0, %v8871_v8 }
  0xf0   : > { %v7731_v44 = vpop.f32.mrf.mxu1  ;;  %7946 = vmatmul.mubr.msk.bf16.gmra.mxu1 %vm513_vm0, %v8869_v7  ;;  %7913 = vmatprep.mubr.msk.bf16.mxu0 %vm513_vm0, %v8875_v10 }
  0xf1   : > { %v9344_v61 = vadd.f32 %v7731_v44, %v7695_v23  ;;  %v644_v2 = vpop.f32.mrf.mxu0  ;;  %7949 = vmatprep.mubr.msk.bf16.mxu1 %vm513_vm0, %v8873_v9  ;;  %v2521_v23 = vpack.c.bf16 %v2505_v30, %v2504_v13 }
  0xf2   : > { %v865_v16 = vpop.f32.mrf.mxu1 }
  0xf3   : > { %v9348_v35 = vadd.f32 %v865_v16, %v644_v2  ;;  %v7696_v15 = vpop.f32.mrf.mxu0 }
  0xf4   : > { %v7732_v17 = vpop.f32.mrf.mxu1 }
  0xf5   : > { %v9350_v28 = vadd.f32 %v7732_v17, %v7696_v15  ;;  %v647_v8 = vpop.f32.mrf.mxu0 }
  0xf6   : > { %v868_v37 = vpop.f32.mrf.mxu1 }
  0xf7   : > { %v9352_v36 = vadd.f32 %v868_v37, %v647_v8  ;;  %v7699_v7 = vpop.f32.mrf.mxu0  ;;  %7914 = vmatmul.mubr.msk.bf16.gmra.mxu0 %vm513_vm0, %v8901_v25  ;;  %v2784_v8 = vld [vmem:[%s8745_s11 + $0x49] sm:$0xff]  ;;  %v2785_v37 = vld [vmem:[%s8745_s11 + $0x51] sm:$0xff] }
  0xf8   : > { %v7735_v10 = vpop.f32.mrf.mxu1  ;;  %7950 = vmatmul.mubr.msk.bf16.gmra.mxu1 %vm513_vm0, %v8899_v22  ;;  %7917 = vmatprep.mubr.msk.bf16.mxu0 %vm513_vm0, %v8905_v27 }
  0xf9   : > { %v9360_v9 = vadd.f32 %v7735_v10, %v7699_v7  ;;  %v660_v38 = vpop.f32.mrf.mxu0  ;;  %7953 = vmatprep.mubr.msk.bf16.mxu1 %vm513_vm0, %v8903_v26 }
  0xfa   : > { %v881_v45 = vpop.f32.mrf.mxu1 }
  0xfb   : > { %v9364_v50 = vadd.f32 %v881_v45, %v660_v38  ;;  %v7700_v51 = vpop.f32.mrf.mxu0 }
  0xfc   : > { %v7736_v52 = vpop.f32.mrf.mxu1 }
  0xfd   : > { %v9366_v57 = vadd.f32 %v7736_v52, %v7700_v51  ;;  %v9368_v25 = vpop.f32.mrf.mxu0  ;;  %v2814_v51 = vpack.c.bf16 %v2785_v37, %v2784_v8  ;;  %v2790_v8 = vld [vmem:[%s8745_s11 + $0x79] sm:$0xff]  ;;  %v2791_v37 = vld [vmem:[%s8745_s11 + $0x81] sm:$0xff] }
  0xfe   : > { %v9370_v47 = vpop.f32.mrf.mxu1 }
  0xff   : > { %v7703_v22 = vpop.f32.mrf.mxu0  ;;  %7918 = vmatmul.mubr.msk.bf16.gmra.mxu0 %vm513_vm0, %v8925_v41 }
 0x100   : > { %v7739_v27 = vpop.f32.mrf.mxu1  ;;  %7954 = vmatmul.mubr.msk.bf16.gmra.mxu1 %vm513_vm0, %v8923_v40  ;;  %7921 = vmatprep.mubr.msk.bf16.mxu0 %vm513_vm0, %v8929_v43 }
 0x101   : > { %v9378_v26 = vadd.f32 %v7739_v27, %v7703_v22  ;;  %v676_v58 = vpop.f32.mrf.mxu0  ;;  %7957 = vmatprep.mubr.msk.bf16.mxu1 %vm513_vm0, %v8927_v42  ;;  %v2198_v42 = vld [vmem:[%s8745_s11 + $0x117] sm:$0xff] }
 0x102   : > { %v897_v49 = vpop.f32.mrf.mxu1 }
 0x103   : > { %v9382_v63 = vadd.f32 %v897_v49, %v676_v58  ;;  %v7704_v41 = vpop.f32.mrf.mxu0 }
 0x104   : > { %v7740_v0 = vpop.f32.mrf.mxu1 }
 0x105   : > { %v9384_v3 = vadd.f32 %v7740_v0, %v7704_v41  ;;  %v9386_v40 = vpop.f32.mrf.mxu0  ;;  %v2786_v41 = vld [vmem:[%s8745_s11 + $0x59] sm:$0xff]  ;;  %v2787_v0 = vld [vmem:[%s8745_s11 + $0x61] sm:$0xff] }
 0x106   : > { %v9388_v43 = vpop.f32.mrf.mxu1 }
 0x107   : > { %v7707_v5 = vpop.f32.mrf.mxu0  ;;  %7922 = vmatmul.mubr.msk.bf16.gmra.mxu0 %vm513_vm0, %v8947_v55 }
 0x108   : > { %v7743_v6 = vpop.f32.mrf.mxu1  ;;  %7958 = vmatmul.mubr.msk.bf16.gmra.mxu1 %vm513_vm0, %v8945_v54  ;;  %7925 = vmatprep.mubr.msk.bf16.mxu0 %vm513_vm0, %v9094_v32  ;;  %v2215_v54 = vpack.c.bf16 %v2199_v11, %v2198_v42  ;;  %v2789_v42 = vld [vmem:[%s8745_s11 + $0x71] sm:$0xff] }
 0x109   : > { %v9398_v18 = vadd.f32 %v7743_v6, %v7707_v5  ;;  %v692_v21 = vpop.f32.mrf.mxu0  ;;  %7961 = vmatprep.mubr.msk.bf16.mxu1 %vm513_vm0, %v9229_v12  ;;  %v2788_v6 = vld [vmem:[%s8745_s11 + $0x69] sm:$0xff] }
 0x10a   : > { %v913_v24 = vpop.f32.mrf.mxu1 }
 0x10b   : > { %v9404_v55 = vadd.f32 %v913_v24, %v692_v21  ;;  %v7708_v31 = vpop.f32.mrf.mxu0  ;;  %v2815_v24 = vpack.c.bf16 %v2787_v0, %v2786_v41 }
 0x10c   : > { %v7744_v62 = vpop.f32.mrf.mxu1 }
 0x10d   : > { %v9406_v32 = vadd.f32 %v7744_v62, %v7708_v31  ;;  %v9408_v44 = vpop.f32.mrf.mxu0 }
 0x10e   : > { %v9410_v2 = vpop.f32.mrf.mxu1 }
 0x10f   : > { %v7711_v16 = vpop.f32.mrf.mxu0  ;;  %7926 = vmatmul.mubr.msk.bf16.gmra.mxu0 %vm513_vm0, %v2215_v54  ;;  %v2816_v54 = vpack.c.bf16 %v2789_v42, %v2788_v6 }
 0x110   : > { %v7747_v12 = vpop.f32.mrf.mxu1  ;;  %7962 = vmatmul.mubr.msk.bf16.gmra.mxu1 %vm513_vm0, %v2521_v23  ;;  %7969 = vmatprep.mubr.msk.bf16.mxu0 %vm513_vm0, %v8965_v4 }
 0x111   : > { %v9416_v15 = vadd.f32 %v7747_v12, %v7711_v16  ;;  %v708_v17 = vpop.f32.mrf.mxu0 }
 0x112   : > { %v929_v7 = vpop.f32.mrf.mxu1 }
 0x113   : > { %v9420_v10 = vadd.f32 %v929_v7, %v708_v17  ;;  %v7712_v38 = vpop.f32.mrf.mxu0 }
 0x114   : > { %v7748_v45 = vpop.f32.mrf.mxu1 }
 0x115   : > { %v9422_v52 = vadd.f32 %v7748_v45, %v7712_v38  ;;  %v9424_v22 = vpop.f32.mrf.mxu0  ;;  %v2792_v38 = vld [vmem:[%s8745_s11 + $0x89] sm:$0xff]  ;;  %v2793_v45 = vld [vmem:[%s8745_s11 + $0x91] sm:$0xff] }
 0x116   : > { %v9426_v4 = vpop.f32.mrf.mxu1 }
 0x117   : > { %v7755_v27 = vpop.f32.mrf.mxu0  ;;  %7970 = vmatmul.mubr.msk.bf16.vlgmr.msra.gmra.mxu0 %vm513_vm0, %v8994_v56 }
 0x118   : > { %v1220_v58 = vadd.f32 %v7755_v27, %v9273_v14  ;;  %v7791_v49 = vpop.f32.mrf.mxu1  ;;  %7973 = vmatprep.mubr.msk.bf16.mxu0 %vm513_vm0, %v2814_v51 }
 0x119   : > { %v1091_v5 = vpop.f32.mrf.mxu0 }
 0x11a   : > { %v1218_v11 = vadd.f32 %v1091_v5, %v9279_v34  ;;  %v9437_v21 = vadd.f32 %v7791_v49, %v1220_v58  ;;  %v1397_v13 = vpop.f32.mrf.mxu1  ;;  %v2817_v49 = vpack.c.bf16 %v2791_v37, %v2790_v8  ;;  %v2818_v5 = vpack.c.bf16 %v2793_v45, %v2792_v38 }
 0x11b   : > { %v7756_v30 = vpop.f32.mrf.mxu0 }
 0x11c   : > { %v1221_v56 = vadd.f32 %v7756_v30, %v9287_v29  ;;  %v9440_v14 = vadd.f32 %v1397_v13, %v1218_v11  ;;  %v7792_v31 = vpop.f32.mrf.mxu1 }
 0x11d   : > { %v1094_v62 = vpop.f32.mrf.mxu0 }
 0x11e   : > { %v9443_v23 = vadd.f32 %v1094_v62, %v9289_v39  ;;  %v9445_v34 = vadd.f32 %v7792_v31, %v1221_v56  ;;  %v9447_v16 = vpop.f32.mrf.mxu1  ;;  %v2795_v56 = vld [vmem:[%s8745_s11 + $0xa1] sm:$0xff]  ;;  %v2797_v62 = vld [vmem:[%s8745_s11 + $0xb1] sm:$0xff] }
 0x11f   : > { %v7759_v12 = vpop.f32.mrf.mxu0  ;;  %7974 = vmatmul.mubr.msk.bf16.gmra.mxu0 %vm513_vm0, %v2815_v24  ;;  %v2794_v24 = vld [vmem:[%s8745_s11 + $0x99] sm:$0xff] }
 0x120   : > { %v1224_v17 = vadd.f32 %v7759_v12, %v9303_v53  ;;  %v7795_v29 = vpop.f32.mrf.mxu1  ;;  %7977 = vmatprep.mubr.msk.bf16.mxu0 %vm513_vm0, %v2816_v54  ;;  %v2796_v54 = vld [vmem:[%s8745_s11 + $0xa9] sm:$0xff]  ;;  %v2819_v8 = vpack.c.bf16 %v2795_v56, %v2794_v24 }
 0x121   : > { %v1107_v7 = vpop.f32.mrf.mxu0  ;;  %v2820_v38 = vpack.c.bf16 %v2797_v62, %v2796_v54 }
 0x122   : > { %v1222_v39 = vadd.f32 %v1107_v7, %v9307_v46  ;;  %v9457_v51 = vadd.f32 %v7795_v29, %v1224_v17  ;;  %v1413_v27 = vpop.f32.mrf.mxu1 }
 0x123   : > { %v7760_v58 = vpop.f32.mrf.mxu0 }
 0x124   : > { %v1225_v41 = vadd.f32 %v7760_v58, %v9315_v1  ;;  %v9460_v53 = vadd.f32 %v1413_v27, %v1222_v39  ;;  %v7796_v0 = vpop.f32.mrf.mxu1 }
 0x125   : > { %v1110_v6 = vpop.f32.mrf.mxu0 }
 0x126   : > { %v9463_v42 = vadd.f32 %v1110_v6, %v9317_v48  ;;  %v9465_v46 = vadd.f32 %v7796_v0, %v1225_v41  ;;  %v9467_v11 = vpop.f32.mrf.mxu1  ;;  %v2798_v41 = vld [vmem:[%s8745_s11 + $0xb9] sm:$0xff]  ;;  %v2799_v0 = vld [vmem:[%s8745_s11 + $0xc1] sm:$0xff]  ;;  %v2800_v6 = vld [vmem:[%s8745_s11 + $0xc9] sm:$0xff] }
 0x127   : > { %v7763_v13 = vpop.f32.mrf.mxu0  ;;  %7978 = vmatmul.mubr.msk.bf16.gmra.mxu0 %vm513_vm0, %v2817_v49 }
 0x128   : > { %v1228_v30 = vadd.f32 %v7763_v13, %v9328_v20  ;;  %v7799_v1 = vpop.f32.mrf.mxu1  ;;  %7981 = vmatprep.mubr.msk.bf16.mxu0 %vm513_vm0, %v2818_v5  ;;  %v8559_v5 = vld [vmem:[%s11439_s4 + $0x78] sm:$0xff]  }
 0x129   : > { %v1123_v31 = vpop.f32.mrf.mxu0  ;;  %v2801_v13 = vld [vmem:[%s8745_s11 + $0xd1] sm:$0xff]  ;;  %8001 = vmatprep.subr.bf16.mxu1 %v8559_v5 }
 0x12a   : > { %v1226_v48 = vadd.f32 %v1123_v31, %v9332_v60  ;;  %v9477_v12 = vadd.f32 %v7799_v1, %v1228_v30  ;;  %v1429_v17 = vpop.f32.mrf.mxu1  ;;  %8002 = vmatpush3.bf16.msra.mxu1 %v8559_v5 }
 0x12b   : > { %v7764_v29 = vpop.f32.mrf.mxu0 }
 0x12c   : > { %v1229_v37 = vadd.f32 %v7764_v29, %v9334_v59  ;;  %v9480_v20 = vadd.f32 %v1429_v17, %v1226_v48  ;;  %v7800_v7 = vpop.f32.mrf.mxu1  ;;  %v2822_v48 = vpack.c.bf16 %v2801_v13, %v2800_v6 }
 0x12d   : > { %v1126_v45 = vpop.f32.mrf.mxu0 }
 0x12e   : > { %v9483_v39 = vadd.f32 %v1126_v45, %v9336_v33  ;;  %v9485_v60 = vadd.f32 %v7800_v7, %v1229_v37  ;;  %v9487_v27 = vpop.f32.mrf.mxu1  ;;  %v2803_v45 = vld [vmem:[%s8745_s11 + $0xe1] sm:$0xff] }
 0x12f   : > { %v7767_v58 = vpop.f32.mrf.mxu0  ;;  %7982 = vmatmul.mubr.msk.bf16.gmra.mxu0 %vm513_vm0, %v2819_v8 }
 0x130   : > { %v1232_v49 = vadd.f32 %v7767_v58, %v9344_v61  ;;  %v7803_v59 = vpop.f32.mrf.mxu1  ;;  %7985 = vmatprep.mubr.msk.bf16.mxu0 %vm513_vm0, %v2820_v38  ;;  %v2821_v61 = vpack.c.bf16 %v2799_v0, %v2798_v41  ;;  %v2802_v38 = vld [vmem:[%s8745_s11 + $0xd9] sm:$0xff]  ;;  %v8560_v58 = vld [vmem:[%s11439_s4 + $0x70] sm:$0xff]  }
 0x131   : > { %v1139_v33 = vpop.f32.mrf.mxu0  ;;  %8003 = vmatprep.subr.bf16.mxu1 %v8560_v58 }
 0x132   : > { %v1230_v30 = vadd.f32 %v1139_v33, %v9348_v35  ;;  %v9500_v1 = vadd.f32 %v7803_v59, %v1232_v49  ;;  %v1445_v24 = vpop.f32.mrf.mxu1  ;;  %v2804_v49 = vld [vmem:[%s8745_s11 + $0xe9] sm:$0xff]  ;;  %v2805_v59 = vld [vmem:[%s8745_s11 + $0xf1] sm:$0xff]  ;;  %v2823_v33 = vpack.c.bf16 %v2803_v45, %v2802_v38  ;;  %8004 = vmatpush3.bf16.msra.mxu1 %v8560_v58 }
 0x133   : > { %v7768_v56 = vpop.f32.mrf.mxu0 }
 0x134   : > { %v1233_v31 = vadd.f32 %v7768_v56, %v9350_v28  ;;  %v9503_v54 = vadd.f32 %v1445_v24, %v1230_v30  ;;  %v7804_v62 = vpop.f32.mrf.mxu1  ;;  %v2824_v24 = vpack.c.bf16 %v2805_v59, %v2804_v49 }
 0x135   : > { %v1142_v17 = vpop.f32.mrf.mxu0 }
 0x136   : > { %v9506_v35 = vadd.f32 %v1142_v17, %v9352_v36  ;;  %v9508_v29 = vadd.f32 %v7804_v62, %v1233_v31  ;;  %v9510_v8 = vpop.f32.mrf.mxu1  ;;  %v2806_v17 = vld [vmem:[%s8745_s11 + $0xf9] sm:$0xff] }
 0x137   : > { %v7771_v37 = vpop.f32.mrf.mxu0  ;;  %7986 = vmatmul.mubr.msk.bf16.gmra.mxu0 %vm513_vm0, %v2821_v61 }
 0x138   : > { %v1236_v7 = vadd.f32 %v7771_v37, %v9360_v9  ;;  %v7807_v28 = vpop.f32.mrf.mxu1  ;;  %7989 = vmatprep.mubr.msk.bf16.mxu0 %vm513_vm0, %v2822_v48  ;;  %v8561_v37 = vld [vmem:[%s11439_s4 + $0x68] sm:$0xff]  }
 0x139   : > { %v1155_v36 = vpop.f32.mrf.mxu0  ;;  %8005 = vmatprep.subr.bf16.mxu1 %v8561_v37 }
 0x13a   : > { %v1234_v41 = vadd.f32 %v1155_v36, %v9364_v50  ;;  %v9523_v0 = vadd.f32 %v7807_v28, %v1236_v7  ;;  %v1461_v5 = vpop.f32.mrf.mxu1  ;;  %8006 = vmatpush3.bf16.msra.mxu1 %v8561_v37 }
 0x13b   : > { %v7772_v9 = vpop.f32.mrf.mxu0 }
 0x13c   : > { %v1237_v6 = vadd.f32 %v7772_v9, %v9366_v57  ;;  %v9526_v13 = vadd.f32 %v1461_v5, %v1234_v41  ;;  %v7808_v30 = vpop.f32.mrf.mxu1  ;;  %v2807_v57 = vld [vmem:[%s8745_s11 + $0x101] sm:$0xff] }
 0x13d   : > { %v9528_v56 = vpop.f32.mrf.mxu0 }
 0x13e   : > { %v9530_v61 = vadd.f32 %v7808_v30, %v1237_v6  ;;  %v9532_v50 = vpop.f32.mrf.mxu1  ;;  %v2810_v30 = vld [vmem:[%s8745_s11 + $0x119] sm:$0xff] }
 0x13f   : > { %v7775_v31 = vpop.f32.mrf.mxu0  ;;  %7990 = vmatmul.mubr.msk.bf16.gmra.mxu0 %vm513_vm0, %v2823_v33 }
 0x140   : > { %v1240_v62 = vadd.f32 %v7775_v31, %v9378_v26  ;;  %v7811_v48 = vpop.f32.mrf.mxu1  ;;  %7993 = vmatprep.mubr.msk.bf16.mxu0 %vm513_vm0, %v2824_v24  ;;  %v2825_v26 = vpack.c.bf16 %v2807_v57, %v2806_v17  ;;  %v8562_v24 = vld [vmem:[%s11439_s4 + $0x60] sm:$0xff]  }
 0x141   : > { %v1171_v7 = vpop.f32.mrf.mxu0  ;;  %8007 = vmatprep.subr.bf16.mxu1 %v8562_v24 }
 0x142   : > { %v1238_v28 = vadd.f32 %v1171_v7, %v9382_v63  ;;  %v9543_v38 = vadd.f32 %v7811_v48, %v1240_v62  ;;  %v1477_v45 = vpop.f32.mrf.mxu1  ;;  %8008 = vmatpush3.bf16.msra.mxu1 %v8562_v24 }
 0x143   : > { %v7776_v58 = vpop.f32.mrf.mxu0 }
 0x144   : > { %v1241_v36 = vadd.f32 %v7776_v58, %v9384_v3  ;;  %v9546_v49 = vadd.f32 %v1477_v45, %v1238_v28  ;;  %v7812_v59 = vpop.f32.mrf.mxu1  ;;  %v2811_v3 = vld [vmem:[%s8745_s11 + $0x121] sm:$0xff]  ;;  %s11366_s11 = scalar_lea.vmem %s11445_s10, %s6834_s20 }
 0x145   : > { %v9548_v41 = vpop.f32.mrf.mxu0  ;;  %v2827_v37 = vpack.c.bf16 %v2811_v3, %v2810_v30 }
 0x146   : > { %v9550_v5 = vadd.f32 %v7812_v59, %v1241_v36  ;;  %v9552_v9 = vpop.f32.mrf.mxu1 }
 0x147   : > { %v7779_v63 = vpop.f32.mrf.mxu0  ;;  %7994 = vmatmul.mubr.msk.bf16.gmra.mxu0 %vm513_vm0, %v2825_v26 }
 0x148   : > { %v1244_v33 = vadd.f32 %v7779_v63, %v9398_v18  ;;  %v7815_v6 = vpop.f32.mrf.mxu1  ;;  %7997 = vmatprep.mubr.msk.bf16.mxu0 %vm513_vm0, %v9231_v19 }
 0x149   : > { %v1187_v31 = vpop.f32.mrf.mxu0 }
 0x14a   : > { %v1242_v62 = vadd.f32 %v1187_v31, %v9404_v55  ;;  %v9564_v48 = vadd.f32 %v7815_v6, %v1244_v33  ;;  %v1493_v17 = vpop.f32.mrf.mxu1  ;;  %v8564_v55 = vld [vmem:[%s11439_s4 + $0x38] sm:$0xff]  }
 0x14b   : > { %v7780_v57 = vpop.f32.mrf.mxu0  ;;  %8049 = vmatprep.subr.bf16.mxu0 %v8564_v55 }
 0x14c   : > { %v1245_v18 = vadd.f32 %v7780_v57, %v9406_v32  ;;  %v9567_v7 = vadd.f32 %v1493_v17, %v1242_v62  ;;  %v7816_v19 = vpop.f32.mrf.mxu1  ;;  %v8563_v32 = vld [vmem:[%s11439_s4 + $0x58] sm:$0xff]   ;;  %8050 = vmatpush3.bf16.msra.mxu0 %v8564_v55 }
 0x14d   : > { %v9569_v28 = vpop.f32.mrf.mxu0  ;;  %8009 = vmatprep.subr.bf16.mxu1 %v8563_v32 }
 0x14e   : > { %v9571_v45 = vadd.f32 %v7816_v19, %v1245_v18  ;;  %v9573_v58 = vpop.f32.mrf.mxu1  ;;  %8010 = vmatpush3.bf16.msra.mxu1 %v8563_v32  ;;  %v8567_v18 = vld [vmem:[%s11439_s4 + $0x28] sm:$0xff]   ;;  %v8566_v32 = vld [vmem:[%s11439_s4 + $0x50] sm:$0xff]  }
 0x14f   : > { %v7783_v26 = vpop.f32.mrf.mxu0  ;;  %7998 = vmatmul.mubr.msk.bf16.gmra.mxu0 %vm513_vm0, %v2827_v37  ;;  %8011 = vmatprep.subr.bf16.mxu1 %v8566_v32 }
 0x150   : > { %v1248_v36 = vadd.f32 %v7783_v26, %v9416_v15  ;;  %v7819_v59 = vpop.f32.mrf.mxu1  ;;  %v8565_v15 = vld [vmem:[%s11439_s4 + $0x30] sm:$0xff]  }
 0x151   : > { %v1203_v63 = vpop.f32.mrf.mxu0  ;;  %8051 = vmatprep.subr.bf16.mxu0 %v8565_v15 }
 0x152   : > { %v1246_v33 = vadd.f32 %v1203_v63, %v9420_v10  ;;  %v9584_v6 = vadd.f32 %v7819_v59, %v1248_v36  ;;  %v1509_v30 = vpop.f32.mrf.mxu1  ;;  %8052 = vmatpush3.bf16.msra.mxu0 %v8565_v15  ;;  %8012 = vmatpush3.bf16.msra.mxu1 %v8566_v32  ;;  %v8657_v15 = vmov 0.0  }
 0x153   : > { %v7784_v3 = vpop.f32.mrf.mxu0  ;;  %8053 = vmatprep.subr.bf16.mxu0 %v8567_v18  ;;  %3349 = vst [vmem:[#allocation2] sm:$0xff] %v8657_v15  ;;  %3350 = vst [vmem:[#allocation2 + $0x8] sm:$0xff] %v8657_v15 }
 0x154   : > { %v1249_v24 = vadd.f32 %v7784_v3, %v9422_v52  ;;  %v9590_v31 = vadd.f32 %v1509_v30, %v1246_v33  ;;  %v7820_v62 = vpop.f32.mrf.mxu1  ;;  %3351 = vst [vmem:[#allocation2 + $0x10] sm:$0xff] %v8657_v15  ;;  %3384 = vst [vmem:[#allocation2 + $0x118] sm:$0xff] %v8657_v15 }
 0x155   : > { %v9592_v17 = vpop.f32.mrf.mxu0  ;;  %3385 = vst [vmem:[#allocation2 + $0x120] sm:$0xff] %v8657_v15  ;;  %3386 = vst [vmem:[#allocation2 + $0x128] sm:$0xff] %v8657_v15 }
 0x156   : > { %v9594_v10 = vadd.f32 %v7820_v62, %v1249_v24  ;;  %v9596_v57 = vpop.f32.mrf.mxu1  ;;  %8054 = vmatpush3.bf16.msra.mxu0 %v8567_v18  ;;  %v8570_v24 = vld [vmem:[%s11439_s4 + $0x18] sm:$0xff]  }
 0x157   : > { %v7827_v37 = vpop.f32.mrf.mxu0 }
 0x158   : > { %v9602_v19 = vadd.f32 %v7827_v37, %v9437_v21  ;;  %v9604_v52 = vpop.f32.mrf.mxu1  ;;  %v8568_v21 = vld [vmem:[%s11439_s4 + $0x20] sm:$0xff]  }
 0x159   : > { %v1703_v26 = vpop.f32.mrf.mxu0  ;;  %8055 = vmatprep.subr.bf16.mxu0 %v8568_v21 }
 0x15a   : > { %v9607_v55 = vadd.f32 %v1703_v26, %v9440_v14  ;;  %v9609_v36 = vpop.f32.mrf.mxu1  ;;  %8056 = vmatpush3.bf16.msra.mxu0 %v8568_v21  ;;  %v8571_v21 = vld [vmem:[%s11439_s4 + $0x10] sm:$0xff]  }
 0x15b   : > { %v7828_v59 = vpop.f32.mrf.mxu0  ;;  %8057 = vmatprep.subr.bf16.mxu0 %v8570_v24 }
 0x15c   : > { %v9618_v63 = vadd.f32 %v7828_v59, %v9445_v34  ;;  %v9620_v33 = vpop.f32.mrf.mxu1  ;;  %v8569_v34 = vld [vmem:[%s11439_s4 + $0x48] sm:$0xff]  }
 0x15d   : > { %v9622_v30 = vpop.f32.mrf.mxu0  ;;  %8013 = vmatprep.subr.bf16.mxu1 %v8569_v34 }
 0x15e   : > { %v9624_v14 = vpop.f32.mrf.mxu1  ;;  %8014 = vmatpush3.bf16.msra.mxu1 %v8569_v34  ;;  %8058 = vmatpush3.bf16.msra.mxu0 %v8570_v24 }
 0x15f   : > { %v7831_v3 = vpop.f32.mrf.mxu0  ;;  %8059 = vmatprep.subr.bf16.mxu0 %v8571_v21 }
 0x160   : > { %v9633_v62 = vadd.f32 %v7831_v3, %v9457_v51  ;;  %v9635_v37 = vpop.f32.mrf.mxu1  ;;  %v8572_v51 = vld [vmem:[%s11439_s4 + $0x40] sm:$0xff]  }
 0x161   : > { %v1719_v18 = vpop.f32.mrf.mxu0  ;;  %8015 = vmatprep.subr.bf16.mxu1 %v8572_v51 }
 0x162   : > { %v9638_v26 = vadd.f32 %v1719_v18, %v9460_v53  ;;  %v9640_v59 = vpop.f32.mrf.mxu1  ;;  %8060 = vmatpush3.bf16.msra.mxu0 %v8571_v21  ;;  %8016 = vmatpush3.bf16.msra.mxu1 %v8572_v51  ;;  %v8573_v18 = vld [vmem:[%s11439_s4 + $0x8] sm:$0xff]   ;;  %v8574_v51 = vld [vmem:[%s11439_s4] sm:$0xff]  }
 0x163   : > { %11481 = vst [vmem:[#allocation4_spill] sm:$0xff] %v9640_v59  ;;  %v7832_v32 = vpop.f32.mrf.mxu0  ;;  %8061 = vmatprep.subr.bf16.mxu0 %v8573_v18 }
 0x164   : > { %11480 = vst [vmem:[#allocation3_spill] sm:$0xff] %v9638_v26  ;;  %v9649_v3 = vadd.f32 %v7832_v32, %v9465_v46  ;;  %v9651_v15 = vpop.f32.mrf.mxu1  ;;  %v8658_v32 = vmov 0.0|0.0  }
 0x165   : > { %11483 = vst [vmem:[#allocation6_spill] sm:$0xff] %v9651_v15  ;;  %v9653_v53 = vpop.f32.mrf.mxu0  ;;  %8017 = vmatprep.mubr.bf16.mxu1 %v8658_v32  ;;  %v3419_v32 = vld [vmem:[#allocation2 + $0x7] sm:$0xff] }
 0x166   : > { %11482 = vst [vmem:[#allocation5_spill] sm:$0xff] %v9649_v3  ;;  %v9655_v34 = vpop.f32.mrf.mxu1  ;;  %8062 = vmatpush3.bf16.msra.mxu0 %v8573_v18 }
 0x167   : > { %11484 = vst [vmem:[#allocation7_spill] sm:$0xff] %v9655_v34  ;;  %v7835_v24 = vpop.f32.mrf.mxu0  ;;  %8063 = vmatprep.subr.bf16.mxu0 %v8574_v51 }
 0x168   : > { %v9661_v59 = vadd.f32 %v7835_v24, %v9477_v12  ;;  %v9663_v46 = vpop.f32.mrf.mxu1 }
 0x169   : > { %11486 = vst [vmem:[#allocation9_spill] sm:$0xff] %v9663_v46  ;;  %v1735_v15 = vpop.f32.mrf.mxu0 }
 0x16a   : > { %11485 = vst [vmem:[#allocation8_spill] sm:$0xff] %v9661_v59  ;;  %v9666_v3 = vadd.f32 %v1735_v15, %v9480_v20  ;;  %v9668_v34 = vpop.f32.mrf.mxu1  ;;  %v3420_v59 = vld [vmem:[#allocation2 + $0xf] sm:$0xff]  ;;  %8064 = vmatpush3.bf16.msra.mxu0 %v8574_v51 }
 0x16b   : > { %11488 = vst [vmem:[#allocation11_spill] sm:$0xff] %v9668_v34  ;;  %v7836_v21 = vpop.f32.mrf.mxu0  ;;  %v3451_v15 = vpack.c.bf16 %v3420_v59, %v3419_v32 }
 0x16c   : > { %11487 = vst [vmem:[#allocation10_spill] sm:$0xff] %v9666_v3  ;;  %v9674_v12 = vadd.f32 %v7836_v21, %v9485_v60  ;;  %v9676_v24 = vpop.f32.mrf.mxu1 }
 0x16d   : > { %11490 = vst [vmem:[#allocation13_spill] sm:$0xff] %v9676_v24  ;;  %v9678_v46 = vpop.f32.mrf.mxu0  ;;  %8065 = vmatprep.mubr.bf16.mxu0 %v3451_v15 }
 0x16e   : > { %11489 = vst [vmem:[#allocation12_spill] sm:$0xff] %v9674_v12  ;;  %v9680_v20 = vpop.f32.mrf.mxu1 }
 0x16f   : > { %11491 = vst [vmem:[#allocation14_spill] sm:$0xff] %v9680_v20  ;;  %v7839_v18 = vpop.f32.mrf.mxu0 }
 0x170   : > { %v9683_v34 = vadd.f32 %v7839_v18, %v9500_v1  ;;  %v9685_v3 = vpop.f32.mrf.mxu1 }
 0x171   : > { %v1751_v60 = vpop.f32.mrf.mxu0 }
 0x172   : > { %v9688_v21 = vadd.f32 %v1751_v60, %v9503_v54  ;;  %v9690_v24 = vpop.f32.mrf.mxu1  ;;  %v9709_v54 = vld [vmem:[%s11439_s4 + $0xb8] sm:$0xff]  }
 0x173   : > { %v7840_v12 = vpop.f32.mrf.mxu0  ;;  %11496 = vst [vmem:[#allocation19_spill] sm:$0xff] %v9709_v54  ;;  %8097 = vmatprep.subr.bf16.mxu1 %v9709_v54 }
 0x174   : > { %v9693_v26 = vadd.f32 %v7840_v12, %v9508_v29  ;;  %v9695_v20 = vpop.f32.mrf.mxu1 }
 0x175   : > { %11492 = vst [vmem:[#allocation15_spill] sm:$0xff] %v9695_v20  ;;  %v9697_v59 = vpop.f32.mrf.mxu0 }
 0x176   : > { %v9699_v51 = vpop.f32.mrf.mxu1 }
 0x177   : > { %11493 = vst [vmem:[#allocation16_spill] sm:$0xff] %v9699_v51  ;;  %v7843_v1 = vpop.f32.mrf.mxu0 }
 0x178   : > { %v9702_v32 = vadd.f32 %v7843_v1, %v9523_v0  ;;  %v9704_v15 = vpop.f32.mrf.mxu1 }
 0x179   : > { %11495 = vst [vmem:[#allocation18_spill] sm:$0xff] %v9704_v15  ;;  %v1767_v18 = vpop.f32.mrf.mxu0 }
 0x17a   : > { %11494 = vst [vmem:[#allocation17_spill] sm:$0xff] %v9702_v32  ;;  %v9712_v29 = vadd.f32 %v1767_v18, %v9526_v13  ;;  %v9714_v12 = vpop.f32.mrf.mxu1 }
 0x17b   : > { %11498 = vst [vmem:[#allocation21_spill] sm:$0xff] %v9714_v12  ;;  %v7844_v60 = vpop.f32.mrf.mxu0 }
 0x17c   : > { %11497 = vst [vmem:[#allocation20_spill] sm:$0xff] %v9712_v29  ;;  %v9718_v51 = vadd.f32 %v7844_v60, %v9530_v61  ;;  %v9720_v0 = vpop.f32.mrf.mxu1 }
 0x17d   : > { %11500 = vst [vmem:[#allocation23_spill] sm:$0xff] %v9720_v0  ;;  %v9722_v1 = vpop.f32.mrf.mxu0 }
 0x17e   : > { %11499 = vst [vmem:[#allocation22_spill] sm:$0xff] %v9718_v51  ;;  %v9724_v15 = vpop.f32.mrf.mxu1 }
 0x17f   : > { %11501 = vst [vmem:[#allocation24_spill] sm:$0xff] %v9724_v15  ;;  %v7847_v32 = vpop.f32.mrf.mxu0 }
 0x180   : > { %v9727_v20 = vadd.f32 %v7847_v32, %v9543_v38  ;;  %v9729_v13 = vpop.f32.mrf.mxu1 }
 0x181   : > { %11503 = vst [vmem:[#allocation26_spill] sm:$0xff] %v9729_v13  ;;  %v1783_v18 = vpop.f32.mrf.mxu0 }
 0x182   : > { %11502 = vst [vmem:[#allocation25_spill] sm:$0xff] %v9727_v20  ;;  %v9732_v12 = vadd.f32 %v1783_v18, %v9546_v49  ;;  %v9734_v54 = vpop.f32.mrf.mxu1 }
 0x183   : > { %11505 = vst [vmem:[#allocation28_spill] sm:$0xff] %v9734_v54  ;;  %v7848_v61 = vpop.f32.mrf.mxu0 }
 0x184   : > { %11504 = vst [vmem:[#allocation27_spill] sm:$0xff] %v9732_v12  ;;  %v9737_v60 = vadd.f32 %v7848_v61, %v9550_v5  ;;  %v9739_v0 = vpop.f32.mrf.mxu1 }
 0x185   : > { %11507 = vst [vmem:[#allocation30_spill] sm:$0xff] %v9739_v0  ;;  %v9741_v51 = vpop.f32.mrf.mxu0 }
 0x186   : > { %11506 = vst [vmem:[#allocation29_spill] sm:$0xff] %v9737_v60  ;;  %11508 = vst [vmem:[#allocation31_spill] sm:$0xff] %v9741_v51  ;;  %v9743_v15 = vpop.f32.mrf.mxu1 }
 0x187   : > { %11509 = vst [vmem:[#allocation32_spill] sm:$0xff] %v9743_v15  ;;  %v7851_v38 = vpop.f32.mrf.mxu0 }
 0x188   : > { %v9746_v32 = vadd.f32 %v7851_v38, %v9564_v48  ;;  %v9748_v13 = vpop.f32.mrf.mxu1  ;;  %v9767_v38 = vld [vmem:[%s11439_s4 + $0xf8] sm:$0xff]  }
 0x189   : > { %11511 = vst [vmem:[#allocation34_spill] sm:$0xff] %v9748_v13  ;;  %v1799_v49 = vpop.f32.mrf.mxu0  ;;  %11518 = vst [vmem:[#allocation41_spill] sm:$0xff] %v9767_v38  ;;  %8145 = vmatprep.subr.bf16.mxu0 %v9767_v38 }
 0x18a   : > { %11510 = vst [vmem:[#allocation33_spill] sm:$0xff] %v9746_v32  ;;  %v9751_v18 = vadd.f32 %v1799_v49, %v9567_v7  ;;  %v9753_v54 = vpop.f32.mrf.mxu1 }
 0x18b   : > { %11513 = vst [vmem:[#allocation36_spill] sm:$0xff] %v9753_v54  ;;  %v7852_v5 = vpop.f32.mrf.mxu0 }
 0x18c   : > { %11512 = vst [vmem:[#allocation35_spill] sm:$0xff] %v9751_v18  ;;  %v9756_v61 = vadd.f32 %v7852_v5, %v9571_v45  ;;  %v9758_v0 = vpop.f32.mrf.mxu1 }
 0x18d   : > { %11515 = vst [vmem:[#allocation38_spill] sm:$0xff] %v9758_v0  ;;  %v9760_v60 = vpop.f32.mrf.mxu0 }
 0x18e   : > { %11514 = vst [vmem:[#allocation37_spill] sm:$0xff] %v9756_v61  ;;  %11516 = vst [vmem:[#allocation39_spill] sm:$0xff] %v9760_v60  ;;  %v9762_v15 = vpop.f32.mrf.mxu1 }
 0x18f   : > { %11517 = vst [vmem:[#allocation40_spill] sm:$0xff] %v9762_v15  ;;  %v7855_v48 = vpop.f32.mrf.mxu0 }
 0x190   : > { %v9770_v7 = vadd.f32 %v7855_v48, %v9584_v6  ;;  %v9772_v49 = vpop.f32.mrf.mxu1 }
 0x191   : > { %11520 = vst [vmem:[#allocation43_spill] sm:$0xff] %v9772_v49  ;;  %v1815_v54 = vpop.f32.mrf.mxu0 }
 0x192   : > { %11519 = vst [vmem:[#allocation42_spill] sm:$0xff] %v9770_v7  ;;  %v9776_v45 = vadd.f32 %v1815_v54, %v9590_v31  ;;  %v9778_v5 = vpop.f32.mrf.mxu1 }
 0x193   : > { %11522 = vst [vmem:[#allocation45_spill] sm:$0xff] %v9778_v5  ;;  %v7856_v15 = vpop.f32.mrf.mxu0 }
 0x194   : > { %11521 = vst [vmem:[#allocation44_spill] sm:$0xff] %v9776_v45  ;;  %v9781_v0 = vadd.f32 %v7856_v15, %v9594_v10  ;;  %v9783_v61 = vpop.f32.mrf.mxu1 }
 0x195   : > { %11524 = vst [vmem:[#allocation47_spill] sm:$0xff] %v9783_v61  ;;  %v9785_v60 = vpop.f32.mrf.mxu0 }
 0x196   : > { %11523 = vst [vmem:[#allocation46_spill] sm:$0xff] %v9781_v0  ;;  %11525 = vst [vmem:[#allocation48_spill] sm:$0xff] %v9785_v60  ;;  %v9787_v6 = vpop.f32.mrf.mxu1 }
 0x197   : > { %11526 = vst [vmem:[#allocation49_spill] sm:$0xff] %v9787_v6  ;;  %v9789_v48 = vpop.f32.mrf.mxu0 }
 0x198   : > { %v9791_v49 = vpop.f32.mrf.mxu1 }
 0x199   : > { %v9793_v7 = vpop.f32.mrf.mxu0 }
 0x19a   : > { %v9795_v31 = vpop.f32.mrf.mxu1 }
 0x19b   : > { %v9797_v54 = vpop.f32.mrf.mxu0 }
 0x19c   : > { %v9799_v5 = vpop.f32.mrf.mxu1 }
 0x19d   : > { %v9801_v10 = vpop.f32.mrf.mxu0 }
 0x19e   : > { %v9805_v61 = vpop.f32.mrf.mxu1 }
 0x19f   : > { %v9803_v15 = vpop.f32.mrf.mxu0 }
 0x1a0   : > { %v9811_v60 = vpop.f32.mrf.mxu1 }
 0x1a1   : > { %v9807_v0 = vpop.f32.mrf.mxu0  ;;  %11528 = vst [vmem:[#allocation51_spill] sm:$0xff] %v9811_v60 }
 0x1a2   : > { %v9817_v18 = vpop.f32.mrf.mxu1 }
 0x1a3   : > { %v9809_v6 = vpop.f32.mrf.mxu0  ;;  %11531 = vst [vmem:[#allocation54_spill] sm:$0xff] %v9817_v18 }
 0x1a4   : > { %11527 = vst [vmem:[#allocation50_spill] sm:$0xff] %v9809_v6  ;;  %v9823_v12 = vpop.f32.mrf.mxu1 }
 0x1a5   : > { %v9813_v45 = vpop.f32.mrf.mxu0  ;;  %11534 = vst [vmem:[#allocation57_spill] sm:$0xff] %v9823_v12  ;;  %v9845_v12 = vpop.permute.xlu0 %3159 }
 0x1a6   : > { %11529 = vst [vmem:[#allocation52_spill] sm:$0xff] %v9813_v45  ;;  %v9829_v29 = vpop.f32.mrf.mxu1  ;;  %11545 = vst [vmem:[#allocation68_spill] sm:$0xff] %v9845_v12 }
 0x1a7   : > { %v9815_v38 = vpop.f32.mrf.mxu0  ;;  %11537 = vst [vmem:[#allocation60_spill] sm:$0xff] %v9829_v29 }
 0x1a8   : > { %11530 = vst [vmem:[#allocation53_spill] sm:$0xff] %v9815_v38  ;;  %v9835_v45 = vpop.f32.mrf.mxu1 }
 0x1a9   : > { %v9819_v13 = vpop.f32.mrf.mxu0  ;;  %11540 = vst [vmem:[#allocation63_spill] sm:$0xff] %v9835_v45 }
 0x1aa   : > { %11532 = vst [vmem:[#allocation55_spill] sm:$0xff] %v9819_v13  ;;  %v9841_v13 = vpop.f32.mrf.mxu1 }
 0x1ab   : > { %v9821_v32 = vpop.f32.mrf.mxu0  ;;  %11543 = vst [vmem:[#allocation66_spill] sm:$0xff] %v9841_v13 }
 0x1ac   : > { %11533 = vst [vmem:[#allocation56_spill] sm:$0xff] %v9821_v32 }
 0x1ad   : > { %v9825_v51 = vpop.f32.mrf.mxu0 }
 0x1ae   : > { %11535 = vst [vmem:[#allocation58_spill] sm:$0xff] %v9825_v51 }
 0x1af   : > { %v9827_v20 = vpop.f32.mrf.mxu0 }
 0x1b0   : > { %11536 = vst [vmem:[#allocation59_spill] sm:$0xff] %v9827_v20  ;;  %v9849_v20 = vpop.f32.mrf.mxu1 }
 0x1b1   : > { %v9831_v6 = vpop.f32.mrf.mxu0  ;;  %11547 = vst [vmem:[#allocation70_spill] sm:$0xff] %v9849_v20 }
 0x1b2   : > { %11538 = vst [vmem:[#allocation61_spill] sm:$0xff] %v9831_v6  ;;  %v9853_v6 = vpop.permute.xlu1 %3169  ;;  %v9857_v45 = vpop.f32.mrf.mxu1 }
 0x1b3   : > { %v9833_v60 = vpop.f32.mrf.mxu0  ;;  %11549 = vst [vmem:[#allocation72_spill] sm:$0xff] %v9853_v6  ;;  %11551 = vst [vmem:[#allocation74_spill] sm:$0xff] %v9857_v45 }
 0x1b4   : > { %11539 = vst [vmem:[#allocation62_spill] sm:$0xff] %v9833_v60 }
 0x1b5   : > { %v9837_v38 = vpop.f32.mrf.mxu0 }
 0x1b6   : > { %11541 = vst [vmem:[#allocation64_spill] sm:$0xff] %v9837_v38  ;;  %v9859_v38 = vpop.permute.xlu0 %3164  ;;  %v9867_v12 = vpop.permute.xlu1 %3174 }
 0x1b7   : > { %v9839_v18 = vpop.f32.mrf.mxu0  ;;  %11552 = vst [vmem:[#allocation75_spill] sm:$0xff] %v9859_v38  ;;  %11556 = vst [vmem:[#allocation79_spill] sm:$0xff] %v9867_v12 }
 0x1b8   : > { %11542 = vst [vmem:[#allocation65_spill] sm:$0xff] %v9839_v18 }
 0x1b9   : > { %v9843_v32 = vpop.f32.mrf.mxu0 }
 0x1ba   : > { %11544 = vst [vmem:[#allocation67_spill] sm:$0xff] %v9843_v32  ;;  %v9865_v32 = vpop.f32.mrf.mxu1  ;;  %v9871_v20 = vpop.permute.xlu0 %3179 }
 0x1bb   : > { %v9847_v51 = vpop.f32.mrf.mxu0  ;;  %11555 = vst [vmem:[#allocation78_spill] sm:$0xff] %v9865_v32  ;;  %11558 = vst [vmem:[#allocation81_spill] sm:$0xff] %v9871_v20  ;;  %v9879_v45 = vpop.permute.xlu1 %3184 }
 0x1bc   : > { %11546 = vst [vmem:[#allocation69_spill] sm:$0xff] %v9847_v51  ;;  %v9875_v6 = vpop.f32.mrf.mxu1  ;;  %11562 = vst [vmem:[#allocation85_spill] sm:$0xff] %v9879_v45 }
 0x1bd   : > { %v9851_v29 = vpop.f32.mrf.mxu0  ;;  %11560 = vst [vmem:[#allocation83_spill] sm:$0xff] %v9875_v6  ;;  %v917_v6 = vadd.f32 %v9410_v2, %v9408_v44 }
 0x1be   : > { %11548 = vst [vmem:[#allocation71_spill] sm:$0xff] %v9851_v29 }
 0x1bf   : > { %v9855_v60 = vpop.f32.mrf.mxu0 }
 0x1c0   : > { %11550 = vst [vmem:[#allocation73_spill] sm:$0xff] %v9855_v60 }
 0x1c1   : > { %v9861_v18 = vpop.f32.mrf.mxu0 }
 0x1c2   : > { %11553 = vst [vmem:[#allocation76_spill] sm:$0xff] %v9861_v18  ;;  %v9883_v18 = vpop.f32.mrf.mxu1 }
 0x1c3   : > { %v9863_v13 = vpop.f32.mrf.mxu0  ;;  %11564 = vst [vmem:[#allocation87_spill] sm:$0xff] %v9883_v18 }
 0x1c4   : > { %11554 = vst [vmem:[#allocation77_spill] sm:$0xff] %v9863_v13  ;;  %v9885_v13 = vpop.permute.xlu0 %3189 }
 0x1c5   : > { %v9869_v51 = vpop.f32.mrf.mxu0  ;;  %11565 = vst [vmem:[#allocation88_spill] sm:$0xff] %v9885_v13 }
 0x1c6   : > { %11557 = vst [vmem:[#allocation80_spill] sm:$0xff] %v9869_v51  ;;  %v885_v51 = vadd.f32 %v9370_v47, %v9368_v25  ;;  %v2138_v25 = vadd.f32 %v9604_v52, %v9602_v19  ;;  %v9905_v47 = vpop.f32.mrf.mxu1  ;;  %v2139_v52 = vadd.f32 %v9620_v33, %v9618_v63  ;;  %v11570_v63 = vld [vmem:[#allocation3_spill] sm:$0xff]  ;;  %v11571_v33 = vld [vmem:[#allocation4_spill] sm:$0xff] }
 0x1c7   : > { %v9873_v29 = vpop.f32.mrf.mxu0 }
 0x1c8   : > { %11559 = vst [vmem:[#allocation82_spill] sm:$0xff] %v9873_v29  ;;  %v901_v29 = vadd.f32 %v9388_v43, %v9386_v40  ;;  %v1235_v45 = vadd.f32 %v9528_v56, %v885_v51  ;;  %v1529_v40 = vadd.f32 %v9467_v11, %v9463_v42  ;;  %v1243_v43 = vadd.f32 %v9569_v28, %v917_v6  ;;  %v11572_v51 = vld [vmem:[#allocation5_spill] sm:$0xff]  ;;  %v11579_v6 = vld [vmem:[#allocation11_spill] sm:$0xff] }
 0x1c9   : > { %v9877_v60 = vpop.f32.mrf.mxu0  ;;  %v1533_v56 = vadd.f32 %v9487_v27, %v9483_v39  ;;  %v1537_v42 = vadd.f32 %v9510_v8, %v9506_v35  ;;  %v9935_v39 = vpop.f32.mrf.mxu1 }
 0x1ca   : > { %11561 = vst [vmem:[#allocation84_spill] sm:$0xff] %v9877_v60  ;;  %v933_v60 = vadd.f32 %v9426_v4, %v9424_v22  ;;  %v9912_v22 = vpop.permute.xlu1 %3194  ;;  %v1835_v11 = vadd.f32 %v9653_v53, %v1529_v40  ;;  %v9938_v27 = vadd.f32 %v9573_v58, %v1243_v43  ;;  %v2445_v58 = vadd.f32 %v9797_v54, %v2139_v52 }
 0x1cb   : > { %v9881_v38 = vpop.f32.mrf.mxu0  ;;  %11567 = vst [vmem:[#allocation90_spill] sm:$0xff] %v9912_v22  ;;  %v9970_v40 = vpop.f32.mrf.mxu1 }
 0x1cc   : > { %11563 = vst [vmem:[#allocation86_spill] sm:$0xff] %v9881_v38  ;;  %v1525_v38 = vadd.f32 %v9447_v16, %v9443_v23  ;;  %v1247_v44 = vadd.f32 %v9592_v17, %v933_v60  ;;  %v2136_v23 = vadd.f32 %v9609_v36, %v9607_v55  ;;  %v2444_v16 = vadd.f32 %v9789_v48, %v2138_v25  ;;  %v11574_v60 = vld [vmem:[#allocation7_spill] sm:$0xff] }
 0x1cd   : > { %v9887_v32 = vpop.f32.mrf.mxu0  ;;  %v1541_v17 = vadd.f32 %v9532_v50, %v1235_v45  ;;  %v1839_v50 = vadd.f32 %v9678_v46, %v1533_v56  ;;  %v9981_v56 = vadd.f32 %v9685_v3, %v9683_v34  ;;  %v2751_v52 = vadd.f32 %v9799_v5, %v2445_v58  ;;  %v11585_v3 = vld [vmem:[#allocation16_spill] sm:$0xff] }
 0x1ce   : > { %11566 = vst [vmem:[#allocation89_spill] sm:$0xff] %v9887_v32  ;;  %v1239_v32 = vadd.f32 %v9548_v41, %v901_v29  ;;  %v1831_v2 = vadd.f32 %v9622_v30, %v1525_v38  ;;  %v9924_v41 = vpop.permute.xlu0 %3199  ;;  %v2442_v55 = vadd.f32 %v9793_v7, %v2136_v23  ;;  %v9941_v35 = vadd.f32 %v9596_v57, %v1247_v44  ;;  %v11573_v29 = vld [vmem:[#allocation6_spill] sm:$0xff]  ;;  %v11576_v38 = vld [vmem:[#allocation9_spill] sm:$0xff]  ;;  %v9959_v45 = vpop.permute.xlu1 %3204  ;;  %v11580_v44 = vld [vmem:[#allocation12_spill] sm:$0xff] }
 0x1cf   : > { %v9899_v18 = vpop.f32.mrf.mxu0  ;;  %11568 = vst [vmem:[#allocation91_spill] sm:$0xff] %v9924_v41  ;;  %v2140_v30 = vadd.f32 %v11571_v33, %v11570_v63  ;;  %v2750_v53 = vadd.f32 %v9791_v49, %v2444_v16  ;;  %v2143_v57 = vadd.f32 %v11573_v29, %v11572_v51  ;;  %v1843_v7 = vadd.f32 %v9697_v59, %v1537_v42  ;;  %v11578_v49 = vld [vmem:[#allocation10_spill] sm:$0xff]  ;;  %v11581_v59 = vld [vmem:[#allocation13_spill] sm:$0xff] }
 0x1d0   : > { %v9930_v19 = vadd.f32 %v9552_v9, %v1239_v32  ;;  %v2137_v8 = vadd.f32 %v9624_v14, %v1831_v2  ;;  %v2142_v9 = vadd.f32 %v9635_v37, %v9633_v62  ;;  %v2141_v32 = vadd.f32 %v11574_v60, %v1835_v11  ;;  %v11575_v14 = vld [vmem:[#allocation8_spill] sm:$0xff]  ;;  %11577 = vst [vmem:[#allocation3_spill] sm:$0xff] %v9959_v45  ;;  %v9964_v37 = vld [vmem:[%s11438_s3] ss:$0 sm:$0xff]  ;;  %v11582_v23 = vld [vmem:[#allocation14_spill] sm:$0xff] }
 0x1d1   : > { %v9914_v4 = vpop.f32.mrf.mxu0  ;;  %v2146_v46 = vadd.f32 %v11576_v38, %v11575_v14  ;;  %v2144_v48 = vadd.f32 %v11579_v6, %v11578_v49  ;;  %v2748_v54 = vadd.f32 %v9795_v31, %v2442_v55  ;;  %v9974_v2 = vadd.f32 %v11581_v59, %v11580_v44  ;;  %v11586_v51 = vld [vmem:[#allocation17_spill] sm:$0xff]  ;;  %v11587_v29 = vld [vmem:[#allocation18_spill] sm:$0xff]  ;;  %v11588_v60 = vld [vmem:[#allocation20_spill] sm:$0xff] }
 0x1d2   : > { %v2443_v25 = vadd.f32 %v9801_v10, %v2137_v8  ;;  %v9977_v16 = vadd.f32 %v11582_v23, %v1839_v50  ;;  %v2448_v42 = vadd.f32 %v9803_v15, %v2142_v9  ;;  %v9984_v11 = vpop.permute.xlu0 %3209  ;;  %v9988_v10 = vadd.f32 %v9690_v24, %v9688_v21  ;;  %v11584_v50 = vld [vmem:[#allocation15_spill] sm:$0xff]  ;;  %v10002_v21 = vpop.f32.mrf.mxu1  ;;  %v11589_v14 = vld [vmem:[#allocation21_spill] sm:$0xff]  ;;  %v11596_v23 = vld [vmem:[#allocation24_spill] sm:$0xff] }
 0x1d3   : > { %v9926_v28 = vpop.f32.mrf.mxu0  ;;  %11583 = vst [vmem:[#allocation4_spill] sm:$0xff] %v9984_v11  ;;  %v9994_v63 = vadd.f32 %v11584_v50, %v9693_v26  ;;  %v9997_v34 = vadd.f32 %v11585_v3, %v1843_v7  ;;  %v1847_v15 = vadd.f32 %v9722_v1, %v1541_v17  ;;  %v2446_v9 = vadd.f32 %v9807_v0, %v2140_v30  ;;  %v11590_v1 = vld [vmem:[#allocation51_spill] sm:$0xff]  ;;  %v11591_v0 = vld [vmem:[#allocation50_spill] sm:$0xff]  ;;  %v10015_v7 = vpop.permute.xlu1 %3214 }
 0x1d4   : > { %v2749_v24 = vadd.f32 %v9805_v61, %v2443_v25  ;;  %v10007_v26 = vadd.f32 %v11587_v29, %v11586_v51  ;;  %v10011_v38 = vadd.f32 %v11589_v14, %v11588_v60  ;;  %v2754_v17 = vadd.f32 %v11590_v1, %v2448_v42  ;;  %11592 = vst [vmem:[#allocation5_spill] sm:$0xff] %v10015_v7  ;;  %v11595_v44 = vld [vmem:[#allocation23_spill] sm:$0xff]  ;;  %v11597_v42 = vld [vmem:[#allocation54_spill] sm:$0xff]  ;;  %v10032_v3 = vpop.f32.mrf.mxu1  ;;  %v11601_v51 = vld [vmem:[#allocation25_spill] sm:$0xff] }
 0x1d5   : > { %v9945_v36 = vpop.f32.mrf.mxu0  ;;  %v2449_v30 = vadd.f32 %v11591_v0, %v2143_v57  ;;  %v11598_v57 = vld [vmem:[#allocation52_spill] sm:$0xff]  ;;  %v11604_v60 = vld [vmem:[#allocation57_spill] sm:$0xff] }
 0x1d6   : > { %11569 = vst [vmem:[#allocation92_spill] sm:$0xff] %v9945_v36  ;;  %v11605_v1 = vld [vmem:[#allocation53_spill] sm:$0xff] }
 0x1d7   : > { %v7971_v62 = vpop.f32.mrf.mxu0  ;;  %v2755_v14 = vadd.f32 %v11604_v60, %v2449_v30  ;;  %v2452_v0 = vadd.f32 %v11605_v1, %v2146_v46 }
 0x1d8   : > { %v3056_v43 = vadd.f32 %v7971_v62, %v2750_v53  ;;  %v11593_v62 = vld [vmem:[#allocation72_spill] sm:$0xff] }
 0x1d9   : > { %v2927_v31 = vpop.f32.mrf.mxu0 }
 0x1da   : > { %v3095_v55 = vadd.f32 %v9964_v37, %v3056_v43  ;;  %v3054_v8 = vadd.f32 %v2927_v31, %v2748_v54  ;;  %v11594_v43 = vld [vmem:[#allocation22_spill] sm:$0xff]  ;;  %v10026_v31 = vadd.f32 %v11596_v23, %v1847_v15 }
 0x1db   : > { %v7972_v33 = vpop.f32.mrf.mxu0  ;;  %v10023_v59 = vadd.f32 %v11595_v44, %v11594_v43  ;;  %v11602_v15 = vld [vmem:[#allocation26_spill] sm:$0xff]  ;;  %v11607_v44 = vld [vmem:[#allocation28_spill] sm:$0xff] }
 0x1dc   : > { %v3127_v5 = vmax.f32 %v3095_v55, 0.0  ;;  %v3093_v53 = vadd.f32 %v9964_v37, %v3054_v8  ;;  %v3057_v58 = vadd.f32 %v7972_v33, %v2751_v52  ;;  %v2752_v52 = vadd.f32 %v11597_v42, %v2446_v9  ;;  %v10030_v8 = vpop.permute.xlu0 %3219  ;;  %v11600_v33 = vld [vmem:[#allocation68_spill] sm:$0xff]  ;;  %v11603_v9 = vld [vmem:[#allocation31_spill] sm:$0xff]  ;;  %v11608_v42 = vld [vmem:[#allocation29_spill] sm:$0xff] }
 0x1dd   : > { %v2930_v61 = vpop.f32.mrf.mxu0  ;;  %v2447_v55 = vadd.f32 %v11598_v57, %v2141_v32  ;;  %11599 = vst [vmem:[#allocation6_spill] sm:$0xff] %v10030_v8  ;;  %v10039_v29 = vadd.f32 %v11602_v15, %v11601_v51  ;;  %v1851_v32 = vadd.f32 %v11603_v9, %v9930_v19  ;;  %v11609_v57 = vld [vmem:[#allocation30_spill] sm:$0xff]  ;;  %v11610_v19 = vld [vmem:[#allocation60_spill] sm:$0xff]  ;;  %v11611_v51 = vld [vmem:[#allocation55_spill] sm:$0xff]  ;;  %v10057_v15 = vpop.permute.xlu1 %3224 }
 0x1de   : > { %v10018_v49 = vmul.f32 %v11593_v62, %v3127_v5  ;;  %v3125_v6 = vmax.f32 %v3093_v53, 0.0  ;;  %v3096_v54 = vadd.f32 %v9964_v37, %v3057_v58  ;;  %v3055_v25 = vadd.f32 %v2930_v61, %v2749_v24  ;;  %11612 = vst [vmem:[#allocation7_spill] sm:$0xff] %v10057_v15 }
 0x1df   : > { %v7975_v50 = vpop.f32.mrf.mxu0  ;;  %v2753_v30 = vadd.f32 %v11610_v19, %v2447_v55  ;;  %v2450_v46 = vadd.f32 %v11611_v51, %v2144_v48  ;;  %v11616_v55 = vld [vmem:[#allocation56_spill] sm:$0xff] }
 0x1e0   : > { %3389 = vst [vmem:[#allocation2 + $0x28] sm:$0xff] %v10018_v49  ;;  %v3317_v24 = vmul.f32 %v11600_v33, %v3125_v6  ;;  %v3128_v5 = vmax.f32 %v3096_v54, 0.0  ;;  %v3094_v53 = vadd.f32 %v9964_v37, %v3055_v25  ;;  %v3060_v58 = vadd.f32 %v7975_v50, %v2754_v17  ;;  %v11606_v17 = vld [vmem:[#allocation27_spill] sm:$0xff] }
 0x1e1   : > { %v2943_v61 = vpop.f32.mrf.mxu0  ;;  %v10049_v23 = vadd.f32 %v11607_v44, %v11606_v17  ;;  %v10053_v50 = vadd.f32 %v11609_v57, %v11608_v42  ;;  %v11615_v44 = vld [vmem:[#allocation63_spill] sm:$0xff]  ;;  %v2453_v48 = vadd.f32 %v11616_v55, %v9974_v2  ;;  %v10069_v57 = vpop.permute.xlu0 %3229 }
 0x1e2   : > { %3387 = vst [vmem:[#allocation2 + $0x18] sm:$0xff] %v3317_v24  ;;  %v3320_v43 = vmul.f32 %v9867_v12, %v3128_v5  ;;  %v3126_v6 = vmax.f32 %v3094_v53, 0.0  ;;  %v3099_v54 = vadd.f32 %v9964_v37, %v3060_v58  ;;  %v3058_v25 = vadd.f32 %v2943_v61, %v2752_v52  ;;  %v10059_v5 = vpop.f32.mrf.mxu1  ;;  %v11613_v53 = vld [vmem:[#allocation75_spill] sm:$0xff]  ;;  %v11614_v61 = vld [vmem:[#allocation32_spill] sm:$0xff]  ;;  %11617 = vst [vmem:[#allocation8_spill] sm:$0xff] %v10069_v57  ;;  %v10102_v33 = vpop.permute.xlu1 %3234 }
 0x1e3   : > { %v7976_v9 = vpop.f32.mrf.mxu0  ;;  %v10064_v17 = vadd.f32 %v11614_v61, %v1851_v32  ;;  %v2758_v42 = vadd.f32 %v11615_v44, %v2452_v0  ;;  %v11618_v32 = vld [vmem:[#allocation66_spill] sm:$0xff]  ;;  %v11620_v2 = vld [vmem:[#allocation59_spill] sm:$0xff]  ;;  %11627 = vst [vmem:[#allocation9_spill] sm:$0xff] %v10102_v33 }
 0x1e4   : > { %3390 = vst [vmem:[#allocation2 + $0x30] sm:$0xff] %v3320_v43  ;;  %v3318_v52 = vmul.f32 %v11613_v53, %v3126_v6  ;;  %v3131_v58 = vmax.f32 %v3099_v54, 0.0  ;;  %v3097_v60 = vadd.f32 %v9964_v37, %v3058_v25  ;;  %v3061_v1 = vadd.f32 %v7976_v9, %v2755_v14  ;;  %v11619_v0 = vld [vmem:[#allocation58_spill] sm:$0xff] }
 0x1e5   : > { %v2946_v19 = vpop.f32.mrf.mxu0  ;;  %v3517_v51 = vpack.c.bf16 %v3320_v43, %v10018_v49  ;;  %v2756_v9 = vadd.f32 %v11618_v32, %v2450_v46  ;;  %v2451_v61 = vadd.f32 %v11619_v0, %v9977_v16  ;;  %v2456_v44 = vadd.f32 %v11620_v2, %v9981_v56  ;;  %v8576_v49 = vld [vmem:[%s11439_s4 + $0xb0] sm:$0xff]   ;;  %v10084_v43 = vpop.f32.mrf.mxu1  ;;  %v11625_v32 = vld [vmem:[#allocation70_spill] sm:$0xff]  ;;  %v11626_v2 = vld [vmem:[#allocation61_spill] sm:$0xff] }
 0x1e6   : > { %3388 = vst [vmem:[#allocation2 + $0x20] sm:$0xff] %v3318_v52  ;;  %v10073_v6 = vmul.f32 %v9885_v13, %v3131_v58  ;;  %v3129_v54 = vmax.f32 %v3097_v60, 0.0  ;;  %v3100_v14 = vadd.f32 %v9964_v37, %v3061_v1  ;;  %v3059_v25 = vadd.f32 %v2946_v19, %v2753_v30  ;;  %v11621_v60 = vld [vmem:[#allocation33_spill] sm:$0xff]  ;;  %v11622_v1 = vld [vmem:[#allocation34_spill] sm:$0xff] }
 0x1e7   : > { %v7979_v55 = vpop.f32.mrf.mxu0  ;;  %v3516_v53 = vpack.c.bf16 %v3318_v52, %v3317_v24  ;;  %v10093_v56 = vadd.f32 %v11622_v1, %v11621_v60  ;;  %v11623_v24 = vld [vmem:[#allocation35_spill] sm:$0xff]  ;;  %v11624_v52 = vld [vmem:[#allocation36_spill] sm:$0xff]  ;;  %v2759_v0 = vadd.f32 %v11625_v32, %v2453_v48  ;;  %v2454_v13 = vadd.f32 %v11626_v2, %v9988_v10  ;;  %v11630_v10 = vld [vmem:[#allocation37_spill] sm:$0xff] }
 0x1e8   : > { %3393 = vst [vmem:[#allocation2 + $0x48] sm:$0xff] %v10073_v6  ;;  %v10088_v30 = vmul.f32 %v9871_v20, %v3129_v54  ;;  %v3132_v46 = vmax.f32 %v3100_v14, 0.0  ;;  %v3098_v58 = vadd.f32 %v9964_v37, %v3059_v25  ;;  %v3064_v16 = vadd.f32 %v7979_v55, %v2758_v42  ;;  %v11628_v60 = vld [vmem:[#allocation19_spill] sm:$0xff]  ;;  %v11633_v2 = vld [vmem:[#allocation78_spill] sm:$0xff] }
 0x1e9   : > { %v10097_v19 = vadd.f32 %v11624_v52, %v11623_v24  ;;  %v2959_v54 = vpop.f32.mrf.mxu0  ;;  %8018 = vmatmul.mubr.bf16.vlgmr.msra.gmra.mxu1 %v3516_v53  ;;  %v11629_v48 = vld [vmem:[#allocation39_spill] sm:$0xff]  ;;  %v11631_v24 = vld [vmem:[#allocation38_spill] sm:$0xff]  ;;  %v2762_v20 = vadd.f32 %v11633_v2, %v2456_v44 }
 0x1ea   : > { %3391 = vst [vmem:[#allocation2 + $0x38] sm:$0xff] %v10088_v30  ;;  %v10106_v42 = vmul.f32 %v9912_v22, %v3132_v46  ;;  %v3130_v14 = vmax.f32 %v3098_v58, 0.0  ;;  %v3103_v25 = vadd.f32 %v9964_v37, %v3064_v16  ;;  %v3062_v55 = vadd.f32 %v2959_v54, %v2756_v9  ;;  %8098 = vmatpush3.bf16.msra.mxu1 %v11628_v60  ;;  %v11632_v53 = vld [vmem:[#allocation74_spill] sm:$0xff]  ;;  %v10118_v46 = vpop.permute.xlu0 %3239 }
 0x1eb   : > { %8021 = vmatprep.mubr.bf16.mxu1 %v3517_v51  ;;  %v1855_v1 = vadd.f32 %v11629_v48, %v9938_v27  ;;  %v10114_v52 = vadd.f32 %v11631_v24, %v11630_v10  ;;  %v2757_v32 = vadd.f32 %v11632_v53, %v2451_v61  ;;  %11634 = vst [vmem:[#allocation10_spill] sm:$0xff] %v10118_v46  ;;  %v7980_v58 = vpop.f32.mrf.mxu0  ;;  %v8577_v9 = vld [vmem:[%s11439_s4 + $0xa8] sm:$0xff]   ;;  %v10123_v51 = vpop.f32.mrf.mxu1  ;;  %v11635_v27 = vld [vmem:[#allocation85_spill] sm:$0xff]  ;;  %v11637_v10 = vld [vmem:[#allocation83_spill] sm:$0xff] }
 0x1ec   : > { %8099 = vmatprep.subr.bf16.mxu1 %v8576_v49  ;;  %3394 = vst [vmem:[#allocation2 + $0x50] sm:$0xff] %v10106_v42  ;;  %v3322_v16 = vmul.f32 %v11635_v27, %v3130_v14  ;;  %v3135_v54 = vmax.f32 %v3103_v25, 0.0  ;;  %v3101_v60 = vadd.f32 %v9964_v37, %v3062_v55  ;;  %v3065_v61 = vadd.f32 %v7980_v58, %v2759_v0  ;;  %v11636_v44 = vld [vmem:[#allocation62_spill] sm:$0xff]  ;;  %v11638_v53 = vld [vmem:[#allocation64_spill] sm:$0xff] }
 0x1ed   : > { %v2457_v48 = vadd.f32 %v11636_v44, %v9994_v63  ;;  %v2760_v24 = vadd.f32 %v11637_v10, %v2454_v13  ;;  %v2455_v2 = vadd.f32 %v11638_v53, %v9997_v34  ;;  %v2962_v22 = vpop.f32.mrf.mxu0  ;;  %v3422_v12 = vld [vmem:[#allocation2 + $0x1f] sm:$0xff]  ;;  %v3423_v62 = vld [vmem:[#allocation2 + $0x27] sm:$0xff]  ;;  %v3519_v36 = vpack.c.bf16 %v10106_v42, %v10073_v6  ;;  %v3421_v63 = vld [vmem:[#allocation2 + $0x17] sm:$0xff]  ;;  %v10141_v44 = vpop.permute.xlu1 %3244 }
 0x1ee   : > { %3392 = vst [vmem:[#allocation2 + $0x40] sm:$0xff] %v3322_v16  ;;  %v10136_v14 = vmul.f32 %v9984_v11, %v3135_v54  ;;  %v3133_v25 = vmax.f32 %v3101_v60, 0.0  ;;  %v3104_v0 = vadd.f32 %v9964_v37, %v3065_v61  ;;  %v3063_v55 = vadd.f32 %v2962_v22, %v2757_v32  ;;  %v3424_v58 = vld [vmem:[#allocation2 + $0x2f] sm:$0xff]  ;;  %8100 = vmatpush3.bf16.msra.mxu1 %v8576_v49  ;;  %v11639_v13 = vld [vmem:[#allocation65_spill] sm:$0xff]  ;;  %v10148_v54 = vpop.f32.mrf.mxu1 }
 0x1ef   : > { %v2460_v34 = vadd.f32 %v11639_v13, %v10007_v26  ;;  %11640 = vst [vmem:[#allocation11_spill] sm:$0xff] %v10141_v44  ;;  %v7983_v10 = vpop.f32.mrf.mxu0  ;;  %v10143_v53 = vpack.c.bf16 %v3422_v12, %v3421_v63  ;;  %v10145_v6 = vpack.c.bf16 %v3424_v58, %v3423_v62  ;;  %v3518_v42 = vpack.c.bf16 %v3322_v16, %v10088_v30  ;;  %v8578_v12 = vld [vmem:[%s11439_s4 + $0xa0] sm:$0xff]   ;;  %v8581_v62 = vld [vmem:[%s11439_s4 + $0xf0] sm:$0xff]   ;;  %v11641_v30 = vld [vmem:[#allocation40_spill] sm:$0xff] }
 0x1f0   : > { %8101 = vmatprep.subr.bf16.mxu1 %v8577_v9  ;;  %3397 = vst [vmem:[#allocation2 + $0x68] sm:$0xff] %v10136_v14  ;;  %v10152_v22 = vmul.f32 %v9924_v41, %v3133_v25  ;;  %v3136_v49 = vmax.f32 %v3104_v0, 0.0  ;;  %v3102_v26 = vadd.f32 %v9964_v37, %v3063_v55  ;;  %v3068_v32 = vadd.f32 %v7983_v10, %v2762_v20  ;;  %v11642_v60 = vld [vmem:[#allocation87_spill] sm:$0xff]  ;;  %v10167_v0 = vpop.permute.xlu0 %3249  ;;  %v11645_v10 = vld [vmem:[#allocation69_spill] sm:$0xff] }
 0x1f1   : > { %v10162_v16 = vadd.f32 %v11641_v30, %v1855_v1  ;;  %v2763_v61 = vadd.f32 %v11642_v60, %v2457_v48  ;;  %v11643_v25 = vld [vmem:[#allocation67_spill] sm:$0xff]  ;;  %11644 = vst [vmem:[#allocation12_spill] sm:$0xff] %v10167_v0  ;;  %8066 = vmatmul.mubr.bf16.vlgmr.msra.gmra.mxu0 %v10143_v53  ;;  %v2975_v20 = vpop.f32.mrf.mxu0  ;;  %8022 = vmatmul.mubr.bf16.gmra.mxu1 %v3518_v42  ;;  %v11646_v60 = vld [vmem:[#allocation41_spill] sm:$0xff] }
 0x1f2   : > { %v2458_v63 = vadd.f32 %v11643_v25, %v10011_v38  ;;  %3395 = vst [vmem:[#allocation2 + $0x58] sm:$0xff] %v10152_v22  ;;  %v10172_v55 = vmul.f32 %v10015_v7, %v3136_v49  ;;  %v3134_v58 = vmax.f32 %v3102_v26, 0.0  ;;  %v3107_v1 = vadd.f32 %v9964_v37, %v3068_v32  ;;  %8069 = vmatprep.mubr.bf16.mxu0 %v10145_v6  ;;  %v10181_v49 = vpop.f32.mrf.mxu1 }
 0x1f3   : > { %v3066_v13 = vadd.f32 %v2975_v20, %v2760_v24  ;;  %8025 = vmatprep.mubr.bf16.mxu1 %v3519_v36  ;;  %v2761_v38 = vadd.f32 %v9905_v47, %v2455_v2  ;;  %v2766_v48 = vadd.f32 %v9935_v39, %v2460_v34  ;;  %v2461_v30 = vadd.f32 %v11645_v10, %v10023_v59  ;;  %v7984_v42 = vpop.f32.mrf.mxu0  ;;  %v8579_v47 = vld [vmem:[%s11439_s4 + $0x98] sm:$0xff]   ;;  %v8583_v39 = vld [vmem:[%s11439_s4 + $0xe8] sm:$0xff]   ;;  %v11648_v34 = vld [vmem:[#allocation73_spill] sm:$0xff]  ;;  %v10197_v20 = vpop.permute.xlu1 %3254 }
 0x1f4   : > { %8102 = vmatpush3.bf16.msra.mxu1 %v8577_v9  ;;  %8146 = vmatpush3.bf16.msra.mxu0 %v11646_v60  ;;  %3398 = vst [vmem:[#allocation2 + $0x70] sm:$0xff] %v10172_v55  ;;  %v3326_v24 = vmul.f32 %v9959_v45, %v3134_v58  ;;  %v3139_v26 = vmax.f32 %v3107_v1, 0.0  ;;  %v3069_v32 = vadd.f32 %v7984_v42, %v2763_v61  ;;  %v11647_v9 = vld [vmem:[#allocation71_spill] sm:$0xff]  ;;  %11649 = vst [vmem:[#allocation13_spill] sm:$0xff] %v10197_v20 }
 0x1f5   : > { %v3105_v36 = vadd.f32 %v9964_v37, %v3066_v13  ;;  %8103 = vmatprep.subr.bf16.mxu1 %v8578_v12  ;;  %8147 = vmatprep.subr.bf16.mxu0 %v8581_v62  ;;  %v2764_v59 = vadd.f32 %v9970_v40, %v2458_v63  ;;  %v2459_v2 = vadd.f32 %v11647_v9, %v10026_v31  ;;  %v2978_v61 = vpop.f32.mrf.mxu0  ;;  %v3426_v58 = vld [vmem:[#allocation2 + $0x3f] sm:$0xff]  ;;  %v3427_v1 = vld [vmem:[#allocation2 + $0x47] sm:$0xff]  ;;  %v3425_v31 = vld [vmem:[#allocation2 + $0x37] sm:$0xff]  ;;  %v10205_v9 = vpop.permute.xlu0 %3259 }
 0x1f6   : > { %v2464_v25 = vadd.f32 %v11648_v34, %v10039_v29  ;;  %v3521_v13 = vpack.c.bf16 %v10172_v55, %v10136_v14  ;;  %3396 = vst [vmem:[#allocation2 + $0x60] sm:$0xff] %v3326_v24  ;;  %v10202_v10 = vmul.f32 %v10069_v57, %v3139_v26  ;;  %v3108_v40 = vadd.f32 %v9964_v37, %v3069_v32  ;;  %v3428_v60 = vld [vmem:[#allocation2 + $0x4f] sm:$0xff]  ;;  %v10212_v14 = vpop.f32.mrf.mxu1 }
 0x1f7   : > { %v3137_v42 = vmax.f32 %v3105_v36, 0.0  ;;  %v3067_v63 = vadd.f32 %v2978_v61, %v2761_v38  ;;  %11650 = vst [vmem:[#allocation14_spill] sm:$0xff] %v10205_v9  ;;  %v7987_v29 = vpop.f32.mrf.mxu0  ;;  %v10207_v34 = vpack.c.bf16 %v3426_v58, %v3425_v31  ;;  %v10209_v41 = vpack.c.bf16 %v3428_v60, %v3427_v1  ;;  %v8582_v32 = vld [vmem:[%s11439_s4 + $0x90] sm:$0xff]   ;;  %v11653_v58 = vld [vmem:[#allocation76_spill] sm:$0xff] }
 0x1f8   : > { %v3520_v45 = vpack.c.bf16 %v3326_v24, %v10152_v22  ;;  %8104 = vmatpush3.bf16.msra.mxu1 %v8578_v12  ;;  %8148 = vmatpush3.bf16.msra.mxu0 %v8581_v62  ;;  %3401 = vst [vmem:[#allocation2 + $0x88] sm:$0xff] %v10202_v10  ;;  %v3140_v38 = vmax.f32 %v3108_v40, 0.0  ;;  %v3072_v36 = vadd.f32 %v7987_v29, %v2766_v48  ;;  %v8584_v22 = vld [vmem:[%s11439_s4 + $0xe0] sm:$0xff]   ;;  %v11651_v12 = vld [vmem:[#allocation42_spill] sm:$0xff]  ;;  %v11652_v62 = vld [vmem:[#allocation43_spill] sm:$0xff] }
 0x1f9   : > { %v10216_v55 = vmul.f32 %v10030_v8, %v3137_v42  ;;  %v3106_v26 = vadd.f32 %v9964_v37, %v3067_v63  ;;  %8105 = vmatprep.subr.bf16.mxu1 %v8579_v47  ;;  %8149 = vmatprep.subr.bf16.mxu0 %v8583_v39  ;;  %v10227_v24 = vadd.f32 %v11652_v62, %v11651_v12  ;;  %v2991_v48 = vpop.f32.mrf.mxu0  ;;  %v10261_v12 = vpop.permute.xlu0 %3269 }
 0x1fa   : > { %v2767_v61 = vadd.f32 %v10002_v21, %v2461_v30  ;;  %v2462_v1 = vadd.f32 %v11653_v58, %v10049_v23  ;;  %8070 = vmatmul.mubr.bf16.gmra.mxu0 %v10207_v34  ;;  %8026 = vmatmul.mubr.bf16.gmra.mxu1 %v3520_v45  ;;  %v10235_v42 = vmul.f32 %v10102_v33, %v3140_v38  ;;  %v11654_v30 = vld [vmem:[#allocation77_spill] sm:$0xff]  ;;  %v10243_v45 = vpop.permute.xlu1 %3264  ;;  %v10245_v38 = vpop.f32.mrf.mxu1 }
 0x1fb   : > { %3399 = vst [vmem:[#allocation2 + $0x78] sm:$0xff] %v10216_v55  ;;  %v3138_v40 = vmax.f32 %v3106_v26, 0.0  ;;  %v3111_v63 = vadd.f32 %v9964_v37, %v3072_v36  ;;  %v3070_v31 = vadd.f32 %v2991_v48, %v2764_v59  ;;  %8073 = vmatprep.mubr.bf16.mxu0 %v10209_v41  ;;  %8029 = vmatprep.mubr.bf16.mxu1 %v3521_v13  ;;  %11655 = vst [vmem:[#allocation15_spill] sm:$0xff] %v10243_v45  ;;  %v7988_v29 = vpop.f32.mrf.mxu0 }
 0x1fc   : > { %v2765_v21 = vadd.f32 %v10032_v3, %v2459_v2  ;;  %v2770_v23 = vadd.f32 %v10059_v5, %v2464_v25  ;;  %v2465_v60 = vadd.f32 %v11654_v30, %v10053_v50  ;;  %8106 = vmatpush3.bf16.msra.mxu1 %v8579_v47  ;;  %8150 = vmatpush3.bf16.msra.mxu0 %v8583_v39  ;;  %v8585_v50 = vld [vmem:[%s11439_s4 + $0x88] sm:$0xff]   ;;  %v8586_v5 = vld [vmem:[%s11439_s4 + $0xd8] sm:$0xff]  }
 0x1fd   : > { %3402 = vst [vmem:[#allocation2 + $0x90] sm:$0xff] %v10235_v42  ;;  %v3330_v59 = vmul.f32 %v10057_v15, %v3138_v40  ;;  %v3143_v26 = vmax.f32 %v3111_v63, 0.0  ;;  %v3109_v13 = vadd.f32 %v9964_v37, %v3070_v31  ;;  %v3073_v3 = vadd.f32 %v7988_v29, %v2767_v61  ;;  %8107 = vmatprep.subr.bf16.mxu1 %v8582_v32  ;;  %v11656_v39 = vld [vmem:[#allocation80_spill] sm:$0xff]  ;;  %v11657_v25 = vld [vmem:[#allocation82_spill] sm:$0xff]  ;;  %v2994_v62 = vpop.f32.mrf.mxu0 }
 0x1fe   : > { %8151 = vmatprep.subr.bf16.mxu0 %v8584_v22  ;;  %v2768_v47 = vadd.f32 %v10084_v43, %v2462_v1  ;;  %v2463_v2 = vadd.f32 %v11656_v39, %v10064_v17  ;;  %v2468_v36 = vadd.f32 %v11657_v25, %v10093_v56  ;;  %11658 = vst [vmem:[#allocation16_spill] sm:$0xff] %v10261_v12  ;;  %v3430_v61 = vld [vmem:[#allocation2 + $0x5f] sm:$0xff]  ;;  %v3431_v58 = vld [vmem:[#allocation2 + $0x67] sm:$0xff]  ;;  %v3429_v17 = vld [vmem:[#allocation2 + $0x57] sm:$0xff] }
 0x1ff   : > { %v3523_v48 = vpack.c.bf16 %v10235_v42, %v10202_v10  ;;  %3400 = vst [vmem:[#allocation2 + $0x80] sm:$0xff] %v3330_v59  ;;  %v10266_v40 = vmul.f32 %v10167_v0, %v3143_v26  ;;  %v3141_v63 = vmax.f32 %v3109_v13, 0.0  ;;  %v3112_v43 = vadd.f32 %v9964_v37, %v3073_v3  ;;  %v3432_v31 = vld [vmem:[#allocation2 + $0x6f] sm:$0xff]  ;;  %v7991_v30 = vpop.f32.mrf.mxu0  ;;  %v10274_v10 = vpop.f32.mrf.mxu1 }
 0x200   : > { %v3071_v1 = vadd.f32 %v2994_v62, %v2765_v21  ;;  %v10269_v56 = vpack.c.bf16 %v3430_v61, %v3429_v17  ;;  %v10271_v29 = vpack.c.bf16 %v3432_v31, %v3431_v58  ;;  %v3522_v39 = vpack.c.bf16 %v3330_v59, %v10216_v55  ;;  %8108 = vmatpush3.bf16.msra.mxu1 %v8582_v32  ;;  %v8587_v3 = vld [vmem:[%s11439_s4 + $0xd0] sm:$0xff]   ;;  %v8588_v55 = vld [vmem:[%s11439_s4 + $0x80] sm:$0xff]   ;;  %v11659_v32 = vld [vmem:[#allocation44_spill] sm:$0xff] }
 0x201   : > { %8152 = vmatpush3.bf16.msra.mxu0 %v8584_v22  ;;  %3405 = vst [vmem:[#allocation2 + $0xa8] sm:$0xff] %v10266_v40  ;;  %v10278_v42 = vmul.f32 %v10118_v46, %v3141_v63  ;;  %v3144_v26 = vmax.f32 %v3112_v43, 0.0  ;;  %v3076_v13 = vadd.f32 %v7991_v30, %v2770_v23  ;;  %8109 = vmatprep.subr.bf16.mxu1 %v8585_v50  ;;  %v11660_v22 = vld [vmem:[#allocation45_spill] sm:$0xff]  ;;  %v11661_v62 = vld [vmem:[#allocation84_spill] sm:$0xff]  ;;  %v10294_v23 = vpop.permute.xlu1 %3274  ;;  %v3007_v58 = vpop.f32.mrf.mxu0 }
 0x202   : > { %v3110_v21 = vadd.f32 %v9964_v37, %v3071_v1  ;;  %8153 = vmatprep.subr.bf16.mxu0 %v8586_v5  ;;  %v10289_v59 = vadd.f32 %v11660_v22, %v11659_v32  ;;  %v2771_v25 = vadd.f32 %v10123_v51, %v2465_v60  ;;  %v2466_v61 = vadd.f32 %v11661_v62, %v10097_v19  ;;  %v11663_v19 = vld [vmem:[#allocation48_spill] sm:$0xff]  ;;  %v10307_v30 = vpop.permute.xlu0 %3279 }
 0x203   : > { %11662 = vst [vmem:[#allocation17_spill] sm:$0xff] %v10294_v23  ;;  %8074 = vmatmul.mubr.bf16.gmra.mxu0 %v10269_v56  ;;  %8030 = vmatmul.mubr.bf16.gmra.mxu1 %v3522_v39  ;;  %3403 = vst [vmem:[#allocation2 + $0x98] sm:$0xff] %v10278_v42  ;;  %v10299_v63 = vmul.f32 %v10197_v20, %v3144_v26  ;;  %v3115_v1 = vadd.f32 %v9964_v37, %v3076_v13  ;;  %v7992_v39 = vpop.f32.mrf.mxu0  ;;  %v10309_v26 = vpop.f32.mrf.mxu1 }
 0x204   : > { %v3142_v43 = vmax.f32 %v3110_v21, 0.0  ;;  %v3074_v17 = vadd.f32 %v3007_v58, %v2768_v47  ;;  %8077 = vmatprep.mubr.bf16.mxu0 %v10271_v29  ;;  %8033 = vmatprep.mubr.bf16.mxu1 %v3523_v48  ;;  %v1859_v51 = vadd.f32 %v11663_v19, %v9941_v35  ;;  %v2769_v60 = vadd.f32 %v10148_v54, %v2463_v2  ;;  %v8589_v35 = vld [vmem:[%s11439_s4 + $0xc8] sm:$0xff]   ;;  %v10320_v54 = vld [vmem:[%s11439_s4 + $0x138] sm:$0xff]   ;;  %v11666_v2 = vld [vmem:[#allocation89_spill] sm:$0xff] }
 0x205   : > { %v2774_v31 = vadd.f32 %v10181_v49, %v2468_v36  ;;  %11664 = vst [vmem:[#allocation18_spill] sm:$0xff] %v10307_v30  ;;  %8110 = vmatpush3.bf16.msra.mxu1 %v8585_v50  ;;  %8154 = vmatpush3.bf16.msra.mxu0 %v8586_v5  ;;  %3406 = vst [vmem:[#allocation2 + $0xb0] sm:$0xff] %v10299_v63  ;;  %v3147_v21 = vmax.f32 %v3115_v1, 0.0  ;;  %v3077_v13 = vadd.f32 %v7992_v39, %v2771_v25  ;;  %v11665_v49 = vld [vmem:[#allocation86_spill] sm:$0xff]  ;;  %v3010_v32 = vpop.f32.mrf.mxu0 }
 0x206   : > { %v3334_v47 = vmul.f32 %v10141_v44, %v3142_v43  ;;  %v3113_v48 = vadd.f32 %v9964_v37, %v3074_v17  ;;  %8155 = vmatprep.subr.bf16.mxu0 %v8587_v3  ;;  %8111 = vmatprep.subr.bf16.mxu1 %v8588_v55  ;;  %v2469_v50 = vadd.f32 %v11665_v49, %v10114_v52  ;;  %v3434_v22 = vld [vmem:[#allocation2 + $0x7f] sm:$0xff]  ;;  %v3435_v25 = vld [vmem:[#allocation2 + $0x87] sm:$0xff]  ;;  %v3433_v52 = vld [vmem:[#allocation2 + $0x77] sm:$0xff] }
 0x207   : > { %v2772_v5 = vadd.f32 %v10212_v14, %v2466_v61  ;;  %v2467_v36 = vadd.f32 %v11666_v2, %v10162_v16  ;;  %v3525_v62 = vpack.c.bf16 %v10299_v63, %v10266_v40  ;;  %v10330_v58 = vmul.f32 %v10261_v12, %v3147_v21  ;;  %v3436_v19 = vld [vmem:[#allocation2 + $0x8f] sm:$0xff]  ;;  %v10333_v14 = vpop.permute.xlu1 %3284  ;;  %v7995_v61 = vpop.f32.mrf.mxu0  ;;  %v5809_v12 = vld [vmem:[#allocation2 + $0x61] sm:$0xff] }
 0x208   : > { %3404 = vst [vmem:[#allocation2 + $0xa0] sm:$0xff] %v3334_v47  ;;  %v3145_v43 = vmax.f32 %v3113_v48, 0.0  ;;  %v3116_v1 = vadd.f32 %v9964_v37, %v3077_v13  ;;  %v3075_v17 = vadd.f32 %v3010_v32, %v2769_v60  ;;  %11667 = vst [vmem:[#allocation20_spill] sm:$0xff] %v10333_v14  ;;  %v10335_v16 = vpack.c.bf16 %v3434_v22, %v3433_v52  ;;  %v2733_v40 = vpop.f32.mrf.mxu1  ;;  %v8590_v13 = vld [vmem:[%s11439_s4 + $0xc0] sm:$0xff]  }
 0x209   : > { %v10337_v39 = vpack.c.bf16 %v3436_v19, %v3435_v25  ;;  %v3524_v49 = vpack.c.bf16 %v3334_v47, %v10278_v42  ;;  %8156 = vmatpush3.bf16.msra.mxu0 %v8587_v3  ;;  %8112 = vmatpush3.bf16.msra.mxu1 %v8588_v55  ;;  %3409 = vst [vmem:[#allocation2 + $0xc8] sm:$0xff] %v10330_v58  ;;  %v10354_v47 = vpop.permute.xlu0 %3289 }
 0x20a   : > { %v10342_v63 = vmul.f32 %v10205_v9, %v3145_v43  ;;  %v3148_v60 = vmax.f32 %v3116_v1, 0.0  ;;  %v3114_v21 = vadd.f32 %v9964_v37, %v3075_v17  ;;  %v3080_v48 = vadd.f32 %v7995_v61, %v2774_v31  ;;  %8157 = vmatprep.subr.bf16.mxu0 %v8589_v35  ;;  %8193 = vmatprep.subr.bf16.mxu1 %v10320_v54  ;;  %v3023_v31 = vpop.f32.mrf.mxu0  ;;  %v7964_v1 = vpop.f32.mrf.mxu1 }
 0x20b   : > { %v2775_v42 = vadd.f32 %v10245_v38, %v2469_v50  ;;  %v2472_v3 = vadd.f32 %v9899_v18, %v10227_v24  ;;  %v2470_v55 = vadd.f32 %v9914_v4, %v10289_v59  ;;  %11668 = vst [vmem:[#allocation21_spill] sm:$0xff] %v10354_v47  ;;  %8078 = vmatmul.mubr.bf16.gmra.mxu0 %v10335_v16  ;;  %v11669_v18 = vld [vmem:[#allocation46_spill] sm:$0xff]  ;;  %v11670_v24 = vld [vmem:[#allocation47_spill] sm:$0xff]  ;;  %v11671_v59 = vld [vmem:[#allocation49_spill] sm:$0xff] }
 0x20c   : > { %8034 = vmatmul.mubr.bf16.gmra.mxu1 %v3524_v49  ;;  %3407 = vst [vmem:[#allocation2 + $0xb8] sm:$0xff] %v10342_v63  ;;  %v3340_v2 = vmul.f32 %v10294_v23, %v3148_v60  ;;  %v3146_v32 = vmax.f32 %v3114_v21, 0.0  ;;  %v3119_v22 = vadd.f32 %v9964_v37, %v3080_v48  ;;  %v3078_v38 = vadd.f32 %v3023_v31, %v2772_v5  ;;  %v7996_v43 = vpop.f32.mrf.mxu0  ;;  %v5808_v23 = vld [vmem:[#allocation2 + $0x59] sm:$0xff] }
 0x20d   : > { %8081 = vmatprep.mubr.bf16.mxu0 %v10337_v39  ;;  %8037 = vmatprep.mubr.bf16.mxu1 %v3525_v62  ;;  %v2167_v4 = vadd.f32 %v11670_v24, %v11669_v18  ;;  %v2165_v50 = vadd.f32 %v11671_v59, %v1859_v51  ;;  %v2773_v25 = vadd.f32 %v10274_v10, %v2467_v36  ;;  %v10372_v62 = vld [vmem:[%s11439_s4 + $0x178] sm:$0xff]   ;;  %v10376_v36 = vpop.permute.xlu1 %3294 }
 0x20e   : > { %8158 = vmatpush3.bf16.msra.mxu0 %v8589_v35  ;;  %3410 = vst [vmem:[#allocation2 + $0xd0] sm:$0xff] %v3340_v2  ;;  %v10366_v17 = vmul.f32 %v10243_v45, %v3146_v32  ;;  %v3151_v52 = vmax.f32 %v3119_v22, 0.0  ;;  %v3117_v5 = vadd.f32 %v9964_v37, %v3078_v38  ;;  %v3081_v19 = vadd.f32 %v7996_v43, %v2775_v42  ;;  %v3026_v61 = vpop.f32.mrf.mxu0 }
 0x20f   : > { %8159 = vmatprep.subr.bf16.mxu0 %v8590_v13  ;;  %v2778_v51 = vadd.f32 %v10309_v26, %v2472_v3  ;;  %v2473_v10 = vadd.f32 %v9926_v28, %v2167_v4  ;;  %v2776_v35 = vadd.f32 %v2733_v40, %v2470_v55  ;;  %11672 = vst [vmem:[#allocation51_spill] sm:$0xff] %v10376_v36  ;;  %v3438_v49 = vld [vmem:[#allocation2 + $0x9f] sm:$0xff]  ;;  %v3439_v60 = vld [vmem:[#allocation2 + $0xa7] sm:$0xff]  ;;  %v3437_v26 = vld [vmem:[#allocation2 + $0x97] sm:$0xff]  ;;  %v10385_v55 = vpop.permute.xlu0 %3299 }
 0x210   : > { %v3527_v21 = vpack.c.bf16 %v3340_v2, %v10330_v58  ;;  %3408 = vst [vmem:[#allocation2 + $0xc0] sm:$0xff] %v10366_v17  ;;  %v10381_v48 = vmul.f32 %v10354_v47, %v3151_v52  ;;  %v3149_v42 = vmax.f32 %v3117_v5, 0.0  ;;  %v3120_v31 = vadd.f32 %v9964_v37, %v3081_v19  ;;  %v3440_v3 = vld [vmem:[#allocation2 + $0xaf] sm:$0xff]  ;;  %v11673_v28 = vld [vmem:[#allocation92_spill] sm:$0xff]  ;;  %11674 = vst [vmem:[#allocation50_spill] sm:$0xff] %v10385_v55  ;;  %v7999_v22 = vpop.f32.mrf.mxu0  ;;  %v2736_v2 = vpop.f32.mrf.mxu1 }
 0x211   : > { %v3079_v32 = vadd.f32 %v3026_v61, %v2773_v25  ;;  %v2471_v40 = vadd.f32 %v11673_v28, %v2165_v50  ;;  %v10387_v38 = vpack.c.bf16 %v3438_v49, %v3437_v26  ;;  %v10389_v18 = vpack.c.bf16 %v3440_v3, %v3439_v60  ;;  %v10401_v61 = vpop.permute.xlu1 %3304 }
 0x212   : > { %v3526_v58 = vpack.c.bf16 %v10366_v17, %v10342_v63  ;;  %8160 = vmatpush3.bf16.msra.mxu0 %v8590_v13  ;;  %3413 = vst [vmem:[#allocation2 + $0xe8] sm:$0xff] %v10381_v48  ;;  %v3341_v24 = vmul.f32 %v10307_v30, %v3149_v42  ;;  %v3152_v4 = vmax.f32 %v3120_v31, 0.0  ;;  %v3084_v50 = vadd.f32 %v7999_v22, %v2778_v51  ;;  %v3039_v43 = vpop.f32.mrf.mxu0 }
 0x213   : > { %v3118_v59 = vadd.f32 %v9964_v37, %v3079_v32  ;;  %8241 = vmatprep.subr.bf16.mxu0 %v10372_v62  ;;  %v2779_v25 = vadd.f32 %v7964_v1, %v2473_v10  ;;  %8082 = vmatmul.mubr.bf16.gmra.mxu0 %v10387_v38  ;;  %v3082_v5 = vadd.f32 %v3039_v43, %v2776_v35  ;;  %v10405_v42 = vpop.permute.xlu0 %3309  ;;  %v3441_v22 = vld [vmem:[#allocation2 + $0xb7] sm:$0xff] }
 0x214   : > { %8038 = vmatmul.mubr.bf16.gmra.mxu1 %v3526_v58  ;;  %3411 = vst [vmem:[#allocation2 + $0xd8] sm:$0xff] %v3341_v24  ;;  %v3344_v63 = vmul.f32 %v10376_v36, %v3152_v4  ;;  %v3123_v52 = vadd.f32 %v9964_v37, %v3084_v50  ;;  %8085 = vmatprep.mubr.bf16.mxu0 %v10389_v18  ;;  %11675 = vst [vmem:[#allocation22_spill] sm:$0xff] %v10401_v61  ;;  %v8000_v51 = vpop.f32.mrf.mxu0 }
 0x215   : > { %v3150_v13 = vmax.f32 %v3118_v59, 0.0  ;;  %8041 = vmatprep.mubr.bf16.mxu1 %v3527_v21  ;;  %v2777_v19 = vadd.f32 %v2736_v2, %v2471_v40  ;;  %v3121_v49 = vadd.f32 %v9964_v37, %v3082_v5  ;;  %v3085_v60 = vadd.f32 %v8000_v51, %v2779_v25  ;;  %11676 = vst [vmem:[#allocation23_spill] sm:$0xff] %v10405_v42  ;;  %v3444_v58 = vld [vmem:[#allocation2 + $0xcf] sm:$0xff]  ;;  %v10418_v43 = vpop.permute.xlu1 %3314 }
 0x216   : > { %3414 = vst [vmem:[#allocation2 + $0xf0] sm:$0xff] %v3344_v63  ;;  %v3155_v10 = vmax.f32 %v3123_v52, 0.0  ;;  %v3042_v31 = vpop.f32.mrf.mxu0  ;;  %v3529_v35 = vpack.c.bf16 %v3344_v63, %v10381_v48  ;;  %11677 = vst [vmem:[#allocation24_spill] sm:$0xff] %v10418_v43  ;;  %v3967_v5 = vld [vmem:[#allocation2 + $0x11] sm:$0xff] }
 0x217   : > { %v3342_v1 = vmul.f32 %v10333_v14, %v3150_v13  ;;  %v3442_v32 = vld [vmem:[#allocation2 + $0xbf] sm:$0xff]  ;;  %v3443_v26 = vld [vmem:[#allocation2 + $0xc7] sm:$0xff]  ;;  %v3153_v3 = vmax.f32 %v3121_v49, 0.0  ;;  %v3124_v28 = vadd.f32 %v9964_v37, %v3085_v60  ;;  %v3083_v40 = vadd.f32 %v3042_v31, %v2777_v19 }
 0x218   : > { %v3347_v21 = vmul.f32 %v10405_v42, %v3155_v10  ;;  %v10410_v2 = vpack.c.bf16 %v3442_v32, %v3441_v22  ;;  %v10412_v4 = vpack.c.bf16 %v3444_v58, %v3443_v26  ;;  %v3968_v32 = vld [vmem:[#allocation2 + $0x19] sm:$0xff]  ;;  %v3969_v26 = vld [vmem:[#allocation2 + $0x21] sm:$0xff]  ;;  %v8592_v22 = vld [vmem:[%s11439_s4 + $0x130] sm:$0xff]  }
 0x219   : > { %3412 = vst [vmem:[#allocation2 + $0xe0] sm:$0xff] %v3342_v1  ;;  %v10414_v59 = vpack.c.bf16 %v3342_v1, %v3341_v24  ;;  %v3345_v50 = vmul.f32 %v10385_v55, %v3153_v3  ;;  %v3156_v25 = vmax.f32 %v3124_v28, 0.0  ;;  %v3122_v48 = vadd.f32 %v9964_v37, %v3083_v40  ;;  %v3966_v37 = vld [vmem:[#allocation2 + $0x9] sm:$0xff]  ;;  %v3971_v28 = vld [vmem:[#allocation2 + $0x31] sm:$0xff] }
 0x21a   : > { %3417 = vst [vmem:[#allocation2 + $0x108] sm:$0xff] %v3347_v21  ;;  %v3998_v31 = vpack.c.bf16 %v3967_v5, %v3966_v37  ;;  %v10439_v40 = vpack.c.bf16 %v3969_v26, %v3968_v32  ;;  %v3970_v58 = vld [vmem:[#allocation2 + $0x29] sm:$0xff] }
 0x21b   : > { %8086 = vmatmul.mubr.bf16.gmra.mxu0 %v10410_v2  ;;  %3415 = vst [vmem:[#allocation2 + $0xf8] sm:$0xff] %v3345_v50  ;;  %v10423_v63 = vmul.f32 %v10418_v43, %v3156_v25  ;;  %v3154_v13 = vmax.f32 %v3122_v48, 0.0  ;;  %v3445_v52 = vld [vmem:[#allocation2 + $0xd7] sm:$0xff]  ;;  %v8593_v25 = vld [vmem:[%s11439_s4 + $0x128] sm:$0xff]  }
 0x21c   : > { %8042 = vmatmul.mubr.bf16.gmra.mxu1 %v10414_v59  ;;  %8089 = vmatprep.mubr.bf16.mxu0 %v10412_v4  ;;  %v3972_v48 = vld [vmem:[#allocation2 + $0x39] sm:$0xff]  ;;  %v3974_v37 = vld [vmem:[#allocation2 + $0x49] sm:$0xff] }
 0x21d   : > { %8045 = vmatprep.mubr.bf16.mxu1 %v3529_v35  ;;  %3418 = vst [vmem:[#allocation2 + $0x110] sm:$0xff] %v10423_v63  ;;  %v3346_v24 = vmul.f32 %v10401_v61, %v3154_v13  ;;  %v3448_v1 = vld [vmem:[#allocation2 + $0xef] sm:$0xff]  ;;  %v3973_v13 = vld [vmem:[#allocation2 + $0x41] sm:$0xff] }
 0x21e   : > { %v5802_v42 = vld [vmem:[#allocation2 + $0x29] sm:$0xff] }
 0x21f   : > { %3416 = vst [vmem:[#allocation2 + $0x100] sm:$0xff] %v3346_v24  ;;  %v10432_v60 = vpack.c.bf16 %v3346_v24, %v3345_v50  ;;  %v10446_v50 = vpack.c.bf16 %v3971_v28, %v3970_v58  ;;  %v3975_v24 = vld [vmem:[#allocation2 + $0x51] sm:$0xff]  ;;  %v3980_v28 = vld [vmem:[#allocation2 + $0x79] sm:$0xff] }
 0x220   : > { %v3446_v19 = vld [vmem:[#allocation2 + $0xdf] sm:$0xff]  ;;  %v3447_v51 = vld [vmem:[#allocation2 + $0xe7] sm:$0xff]  ;;  %v10456_v5 = vpack.c.bf16 %v3975_v24, %v3974_v37  ;;  %v3983_v58 = vld [vmem:[#allocation2 + $0x91] sm:$0xff] }
 0x221   : > { %v10428_v10 = vpack.c.bf16 %v3446_v19, %v3445_v52  ;;  %v10430_v49 = vpack.c.bf16 %v3448_v1, %v3447_v51  ;;  %v10454_v52 = vpack.c.bf16 %v3973_v13, %v3972_v48  ;;  %v8595_v19 = vld [vmem:[%s11439_s4 + $0x118] sm:$0xff]   ;;  %v3977_v1 = vld [vmem:[#allocation2 + $0x61] sm:$0xff]  ;;  %v8603_v13 = vld [vmem:[%s11439_s4 + $0x150] sm:$0xff]  }
 0x222   : > { %v3449_v35 = vld [vmem:[#allocation2 + $0xf7] sm:$0xff]  ;;  %v8604_v24 = vld [vmem:[%s11439_s4 + $0x100] sm:$0xff]   ;;  %v8605_v37 = vld [vmem:[%s11439_s4 + $0x148] sm:$0xff]  }
 0x223   : > { %8090 = vmatmul.mubr.bf16.gmra.mxu0 %v10428_v10  ;;  %v3976_v51 = vld [vmem:[#allocation2 + $0x59] sm:$0xff] }
 0x224   : > { %8046 = vmatmul.mubr.bf16.gmra.mxu1 %v10432_v60  ;;  %8093 = vmatprep.mubr.bf16.mxu0 %v10430_v49  ;;  %v10475_v32 = vpack.c.bf16 %v3977_v1, %v3976_v51  ;;  %v5220_v55 = vld [vmem:[#allocation2 + $0x117] sm:$0xff] }
 0x225   : > { %8113 = vmatprep.mubr.bf16.mxu1 %v3998_v31  ;;  %v3979_v31 = vld [vmem:[#allocation2 + $0x71] sm:$0xff] }
 0x226   : > { %v3450_v21 = vld [vmem:[#allocation2 + $0xff] sm:$0xff]  ;;  %v5525_v43 = vld [vmem:[#allocation2 + $0x110] sm:$0xff] }
 0x227   : > { %v10437_v3 = vpack.c.bf16 %v3450_v21, %v3449_v35  ;;  %v8600_v35 = vld [vmem:[%s11439_s4 + $0x160] sm:$0xff]   ;;  %v8601_v21 = vld [vmem:[%s11439_s4 + $0x108] sm:$0xff]  }
 0x22b   : > { %8094 = vmatmul.mubr.bf16.gmra.mxu0 %v10437_v3 }
 0x22c   : > { %8114 = vmatmul.mubr.bf16.vlgmr.msra.gmra.mxu1 %v10439_v40  ;;  %8161 = vmatprep.mubr.bf16.mxu0 %v10143_v53  ;;  %v8594_v53 = vld [vmem:[%s11439_s4 + $0x120] sm:$0xff]  }
 0x22d   : > { %8194 = vmatpush3.bf16.msra.mxu1 %v10320_v54  ;;  %8117 = vmatprep.mubr.bf16.mxu1 %v10446_v50  ;;  %v8597_v54 = vld [vmem:[%s11439_s4 + $0x170] sm:$0xff]  }
 0x22e   : > { %8195 = vmatprep.subr.bf16.mxu1 %v8592_v22 }
 0x231   : > { %8196 = vmatpush3.bf16.msra.mxu1 %v8592_v22  ;;  %v3981_v22 = vld [vmem:[#allocation2 + $0x81] sm:$0xff] }
 0x232   : > { %8197 = vmatprep.subr.bf16.mxu1 %v8593_v25 }
 0x233   : > { %8162 = vmatmul.mubr.bf16.vlgmr.msra.gmra.mxu0 %v10145_v6  ;;  %v8599_v6 = vld [vmem:[%s11439_s4 + $0x168] sm:$0xff]  }
 0x234   : > { %8118 = vmatmul.mubr.bf16.gmra.mxu1 %v10454_v52  ;;  %8165 = vmatprep.mubr.bf16.mxu0 %v10207_v34  ;;  %v3978_v34 = vld [vmem:[#allocation2 + $0x69] sm:$0xff] }
 0x235   : > { %8121 = vmatprep.mubr.bf16.mxu1 %v10456_v5  ;;  %8198 = vmatpush3.bf16.msra.mxu1 %v8593_v25  ;;  %v10477_v26 = vpack.c.bf16 %v3979_v31, %v3978_v34  ;;  %v10495_v25 = vpack.c.bf16 %v3981_v22, %v3980_v28  ;;  %v3988_v31 = vld [vmem:[#allocation2 + $0xb9] sm:$0xff]  ;;  %v3989_v34 = vld [vmem:[#allocation2 + $0xc1] sm:$0xff]  ;;  %v3990_v28 = vld [vmem:[#allocation2 + $0xc9] sm:$0xff] }
 0x236   : > { %8242 = vmatpush3.bf16.msra.mxu0 %v10372_v62  ;;  %8199 = vmatprep.subr.bf16.mxu1 %v8594_v53  ;;  %v8598_v62 = vld [vmem:[%s11439_s4 + $0x110] sm:$0xff]   ;;  %v3993_v22 = vld [vmem:[#allocation2 + $0xe1] sm:$0xff] }
 0x237   : > { %8243 = vmatprep.subr.bf16.mxu0 %v8597_v54 }
 0x239   : > { %8200 = vmatpush3.bf16.msra.mxu1 %v8594_v53  ;;  %v3984_v53 = vld [vmem:[#allocation2 + $0x99] sm:$0xff] }
 0x23a   : > { %8244 = vmatpush3.bf16.msra.mxu0 %v8597_v54  ;;  %8201 = vmatprep.subr.bf16.mxu1 %v8595_v19  ;;  %v3985_v54 = vld [vmem:[#allocation2 + $0xa1] sm:$0xff] }
 0x23b   : > { %8245 = vmatprep.subr.bf16.mxu0 %v8599_v6  ;;  %8166 = vmatmul.mubr.bf16.gmra.mxu0 %v10209_v41  ;;  %v8602_v41 = vld [vmem:[%s11439_s4 + $0x158] sm:$0xff]   ;;  %v10515_v51 = vpack.c.bf16 %v3985_v54, %v3984_v53 }
 0x23c   : > { %8122 = vmatmul.mubr.bf16.gmra.mxu1 %v10475_v32  ;;  %8169 = vmatprep.mubr.bf16.mxu0 %v10269_v56  ;;  %v3982_v56 = vld [vmem:[#allocation2 + $0x89] sm:$0xff]  ;;  %v4578_v53 = vld [vmem:[#allocation2 + $0x18] sm:$0xff] }
 0x23d   : > { %8125 = vmatprep.mubr.bf16.mxu1 %v10477_v26  ;;  %8202 = vmatpush3.bf16.msra.mxu1 %v8595_v19  ;;  %v10497_v48 = vpack.c.bf16 %v3983_v58, %v3982_v56  ;;  %v3987_v19 = vld [vmem:[#allocation2 + $0xb1] sm:$0xff]  ;;  %v3994_v56 = vld [vmem:[#allocation2 + $0xe9] sm:$0xff] }
 0x23e   : > { %8246 = vmatpush3.bf16.msra.mxu0 %v8599_v6  ;;  %8203 = vmatprep.subr.bf16.mxu1 %v8598_v62  ;;  %v8606_v6 = vld [vmem:[%s11439_s4 + $0x140] sm:$0xff]  }
 0x23f   : > { %8247 = vmatprep.subr.bf16.mxu0 %v8600_v35 }
 0x241   : > { %8204 = vmatpush3.bf16.msra.mxu1 %v8598_v62  ;;  %v8612_v62 = vld [vmem:[%s11439_s4 + $0x1f8] sm:$0xff]  }
 0x242   : > { %8248 = vmatpush3.bf16.msra.mxu0 %v8600_v35  ;;  %8205 = vmatprep.subr.bf16.mxu1 %v8601_v21  ;;  %v3991_v35 = vld [vmem:[#allocation2 + $0xd1] sm:$0xff] }
 0x243   : > { %8249 = vmatprep.subr.bf16.mxu0 %v8602_v41  ;;  %8170 = vmatmul.mubr.bf16.gmra.mxu0 %v10271_v29  ;;  %v8607_v29 = vld [vmem:[%s11439_s4 + $0x1b8] sm:$0xff]  }
 0x244   : > { %8126 = vmatmul.mubr.bf16.gmra.mxu1 %v10495_v25  ;;  %8173 = vmatprep.mubr.bf16.mxu0 %v10335_v16  ;;  %v3986_v16 = vld [vmem:[#allocation2 + $0xa9] sm:$0xff] }
 0x245   : > { %8129 = vmatprep.mubr.bf16.mxu1 %v10497_v48  ;;  %8206 = vmatpush3.bf16.msra.mxu1 %v8601_v21  ;;  %v10517_v1 = vpack.c.bf16 %v3987_v19, %v3986_v16  ;;  %v10529_v21 = vpack.c.bf16 %v3989_v34, %v3988_v31  ;;  %v4581_v19 = vld [vmem:[#allocation2 + $0x30] sm:$0xff] }
 0x246   : > { %8250 = vmatpush3.bf16.msra.mxu0 %v8602_v41  ;;  %8207 = vmatprep.subr.bf16.mxu1 %v8604_v24  ;;  %v3995_v41 = vld [vmem:[#allocation2 + $0xf1] sm:$0xff] }
 0x247   : > { %8251 = vmatprep.subr.bf16.mxu0 %v8603_v13  ;;  %v4303_v16 = vld [vmem:[#allocation2 + $0x10f] sm:$0xff] }
 0x249   : > { %8208 = vmatpush3.bf16.msra.mxu1 %v8604_v24  ;;  %v4579_v24 = vld [vmem:[#allocation2 + $0x20] sm:$0xff] }
 0x24a   : > { %8252 = vmatpush3.bf16.msra.mxu0 %v8603_v13  ;;  %8289 = vmatprep.subr.bf16.mxu1 %v8607_v29  ;;  %v10539_v13 = vpack.c.bf16 %v3995_v41, %v3994_v56  ;;  %v4610_v54 = vpack.c.bf16 %v4579_v24, %v4578_v53  ;;  %v4584_v41 = vld [vmem:[#allocation2 + $0x48] sm:$0xff]  ;;  %v4589_v24 = vld [vmem:[#allocation2 + $0x70] sm:$0xff]  ;;  %v8611_v53 = vld [vmem:[%s11439_s4 + $0x198] sm:$0xff]  }
 0x24b   : > { %8253 = vmatprep.subr.bf16.mxu0 %v8605_v37  ;;  %8174 = vmatmul.mubr.bf16.gmra.mxu0 %v10337_v39  ;;  %v10531_v39 = vpack.c.bf16 %v3991_v35, %v3990_v28  ;;  %v8608_v35 = vld [vmem:[%s11439_s4 + $0x1b0] sm:$0xff]   ;;  %v4582_v28 = vld [vmem:[#allocation2 + $0x38] sm:$0xff] }
 0x24c   : > { %8130 = vmatmul.mubr.bf16.gmra.mxu1 %v10515_v51  ;;  %8177 = vmatprep.mubr.bf16.mxu0 %v10387_v38  ;;  %v3992_v38 = vld [vmem:[#allocation2 + $0xd9] sm:$0xff] }
 0x24d   : > { %8133 = vmatprep.mubr.bf16.mxu1 %v10517_v1  ;;  %v10537_v58 = vpack.c.bf16 %v3993_v22, %v3992_v38  ;;  %v4585_v38 = vld [vmem:[#allocation2 + $0x50] sm:$0xff]  ;;  %v4587_v22 = vld [vmem:[#allocation2 + $0x60] sm:$0xff] }
 0x24e   : > { %8254 = vmatpush3.bf16.msra.mxu0 %v8605_v37  ;;  %v10566_v56 = vpack.c.bf16 %v4585_v38, %v4584_v41  ;;  %v8619_v41 = vld [vmem:[%s11439_s4 + $0x1d0] sm:$0xff]  }
 0x24f   : > { %8255 = vmatprep.subr.bf16.mxu0 %v8606_v6 }
 0x252   : > { %8256 = vmatpush3.bf16.msra.mxu0 %v8606_v6  ;;  %v4583_v6 = vld [vmem:[#allocation2 + $0x40] sm:$0xff] }
 0x253   : > { %8337 = vmatprep.subr.bf16.mxu0 %v8612_v62  ;;  %8178 = vmatmul.mubr.bf16.gmra.mxu0 %v10389_v18  ;;  %v3996_v18 = vld [vmem:[#allocation2 + $0xf9] sm:$0xff] }
 0x254   : > { %8134 = vmatmul.mubr.bf16.gmra.mxu1 %v10529_v21  ;;  %8181 = vmatprep.mubr.bf16.mxu0 %v10410_v2  ;;  %v3997_v2 = vld [vmem:[#allocation2 + $0x101] sm:$0xff] }
 0x255   : > { %8137 = vmatprep.mubr.bf16.mxu1 %v10531_v39  ;;  %v10545_v37 = vpack.c.bf16 %v3997_v2, %v3996_v18  ;;  %v4586_v18 = vld [vmem:[#allocation2 + $0x58] sm:$0xff] }
 0x256   : > { %v10568_v2 = vpack.c.bf16 %v4587_v22, %v4586_v18  ;;  %v8620_v18 = vld [vmem:[%s11439_s4 + $0x180] sm:$0xff]  }
 0x25b   : > { %8182 = vmatmul.mubr.bf16.gmra.mxu0 %v10412_v4  ;;  %v4302_v4 = vld [vmem:[#allocation2 + $0x107] sm:$0xff] }
 0x25c   : > { %8138 = vmatmul.mubr.bf16.gmra.mxu1 %v10537_v58  ;;  %8185 = vmatprep.mubr.bf16.mxu0 %v10428_v10  ;;  %v4580_v10 = vld [vmem:[#allocation2 + $0x28] sm:$0xff]  ;;  %v10550_v31 = vpack.c.bf16 %v4303_v16, %v4302_v4 }
 0x25d   : > { %8141 = vmatprep.mubr.bf16.mxu1 %v10539_v13  ;;  %v10552_v34 = vpack.c.bf16 %v4581_v19, %v4580_v10  ;;  %v4588_v4 = vld [vmem:[#allocation2 + $0x68] sm:$0xff]  ;;  %v8616_v10 = vld [vmem:[%s11439_s4 + $0x1e0] sm:$0xff]  }
 0x25e   : > { %v10586_v19 = vpack.c.bf16 %v4589_v24, %v4588_v4  ;;  %v8623_v24 = vld [vmem:[%s11439_s4 + $0x238] sm:$0xff]   ;;  %v4601_v4 = vld [vmem:[#allocation2 + $0xd0] sm:$0xff] }
 0x263   : > { %8186 = vmatmul.mubr.bf16.gmra.mxu0 %v10430_v49  ;;  %v10559_v49 = vpack.c.bf16 %v4583_v6, %v4582_v28  ;;  %v4593_v6 = vld [vmem:[#allocation2 + $0x90] sm:$0xff]  ;;  %v8618_v28 = vld [vmem:[%s11439_s4 + $0x1d8] sm:$0xff]  }
 0x264   : > { %8142 = vmatmul.mubr.bf16.gmra.mxu1 %v10545_v37  ;;  %8189 = vmatprep.mubr.bf16.mxu0 %v10437_v3  ;;  %v8609_v3 = vld [vmem:[%s11439_s4 + $0x1a8] sm:$0xff]  }
 0x265   : > { %8209 = vmatprep.mubr.bf16.mxu1 %v4610_v54  ;;  %v8615_v54 = vld [vmem:[%s11439_s4 + $0x1e8] sm:$0xff]  }
 0x26b   : > { %8190 = vmatmul.mubr.bf16.gmra.mxu0 %v10550_v31 }
 0x26c   : > { %8210 = vmatmul.mubr.bf16.vlgmr.msra.gmra.mxu1 %v10552_v34  ;;  %8257 = vmatprep.mubr.bf16.mxu0 %v10439_v40  ;;  %v8610_v40 = vld [vmem:[%s11439_s4 + $0x1a0] sm:$0xff]  }
 0x26d   : > { %8290 = vmatpush3.bf16.msra.mxu1 %v8607_v29  ;;  %8213 = vmatprep.mubr.bf16.mxu1 %v10559_v49  ;;  %v8613_v29 = vld [vmem:[%s11439_s4 + $0x1f0] sm:$0xff]  }
 0x26e   : > { %8291 = vmatprep.subr.bf16.mxu1 %v8608_v35 }
 0x271   : > { %8292 = vmatpush3.bf16.msra.mxu1 %v8608_v35  ;;  %v8617_v35 = vld [vmem:[%s11439_s4 + $0x188] sm:$0xff]  }
 0x272   : > { %8293 = vmatprep.subr.bf16.mxu1 %v8609_v3 }
 0x273   : > { %8258 = vmatmul.mubr.bf16.vlgmr.msra.gmra.mxu0 %v10446_v50  ;;  %v4591_v50 = vld [vmem:[#allocation2 + $0x80] sm:$0xff] }
 0x274   : > { %8214 = vmatmul.mubr.bf16.gmra.mxu1 %v10566_v56  ;;  %8261 = vmatprep.mubr.bf16.mxu0 %v10454_v52  ;;  %v4590_v52 = vld [vmem:[#allocation2 + $0x78] sm:$0xff] }
 0x275   : > { %8217 = vmatprep.mubr.bf16.mxu1 %v10568_v2  ;;  %8294 = vmatpush3.bf16.msra.mxu1 %v8609_v3  ;;  %v10588_v16 = vpack.c.bf16 %v4591_v50, %v4590_v52  ;;  %v4592_v3 = vld [vmem:[#allocation2 + $0x88] sm:$0xff]  ;;  %v8622_v50 = vld [vmem:[%s11439_s4 + $0x1c0] sm:$0xff]  }
 0x276   : > { %8338 = vmatpush3.bf16.msra.mxu0 %v8612_v62  ;;  %8295 = vmatprep.subr.bf16.mxu1 %v8610_v40  ;;  %v8614_v62 = vld [vmem:[%s11439_s4 + $0x190] sm:$0xff]   ;;  %v10606_v38 = vpack.c.bf16 %v4593_v6, %v4592_v3  ;;  %v4600_v52 = vld [vmem:[#allocation2 + $0xc8] sm:$0xff] }
 0x277   : > { %8339 = vmatprep.subr.bf16.mxu0 %v8613_v29  ;;  %v5191_v6 = vld [vmem:[#allocation2 + $0x2f] sm:$0xff] }
 0x279   : > { %8296 = vmatpush3.bf16.msra.mxu1 %v8610_v40  ;;  %v4597_v40 = vld [vmem:[#allocation2 + $0xb0] sm:$0xff] }
 0x27a   : > { %8340 = vmatpush3.bf16.msra.mxu0 %v8613_v29  ;;  %8297 = vmatprep.subr.bf16.mxu1 %v8611_v53  ;;  %v8621_v29 = vld [vmem:[%s11439_s4 + $0x1c8] sm:$0xff]  }
 0x27b   : > { %8341 = vmatprep.subr.bf16.mxu0 %v8615_v54  ;;  %8262 = vmatmul.mubr.bf16.gmra.mxu0 %v10456_v5  ;;  %v4595_v5 = vld [vmem:[#allocation2 + $0xa0] sm:$0xff] }
 0x27c   : > { %8218 = vmatmul.mubr.bf16.gmra.mxu1 %v10586_v19  ;;  %8265 = vmatprep.mubr.bf16.mxu0 %v10475_v32  ;;  %v4594_v32 = vld [vmem:[#allocation2 + $0x98] sm:$0xff] }
 0x27d   : > { %8221 = vmatprep.mubr.bf16.mxu1 %v10588_v16  ;;  %8298 = vmatpush3.bf16.msra.mxu1 %v8611_v53  ;;  %v10608_v22 = vpack.c.bf16 %v4595_v5, %v4594_v32  ;;  %v4596_v53 = vld [vmem:[#allocation2 + $0xa8] sm:$0xff] }
 0x27e   : > { %8342 = vmatpush3.bf16.msra.mxu0 %v8615_v54  ;;  %8299 = vmatprep.subr.bf16.mxu1 %v8614_v62  ;;  %v10628_v54 = vpack.c.bf16 %v4597_v40, %v4596_v53  ;;  %v5194_v5 = vld [vmem:[#allocation2 + $0x47] sm:$0xff]  ;;  %v5195_v32 = vld [vmem:[#allocation2 + $0x4f] sm:$0xff]  ;;  %v5197_v40 = vld [vmem:[#allocation2 + $0x5f] sm:$0xff] }
 0x27f   : > { %8343 = vmatprep.subr.bf16.mxu0 %v8616_v10  ;;  %v5198_v53 = vld [vmem:[#allocation2 + $0x67] sm:$0xff] }
 0x281   : > { %8300 = vmatpush3.bf16.msra.mxu1 %v8614_v62  ;;  %v10638_v62 = vpack.c.bf16 %v4601_v4, %v4600_v52  ;;  %v5199_v52 = vld [vmem:[#allocation2 + $0x6f] sm:$0xff] }
 0x282   : > { %8344 = vmatpush3.bf16.msra.mxu0 %v8616_v10  ;;  %8301 = vmatprep.subr.bf16.mxu1 %v8617_v35 }
 0x283   : > { %8345 = vmatprep.subr.bf16.mxu0 %v8618_v28  ;;  %8266 = vmatmul.mubr.bf16.gmra.mxu0 %v10477_v26  ;;  %v10626_v26 = vld [vmem:[#allocation2 + $0xb8] sm:$0xff] }
 0x284   : > { %8222 = vmatmul.mubr.bf16.gmra.mxu1 %v10606_v38  ;;  %8269 = vmatprep.mubr.bf16.mxu0 %v10495_v25  ;;  %v4620_v25 = vpack.c.bf16 %v10366_v17, %v10626_v26  ;;  %v4605_v17 = vld [vmem:[#allocation2 + $0xf0] sm:$0xff] }
 0x285   : > { %8225 = vmatprep.mubr.bf16.mxu1 %v10608_v22  ;;  %8302 = vmatpush3.bf16.msra.mxu1 %v8617_v35  ;;  %v4915_v35 = vld [vmem:[#allocation2 + $0x111] sm:$0xff] }
 0x286   : > { %8346 = vmatpush3.bf16.msra.mxu0 %v8618_v28  ;;  %8303 = vmatprep.subr.bf16.mxu1 %v8620_v18  ;;  %v5193_v28 = vld [vmem:[#allocation2 + $0x3f] sm:$0xff] }
 0x287   : > { %8347 = vmatprep.subr.bf16.mxu0 %v8619_v41 }
 0x289   : > { %8304 = vmatpush3.bf16.msra.mxu1 %v8620_v18  ;;  %v8625_v18 = vld [vmem:[%s11439_s4 + $0x228] sm:$0xff]  }
 0x28a   : > { %8348 = vmatpush3.bf16.msra.mxu0 %v8619_v41  ;;  %8385 = vmatprep.subr.bf16.mxu1 %v8623_v24  ;;  %v5224_v41 = vpack.c.bf16 %v5195_v32, %v5194_v5 }
 0x28b   : > { %8349 = vmatprep.subr.bf16.mxu0 %v8621_v29  ;;  %8270 = vmatmul.mubr.bf16.gmra.mxu0 %v10497_v48  ;;  %v4604_v48 = vld [vmem:[#allocation2 + $0xe8] sm:$0xff] }
 0x28c   : > { %8226 = vmatmul.mubr.bf16.gmra.mxu1 %v10628_v54  ;;  %8273 = vmatprep.mubr.bf16.mxu0 %v10515_v51  ;;  %v10644_v10 = vpack.c.bf16 %v4605_v17, %v4604_v48  ;;  %v10650_v51 = vld [vmem:[#allocation2 + $0x108] sm:$0xff]  ;;  %v5226_v17 = vpack.c.bf16 %v5199_v52, %v5198_v53  ;;  %v5205_v52 = vld [vmem:[#allocation2 + $0x9f] sm:$0xff] }
 0x28d   : > { %8229 = vmatprep.mubr.bf16.mxu1 %v4620_v25  ;;  %v5196_v25 = vld [vmem:[#allocation2 + $0x57] sm:$0xff] }
 0x28e   : > { %8350 = vmatpush3.bf16.msra.mxu0 %v8621_v29  ;;  %v5225_v4 = vpack.c.bf16 %v5197_v40, %v5196_v25 }
 0x28f   : > { %8351 = vmatprep.subr.bf16.mxu0 %v8622_v50 }
 0x292   : > { %8352 = vmatpush3.bf16.msra.mxu0 %v8622_v50 }
 0x293   : > { %8274 = vmatmul.mubr.bf16.gmra.mxu0 %v10517_v1  ;;  %v5190_v1 = vld [vmem:[#allocation2 + $0x27] sm:$0xff] }
 0x294   : > { %8230 = vmatmul.mubr.bf16.gmra.mxu1 %v10638_v62  ;;  %8277 = vmatprep.mubr.bf16.mxu0 %v10529_v21  ;;  %v4625_v21 = vpack.c.bf16 %v10423_v63, %v10650_v51  ;;  %v8624_v63 = vld [vmem:[%s11439_s4 + $0x230] sm:$0xff]  }
 0x295   : > { %8233 = vmatprep.mubr.bf16.mxu1 %v10414_v59  ;;  %v5222_v59 = vpack.c.bf16 %v5191_v6, %v5190_v1 }
 0x29b   : > { %8278 = vmatmul.mubr.bf16.gmra.mxu0 %v10531_v39  ;;  %v4914_v39 = vld [vmem:[#allocation2 + $0x109] sm:$0xff] }
 0x29c   : > { %8234 = vmatmul.mubr.bf16.gmra.mxu1 %v10644_v10  ;;  %8281 = vmatprep.mubr.bf16.mxu0 %v10537_v58  ;;  %v5192_v58 = vld [vmem:[#allocation2 + $0x37] sm:$0xff] }
 0x29d   : > { %8237 = vmatprep.mubr.bf16.mxu1 %v10432_v60  ;;  %v10656_v60 = vpack.c.bf16 %v4915_v35, %v4914_v39  ;;  %v5223_v3 = vpack.c.bf16 %v5193_v28, %v5192_v58  ;;  %v5201_v39 = vld [vmem:[#allocation2 + $0x7f] sm:$0xff]  ;;  %v5202_v58 = vld [vmem:[#allocation2 + $0x87] sm:$0xff] }
 0x29e   : > { %v8627_v35 = vld [vmem:[%s11439_s4 + $0x218] sm:$0xff]  }
 0x2a3   : > { %8282 = vmatmul.mubr.bf16.gmra.mxu0 %v10539_v13 }
 0x2a4   : > { %8238 = vmatmul.mubr.bf16.gmra.mxu1 %v4625_v21  ;;  %8285 = vmatprep.mubr.bf16.mxu0 %v10545_v37 }
 0x2a5   : > { %8305 = vmatprep.mubr.bf16.mxu1 %v5222_v59 }
 0x2a9   : > { %v8019_v13 = vpop.f32.mrf.mxu1 }
 0x2ab   : > { %8286 = vmatmul.mubr.bf16.gmra.mxu0 %v10656_v60  ;;  %v3630_v37 = vpop.f32.mrf.mxu1 }
 0x2ac   : > { %8306 = vmatmul.mubr.bf16.vlgmr.msra.gmra.mxu1 %v5223_v3  ;;  %8353 = vmatprep.mubr.bf16.mxu0 %v10552_v34  ;;  %v8626_v34 = vld [vmem:[%s11439_s4 + $0x220] sm:$0xff]   ;;  %v5200_v3 = vld [vmem:[#allocation2 + $0x77] sm:$0xff] }
 0x2ad   : > { %8386 = vmatpush3.bf16.msra.mxu1 %v8623_v24  ;;  %8309 = vmatprep.mubr.bf16.mxu1 %v5224_v41  ;;  %v8020_v29 = vpop.f32.mrf.mxu1  ;;  %v5227_v32 = vpack.c.bf16 %v5201_v39, %v5200_v3  ;;  %v8630_v3 = vld [vmem:[%s11439_s4 + $0x200] sm:$0xff]  }
 0x2ae   : > { %8387 = vmatprep.subr.bf16.mxu1 %v8624_v63 }
 0x2af   : > { %v3633_v50 = vpop.f32.mrf.mxu1 }
 0x2b1   : > { %8388 = vmatpush3.bf16.msra.mxu1 %v8624_v63  ;;  %v8067_v24 = vpop.f32.mrf.mxu0  ;;  %v8023_v48 = vpop.f32.mrf.mxu1 }
 0x2b2   : > { %8389 = vmatprep.subr.bf16.mxu1 %v8625_v18  ;;  %v10670_v1 = vadd.f32 %v8067_v24, %v8019_v13  ;;  %v5203_v13 = vld [vmem:[#allocation2 + $0x8f] sm:$0xff]  ;;  %v5206_v24 = vld [vmem:[#allocation2 + $0xa7] sm:$0xff] }
 0x2b3   : > { %8354 = vmatmul.mubr.bf16.vlgmr.msra.gmra.mxu0 %v10559_v49  ;;  %v3839_v21 = vpop.f32.mrf.mxu0  ;;  %v3646_v6 = vpop.f32.mrf.mxu1 }
 0x2b4   : > { %8310 = vmatmul.mubr.bf16.gmra.mxu1 %v5225_v4  ;;  %8357 = vmatprep.mubr.bf16.mxu0 %v10566_v56  ;;  %v10673_v59 = vadd.f32 %v3839_v21, %v3630_v37  ;;  %v5228_v37 = vpack.c.bf16 %v5203_v13, %v5202_v58  ;;  %v5207_v58 = vld [vmem:[#allocation2 + $0xaf] sm:$0xff] }
 0x2b5   : > { %8313 = vmatprep.mubr.bf16.mxu1 %v5226_v17  ;;  %8390 = vmatpush3.bf16.msra.mxu1 %v8625_v18  ;;  %v8068_v28 = vpop.f32.mrf.mxu0  ;;  %v8024_v49 = vpop.f32.mrf.mxu1  ;;  %v8628_v18 = vld [vmem:[%s11439_s4 + $0x210] sm:$0xff]   ;;  %v8629_v17 = vld [vmem:[%s11439_s4 + $0x208] sm:$0xff]  }
 0x2b6   : > { %8391 = vmatprep.subr.bf16.mxu1 %v8626_v34  ;;  %v10678_v5 = vadd.f32 %v8068_v28, %v8020_v29 }
 0x2b7   : > { %v3842_v63 = vpop.f32.mrf.mxu0  ;;  %v3649_v56 = vpop.f32.mrf.mxu1 }
 0x2b8   : > { %v10680_v41 = vadd.f32 %v3842_v63, %v3633_v50 }
 0x2b9   : > { %8392 = vmatpush3.bf16.msra.mxu1 %v8626_v34 }
 0x2ba   : > { %8393 = vmatprep.subr.bf16.mxu1 %v8627_v35  ;;  %v8071_v40 = vpop.f32.mrf.mxu0  ;;  %v8027_v53 = vpop.f32.mrf.mxu1 }
 0x2bb   : > { %8358 = vmatmul.mubr.bf16.gmra.mxu0 %v10568_v2  ;;  %v10686_v29 = vadd.f32 %v8071_v40, %v8023_v48  ;;  %v5204_v48 = vld [vmem:[#allocation2 + $0x97] sm:$0xff] }
 0x2bc   : > { %8314 = vmatmul.mubr.bf16.gmra.mxu1 %v5227_v32  ;;  %8361 = vmatprep.mubr.bf16.mxu0 %v10586_v19  ;;  %v3855_v25 = vpop.f32.mrf.mxu0  ;;  %v3662_v4 = vpop.f32.mrf.mxu1  ;;  %v5229_v28 = vpack.c.bf16 %v5205_v52, %v5204_v48  ;;  %v5210_v52 = vld [vmem:[#allocation2 + $0xc7] sm:$0xff] }
 0x2bd   : > { %8317 = vmatprep.mubr.bf16.mxu1 %v5228_v37  ;;  %8394 = vmatpush3.bf16.msra.mxu1 %v8627_v35  ;;  %v10689_v50 = vadd.f32 %v3855_v25, %v3646_v6  ;;  %v5230_v6 = vpack.c.bf16 %v5207_v58, %v5206_v24 }
 0x2be   : > { %8395 = vmatprep.subr.bf16.mxu1 %v8628_v18  ;;  %v8072_v34 = vpop.f32.mrf.mxu0  ;;  %v8028_v2 = vpop.f32.mrf.mxu1 }
 0x2bf   : > { %v10694_v21 = vadd.f32 %v8072_v34, %v8024_v49 }
 0x2c0   : > { %v3858_v39 = vpop.f32.mrf.mxu0  ;;  %v3665_v19 = vpop.f32.mrf.mxu1 }
 0x2c1   : > { %8396 = vmatpush3.bf16.msra.mxu1 %v8628_v18  ;;  %v10696_v35 = vadd.f32 %v3858_v39, %v3649_v56  ;;  %v5209_v18 = vld [vmem:[#allocation2 + $0xbf] sm:$0xff]  ;;  %v5211_v39 = vld [vmem:[#allocation2 + $0xcf] sm:$0xff] }
 0x2c2   : > { %8397 = vmatprep.subr.bf16.mxu1 %v8629_v17 }
 0x2c3   : > { %v8075_v63 = vpop.f32.mrf.mxu0  ;;  %8362 = vmatmul.mubr.bf16.gmra.mxu0 %v10588_v16  ;;  %v8031_v32 = vpop.f32.mrf.mxu1  ;;  %v5208_v16 = vld [vmem:[#allocation2 + $0xb7] sm:$0xff] }
 0x2c4   : > { %8318 = vmatmul.mubr.bf16.gmra.mxu1 %v5229_v28  ;;  %v10702_v49 = vadd.f32 %v8075_v63, %v8027_v53  ;;  %8365 = vmatprep.mubr.bf16.mxu0 %v10606_v38  ;;  %v5231_v53 = vpack.c.bf16 %v5209_v18, %v5208_v16  ;;  %v5232_v28 = vpack.c.bf16 %v5211_v39, %v5210_v52  ;;  %v5213_v18 = vld [vmem:[#allocation2 + $0xdf] sm:$0xff]  ;;  %v5212_v16 = vld [vmem:[#allocation2 + $0xd7] sm:$0xff] }
 0x2c5   : > { %8321 = vmatprep.mubr.bf16.mxu1 %v5230_v6  ;;  %v3871_v13 = vpop.f32.mrf.mxu0  ;;  %v3678_v37 = vpop.f32.mrf.mxu1  ;;  %8398 = vmatpush3.bf16.msra.mxu1 %v8629_v17 }
 0x2c6   : > { %v10705_v56 = vadd.f32 %v3871_v13, %v3662_v4  ;;  %8399 = vmatprep.subr.bf16.mxu1 %v8630_v3  ;;  %v5515_v13 = vld [vmem:[#allocation2 + $0xc0] sm:$0xff] }
 0x2c7   : > { %v8076_v40 = vpop.f32.mrf.mxu0  ;;  %v8032_v25 = vpop.f32.mrf.mxu1 }
 0x2c8   : > { %v10707_v34 = vadd.f32 %v8076_v40, %v8028_v2  ;;  %v5214_v40 = vld [vmem:[#allocation2 + $0xe7] sm:$0xff] }
 0x2c9   : > { %v3874_v24 = vpop.f32.mrf.mxu0  ;;  %v3681_v48 = vpop.f32.mrf.mxu1  ;;  %8400 = vmatpush3.bf16.msra.mxu1 %v8630_v3 }
 0x2ca   : > { %v10709_v38 = vadd.f32 %v3874_v24, %v3665_v19  ;;  %v5537_v24 = vpack.c.bf16 %v5515_v13, %v10626_v26  ;;  %v5519_v26 = vld [vmem:[#allocation2 + $0xe0] sm:$0xff] }
 0x2cb   : > { %v8079_v58 = vpop.f32.mrf.mxu0  ;;  %8366 = vmatmul.mubr.bf16.gmra.mxu0 %v10608_v22  ;;  %v5217_v13 = vld [vmem:[#allocation2 + $0xff] sm:$0xff] }
 0x2cc   : > { %v8035_v4 = vpop.f32.mrf.mxu1  ;;  %8322 = vmatmul.mubr.bf16.gmra.mxu1 %v5231_v53  ;;  %v10712_v17 = vadd.f32 %v8079_v58, %v8031_v32  ;;  %8369 = vmatprep.mubr.bf16.mxu0 %v10628_v54  ;;  %v5233_v53 = vpack.c.bf16 %v5213_v18, %v5212_v16  ;;  %v5215_v54 = vld [vmem:[#allocation2 + $0xef] sm:$0xff] }
 0x2cd   : > { %8325 = vmatprep.mubr.bf16.mxu1 %v5232_v28  ;;  %v3887_v2 = vpop.f32.mrf.mxu0  ;;  %v5234_v28 = vpack.c.bf16 %v5215_v54, %v5214_v40  ;;  %v5518_v40 = vld [vmem:[#allocation2 + $0xd8] sm:$0xff] }
 0x2ce   : > { %v3694_v6 = vpop.f32.mrf.mxu1  ;;  %v10715_v63 = vadd.f32 %v3887_v2, %v3678_v37 }
 0x2cf   : > { %v8080_v3 = vpop.f32.mrf.mxu0 }
 0x2d0   : > { %v8036_v19 = vpop.f32.mrf.mxu1  ;;  %v10717_v52 = vadd.f32 %v8080_v3, %v8032_v25 }
 0x2d1   : > { %v3890_v22 = vpop.f32.mrf.mxu0 }
 0x2d2   : > { %v10720_v32 = vpop.f32.mrf.mxu1  ;;  %v10722_v39 = vadd.f32 %v3890_v22, %v3681_v48  ;;  %v5216_v22 = vld [vmem:[#allocation2 + $0xf7] sm:$0xff] }
 0x2d3   : > { %v8083_v37 = vpop.f32.mrf.mxu0  ;;  %8370 = vmatmul.mubr.bf16.gmra.mxu0 %v5537_v24  ;;  %v5235_v54 = vpack.c.bf16 %v5217_v13, %v5216_v22  ;;  %v5803_v22 = vld [vmem:[#allocation2 + $0x31] sm:$0xff] }
 0x2d4   : > { %v8039_v58 = vpop.f32.mrf.mxu1  ;;  %8326 = vmatmul.mubr.bf16.gmra.mxu1 %v5233_v53  ;;  %v10724_v2 = vadd.f32 %v8083_v37, %v8035_v4  ;;  %8373 = vmatprep.mubr.bf16.mxu0 %v10638_v62  ;;  %v5539_v53 = vpack.c.bf16 %v5519_v26, %v5518_v40  ;;  %v5221_v26 = vld [vmem:[#allocation2 + $0x11f] sm:$0xff] }
 0x2d5   : > { %8329 = vmatprep.mubr.bf16.mxu1 %v5234_v28  ;;  %v3903_v25 = vpop.f32.mrf.mxu0 }
 0x2d6   : > { %v3710_v3 = vpop.f32.mrf.mxu1  ;;  %v10727_v61 = vadd.f32 %v3903_v25, %v3694_v6 }
 0x2d7   : > { %v8084_v18 = vpop.f32.mrf.mxu0 }
 0x2d8   : > { %v8040_v16 = vpop.f32.mrf.mxu1  ;;  %v10729_v48 = vadd.f32 %v8084_v18, %v8036_v19  ;;  %v5523_v18 = vld [vmem:[#allocation2 + $0x100] sm:$0xff] }
 0x2d9   : > { %v10731_v24 = vpop.f32.mrf.mxu0 }
 0x2da   : > { %v10733_v4 = vpop.f32.mrf.mxu1 }
 0x2db   : > { %v8087_v62 = vpop.f32.mrf.mxu0  ;;  %8374 = vmatmul.mubr.bf16.gmra.mxu0 %v5539_v53 }
 0x2dc   : > { %v8043_v28 = vpop.f32.mrf.mxu1  ;;  %8330 = vmatmul.mubr.bf16.gmra.mxu1 %v5235_v54  ;;  %v10735_v6 = vadd.f32 %v8087_v62, %v8039_v58  ;;  %8377 = vmatprep.mubr.bf16.mxu0 %v10644_v10  ;;  %v5522_v54 = vld [vmem:[#allocation2 + $0xf8] sm:$0xff] }
 0x2dd   : > { %8333 = vmatprep.mubr.bf16.mxu1 %v10550_v31  ;;  %v3919_v19 = vpop.f32.mrf.mxu0  ;;  %v5541_v62 = vpack.c.bf16 %v5523_v18, %v5522_v54  ;;  %v5237_v31 = vpack.c.bf16 %v5221_v26, %v5220_v55  ;;  %v5804_v18 = vld [vmem:[#allocation2 + $0x39] sm:$0xff]  ;;  %v5805_v54 = vld [vmem:[#allocation2 + $0x41] sm:$0xff] }
 0x2de   : > { %v3726_v37 = vpop.f32.mrf.mxu1  ;;  %v10739_v25 = vadd.f32 %v3919_v19, %v3710_v3  ;;  %v5542_v3 = vpack.c.bf16 %v5525_v43, %v10650_v51  ;;  %v5834_v19 = vpack.c.bf16 %v5803_v22, %v5802_v42  ;;  %v8647_v55 = vld [vmem:[#allocation2] sm:$0xff]  ;;  %v5807_v43 = vld [vmem:[#allocation2 + $0x51] sm:$0xff] }
 0x2df   : > { %v8088_v40 = vpop.f32.mrf.mxu0  ;;  %v5543_v26 = vpack.c.bf16 %v8647_v55, %v8647_v55 }
 0x2e0   : > { %v8044_v13 = vpop.f32.mrf.mxu1  ;;  %v10741_v53 = vadd.f32 %v8088_v40, %v8040_v16 }
 0x2e1   : > { %v10743_v58 = vpop.f32.mrf.mxu0 }
 0x2e2   : > { %v10745_v10 = vpop.f32.mrf.mxu1 }
 0x2e3   : > { %v8091_v30 = vpop.f32.mrf.mxu0  ;;  %8378 = vmatmul.mubr.bf16.gmra.mxu0 %v5541_v62 }
 0x2e4   : > { %v8047_v14 = vpop.f32.mrf.mxu1  ;;  %8334 = vmatmul.mubr.bf16.gmra.mxu1 %v5237_v31  ;;  %v10748_v36 = vadd.f32 %v8091_v30, %v8043_v28  ;;  %8381 = vmatprep.mubr.bf16.mxu0 %v5542_v3  ;;  %v5835_v30 = vpack.c.bf16 %v5805_v54, %v5804_v18  ;;  %v5806_v28 = vld [vmem:[#allocation2 + $0x49] sm:$0xff] }
 0x2e5   : > { %8401 = vmatprep.mubr.bf16.mxu1 %v5834_v19  ;;  %v3935_v16 = vpop.f32.mrf.mxu0  ;;  %v5836_v62 = vpack.c.bf16 %v5807_v43, %v5806_v28  ;;  %v5811_v43 = vld [vmem:[#allocation2 + $0x71] sm:$0xff] }
 0x2e6   : > { %v3742_v40 = vpop.f32.mrf.mxu1  ;;  %v10750_v47 = vadd.f32 %v3935_v16, %v3726_v37 }
 0x2e7   : > { %v8092_v45 = vpop.f32.mrf.mxu0 }
 0x2e8   : > { %v8048_v9 = vpop.f32.mrf.mxu1  ;;  %v10752_v42 = vadd.f32 %v8092_v45, %v8044_v13 }
 0x2e9   : > { %v10754_v51 = vpop.f32.mrf.mxu0 }
 0x2ea   : > { %v10756_v22 = vpop.f32.mrf.mxu1 }
 0x2eb   : > { %v8095_v31 = vpop.f32.mrf.mxu0  ;;  %8382 = vmatmul.mubr.bf16.gmra.mxu0 %v5543_v26 }
 0x2ec   : > { %v8115_v37 = vpop.f32.mrf.mxu1  ;;  %8402 = vmatmul.mubr.bf16.vlgmr.msra.gmra.mxu1 %v5835_v30  ;;  %v10758_v3 = vadd.f32 %v8095_v31, %v8047_v14 }
 0x2ed   : > { %v4242_v19 = vadd.f32 %v8115_v37, %v10670_v1  ;;  %8405 = vmatprep.mubr.bf16.mxu1 %v5836_v62  ;;  %v3951_v16 = vpop.f32.mrf.mxu0  ;;  %v5837_v1 = vpack.c.bf16 %v5809_v12, %v5808_v23  ;;  %v5810_v62 = vld [vmem:[#allocation2 + $0x69] sm:$0xff]  ;;  %v5812_v12 = vld [vmem:[#allocation2 + $0x79] sm:$0xff]  ;;  %v5813_v23 = vld [vmem:[#allocation2 + $0x81] sm:$0xff] }
 0x2ee   : > { %v4113_v55 = vpop.f32.mrf.mxu1  ;;  %v10761_v45 = vadd.f32 %v3951_v16, %v3742_v40  ;;  %v5838_v40 = vpack.c.bf16 %v5811_v43, %v5810_v62 }
 0x2ef   : > { %v4240_v13 = vadd.f32 %v4113_v55, %v10673_v59  ;;  %v8096_v18 = vpop.f32.mrf.mxu0 }
 0x2f0   : > { %v8116_v54 = vpop.f32.mrf.mxu1  ;;  %v10764_v28 = vadd.f32 %v8096_v18, %v8048_v9 }
 0x2f1   : > { %v4243_v26 = vadd.f32 %v8116_v54, %v10678_v5  ;;  %v10767_v14 = vpop.f32.mrf.mxu0 }
 0x2f2   : > { %v4116_v30 = vpop.f32.mrf.mxu1 }
 0x2f3   : > { %v10770_v31 = vadd.f32 %v4116_v30, %v10680_v41  ;;  %v8163_v37 = vpop.f32.mrf.mxu0  ;;  %v5815_v30 = vld [vmem:[#allocation2 + $0x91] sm:$0xff] }
 0x2f4   : > { %v8119_v59 = vpop.f32.mrf.mxu1  ;;  %8406 = vmatmul.mubr.bf16.gmra.mxu1 %v5837_v1  ;;  %v10772_v16 = vadd.f32 %v8163_v37, %v4242_v19 }
 0x2f5   : > { %v4246_v55 = vadd.f32 %v8119_v59, %v10686_v29  ;;  %8409 = vmatprep.mubr.bf16.mxu1 %v5838_v40  ;;  %v4419_v9 = vpop.f32.mrf.mxu0  ;;  %v5839_v29 = vpack.c.bf16 %v5813_v23, %v5812_v12  ;;  %v5814_v40 = vld [vmem:[#allocation2 + $0x89] sm:$0xff]  ;;  %v5816_v12 = vld [vmem:[#allocation2 + $0x99] sm:$0xff]  ;;  %v5817_v23 = vld [vmem:[#allocation2 + $0xa1] sm:$0xff] }
 0x2f6   : > { %v4129_v18 = vpop.f32.mrf.mxu1  ;;  %v10775_v5 = vadd.f32 %v4419_v9, %v4240_v13  ;;  %v5840_v13 = vpack.c.bf16 %v5815_v30, %v5814_v40 }
 0x2f7   : > { %v4244_v54 = vadd.f32 %v4129_v18, %v10689_v50  ;;  %v8164_v46 = vpop.f32.mrf.mxu0 }
 0x2f8   : > { %v8120_v41 = vpop.f32.mrf.mxu1  ;;  %v10778_v43 = vadd.f32 %v8164_v46, %v4243_v26 }
 0x2f9   : > { %v4247_v1 = vadd.f32 %v8120_v41, %v10694_v21  ;;  %v10781_v19 = vpop.f32.mrf.mxu0 }
 0x2fa   : > { %v4132_v62 = vpop.f32.mrf.mxu1 }
 0x2fb   : > { %v10784_v37 = vadd.f32 %v4132_v62, %v10696_v35  ;;  %v8167_v59 = vpop.f32.mrf.mxu0  ;;  %v5819_v62 = vld [vmem:[#allocation2 + $0xb1] sm:$0xff] }
 0x2fc   : > { %v8123_v50 = vpop.f32.mrf.mxu1  ;;  %8410 = vmatmul.mubr.bf16.gmra.mxu1 %v5839_v29  ;;  %v10786_v9 = vadd.f32 %v8167_v59, %v4246_v55 }
 0x2fd   : > { %v4250_v18 = vadd.f32 %v8123_v50, %v10702_v49  ;;  %8413 = vmatprep.mubr.bf16.mxu1 %v5840_v13  ;;  %v4435_v46 = vpop.f32.mrf.mxu0  ;;  %v5841_v49 = vpack.c.bf16 %v5817_v23, %v5816_v12  ;;  %v5818_v13 = vld [vmem:[#allocation2 + $0xa9] sm:$0xff]  ;;  %v5820_v23 = vld [vmem:[#allocation2 + $0xb9] sm:$0xff] }
 0x2fe   : > { %v4145_v26 = vpop.f32.mrf.mxu1  ;;  %v10789_v21 = vadd.f32 %v4435_v46, %v4244_v54  ;;  %v5842_v54 = vpack.c.bf16 %v5819_v62, %v5818_v13 }
 0x2ff   : > { %v4248_v41 = vadd.f32 %v4145_v26, %v10705_v56  ;;  %v8168_v44 = vpop.f32.mrf.mxu0 }
 0x300   : > { %v8124_v35 = vpop.f32.mrf.mxu1  ;;  %v10792_v30 = vadd.f32 %v8168_v44, %v4247_v1  ;;  %v8631_v44 = vld [vmem:[%s11441_s6 + $0x38] sm:$0xff]  }
 0x301   : > { %v4251_v29 = vadd.f32 %v8124_v35, %v10707_v34  ;;  %v10795_v55 = vpop.f32.mrf.mxu0  ;;  %v5821_v35 = vld [vmem:[#allocation2 + $0xc1] sm:$0xff]  ;;  %8433 = vmatprep.subr.bf16.mxu0 %v8631_v44 }
 0x302   : > { %v4148_v40 = vpop.f32.mrf.mxu1  ;;  %8434 = vmatpush3.bf16.msra.mxu0 %v8631_v44 }
 0x303   : > { %v10798_v59 = vadd.f32 %v4148_v40, %v10709_v38  ;;  %v8171_v50 = vpop.f32.mrf.mxu0 }
 0x304   : > { %v8127_v56 = vpop.f32.mrf.mxu1  ;;  %8414 = vmatmul.mubr.bf16.gmra.mxu1 %v5841_v49  ;;  %v10800_v46 = vadd.f32 %v8171_v50, %v4250_v18  ;;  %v5823_v18 = vld [vmem:[#allocation2 + $0xd1] sm:$0xff]  ;;  %v5843_v50 = vpack.c.bf16 %v5821_v35, %v5820_v23  ;;  %v5824_v35 = vld [vmem:[#allocation2 + $0xd9] sm:$0xff] }
 0x305   : > { %v4254_v26 = vadd.f32 %v8127_v56, %v10712_v17  ;;  %8417 = vmatprep.mubr.bf16.mxu1 %v5842_v54  ;;  %v4451_v34 = vpop.f32.mrf.mxu0  ;;  %v5822_v56 = vld [vmem:[#allocation2 + $0xc9] sm:$0xff] }
 0x306   : > { %v4161_v1 = vpop.f32.mrf.mxu1  ;;  %v10806_v12 = vadd.f32 %v4451_v34, %v4248_v41 }
 0x307   : > { %v4252_v38 = vadd.f32 %v4161_v1, %v10715_v63  ;;  %v8172_v62 = vpop.f32.mrf.mxu0  ;;  %v5844_v63 = vpack.c.bf16 %v5823_v18, %v5822_v56 }
 0x308   : > { %v8128_v40 = vpop.f32.mrf.mxu1  ;;  %v10809_v49 = vadd.f32 %v8172_v62, %v4251_v29 }
 0x309   : > { %v4255_v17 = vadd.f32 %v8128_v40, %v10717_v52  ;;  %v10812_v13 = vpop.f32.mrf.mxu0  ;;  %v8632_v52 = vld [vmem:[%s11441_s6 + $0x30] sm:$0xff]   ;;  %v5825_v40 = vld [vmem:[#allocation2 + $0xe1] sm:$0xff] }
 0x30a   : > { %v4164_v54 = vpop.f32.mrf.mxu1  ;;  %8435 = vmatprep.subr.bf16.mxu0 %v8632_v52 }
 0x30b   : > { %v10815_v41 = vadd.f32 %v4164_v54, %v10722_v39  ;;  %v8175_v34 = vpop.f32.mrf.mxu0  ;;  %8436 = vmatpush3.bf16.msra.mxu0 %v8632_v52 }
 0x30c   : > { %v8131_v1 = vpop.f32.mrf.mxu1  ;;  %8418 = vmatmul.mubr.bf16.gmra.mxu1 %v5843_v50  ;;  %v10817_v20 = vadd.f32 %v8175_v34, %v4254_v26  ;;  %v5827_v26 = vld [vmem:[#allocation2 + $0xf1] sm:$0xff]  ;;  %v5845_v34 = vpack.c.bf16 %v5825_v40, %v5824_v35 }
 0x30d   : > { %v4258_v44 = vadd.f32 %v8131_v1, %v10724_v2  ;;  %8421 = vmatprep.mubr.bf16.mxu1 %v5844_v63  ;;  %v4467_v29 = vpop.f32.mrf.mxu0  ;;  %v5826_v1 = vld [vmem:[#allocation2 + $0xe9] sm:$0xff] }
 0x30e   : > { %v4177_v62 = vpop.f32.mrf.mxu1  ;;  %v10823_v23 = vadd.f32 %v4467_v29, %v4252_v38  ;;  %v5846_v38 = vpack.c.bf16 %v5827_v26, %v5826_v1  ;;  %v5829_v26 = vld [vmem:[#allocation2 + $0x101] sm:$0xff] }
 0x30f   : > { %v4256_v39 = vadd.f32 %v4177_v62, %v10727_v61  ;;  %v8176_v18 = vpop.f32.mrf.mxu0 }
 0x310   : > { %v8132_v54 = vpop.f32.mrf.mxu1  ;;  %v10826_v50 = vadd.f32 %v8176_v18, %v4255_v17  ;;  %v8633_v17 = vld [vmem:[%s11441_s6 + $0x28] sm:$0xff]   ;;  %v3907_v18 = vadd.f32 %v10731_v24, %v10720_v32 }
 0x311   : > { %v4259_v2 = vadd.f32 %v8132_v54, %v10729_v48  ;;  %v10829_v56 = vpop.f32.mrf.mxu0  ;;  %v5828_v54 = vld [vmem:[#allocation2 + $0xf9] sm:$0xff]  ;;  %8437 = vmatprep.subr.bf16.mxu0 %v8633_v17 }
 0x312   : > { %v4180_v63 = vpop.f32.mrf.mxu1  ;;  %8438 = vmatpush3.bf16.msra.mxu0 %v8633_v17  ;;  %v5847_v15 = vpack.c.bf16 %v5829_v26, %v5828_v54  ;;  %v5832_v17 = vld [vmem:[#allocation2 + $0x119] sm:$0xff] }
 0x313   : > { %v8179_v29 = vpop.f32.mrf.mxu0 }
 0x314   : > { %v8135_v0 = vpop.f32.mrf.mxu1  ;;  %8422 = vmatmul.mubr.bf16.gmra.mxu1 %v5845_v34  ;;  %v10831_v61 = vadd.f32 %v8179_v29, %v4258_v44 }
 0x315   : > { %v4262_v62 = vadd.f32 %v8135_v0, %v10735_v6  ;;  %8425 = vmatprep.mubr.bf16.mxu1 %v5846_v38  ;;  %v4483_v52 = vpop.f32.mrf.mxu0  ;;  %v4257_v6 = vadd.f32 %v4180_v63, %v3907_v18 }
 0x316   : > { %v4193_v48 = vpop.f32.mrf.mxu1  ;;  %v10839_v35 = vadd.f32 %v4483_v52, %v4256_v39 }
 0x317   : > { %v4260_v40 = vadd.f32 %v4193_v48, %v10739_v25  ;;  %v8180_v44 = vpop.f32.mrf.mxu0  ;;  %v3923_v48 = vadd.f32 %v10743_v58, %v10733_v4 }
 0x318   : > { %v8136_v34 = vpop.f32.mrf.mxu1  ;;  %v10842_v0 = vadd.f32 %v8180_v44, %v4259_v2  ;;  %v5833_v2 = vld [vmem:[#allocation2 + $0x121] sm:$0xff] }
 0x319   : > { %v4263_v1 = vadd.f32 %v8136_v34, %v10741_v53  ;;  %v4486_v38 = vpop.f32.mrf.mxu0  ;;  %v8634_v53 = vld [vmem:[%s11441_s6 + $0x20] sm:$0xff]   ;;  %v5849_v54 = vpack.c.bf16 %v5833_v2, %v5832_v17 }
 0x31a   : > { %v4196_v29 = vpop.f32.mrf.mxu1  ;;  %v10845_v8 = vadd.f32 %v4486_v38, %v4257_v6  ;;  %8439 = vmatprep.subr.bf16.mxu0 %v8634_v53 }
 0x31b   : > { %v8183_v32 = vpop.f32.mrf.mxu0  ;;  %8440 = vmatpush3.bf16.msra.mxu0 %v8634_v53  ;;  %v4261_v26 = vadd.f32 %v4196_v29, %v3923_v48 }
 0x31c   : > { %v8139_v24 = vpop.f32.mrf.mxu1  ;;  %8426 = vmatmul.mubr.bf16.gmra.mxu1 %v5847_v15  ;;  %v10847_v25 = vadd.f32 %v8183_v32, %v4262_v62 }
 0x31d   : > { %v4266_v39 = vadd.f32 %v8139_v24, %v10748_v36  ;;  %8429 = vmatprep.mubr.bf16.mxu1 %v10656_v60  ;;  %v4499_v63 = vpop.f32.mrf.mxu0 }
 0x31e   : > { %v4209_v52 = vpop.f32.mrf.mxu1  ;;  %v10856_v18 = vadd.f32 %v4499_v63, %v4260_v40  ;;  %v8635_v40 = vld [vmem:[%s11441_s6 + $0x18] sm:$0xff]  }
 0x31f   : > { %v4264_v15 = vadd.f32 %v4209_v52, %v10750_v47  ;;  %v8184_v62 = vpop.f32.mrf.mxu0  ;;  %8441 = vmatprep.subr.bf16.mxu0 %v8635_v40 }
 0x320   : > { %v8140_v36 = vpop.f32.mrf.mxu1  ;;  %v10859_v60 = vadd.f32 %v8184_v62, %v4263_v1  ;;  %8442 = vmatpush3.bf16.msra.mxu0 %v8635_v40 }
 0x321   : > { %v4267_v44 = vadd.f32 %v8140_v36, %v10752_v42  ;;  %v4502_v34 = vpop.f32.mrf.mxu0  ;;  %v3939_v42 = vadd.f32 %v10754_v51, %v10745_v10  ;;  %v8636_v10 = vld [vmem:[%s11441_s6 + $0x10] sm:$0xff]  }
 0x322   : > { %v4212_v6 = vpop.f32.mrf.mxu1  ;;  %v10862_v38 = vadd.f32 %v4502_v34, %v4261_v26  ;;  %8443 = vmatprep.subr.bf16.mxu0 %v8636_v10 }
 0x323   : > { %v8187_v32 = vpop.f32.mrf.mxu0 }
 0x324   : > { %v8143_v4 = vpop.f32.mrf.mxu1  ;;  %8430 = vmatmul.mubr.bf16.gmra.mxu1 %v5849_v54  ;;  %v10864_v58 = vadd.f32 %v8187_v32, %v4266_v39  ;;  %8444 = vmatpush3.bf16.msra.mxu0 %v8636_v10 }
 0x325   : > { %v4270_v47 = vadd.f32 %v8143_v4, %v10758_v3  ;;  %v4515_v1 = vpop.f32.mrf.mxu0  ;;  %v4265_v3 = vadd.f32 %v4212_v6, %v3939_v42 }
 0x326   : > { %v4225_v24 = vpop.f32.mrf.mxu1  ;;  %v10872_v29 = vadd.f32 %v4515_v1, %v4264_v15 }
 0x327   : > { %v4268_v17 = vadd.f32 %v4225_v24, %v10761_v45  ;;  %v8188_v2 = vpop.f32.mrf.mxu0 }
 0x328   : > { %v8144_v53 = vpop.f32.mrf.mxu1  ;;  %v10875_v39 = vadd.f32 %v8188_v2, %v4267_v44 }
 0x329   : > { %v4271_v63 = vadd.f32 %v8144_v53, %v10764_v28  ;;  %v4518_v52 = vpop.f32.mrf.mxu0  ;;  %v3955_v28 = vadd.f32 %v10767_v14, %v10756_v22  ;;  %v8637_v22 = vld [vmem:[%s11441_s6 + $0x8] sm:$0xff]  }
 0x32a   : > { %v4228_v48 = vpop.f32.mrf.mxu1  ;;  %v10878_v62 = vadd.f32 %v4518_v52, %v4265_v3  ;;  %8445 = vmatprep.subr.bf16.mxu0 %v8637_v22 }
 0x32b   : > { %v8191_v51 = vpop.f32.mrf.mxu0  ;;  %v4269_v40 = vadd.f32 %v4228_v48, %v3955_v28  ;;  %8446 = vmatpush3.bf16.msra.mxu0 %v8637_v22 }
 0x32c   : > { %v8211_v15 = vpop.f32.mrf.mxu1  ;;  %v10883_v45 = vadd.f32 %v8191_v51, %v4270_v47 }
 0x32d   : > { %v4854_v36 = vadd.f32 %v8211_v15, %v10772_v16  ;;  %v4531_v54 = vpop.f32.mrf.mxu0 }
 0x32e   : > { %v4725_v26 = vpop.f32.mrf.mxu1  ;;  %v10888_v44 = vadd.f32 %v4531_v54, %v4268_v17 }
 0x32f   : > { %v4852_v34 = vadd.f32 %v4725_v26, %v10775_v5  ;;  %v8192_v6 = vpop.f32.mrf.mxu0 }
 0x330   : > { %v8212_v32 = vpop.f32.mrf.mxu1  ;;  %v10891_v4 = vadd.f32 %v8192_v6, %v4271_v63 }
 0x331   : > { %v4855_v47 = vadd.f32 %v8212_v32, %v10778_v43  ;;  %v4534_v1 = vpop.f32.mrf.mxu0 }
 0x332   : > { %v10894_v16 = vpop.f32.mrf.mxu1  ;;  %v10896_v24 = vadd.f32 %v4534_v1, %v4269_v40 }
 0x333   : > { %v8259_v14 = vpop.f32.mrf.mxu0 }
 0x334   : > { %v8215_v42 = vpop.f32.mrf.mxu1  ;;  %v10901_v17 = vadd.f32 %v8259_v14, %v4854_v36 }
 0x335   : > { %v4858_v5 = vadd.f32 %v8215_v42, %v10786_v9  ;;  %v5031_v2 = vpop.f32.mrf.mxu0  ;;  %v8638_v9 = vld [vmem:[%s11441_s6] sm:$0xff]  }
 0x336   : > { %v4741_v53 = vpop.f32.mrf.mxu1  ;;  %v10904_v43 = vadd.f32 %v5031_v2, %v4852_v34  ;;  %8447 = vmatprep.subr.bf16.mxu0 %v8638_v9 }
 0x337   : > { %v4856_v3 = vadd.f32 %v4741_v53, %v10789_v21  ;;  %v8260_v63 = vpop.f32.mrf.mxu0  ;;  %8448 = vmatpush3.bf16.msra.mxu0 %v8638_v9 }
 0x338   : > { %v8216_v52 = vpop.f32.mrf.mxu1  ;;  %v10907_v48 = vadd.f32 %v8260_v63, %v4855_v47 }
 0x339   : > { %v4859_v10 = vadd.f32 %v8216_v52, %v10792_v30  ;;  %v10910_v51 = vpop.f32.mrf.mxu0 }
 0x33a   : > { %v10912_v15 = vpop.f32.mrf.mxu1 }
 0x33b   : > { %v8263_v36 = vpop.f32.mrf.mxu0 }
 0x33c   : > { %v8219_v54 = vpop.f32.mrf.mxu1  ;;  %v10917_v26 = vadd.f32 %v8263_v36, %v4858_v5 }
 0x33d   : > { %v4862_v21 = vadd.f32 %v8219_v54, %v10800_v46  ;;  %v5047_v28 = vpop.f32.mrf.mxu0 }
 0x33e   : > { %v4757_v34 = vpop.f32.mrf.mxu1  ;;  %v10920_v6 = vadd.f32 %v5047_v28, %v4856_v3 }
 0x33f   : > { %v4860_v30 = vadd.f32 %v4757_v34, %v10806_v12  ;;  %v8264_v32 = vpop.f32.mrf.mxu0 }
 0x340   : > { %v8220_v40 = vpop.f32.mrf.mxu1  ;;  %v10923_v47 = vadd.f32 %v8264_v32, %v4859_v10 }
 0x341   : > { %v4863_v1 = vadd.f32 %v8220_v40, %v10809_v49  ;;  %v10926_v22 = vpop.f32.mrf.mxu0 }
 0x342   : > { %v10928_v14 = vpop.f32.mrf.mxu1 }
 0x343   : > { %v8267_v42 = vpop.f32.mrf.mxu0 }
 0x344   : > { %v8223_v46 = vpop.f32.mrf.mxu1  ;;  %v10930_v5 = vadd.f32 %v8267_v42, %v4862_v21 }
 0x345   : > { %v4866_v2 = vadd.f32 %v8223_v46, %v10817_v20  ;;  %v5063_v53 = vpop.f32.mrf.mxu0 }
 0x346   : > { %v4773_v3 = vpop.f32.mrf.mxu1  ;;  %v10933_v63 = vadd.f32 %v5063_v53, %v4860_v30 }
 0x347   : > { %v4864_v12 = vadd.f32 %v4773_v3, %v10823_v23  ;;  %v8268_v52 = vpop.f32.mrf.mxu0 }
 0x348   : > { %v8224_v10 = vpop.f32.mrf.mxu1  ;;  %v10936_v9 = vadd.f32 %v8268_v52, %v4863_v1 }
 0x349   : > { %v4867_v49 = vadd.f32 %v8224_v10, %v10826_v50  ;;  %v10939_v36 = vpop.f32.mrf.mxu0 }
 0x34a   : > { %v10941_v54 = vpop.f32.mrf.mxu1 }
 0x34b   : > { %v8271_v21 = vpop.f32.mrf.mxu0 }
 0x34c   : > { %v8227_v28 = vpop.f32.mrf.mxu1  ;;  %v10943_v34 = vadd.f32 %v8271_v21, %v4866_v2 }
 0x34d   : > { %v4870_v20 = vadd.f32 %v8227_v28, %v10831_v61  ;;  %v5079_v30 = vpop.f32.mrf.mxu0 }
 0x34e   : > { %v4789_v32 = vpop.f32.mrf.mxu1  ;;  %v10946_v40 = vadd.f32 %v5079_v30, %v4864_v12 }
 0x34f   : > { %v4868_v23 = vadd.f32 %v4789_v32, %v10839_v35  ;;  %v8272_v1 = vpop.f32.mrf.mxu0 }
 0x350   : > { %v8228_v42 = vpop.f32.mrf.mxu1  ;;  %v10949_v46 = vadd.f32 %v8272_v1, %v4867_v49 }
 0x351   : > { %v4871_v50 = vadd.f32 %v8228_v42, %v10842_v0  ;;  %v10952_v53 = vpop.f32.mrf.mxu0 }
 0x352   : > { %v4792_v3 = vpop.f32.mrf.mxu1 }
 0x353   : > { %v10955_v2 = vadd.f32 %v4792_v3, %v10845_v8  ;;  %v8275_v52 = vpop.f32.mrf.mxu0 }
 0x354   : > { %v8231_v61 = vpop.f32.mrf.mxu1  ;;  %v10957_v10 = vadd.f32 %v8275_v52, %v4870_v20 }
 0x355   : > { %11678 = vst [vmem:[#allocation54_spill] sm:$0xff] %v10955_v2  ;;  %v4874_v12 = vadd.f32 %v8231_v61, %v10847_v25  ;;  %v5095_v21 = vpop.f32.mrf.mxu0 }
 0x356   : > { %v4805_v35 = vpop.f32.mrf.mxu1  ;;  %v10960_v28 = vadd.f32 %v5095_v21, %v4868_v23 }
 0x357   : > { %v4872_v49 = vadd.f32 %v4805_v35, %v10856_v18  ;;  %v8276_v30 = vpop.f32.mrf.mxu0 }
 0x358   : > { %v8232_v0 = vpop.f32.mrf.mxu1  ;;  %v10963_v32 = vadd.f32 %v8276_v30, %v4871_v50 }
 0x359   : > { %v4875_v1 = vadd.f32 %v8232_v0, %v10859_v60  ;;  %v10966_v8 = vpop.f32.mrf.mxu0 }
 0x35a   : > { %11679 = vst [vmem:[#allocation52_spill] sm:$0xff] %v10966_v8  ;;  %v4808_v42 = vpop.f32.mrf.mxu1 }
 0x35b   : > { %v10969_v20 = vadd.f32 %v4808_v42, %v10862_v38  ;;  %v8279_v3 = vpop.f32.mrf.mxu0 }
 0x35c   : > { %v8235_v25 = vpop.f32.mrf.mxu1  ;;  %v10971_v52 = vadd.f32 %v8279_v3, %v4874_v12 }
 0x35d   : > { %11680 = vst [vmem:[#allocation25_spill] sm:$0xff] %v10969_v20  ;;  %v4878_v23 = vadd.f32 %v8235_v25, %v10864_v58  ;;  %v5111_v61 = vpop.f32.mrf.mxu0 }
 0x35e   : > { %v4821_v18 = vpop.f32.mrf.mxu1  ;;  %v10974_v21 = vadd.f32 %v5111_v61, %v4872_v49 }
 0x35f   : > { %v4876_v50 = vadd.f32 %v4821_v18, %v10872_v29  ;;  %v8280_v35 = vpop.f32.mrf.mxu0 }
 0x360   : > { %v8236_v60 = vpop.f32.mrf.mxu1  ;;  %v10977_v30 = vadd.f32 %v8280_v35, %v4875_v1 }
 0x361   : > { %v4879_v0 = vadd.f32 %v8236_v60, %v10875_v39  ;;  %v10980_v38 = vpop.f32.mrf.mxu0 }
 0x362   : > { %11681 = vst [vmem:[#allocation26_spill] sm:$0xff] %v10980_v38  ;;  %v4824_v42 = vpop.f32.mrf.mxu1 }
 0x363   : > { %v10983_v12 = vadd.f32 %v4824_v42, %v10878_v62  ;;  %v8283_v3 = vpop.f32.mrf.mxu0 }
 0x364   : > { %v8239_v58 = vpop.f32.mrf.mxu1  ;;  %v10985_v25 = vadd.f32 %v8283_v3, %v4878_v23 }
 0x365   : > { %11682 = vst [vmem:[#allocation31_spill] sm:$0xff] %v10983_v12  ;;  %v4882_v49 = vadd.f32 %v8239_v58, %v10883_v45  ;;  %v5127_v61 = vpop.f32.mrf.mxu0 }
 0x366   : > { %v4837_v29 = vpop.f32.mrf.mxu1  ;;  %v10988_v18 = vadd.f32 %v5127_v61, %v4876_v50 }
 0x367   : > { %v4880_v1 = vadd.f32 %v4837_v29, %v10888_v44  ;;  %v8284_v35 = vpop.f32.mrf.mxu0 }
 0x368   : > { %v8240_v39 = vpop.f32.mrf.mxu1  ;;  %v10991_v60 = vadd.f32 %v8284_v35, %v4879_v0 }
 0x369   : > { %v4883_v38 = vadd.f32 %v8240_v39, %v10891_v4  ;;  %v10994_v62 = vpop.f32.mrf.mxu0 }
 0x36a   : > { %11683 = vst [vmem:[#allocation57_spill] sm:$0xff] %v10994_v62  ;;  %v4840_v42 = vpop.f32.mrf.mxu1 }
 0x36b   : > { %v10997_v23 = vadd.f32 %v4840_v42, %v10896_v24  ;;  %v8287_v3 = vpop.f32.mrf.mxu0 }
 0x36c   : > { %v8307_v45 = vpop.f32.mrf.mxu1  ;;  %v10999_v58 = vadd.f32 %v8287_v3, %v4882_v49 }
 0x36d   : > { %11684 = vst [vmem:[#allocation53_spill] sm:$0xff] %v10997_v23  ;;  %v11002_v50 = vadd.f32 %v8307_v45, %v10901_v17  ;;  %v5143_v44 = vpop.f32.mrf.mxu0 }
 0x36e   : > { %v5337_v61 = vpop.f32.mrf.mxu1  ;;  %v11004_v29 = vadd.f32 %v5143_v44, %v4880_v1 }
 0x36f   : > { %v11007_v0 = vadd.f32 %v5337_v61, %v10904_v43  ;;  %v8288_v4 = vpop.f32.mrf.mxu0 }
 0x370   : > { %v8308_v35 = vpop.f32.mrf.mxu1  ;;  %v11009_v39 = vadd.f32 %v8288_v4, %v4883_v38  ;;  %v8640_v38 = vld [vmem:[%s11443_s8 + $0x30] sm:$0xff]  }
 0x371   : > { %v11012_v24 = vadd.f32 %v8308_v35, %v10907_v48  ;;  %v11014_v42 = vpop.f32.mrf.mxu0  ;;  %v8639_v48 = vld [vmem:[%s11443_s8 + $0x38] sm:$0xff]  }
 0x372   : > { %11685 = vst [vmem:[#allocation27_spill] sm:$0xff] %v11014_v42  ;;  %v11016_v49 = vpop.f32.mrf.mxu1  ;;  %8481 = vmatprep.subr.bf16.mxu1 %v8639_v48 }
 0x373   : > { %v11018_v17 = vpop.f32.mrf.mxu0  ;;  %8482 = vmatpush3.bf16.msra.mxu1 %v8639_v48  ;;  %v8642_v48 = vld [vmem:[%s11443_s8 + $0x20] sm:$0xff]  }
 0x374   : > { %v8311_v3 = vpop.f32.mrf.mxu1  ;;  %8483 = vmatprep.subr.bf16.mxu1 %v8640_v38 }
 0x375   : > { %v11021_v1 = vadd.f32 %v8311_v3, %v10917_v26  ;;  %v11023_v45 = vpop.f32.mrf.mxu0 }
 0x376   : > { %v5353_v43 = vpop.f32.mrf.mxu1 }
 0x377   : > { %v11026_v44 = vadd.f32 %v5353_v43, %v10920_v6  ;;  %v11034_v61 = vpop.f32.mrf.mxu0  ;;  %v8641_v6 = vld [vmem:[%s11443_s8 + $0x28] sm:$0xff]   ;;  %8484 = vmatpush3.bf16.msra.mxu1 %v8640_v38 }
 0x378   : > { %v8312_v4 = vpop.f32.mrf.mxu1  ;;  %8485 = vmatprep.subr.bf16.mxu1 %v8641_v6 }
 0x379   : > { %v11037_v26 = vadd.f32 %v8312_v4, %v10923_v47  ;;  %v11039_v35 = vpop.f32.mrf.mxu0 }
 0x37a   : > { %v11041_v3 = vpop.f32.mrf.mxu1 }
 0x37b   : > { %v11046_v43 = vpop.f32.mrf.mxu0  ;;  %8486 = vmatpush3.bf16.msra.mxu1 %v8641_v6 }
 0x37c   : > { %v8315_v42 = vpop.f32.mrf.mxu1  ;;  %8487 = vmatprep.subr.bf16.mxu1 %v8642_v48 }
 0x37d   : > { %v11049_v23 = vadd.f32 %v8315_v42, %v10930_v5  ;;  %v11051_v62 = vpop.f32.mrf.mxu0 }
 0x37e   : > { %v5369_v47 = vpop.f32.mrf.mxu1 }
 0x37f   : > { %v11054_v4 = vadd.f32 %v5369_v47, %v10933_v63  ;;  %v11062_v33 = vpop.f32.mrf.mxu0  ;;  %v8643_v63 = vld [vmem:[%s11443_s8 + $0x18] sm:$0xff]   ;;  %8488 = vmatpush3.bf16.msra.mxu1 %v8642_v48 }
 0x380   : > { %v8316_v12 = vpop.f32.mrf.mxu1  ;;  %8489 = vmatprep.subr.bf16.mxu1 %v8643_v63 }
 0x381   : > { %v11060_v20 = vadd.f32 %v8316_v12, %v10936_v9  ;;  %v11072_v47 = vpop.f32.mrf.mxu0  ;;  %v8644_v12 = vld [vmem:[%s11443_s8 + $0x10] sm:$0xff]  }
 0x382   : > { %v11064_v5 = vpop.f32.mrf.mxu1 }
 0x383   : > { %v11083_v2 = vpop.f32.mrf.mxu0  ;;  %8490 = vmatpush3.bf16.msra.mxu1 %v8643_v63 }
 0x384   : > { %v8319_v42 = vpop.f32.mrf.mxu1  ;;  %8491 = vmatprep.subr.bf16.mxu1 %v8644_v12 }
 0x385   : > { %v11070_v38 = vadd.f32 %v8319_v42, %v10943_v34  ;;  %v11093_v42 = vpop.f32.mrf.mxu0 }
 0x386   : > { %v5385_v57 = vpop.f32.mrf.mxu1 }
 0x387   : > { %v11075_v9 = vadd.f32 %v5385_v57, %v10946_v40  ;;  %v8645_v57 = vld [vmem:[%s11443_s8 + $0x8] sm:$0xff]   ;;  %8492 = vmatpush3.bf16.msra.mxu1 %v8644_v12  ;;  %v11101_v11 = vpop.f32.mrf.mxu0 }
 0x388   : > { %v8320_v6 = vpop.f32.mrf.mxu1  ;;  %8493 = vmatprep.subr.bf16.mxu1 %v8645_v57 }
 0x389   : > { %v11081_v8 = vadd.f32 %v8320_v6, %v10949_v46 }
 0x38a   : > { %v11085_v34 = vpop.f32.mrf.mxu1 }
 0x38b   : > { %11686 = vst [vmem:[#allocation28_spill] sm:$0xff] %v11081_v8  ;;  %11687 = vst [vmem:[#allocation29_spill] sm:$0xff] %v11085_v34  ;;  %8494 = vmatpush3.bf16.msra.mxu1 %v8645_v57 }
 0x38c   : > { %v8323_v40 = vpop.f32.mrf.mxu1 }
 0x38d   : > { %v11091_v48 = vadd.f32 %v8323_v40, %v10957_v10  ;;  %v11108_v40 = vpop.f32.mrf.mxu0 }
 0x38e   : > { %v5401_v7 = vpop.f32.mrf.mxu1 }
 0x38f   : > { %v11096_v46 = vadd.f32 %v5401_v7, %v10960_v28 }
 0x390   : > { %v8324_v6 = vpop.f32.mrf.mxu1 }
 0x391   : > { %11688 = vst [vmem:[#allocation30_spill] sm:$0xff] %v11096_v46  ;;  %v11099_v63 = vadd.f32 %v8324_v6, %v10963_v32  ;;  %v11116_v32 = vpop.f32.mrf.mxu0 }
 0x392   : > { %v11103_v8 = vpop.f32.mrf.mxu1 }
 0x393   : > { %11689 = vst [vmem:[#allocation60_spill] sm:$0xff] %v11099_v63 }
 0x394   : > { %v8327_v34 = vpop.f32.mrf.mxu1 }
 0x395   : > { %v11106_v10 = vadd.f32 %v8327_v34, %v10971_v52  ;;  %v11123_v52 = vpop.f32.mrf.mxu0 }
 0x396   : > { %v5417_v12 = vpop.f32.mrf.mxu1 }
 0x397   : > { %11690 = vst [vmem:[#allocation55_spill] sm:$0xff] %v11106_v10  ;;  %v11111_v7 = vadd.f32 %v5417_v12, %v10974_v21 }
 0x398   : > { %v8328_v28 = vpop.f32.mrf.mxu1 }
 0x399   : > { %v11114_v46 = vadd.f32 %v8328_v28, %v10977_v30  ;;  %v11131_v30 = vpop.f32.mrf.mxu0 }
 0x39a   : > { %v11118_v6 = vpop.f32.mrf.mxu1 }
 0x39b   : > { %11691 = vst [vmem:[#allocation32_spill] sm:$0xff] %v11114_v46  ;;  %11692 = vst [vmem:[#allocation63_spill] sm:$0xff] %v11118_v6 }
 0x39c   : > { %v8331_v63 = vpop.f32.mrf.mxu1 }
 0x39d   : > { %v11121_v57 = vadd.f32 %v8331_v63, %v10985_v25  ;;  %v11138_v25 = vpop.f32.mrf.mxu0 }
 0x39e   : > { %v5433_v34 = vpop.f32.mrf.mxu1 }
 0x39f   : > { %11693 = vst [vmem:[#allocation56_spill] sm:$0xff] %v11121_v57  ;;  %v11126_v10 = vadd.f32 %v5433_v34, %v10988_v18 }
 0x3a0   : > { %v8332_v21 = vpop.f32.mrf.mxu1 }
 0x3a1   : > { %v11129_v12 = vadd.f32 %v8332_v21, %v10991_v60  ;;  %v4547_v60 = vadd.f32 %v10781_v19, %v10770_v31  ;;  %v11148_v21 = vpop.f32.mrf.mxu0 }
 0x3a2   : > { %v11133_v28 = vpop.f32.mrf.mxu1 }
 0x3a3   : > { %11694 = vst [vmem:[#allocation66_spill] sm:$0xff] %v11129_v12  ;;  %v11163_v19 = vpop.f32.mrf.mxu0 }
 0x3a4   : > { %v8335_v46 = vpop.f32.mrf.mxu1 }
 0x3a5   : > { %v11136_v6 = vadd.f32 %v8335_v46, %v10999_v58  ;;  %v5772_v58 = vadd.f32 %v11018_v17, %v11002_v50  ;;  %v4853_v46 = vadd.f32 %v10894_v16, %v4547_v60  ;;  %v5773_v50 = vadd.f32 %v11034_v61, %v11012_v24 }
 0x3a6   : > { %v5449_v63 = vpop.f32.mrf.mxu1  ;;  %v4551_v60 = vadd.f32 %v10795_v55, %v10784_v37  ;;  %v5776_v24 = vadd.f32 %v11046_v43, %v11021_v1 }
 0x3a7   : > { %11695 = vst [vmem:[#allocation58_spill] sm:$0xff] %v11136_v6  ;;  %v11141_v57 = vadd.f32 %v5449_v63, %v11004_v29  ;;  %v11158_v29 = vld [vmem:[%s11440_s5] ss:$0 sm:$0xff]  ;;  %v5159_v31 = vadd.f32 %v10910_v51, %v4853_v46 }
 0x3a8   : > { %v8336_v18 = vpop.f32.mrf.mxu1 }
 0x3a9   : > { %11696 = vst [vmem:[#allocation59_spill] sm:$0xff] %v11141_v57  ;;  %v11144_v34 = vadd.f32 %v8336_v18, %v11009_v39  ;;  %v5770_v39 = vadd.f32 %v11023_v45, %v11007_v0  ;;  %v4857_v0 = vadd.f32 %v10912_v15, %v4551_v60  ;;  %v11173_v45 = vpop.f32.mrf.mxu0  ;;  %v5774_v15 = vadd.f32 %v11051_v62, %v11026_v44 }
 0x3aa   : > { %v11150_v12 = vpop.f32.mrf.mxu1  ;;  %v4555_v44 = vadd.f32 %v10812_v13, %v10798_v59  ;;  %v5780_v59 = vadd.f32 %v11083_v2, %v11049_v23  ;;  %v11703_v23 = vld [vmem:[#allocation88_spill] sm:$0xff] }
 0x3ab   : > { %11697 = vst [vmem:[#allocation33_spill] sm:$0xff] %v11144_v34  ;;  %11698 = vst [vmem:[#allocation34_spill] sm:$0xff] %v11150_v12  ;;  %v5465_v34 = vadd.f32 %v11016_v49, %v5159_v31  ;;  %v5163_v37 = vadd.f32 %v10926_v22, %v4857_v0  ;;  %v11699_v31 = vld [vmem:[#allocation72_spill] sm:$0xff] }
 0x3ac   : > { %v8403_v6 = vpop.f32.mrf.mxu1 }
 0x3ad   : > { %v6078_v63 = vadd.f32 %v8403_v6, %v5772_v58  ;;  %v5771_v51 = vadd.f32 %v11039_v35, %v5465_v34  ;;  %v5777_v34 = vadd.f32 %v11062_v33, %v11037_v26 }
 0x3ae   : > { %v5949_v18 = vpop.f32.mrf.mxu1 }
 0x3af   : > { %v6117_v16 = vadd.f32 %v11158_v29, %v6078_v63  ;;  %v6076_v17 = vadd.f32 %v5949_v18, %v5770_v39  ;;  %v5469_v39 = vadd.f32 %v11041_v3, %v5163_v37  ;;  %v11185_v63 = vpop.f32.mrf.mxu0  ;;  %v11700_v18 = vld [vmem:[#allocation79_spill] sm:$0xff] }
 0x3b0   : > { %v8404_v12 = vpop.f32.mrf.mxu1 }
 0x3b1   : > { %v6079_v57 = vadd.f32 %v8404_v12, %v5773_v50  ;;  %v6115_v6 = vadd.f32 %v11158_v29, %v6076_v17  ;;  %v6149_v61 = vmax.f32 %v6117_v16, 0.0  ;;  %v5775_v26 = vadd.f32 %v11072_v47, %v5469_v39 }
 0x3b2   : > { %v5952_v58 = vpop.f32.mrf.mxu1 }
 0x3b3   : > { %v6118_v46 = vadd.f32 %v11158_v29, %v6079_v57  ;;  %v6077_v55 = vadd.f32 %v5952_v58, %v5771_v51  ;;  %v6147_v1 = vmax.f32 %v6115_v6, 0.0  ;;  %v6181_v22 = vmul.f32 %v6149_v61, %v11699_v31  ;;  %v11196_v6 = vpop.f32.mrf.mxu0  ;;  %v11701_v58 = vld [vmem:[#allocation68_spill] sm:$0xff]  ;;  %v11702_v61 = vld [vmem:[#allocation75_spill] sm:$0xff] }
 0x3b4   : > { %v8407_v49 = vpop.f32.mrf.mxu1  ;;  %v4861_v51 = vadd.f32 %v10928_v14, %v4555_v44  ;;  %v11705_v44 = vld [vmem:[#allocation81_spill] sm:$0xff] }
 0x3b5   : > { %v6150_v12 = vmax.f32 %v6118_v46, 0.0  ;;  %v6082_v35 = vadd.f32 %v8407_v49, %v5776_v24  ;;  %v6116_v43 = vadd.f32 %v11158_v29, %v6077_v55  ;;  %v6179_v24 = vmul.f32 %v6147_v1, %v11701_v58 }
 0x3b6   : > { %v5965_v57 = vpop.f32.mrf.mxu1  ;;  %v5167_v49 = vadd.f32 %v10939_v36, %v4861_v51 }
 0x3b7   : > { %v6182_v50 = vmul.f32 %v6150_v12, %v11700_v18  ;;  %v6121_v16 = vadd.f32 %v11158_v29, %v6082_v35  ;;  %v6080_v62 = vadd.f32 %v5965_v57, %v5774_v15  ;;  %v6148_v17 = vmax.f32 %v6116_v43, 0.0  ;;  %v11208_v57 = vpop.f32.mrf.mxu0 }
 0x3b8   : > { %v8408_v33 = vpop.f32.mrf.mxu1  ;;  %v5778_v15 = vadd.f32 %v11093_v42, %v11054_v4  ;;  %v5473_v43 = vadd.f32 %v11064_v5, %v5167_v49  ;;  %v4559_v4 = vadd.f32 %v10829_v56, %v10815_v41  ;;  %v5781_v42 = vadd.f32 %v11101_v11, %v11060_v20 }
 0x3b9   : > { %v6212_v3 = vpack.c.bf16 %v6182_v50, %v6181_v22  ;;  %v6119_v60 = vadd.f32 %v11158_v29, %v6080_v62  ;;  %v6083_v0 = vadd.f32 %v8408_v33, %v5777_v34  ;;  %v6180_v46 = vmul.f32 %v6148_v17, %v11702_v61  ;;  %v11704_v22 = vld [vmem:[#allocation90_spill] sm:$0xff] }
 0x3ba   : > { %v5968_v37 = vpop.f32.mrf.mxu1  ;;  %v6153_v13 = vmax.f32 %v6121_v16, 0.0  ;;  %v5779_v62 = vadd.f32 %v11108_v40, %v5473_v43  ;;  %v5784_v11 = vadd.f32 %v11116_v32, %v11070_v38 }
 0x3bb   : > { %v6122_v55 = vadd.f32 %v11158_v29, %v6083_v0  ;;  %v6081_v47 = vadd.f32 %v5968_v37, %v5775_v26  ;;  %v6211_v12 = vpack.c.bf16 %v6180_v46, %v6179_v24  ;;  %v6151_v35 = vmax.f32 %v6119_v60, 0.0  ;;  %v11221_v0 = vpop.f32.mrf.mxu0  ;;  %v11706_v37 = vld [vmem:[#allocation29_spill] sm:$0xff] }
 0x3bc   : > { %v8411_v14 = vpop.f32.mrf.mxu1  ;;  %v6185_v31 = vmul.f32 %v6153_v13, %v11703_v23  ;;  %v4865_v60 = vadd.f32 %v10941_v54, %v4559_v4 }
 0x3bd   : > { %v6154_v34 = vmax.f32 %v6122_v55, 0.0  ;;  %v6120_v39 = vadd.f32 %v11158_v29, %v6081_v47  ;;  %v6086_v1 = vadd.f32 %v8411_v14, %v5780_v59  ;;  %8449 = vmatprep.mubr.bf16.mxu0 %v6211_v12  ;;  %v6183_v17 = vmul.f32 %v6151_v35, %v11705_v44  ;;  %v11232_v13 = vpop.f32.mrf.mxu0  ;;  %v11707_v47 = vld [vmem:[#allocation28_spill] sm:$0xff]  ;;  %v11709_v12 = vld [vmem:[#allocation5_spill] sm:$0xff]  ;;  %v11714_v44 = vld [vmem:[#allocation30_spill] sm:$0xff] }
 0x3be   : > { %v5981_v2 = vpop.f32.mrf.mxu1  ;;  %8450 = vmatmul.mubr.bf16.vlgmr.msra.gmra.mxu0 %v6212_v3  ;;  %v5171_v40 = vadd.f32 %v10952_v53, %v4865_v60  ;;  %v5785_v53 = vadd.f32 %v11131_v30, %v11707_v47  ;;  %v11711_v30 = vld [vmem:[#allocation91_spill] sm:$0xff] }
 0x3bf   : > { %v6186_v36 = vmul.f32 %v6154_v34, %v11704_v22  ;;  %v6152_v18 = vmax.f32 %v6120_v39, 0.0  ;;  %v6084_v50 = vadd.f32 %v5981_v2, %v5778_v15  ;;  %v6125_v16 = vadd.f32 %v11158_v29, %v6086_v1  ;;  %v11710_v1 = vld [vmem:[#allocation3_spill] sm:$0xff] }
 0x3c0   : > { %v8412_v5 = vpop.f32.mrf.mxu1  ;;  %v5477_v59 = vadd.f32 %v11706_v37, %v5171_v40  ;;  %v11716_v40 = vld [vmem:[#allocation9_spill] sm:$0xff] }
 0x3c1   : > { %v6214_v33 = vpack.c.bf16 %v6186_v36, %v6185_v31  ;;  %v6184_v26 = vmul.f32 %v6152_v18, %v11635_v27  ;;  %v6123_v3 = vadd.f32 %v11158_v29, %v6084_v50  ;;  %v6087_v41 = vadd.f32 %v8412_v5, %v5781_v42  ;;  %v11242_v31 = vpop.f32.mrf.mxu0  ;;  %v11712_v5 = vld [vmem:[#allocation54_spill] sm:$0xff] }
 0x3c2   : > { %v5984_v56 = vpop.f32.mrf.mxu1  ;;  %v6157_v58 = vmax.f32 %v6125_v16, 0.0  ;;  %v5782_v27 = vadd.f32 %v11123_v52, %v11075_v9  ;;  %v11708_v9 = vld [vmem:[#allocation4_spill] sm:$0xff]  ;;  %v5783_v39 = vadd.f32 %v11138_v25, %v5477_v59  ;;  %v5788_v50 = vadd.f32 %v11148_v21, %v11091_v48  ;;  %v11718_v59 = vld [vmem:[#allocation6_spill] sm:$0xff] }
 0x3c3   : > { %v6085_v20 = vadd.f32 %v5984_v56, %v5779_v62  ;;  %v6213_v51 = vpack.c.bf16 %v6184_v26, %v6183_v17  ;;  %v6126_v24 = vadd.f32 %v11158_v29, %v6087_v41  ;;  %v6155_v38 = vmax.f32 %v6123_v3, 0.0  ;;  %v11713_v25 = vld [vmem:[#allocation52_spill] sm:$0xff]  ;;  %v5739_v48 = vpop.f32.mrf.mxu0 }
 0x3c4   : > { %v8415_v61 = vpop.f32.mrf.mxu1  ;;  %v6189_v52 = vmul.f32 %v6157_v58, %v11708_v9  ;;  %v5175_v62 = vadd.f32 %v11713_v25, %v11712_v5  ;;  %v5786_v17 = vadd.f32 %v11163_v19, %v11714_v44  ;;  %v11717_v19 = vld [vmem:[#allocation60_spill] sm:$0xff] }
 0x3c5   : > { %v6124_v54 = vadd.f32 %v11158_v29, %v6085_v20  ;;  %v6090_v46 = vadd.f32 %v8415_v61, %v5784_v11  ;;  %8453 = vmatprep.mubr.bf16.mxu0 %v6213_v51  ;;  %v6158_v32 = vmax.f32 %v6126_v24, 0.0  ;;  %v6187_v22 = vmul.f32 %v6155_v38, %v11711_v30  ;;  %v11715_v20 = vld [vmem:[#allocation8_spill] sm:$0xff]  ;;  %v8380_v47 = vpop.f32.mrf.mxu0  ;;  %v11723_v30 = vld [vmem:[#allocation63_spill] sm:$0xff] }
 0x3c6   : > { %v5997_v55 = vpop.f32.mrf.mxu1  ;;  %8454 = vmatmul.mubr.bf16.gmra.mxu0 %v6214_v33  ;;  %v5481_v11 = vadd.f32 %v11103_v8, %v5175_v62  ;;  %v11725_v62 = vld [vmem:[#allocation12_spill] sm:$0xff] }
 0x3c7   : > { %v6156_v49 = vmax.f32 %v6124_v54, 0.0  ;;  %v6129_v15 = vadd.f32 %v11158_v29, %v6090_v46  ;;  %v6088_v14 = vadd.f32 %v5997_v55, %v5782_v27  ;;  %v6190_v35 = vmul.f32 %v6158_v32, %v11709_v12  ;;  %v11719_v32 = vld [vmem:[#allocation7_spill] sm:$0xff]  ;;  %v11721_v12 = vld [vmem:[#allocation25_spill] sm:$0xff] }
 0x3c8   : > { %v8416_v34 = vpop.f32.mrf.mxu1  ;;  %v5789_v27 = vadd.f32 %v11173_v45, %v11717_v19  ;;  %v5787_v37 = vadd.f32 %v11185_v63, %v5481_v11  ;;  %v11728_v11 = vld [vmem:[#allocation10_spill] sm:$0xff]  ;;  %v11730_v19 = vld [vmem:[#allocation31_spill] sm:$0xff] }
 0x3c9   : > { %v6188_v43 = vmul.f32 %v6156_v49, %v11710_v1  ;;  %v6127_v2 = vadd.f32 %v11158_v29, %v6088_v14  ;;  %v6091_v23 = vadd.f32 %v8416_v34, %v5785_v53  ;;  %v6216_v36 = vpack.c.bf16 %v6190_v35, %v6189_v52  ;;  %v11720_v14 = vld [vmem:[#allocation55_spill] sm:$0xff]  ;;  %v11722_v35 = vld [vmem:[#allocation26_spill] sm:$0xff] }
 0x3ca   : > { %v6000_v18 = vpop.f32.mrf.mxu1  ;;  %v6161_v4 = vmax.f32 %v6129_v15, 0.0  ;;  %v5792_v9 = vadd.f32 %v11196_v6, %v11720_v14  ;;  %v5179_v34 = vadd.f32 %v11722_v35, %v11721_v12  ;;  %v11733_v14 = vld [vmem:[#allocation17_spill] sm:$0xff] }
 0x3cb   : > { %v6130_v42 = vadd.f32 %v11158_v29, %v6091_v23  ;;  %v6089_v16 = vadd.f32 %v6000_v18, %v5783_v39  ;;  %v6215_v26 = vpack.c.bf16 %v6188_v43, %v6187_v22  ;;  %v6159_v60 = vmax.f32 %v6127_v2, 0.0 }
 0x3cc   : > { %v8419_v33 = vpop.f32.mrf.mxu1  ;;  %v6193_v51 = vmul.f32 %v6161_v4, %v11715_v20  ;;  %v5790_v43 = vadd.f32 %v11208_v57, %v11111_v7  ;;  %v5485_v22 = vadd.f32 %v11723_v30, %v5179_v34  ;;  %v11724_v4 = vld [vmem:[#allocation32_spill] sm:$0xff]  ;;  %v11726_v57 = vld [vmem:[#allocation13_spill] sm:$0xff] }
 0x3cd   : > { %v6162_v3 = vmax.f32 %v6130_v42, 0.0  ;;  %v6128_v41 = vadd.f32 %v11158_v29, %v6089_v16  ;;  %v6094_v56 = vadd.f32 %v8419_v33, %v5788_v50  ;;  %8457 = vmatprep.mubr.bf16.mxu0 %v6215_v26  ;;  %v6191_v8 = vmul.f32 %v6159_v60, %v11718_v59  ;;  %v11727_v26 = vld [vmem:[#allocation11_spill] sm:$0xff] }
 0x3ce   : > { %v6013_v21 = vpop.f32.mrf.mxu1  ;;  %8458 = vmatmul.mubr.bf16.gmra.mxu0 %v6216_v36  ;;  %v5742_v36 = vpop.f32.mrf.mxu0  ;;  %v5793_v42 = vadd.f32 %v11221_v0, %v11724_v4  ;;  %v5791_v33 = vadd.f32 %v11232_v13, %v5485_v22 }
 0x3cf   : > { %v6194_v58 = vmul.f32 %v6162_v3, %v11716_v40  ;;  %v6160_v24 = vmax.f32 %v6128_v41, 0.0  ;;  %v6092_v61 = vadd.f32 %v6013_v21, %v5786_v17  ;;  %v6133_v54 = vadd.f32 %v11158_v29, %v6094_v56 }
 0x3d0   : > { %v8420_v46 = vpop.f32.mrf.mxu1  ;;  %v8383_v56 = vpop.f32.mrf.mxu0 }
 0x3d1   : > { %v6218_v38 = vpack.c.bf16 %v6194_v58, %v6193_v51  ;;  %v6192_v55 = vmul.f32 %v6160_v24, %v11719_v32  ;;  %v6131_v53 = vadd.f32 %v11158_v29, %v6092_v61  ;;  %v6095_v49 = vadd.f32 %v8420_v46, %v5789_v27  ;;  %v11729_v51 = vld [vmem:[#allocation56_spill] sm:$0xff]  ;;  %v11731_v27 = vld [vmem:[#allocation57_spill] sm:$0xff] }
 0x3d2   : > { %v6016_v15 = vpop.f32.mrf.mxu1  ;;  %v6165_v39 = vmax.f32 %v6133_v54, 0.0  ;;  %v5796_v40 = vadd.f32 %v11242_v31, %v11729_v51  ;;  %v5183_v13 = vadd.f32 %v11731_v27, %v11730_v19  ;;  %v5794_v54 = vadd.f32 %v5739_v48, %v11126_v10  ;;  %v11734_v10 = vld [vmem:[#allocation66_spill] sm:$0xff]  ;;  %v11743_v51 = vld [vmem:[#allocation21_spill] sm:$0xff]  ;;  %v11745_v27 = vld [vmem:[#allocation20_spill] sm:$0xff] }
 0x3d3   : > { %v6093_v52 = vadd.f32 %v6016_v15, %v5787_v37  ;;  %v6217_v45 = vpack.c.bf16 %v6192_v55, %v6191_v8  ;;  %v6134_v63 = vadd.f32 %v11158_v29, %v6095_v49  ;;  %v6163_v6 = vmax.f32 %v6131_v53, 0.0  ;;  %v5755_v53 = vpop.f32.mrf.mxu0  ;;  %v11732_v49 = vld [vmem:[#allocation16_spill] sm:$0xff] }
 0x3d4   : > { %v8423_v1 = vpop.f32.mrf.mxu1  ;;  %v6197_v7 = vmul.f32 %v6165_v39, %v11725_v62  ;;  %v5489_v55 = vadd.f32 %v11133_v28, %v5183_v13  ;;  %v5797_v48 = vadd.f32 %v8380_v47, %v11734_v10  ;;  %v11735_v39 = vld [vmem:[#allocation14_spill] sm:$0xff]  ;;  %v11736_v28 = vld [vmem:[#allocation15_spill] sm:$0xff] }
 0x3d5   : > { %v6132_v2 = vadd.f32 %v11158_v29, %v6093_v52  ;;  %v6098_v23 = vadd.f32 %v8423_v1, %v5792_v9  ;;  %8461 = vmatprep.mubr.bf16.mxu0 %v6217_v45  ;;  %v6166_v18 = vmax.f32 %v6134_v63, 0.0  ;;  %v6195_v0 = vmul.f32 %v6163_v6, %v11728_v11  ;;  %v11737_v6 = vld [vmem:[#allocation58_spill] sm:$0xff]  ;;  %v11739_v47 = vld [vmem:[#allocation27_spill] sm:$0xff] }
 0x3d6   : > { %v6029_v50 = vpop.f32.mrf.mxu1  ;;  %8462 = vmatmul.mubr.bf16.gmra.mxu0 %v6218_v38  ;;  %v5795_v34 = vadd.f32 %v5742_v36, %v5489_v55  ;;  %v11740_v62 = vld [vmem:[#allocation59_spill] sm:$0xff] }
 0x3d7   : > { %v6164_v16 = vmax.f32 %v6132_v2, 0.0  ;;  %v6137_v5 = vadd.f32 %v11158_v29, %v6098_v23  ;;  %v6096_v25 = vadd.f32 %v6029_v50, %v5790_v43  ;;  %v6198_v44 = vmul.f32 %v6166_v18, %v11726_v57  ;;  %v8384_v2 = vpop.f32.mrf.mxu0 }
 0x3d8   : > { %v8424_v17 = vpop.f32.mrf.mxu1  ;;  %v5800_v18 = vadd.f32 %v8383_v56, %v11737_v6  ;;  %v11742_v56 = vld [vmem:[#allocation33_spill] sm:$0xff] }
 0x3d9   : > { %v6196_v60 = vmul.f32 %v6164_v16, %v11727_v26  ;;  %v6135_v3 = vadd.f32 %v11158_v29, %v6096_v25  ;;  %v6099_v41 = vadd.f32 %v8424_v17, %v5793_v42  ;;  %v6220_v21 = vpack.c.bf16 %v6198_v44, %v6197_v7  ;;  %v11738_v42 = vld [vmem:[#allocation53_spill] sm:$0xff]  ;;  %v11741_v17 = vld [vmem:[#allocation34_spill] sm:$0xff]  ;;  %v5758_v26 = vpop.f32.mrf.mxu0 }
 0x3da   : > { %v6032_v20 = vpop.f32.mrf.mxu1  ;;  %v6169_v58 = vmax.f32 %v6137_v5, 0.0  ;;  %v5187_v16 = vadd.f32 %v11739_v47, %v11738_v42  ;;  %v5798_v7 = vadd.f32 %v5755_v53, %v11740_v62  ;;  %v5801_v11 = vadd.f32 %v8384_v2, %v11742_v56  ;;  %v11322_v2 = vld [vmem:[%s11442_s7] ss:$0 sm:$0xff] }
 0x3db   : > { %v6138_v24 = vadd.f32 %v11158_v29, %v6099_v41  ;;  %v6097_v61 = vadd.f32 %v6032_v20, %v5791_v33  ;;  %v6219_v37 = vpack.c.bf16 %v6196_v60, %v6195_v0  ;;  %v6167_v59 = vmax.f32 %v6135_v3, 0.0 }
 0x3dc   : > { %v8427_v46 = vpop.f32.mrf.mxu1  ;;  %v6201_v15 = vmul.f32 %v6169_v58, %v11732_v49  ;;  %v5493_v33 = vadd.f32 %v11741_v17, %v5187_v16  ;;  %v11744_v58 = vld [vmem:[#allocation51_spill] sm:$0xff] }
 0x3dd   : > { %v6170_v8 = vmax.f32 %v6138_v24, 0.0  ;;  %v6136_v38 = vadd.f32 %v11158_v29, %v6097_v61  ;;  %v6102_v32 = vadd.f32 %v8427_v46, %v5796_v40  ;;  %8465 = vmatprep.mubr.bf16.mxu0 %v6219_v37  ;;  %v6199_v63 = vmul.f32 %v6167_v59, %v11735_v39  ;;  %v11746_v37 = vld [vmem:[#allocation18_spill] sm:$0xff] }
 0x3de   : > { %v6045_v31 = vpop.f32.mrf.mxu1  ;;  %8466 = vmatmul.mubr.bf16.gmra.mxu0 %v6220_v21  ;;  %v5799_v19 = vadd.f32 %v5758_v26, %v5493_v33  ;;  %v11750_v39 = vld [vmem:[#allocation22_spill] sm:$0xff] }
 0x3df   : > { %v6202_v9 = vmul.f32 %v6170_v8, %v11733_v14  ;;  %v6168_v52 = vmax.f32 %v6136_v38, 0.0  ;;  %v6100_v45 = vadd.f32 %v6045_v31, %v5794_v54  ;;  %v6141_v12 = vadd.f32 %v11158_v29, %v6102_v32 }
 0x3e0   : > { %v8428_v35 = vpop.f32.mrf.mxu1 }
 0x3e1   : > { %v6222_v1 = vpack.c.bf16 %v6202_v9, %v6201_v15  ;;  %v6200_v43 = vmul.f32 %v6168_v52, %v11736_v28  ;;  %v6139_v23 = vadd.f32 %v11158_v29, %v6100_v45  ;;  %v6103_v30 = vadd.f32 %v8428_v35, %v5797_v48  ;;  %v11747_v9 = vld [vmem:[#allocation23_spill] sm:$0xff]  ;;  %v11748_v45 = vld [vmem:[#allocation24_spill] sm:$0xff]  ;;  %v8646_v28 = vld [vmem:[%s11443_s8] sm:$0xff]  }
 0x3e2   : > { %v6048_v22 = vpop.f32.mrf.mxu1  ;;  %v6173_v5 = vmax.f32 %v6141_v12, 0.0  ;;  %v11749_v12 = vld [vmem:[#allocation50_spill] sm:$0xff]  ;;  %8495 = vmatprep.subr.bf16.mxu1 %v8646_v28 }
 0x3e3   : > { %v6101_v50 = vadd.f32 %v6048_v22, %v5795_v34  ;;  %v6221_v4 = vpack.c.bf16 %v6200_v43, %v6199_v63  ;;  %v6142_v36 = vadd.f32 %v11158_v29, %v6103_v30  ;;  %v6171_v60 = vmax.f32 %v6139_v23, 0.0  ;;  %8496 = vmatpush3.bf16.msra.mxu1 %v8646_v28 }
 0x3e4   : > { %v8431_v25 = vpop.f32.mrf.mxu1  ;;  %v6205_v40 = vmul.f32 %v6173_v5, %v11743_v51 }
 0x3e5   : > { %v6140_v57 = vadd.f32 %v11158_v29, %v6101_v50  ;;  %v6106_v44 = vadd.f32 %v8431_v25, %v5800_v18  ;;  %8469 = vmatprep.mubr.bf16.mxu0 %v6221_v4  ;;  %v6174_v3 = vmax.f32 %v6142_v36, 0.0  ;;  %v6203_v59 = vmul.f32 %v6171_v60, %v11746_v37 }
 0x3e6   : > { %v6061_v41 = vpop.f32.mrf.mxu1  ;;  %8470 = vmatmul.mubr.bf16.gmra.mxu0 %v6222_v1 }
 0x3e7   : > { %v6172_v0 = vmax.f32 %v6140_v57, 0.0  ;;  %v6145_v21 = vadd.f32 %v11158_v29, %v6106_v44  ;;  %v6104_v20 = vadd.f32 %v6061_v41, %v5798_v7  ;;  %v6206_v24 = vmul.f32 %v6174_v3, %v11744_v58 }
 0x3e8   : > { %v8432_v61 = vpop.f32.mrf.mxu1 }
 0x3e9   : > { %v6204_v13 = vmul.f32 %v6172_v0, %v11745_v27  ;;  %v6143_v54 = vadd.f32 %v11158_v29, %v6104_v20  ;;  %v6107_v46 = vadd.f32 %v8432_v61, %v5801_v11  ;;  %v6224_v8 = vpack.c.bf16 %v6206_v24, %v6205_v40 }
 0x3ea   : > { %v6064_v38 = vpop.f32.mrf.mxu1  ;;  %v6177_v32 = vmax.f32 %v6145_v21, 0.0 }
 0x3eb   : > { %v6146_v55 = vadd.f32 %v11158_v29, %v6107_v46  ;;  %v6105_v53 = vadd.f32 %v6064_v38, %v5799_v19  ;;  %v6223_v31 = vpack.c.bf16 %v6204_v13, %v6203_v59  ;;  %v6175_v49 = vmax.f32 %v6143_v54, 0.0 }
 0x3ec   : > { %v6209_v52 = vmul.f32 %v6177_v32, %v11747_v9 }
 0x3ed   : > { %v6178_v15 = vmax.f32 %v6146_v55, 0.0  ;;  %v6144_v14 = vadd.f32 %v11158_v29, %v6105_v53  ;;  %8473 = vmatprep.mubr.bf16.mxu0 %v6223_v31  ;;  %v6207_v35 = vmul.f32 %v6175_v49, %v11749_v12 }
 0x3ee   : > { %8474 = vmatmul.mubr.bf16.gmra.mxu0 %v6224_v8 }
 0x3ef   : > { %v6210_v10 = vmul.f32 %v6178_v15, %v11748_v45  ;;  %v6176_v48 = vmax.f32 %v6144_v14, 0.0 }
 0x3f1   : > { %v6226_v34 = vpack.c.bf16 %v6210_v10, %v6209_v52  ;;  %v6208_v63 = vmul.f32 %v6176_v48, %v11750_v39 }
 0x3f3   : > { %v6225_v1 = vpack.c.bf16 %v6208_v63, %v6207_v35 }
 0x3f5   : > { %8477 = vmatprep.mubr.bf16.mxu0 %v6225_v1 }
 0x3f6   : > { %8478 = vmatmul.mubr.bf16.gmra.mxu0 %v6226_v34 }
 0x47e   : > { %v8451_v29 = vpop.f32.mrf.mxu0 }
 0x47f   : > { %v6341_v6 = vadd.f32 %v8451_v29, %v11322_v2 }
 0x480   : > { %v6332_v43 = vpop.f32.mrf.mxu0 }
 0x481   : > { %v6333_v30 = vadd.f32 %v11322_v2, %v6332_v43  ;;  %v6461_v5 = vmax.f32 %v6341_v6, 0.0 }
 0x482   : > { %v8452_v23 = vpop.f32.mrf.mxu0 }
 0x483   : > { %v6344_v22 = vadd.f32 %v8452_v23, %v11322_v2  ;;  %v6459_v47 = vmax.f32 %v6333_v30, 0.0 }
 0x484   : > { %v6335_v18 = vpop.f32.mrf.mxu0 }
 0x485   : > { %v6336_v50 = vadd.f32 %v11322_v2, %v6335_v18  ;;  %v6462_v4 = vmax.f32 %v6344_v22, 0.0 }
 0x486   : > { %v8455_v42 = vpop.f32.mrf.mxu0 }
 0x487   : > { %v6460_v16 = vmax.f32 %v6336_v50, 0.0  ;;  %v6492_v62 = vpack.c.bf16 %v6462_v4, %v6461_v5  ;;  %v6357_v17 = vadd.f32 %v8455_v42, %v11322_v2 }
 0x488   : > { %v6348_v36 = vpop.f32.mrf.mxu0 }
 0x489   : > { %v6491_v25 = vpack.c.bf16 %v6460_v16, %v6459_v47  ;;  %v6349_v57 = vadd.f32 %v11322_v2, %v6348_v36  ;;  %v6465_v11 = vmax.f32 %v6357_v17, 0.0 }
 0x48a   : > { %v8456_v7 = vpop.f32.mrf.mxu0 }
 0x48b   : > { %v6360_v44 = vadd.f32 %v8456_v7, %v11322_v2  ;;  %8497 = vmatprep.mubr.bf16.mxu1 %v6491_v25  ;;  %v6463_v41 = vmax.f32 %v6349_v57, 0.0 }
 0x48c   : > { %v6351_v33 = vpop.f32.mrf.mxu0  ;;  %8498 = vmatmul.mubr.bf16.vlgmr.msra.gmra.mxu1 %v6492_v62 }
 0x48d   : > { %v6352_v26 = vadd.f32 %v11322_v2, %v6351_v33  ;;  %v6466_v60 = vmax.f32 %v6360_v44, 0.0 }
 0x48e   : > { %v8459_v3 = vpop.f32.mrf.mxu0 }
 0x48f   : > { %v6464_v56 = vmax.f32 %v6352_v26, 0.0  ;;  %v6494_v20 = vpack.c.bf16 %v6466_v60, %v6465_v11  ;;  %v6373_v24 = vadd.f32 %v8459_v3, %v11322_v2 }
 0x490   : > { %v6364_v0 = vpop.f32.mrf.mxu0 }
 0x491   : > { %v6493_v21 = vpack.c.bf16 %v6464_v56, %v6463_v41  ;;  %v6365_v40 = vadd.f32 %v11322_v2, %v6364_v0  ;;  %v6469_v37 = vmax.f32 %v6373_v24, 0.0 }
 0x492   : > { %v8460_v51 = vpop.f32.mrf.mxu0 }
 0x493   : > { %v6376_v58 = vadd.f32 %v8460_v51, %v11322_v2  ;;  %8501 = vmatprep.mubr.bf16.mxu1 %v6493_v21  ;;  %v6467_v54 = vmax.f32 %v6365_v40, 0.0 }
 0x494   : > { %v6367_v61 = vpop.f32.mrf.mxu0  ;;  %8502 = vmatmul.mubr.bf16.gmra.mxu1 %v6494_v20 }
 0x495   : > { %v6368_v19 = vadd.f32 %v11322_v2, %v6367_v61  ;;  %v6470_v27 = vmax.f32 %v6376_v58, 0.0 }
 0x496   : > { %v8463_v13 = vpop.f32.mrf.mxu0 }
 0x497   : > { %v6468_v46 = vmax.f32 %v6368_v19, 0.0  ;;  %v6496_v38 = vpack.c.bf16 %v6470_v27, %v6469_v37  ;;  %v6389_v31 = vadd.f32 %v8463_v13, %v11322_v2 }
 0x498   : > { %v6380_v59 = vpop.f32.mrf.mxu0 }
 0x499   : > { %v6495_v8 = vpack.c.bf16 %v6468_v46, %v6467_v54  ;;  %v6381_v55 = vadd.f32 %v11322_v2, %v6380_v59  ;;  %v6473_v10 = vmax.f32 %v6389_v31, 0.0 }
 0x49a   : > { %v8464_v32 = vpop.f32.mrf.mxu0 }
 0x49b   : > { %v6392_v53 = vadd.f32 %v8464_v32, %v11322_v2  ;;  %8505 = vmatprep.mubr.bf16.mxu1 %v6495_v8  ;;  %v6471_v52 = vmax.f32 %v6381_v55, 0.0 }
 0x49c   : > { %v6383_v49 = vpop.f32.mrf.mxu0  ;;  %8506 = vmatmul.mubr.bf16.gmra.mxu1 %v6496_v38 }
 0x49d   : > { %v6384_v15 = vadd.f32 %v11322_v2, %v6383_v49  ;;  %v6474_v14 = vmax.f32 %v6392_v53, 0.0 }
 0x49e   : > { %v8467_v9 = vpop.f32.mrf.mxu0 }
 0x49f   : > { %v6472_v45 = vmax.f32 %v6384_v15, 0.0  ;;  %v6498_v35 = vpack.c.bf16 %v6474_v14, %v6473_v10  ;;  %v6405_v1 = vadd.f32 %v8467_v9, %v11322_v2  ;;  %v11361_v15 = vld [vmem:[%s11444_s9] ss:$0 sm:$0xff] }
 0x4a0   : > { %v6396_v48 = vpop.f32.mrf.mxu0 }
 0x4a1   : > { %v6497_v12 = vpack.c.bf16 %v6472_v45, %v6471_v52  ;;  %v6397_v39 = vadd.f32 %v11322_v2, %v6396_v48  ;;  %v6477_v6 = vmax.f32 %v6405_v1, 0.0 }
 0x4a2   : > { %v8468_v34 = vpop.f32.mrf.mxu0 }
 0x4a3   : > { %v6408_v63 = vadd.f32 %v8468_v34, %v11322_v2  ;;  %8509 = vmatprep.mubr.bf16.mxu1 %v6497_v12  ;;  %v6475_v30 = vmax.f32 %v6397_v39, 0.0 }
 0x4a4   : > { %v6399_v28 = vpop.f32.mrf.mxu0  ;;  %8510 = vmatmul.mubr.bf16.gmra.mxu1 %v6498_v35 }
 0x4a5   : > { %v6400_v29 = vadd.f32 %v11322_v2, %v6399_v28  ;;  %v6478_v43 = vmax.f32 %v6408_v63, 0.0 }
 0x4a6   : > { %v8471_v23 = vpop.f32.mrf.mxu0 }
 0x4a7   : > { %v6476_v22 = vmax.f32 %v6400_v29, 0.0  ;;  %v6500_v4 = vpack.c.bf16 %v6478_v43, %v6477_v6  ;;  %v6421_v5 = vadd.f32 %v8471_v23, %v11322_v2 }
 0x4a8   : > { %v6412_v18 = vpop.f32.mrf.mxu0 }
 0x4a9   : > { %v6499_v50 = vpack.c.bf16 %v6476_v22, %v6475_v30  ;;  %v6413_v47 = vadd.f32 %v11322_v2, %v6412_v18  ;;  %v6481_v17 = vmax.f32 %v6421_v5, 0.0 }
 0x4aa   : > { %v8472_v42 = vpop.f32.mrf.mxu0 }
 0x4ab   : > { %v6424_v16 = vadd.f32 %v8472_v42, %v11322_v2  ;;  %8513 = vmatprep.mubr.bf16.mxu1 %v6499_v50  ;;  %v6479_v57 = vmax.f32 %v6413_v47, 0.0 }
 0x4ac   : > { %v6415_v36 = vpop.f32.mrf.mxu0  ;;  %8514 = vmatmul.mubr.bf16.gmra.mxu1 %v6500_v4 }
 0x4ad   : > { %v6416_v25 = vadd.f32 %v11322_v2, %v6415_v36  ;;  %v6482_v62 = vmax.f32 %v6424_v16, 0.0 }
 0x4ae   : > { %v8475_v7 = vpop.f32.mrf.mxu0 }
 0x4af   : > { %v6480_v44 = vmax.f32 %v6416_v25, 0.0  ;;  %v6502_v60 = vpack.c.bf16 %v6482_v62, %v6481_v17  ;;  %v6437_v11 = vadd.f32 %v8475_v7, %v11322_v2 }
 0x4b0   : > { %v6428_v33 = vpop.f32.mrf.mxu0 }
 0x4b1   : > { %v6501_v26 = vpack.c.bf16 %v6480_v44, %v6479_v57  ;;  %v6429_v41 = vadd.f32 %v11322_v2, %v6428_v33  ;;  %v6485_v24 = vmax.f32 %v6437_v11, 0.0 }
 0x4b2   : > { %v8476_v3 = vpop.f32.mrf.mxu0 }
 0x4b3   : > { %v6440_v56 = vadd.f32 %v8476_v3, %v11322_v2  ;;  %8517 = vmatprep.mubr.bf16.mxu1 %v6501_v26  ;;  %v6483_v40 = vmax.f32 %v6429_v41, 0.0 }
 0x4b4   : > { %v6431_v0 = vpop.f32.mrf.mxu0  ;;  %8518 = vmatmul.mubr.bf16.gmra.mxu1 %v6502_v60 }
 0x4b5   : > { %v6432_v21 = vadd.f32 %v11322_v2, %v6431_v0  ;;  %v6486_v20 = vmax.f32 %v6440_v56, 0.0 }
 0x4b6   : > { %v8479_v51 = vpop.f32.mrf.mxu0 }
 0x4b7   : > { %v6484_v58 = vmax.f32 %v6432_v21, 0.0  ;;  %v6504_v27 = vpack.c.bf16 %v6486_v20, %v6485_v24  ;;  %v6453_v37 = vadd.f32 %v8479_v51, %v11322_v2 }
 0x4b8   : > { %v6444_v61 = vpop.f32.mrf.mxu0 }
 0x4b9   : > { %v6503_v19 = vpack.c.bf16 %v6484_v58, %v6483_v40  ;;  %v6445_v54 = vadd.f32 %v11322_v2, %v6444_v61  ;;  %v6489_v53 = vmax.f32 %v6453_v37, 0.0 }
 0x4ba   : > { %v8480_v13 = vpop.f32.mrf.mxu0 }
 0x4bb   : > { %v6456_v46 = vadd.f32 %v8480_v13, %v11322_v2  ;;  %8521 = vmatprep.mubr.bf16.mxu1 %v6503_v19  ;;  %v6487_v32 = vmax.f32 %v6445_v54, 0.0 }
 0x4bc   : > { %v6447_v59 = vpop.f32.mrf.mxu0  ;;  %8522 = vmatmul.mubr.bf16.gmra.mxu1 %v6504_v27 }
 0x4bd   : > { %v6448_v8 = vadd.f32 %v11322_v2, %v6447_v59  ;;  %v6490_v38 = vmax.f32 %v6456_v46, 0.0 }
 0x4bf   : > { %v6488_v55 = vmax.f32 %v6448_v8, 0.0  ;;  %v6506_v49 = vpack.c.bf16 %v6490_v38, %v6489_v53 }
 0x4c1   : > { %v6505_v31 = vpack.c.bf16 %v6488_v55, %v6487_v32 }
 0x4c3   : > { %8525 = vmatprep.mubr.bf16.mxu1 %v6505_v31 }
 0x4c4   : > { %8526 = vmatmul.mubr.bf16.gmra.mxu1 %v6506_v49 }
 0x54c   : > { %v8499_v2 = vpop.f32.mrf.mxu1 }
 0x54d   : > { %v6621_v14 = vadd.f32 %v8499_v2, %v11361_v15 }
 0x54e   : > { %v6612_v9 = vpop.f32.mrf.mxu1 }
 0x54f   : > { %6741 = vst [vmem:[%s11366_s11 + $0x10] sm:$0xff] %v6621_v14  ;;  %v6613_v52 = vadd.f32 %v11361_v15, %v6612_v9 }
 0x550   : > { %v8500_v45 = vpop.f32.mrf.mxu1 }
 0x551   : > { %6739 = vst [vmem:[%s11366_s11] sm:$0xff] %v6613_v52  ;;  %v6624_v10 = vadd.f32 %v8500_v45, %v11361_v15 }
 0x552   : > { %v6615_v48 = vpop.f32.mrf.mxu1 }
 0x553   : > { %6742 = vst [vmem:[%s11366_s11 + $0x18] sm:$0xff] %v6624_v10  ;;  %v6616_v12 = vadd.f32 %v11361_v15, %v6615_v48 }
 0x554   : > { %v8503_v35 = vpop.f32.mrf.mxu1 }
 0x555   : > { %6740 = vst [vmem:[%s11366_s11 + $0x8] sm:$0xff] %v6616_v12  ;;  %v6637_v34 = vadd.f32 %v8503_v35, %v11361_v15 }
 0x556   : > { %v6628_v39 = vpop.f32.mrf.mxu1 }
 0x557   : > { %6745 = vst [vmem:[%s11366_s11 + $0x30] sm:$0xff] %v6637_v34  ;;  %v6629_v63 = vadd.f32 %v11361_v15, %v6628_v39 }
 0x558   : > { %v8504_v1 = vpop.f32.mrf.mxu1 }
 0x559   : > { %6743 = vst [vmem:[%s11366_s11 + $0x20] sm:$0xff] %v6629_v63  ;;  %v6640_v28 = vadd.f32 %v8504_v1, %v11361_v15 }
 0x55a   : > { %v6631_v29 = vpop.f32.mrf.mxu1 }
 0x55b   : > { %6746 = vst [vmem:[%s11366_s11 + $0x38] sm:$0xff] %v6640_v28  ;;  %v6632_v43 = vadd.f32 %v11361_v15, %v6631_v29 }
 0x55c   : > { %v8507_v23 = vpop.f32.mrf.mxu1 }
 0x55d   : > { %6744 = vst [vmem:[%s11366_s11 + $0x28] sm:$0xff] %v6632_v43  ;;  %v6653_v30 = vadd.f32 %v8507_v23, %v11361_v15 }
 0x55e   : > { %v6644_v22 = vpop.f32.mrf.mxu1 }
 0x55f   : > { %6749 = vst [vmem:[%s11366_s11 + $0x50] sm:$0xff] %v6653_v30  ;;  %v6645_v6 = vadd.f32 %v11361_v15, %v6644_v22 }
 0x560   : > { %v8508_v18 = vpop.f32.mrf.mxu1 }
 0x561   : > { %6747 = vst [vmem:[%s11366_s11 + $0x40] sm:$0xff] %v6645_v6  ;;  %v6656_v50 = vadd.f32 %v8508_v18, %v11361_v15 }
 0x562   : > { %v6647_v4 = vpop.f32.mrf.mxu1 }
 0x563   : > { %6750 = vst [vmem:[%s11366_s11 + $0x58] sm:$0xff] %v6656_v50  ;;  %v6648_v42 = vadd.f32 %v11361_v15, %v6647_v4 }
 0x564   : > { %v8511_v47 = vpop.f32.mrf.mxu1 }
 0x565   : > { %6748 = vst [vmem:[%s11366_s11 + $0x48] sm:$0xff] %v6648_v42  ;;  %v6669_v16 = vadd.f32 %v8511_v47, %v11361_v15 }
 0x566   : > { %v6660_v5 = vpop.f32.mrf.mxu1 }
 0x567   : > { %6753 = vst [vmem:[%s11366_s11 + $0x70] sm:$0xff] %v6669_v16  ;;  %v6661_v36 = vadd.f32 %v11361_v15, %v6660_v5 }
 0x568   : > { %v8512_v25 = vpop.f32.mrf.mxu1 }
 0x569   : > { %6751 = vst [vmem:[%s11366_s11 + $0x60] sm:$0xff] %v6661_v36  ;;  %v6672_v62 = vadd.f32 %v8512_v25, %v11361_v15 }
 0x56a   : > { %v6663_v7 = vpop.f32.mrf.mxu1 }
 0x56b   : > { %6754 = vst [vmem:[%s11366_s11 + $0x78] sm:$0xff] %v6672_v62  ;;  %v6664_v57 = vadd.f32 %v11361_v15, %v6663_v7 }
 0x56c   : > { %v8515_v44 = vpop.f32.mrf.mxu1 }
 0x56d   : > { %6752 = vst [vmem:[%s11366_s11 + $0x68] sm:$0xff] %v6664_v57  ;;  %v6685_v17 = vadd.f32 %v8515_v44, %v11361_v15 }
 0x56e   : > { %v6676_v33 = vpop.f32.mrf.mxu1 }
 0x56f   : > { %6757 = vst [vmem:[%s11366_s11 + $0x90] sm:$0xff] %v6685_v17  ;;  %v6677_v26 = vadd.f32 %v11361_v15, %v6676_v33 }
 0x570   : > { %v8516_v60 = vpop.f32.mrf.mxu1 }
 0x571   : > { %6755 = vst [vmem:[%s11366_s11 + $0x80] sm:$0xff] %v6677_v26  ;;  %v6688_v3 = vadd.f32 %v8516_v60, %v11361_v15 }
 0x572   : > { %v6679_v41 = vpop.f32.mrf.mxu1 }
 0x573   : > { %6758 = vst [vmem:[%s11366_s11 + $0x98] sm:$0xff] %v6688_v3  ;;  %v6680_v56 = vadd.f32 %v11361_v15, %v6679_v41 }
 0x574   : > { %v8519_v11 = vpop.f32.mrf.mxu1 }
 0x575   : > { %6756 = vst [vmem:[%s11366_s11 + $0x88] sm:$0xff] %v6680_v56  ;;  %v6701_v0 = vadd.f32 %v8519_v11, %v11361_v15 }
 0x576   : > { %v6692_v21 = vpop.f32.mrf.mxu1 }
 0x577   : > { %6761 = vst [vmem:[%s11366_s11 + $0xb0] sm:$0xff] %v6701_v0  ;;  %v6693_v20 = vadd.f32 %v11361_v15, %v6692_v21 }
 0x578   : > { %v8520_v51 = vpop.f32.mrf.mxu1 }
 0x579   : > { %6759 = vst [vmem:[%s11366_s11 + $0xa0] sm:$0xff] %v6693_v20  ;;  %v6704_v40 = vadd.f32 %v8520_v51, %v11361_v15 }
 0x57a   : > { %v6695_v58 = vpop.f32.mrf.mxu1 }
 0x57b   : > { %6762 = vst [vmem:[%s11366_s11 + $0xb8] sm:$0xff] %v6704_v40  ;;  %v6696_v24 = vadd.f32 %v11361_v15, %v6695_v58 }
 0x57c   : > { %v8523_v61 = vpop.f32.mrf.mxu1 }
 0x57d   : > { %6760 = vst [vmem:[%s11366_s11 + $0xa8] sm:$0xff] %v6696_v24  ;;  %v6717_v19 = vadd.f32 %v8523_v61, %v11361_v15 }
 0x57e   : > { %v6708_v27 = vpop.f32.mrf.mxu1 }
 0x57f   : > { %6765 = vst [vmem:[%s11366_s11 + $0xd0] sm:$0xff] %v6717_v19  ;;  %v6709_v13 = vadd.f32 %v11361_v15, %v6708_v27 }
 0x580   : > { %v8524_v54 = vpop.f32.mrf.mxu1 }
 0x581   : > { %6763 = vst [vmem:[%s11366_s11 + $0xc0] sm:$0xff] %v6709_v13  ;;  %v6720_v46 = vadd.f32 %v8524_v54, %v11361_v15 }
 0x582   : > { %v6711_v37 = vpop.f32.mrf.mxu1 }
 0x583   : > { %6766 = vst [vmem:[%s11366_s11 + $0xd8] sm:$0xff] %v6720_v46  ;;  %v6712_v59 = vadd.f32 %v11361_v15, %v6711_v37 }
 0x584   : > { %v8527_v8 = vpop.f32.mrf.mxu1 }
 0x585   : > { %6764 = vst [vmem:[%s11366_s11 + $0xc8] sm:$0xff] %v6712_v59  ;;  %v6733_v38 = vadd.f32 %v8527_v8, %v11361_v15 }
 0x586   : > { %v6724_v32 = vpop.f32.mrf.mxu1 }
 0x587   : > { %6769 = vst [vmem:[%s11366_s11 + $0xf0] sm:$0xff] %v6733_v38  ;;  %v6725_v55 = vadd.f32 %v11361_v15, %v6724_v32 }
 0x588   : > { %v8528_v53 = vpop.f32.mrf.mxu1 }
 0x589   : > { %6767 = vst [vmem:[%s11366_s11 + $0xe0] sm:$0xff] %v6725_v55  ;;  %v6736_v31 = vadd.f32 %v8528_v53, %v11361_v15 }
 0x58a   : > { %v6727_v49 = vpop.f32.mrf.mxu1 }
 0x58b   : > { %6770 = vst [vmem:[%s11366_s11 + $0xf8] sm:$0xff] %v6736_v31  ;;  %v6728_v2 = vadd.f32 %v11361_v15, %v6727_v49 }
 0x58d   : > { %6768 = vst [vmem:[%s11366_s11 + $0xe8] sm:$0xff] %v6728_v2 }
 0x58e PF: > { %s20_s13 = sadd.s32 1, %s8654_s13  }
 0x58f   : > { %p17_p5 = scmp.ge.s32.totalorder %s20_s13, 5  }
 0x591   :  { %19 = sbr.rel (!%p17_p5) target bundleno = 1 (0x1), region = 106 }

</bundles_post_ra>
